<compile_context>
chip_gen: v7x
topology: tpu7x:2x2x1
jax: 0.10.0
libtpu: 0.0.40
codegen_flags: <defaults>
</compile_context>

<pallas_src>
import functools
import numpy as np

import jax
import jax.numpy as jnp
from jax.experimental import pallas as pl
from jax.experimental.pallas import tpu as pltpu


_SQRT_2_OVER_PI = 0.7978845608028654
# Conservative scoped-VMEM limit valid on v5e/v6e (128 MiB physical) and v7x (64 MiB physical).
_VMEM_LIMIT_BYTES = 32 * 1024 * 1024


# ----------------------------------------------------------------------------- elementwise helpers
def _gelu(x):
    return 0.5 * x * (1.0 + jnp.tanh(_SQRT_2_OVER_PI * (x + 0.044715 * x * x * x)))


def _sigmoid(x):
    return 1.0 / (1.0 + jnp.exp(-x))


def _ln(y, g, b, eps):
    mu = jnp.mean(y, axis=-1, keepdims=True)
    yc = y - mu
    var = jnp.mean(yc * yc, axis=-1, keepdims=True)
    return yc * jax.lax.rsqrt(var + eps) * g + b


def _row_tile(M, target=256):
    """Largest row-tile <= target that divides M (multiple of 8 when possible)."""
    if M <= target:
        return M
    tm = target
    while tm >= 8:
        if M % tm == 0:
            return tm
        tm -= 8
    return M


# ----------------------------------------------------------------------------- embeddings LayerNorm (row-tiled)
def _layernorm_kernel(eps, x_ref, g_ref, b_ref, o_ref):
    o_ref[...] = _ln(x_ref[...], g_ref[...], b_ref[...], eps)


def layernorm(x, g, b, eps=1e-12):
    M, H = x.shape
    tm = _row_tile(M)
    return pl.pallas_call(
        functools.partial(_layernorm_kernel, eps),
        out_shape=jax.ShapeDtypeStruct((M, H), jnp.float32),
        grid=(M // tm,),
        in_specs=[pl.BlockSpec((tm, H), lambda i: (i, 0)),
                  pl.BlockSpec((1, H), lambda i: (0, 0)),
                  pl.BlockSpec((1, H), lambda i: (0, 0))],
        out_specs=pl.BlockSpec((tm, H), lambda i: (i, 0)),
        compiler_params=pltpu.CompilerParams(
            dimension_semantics=("parallel",), vmem_limit_bytes=_VMEM_LIMIT_BYTES),
    )(x, g.reshape(1, H), b.reshape(1, H))


# ----------------------------------------------------------------------------- fused QKV-proj + all-heads attention
def _qkv_attn_kernel(nh, hd, scale, x_ref, wqkv_ref, bqkv_ref, bias_ref, o_ref):
    H = nh * hd
    xb = x_ref[...].astype(jnp.bfloat16)
    # One big QKV matmul (bf16 MXU operands, f32 accumulate), then static per-head column slices.
    qkv = jnp.dot(xb, wqkv_ref[...], preferred_element_type=jnp.float32) + bqkv_ref[...]
    bias_row = bias_ref[0]                                                 # [1, T] additive key mask

    ctx_heads = []
    for h in range(nh):                                                    # nh is small & static
        q = qkv[:, h * hd:(h + 1) * hd]
        k = qkv[:, H + h * hd:H + (h + 1) * hd]
        v = qkv[:, 2 * H + h * hd:2 * H + (h + 1) * hd]
        s = jax.lax.dot_general(q.astype(jnp.bfloat16), k.astype(jnp.bfloat16),
                                (((1,), (1,)), ((), ())),
                                preferred_element_type=jnp.float32) * scale + bias_row
        m = jnp.max(s, axis=-1, keepdims=True)
        p = jnp.exp(s - m)                                                 # softmax stats in f32
        p = p * pl.reciprocal(jnp.sum(p, axis=-1, keepdims=True), approx=True)
        ctx_heads.append(jnp.dot(p.astype(jnp.bfloat16), v.astype(jnp.bfloat16),
                                 preferred_element_type=jnp.float32))
    # head-merged, lane-dense [T, H] context written in one store
    o_ref[...] = jnp.concatenate(ctx_heads, axis=-1)


def fused_qkv_attention(x2, wqkv_bf16, bqkv, bias_b1t, *, B, T, nh):
    H = x2.shape[1]
    hd = H // nh
    scale = 1.0 / float(np.sqrt(hd))
    return pl.pallas_call(
        functools.partial(_qkv_attn_kernel, nh, hd, scale),
        out_shape=jax.ShapeDtypeStruct((B * T, H), jnp.float32),
        grid=(B,),
        in_specs=[pl.BlockSpec((T, H), lambda b: (b, 0)),
                  pl.BlockSpec((H, 3 * H), lambda b: (0, 0)),
                  pl.BlockSpec((1, 3 * H), lambda b: (0, 0)),
                  pl.BlockSpec((1, 1, T), lambda b: (b, 0, 0))],
        out_specs=pl.BlockSpec((T, H), lambda b: (b, 0)),
        compiler_params=pltpu.CompilerParams(
            dimension_semantics=("parallel",), vmem_limit_bytes=_VMEM_LIMIT_BYTES),
    )(x2, wqkv_bf16, bqkv.reshape(1, 3 * H), bias_b1t)


# ----------------------------------------------------------------------------- out-proj + residual + LN (row-tiled)
def _dense_res_ln_kernel(eps, x_ref, w_ref, b_ref, r_ref, g_ref, bb_ref, o_ref):
    y = (jnp.dot(x_ref[...].astype(jnp.bfloat16), w_ref[...],
                 preferred_element_type=jnp.float32) + b_ref[...] + r_ref[...])
    o_ref[...] = _ln(y, g_ref[...], bb_ref[...], eps)


def dense_residual_layernorm(x, w_bf16, b, resid, g, beta, eps=1e-12):
    M, K = x.shape
    N = w_bf16.shape[1]
    tm = _row_tile(M)
    return pl.pallas_call(
        functools.partial(_dense_res_ln_kernel, eps),
        out_shape=jax.ShapeDtypeStruct((M, N), jnp.float32),
        grid=(M // tm,),
        in_specs=[pl.BlockSpec((tm, K), lambda i: (i, 0)),
                  pl.BlockSpec((K, N), lambda i: (0, 0)),
                  pl.BlockSpec((1, N), lambda i: (0, 0)),
                  pl.BlockSpec((tm, N), lambda i: (i, 0)),
                  pl.BlockSpec((1, N), lambda i: (0, 0)),
                  pl.BlockSpec((1, N), lambda i: (0, 0))],
        out_specs=pl.BlockSpec((tm, N), lambda i: (i, 0)),
        compiler_params=pltpu.CompilerParams(
            dimension_semantics=("parallel",), vmem_limit_bytes=_VMEM_LIMIT_BYTES),
    )(x, w_bf16, b.reshape(1, N), resid, g.reshape(1, N), beta.reshape(1, N))


# ----------------------------------------------------------------------------- fused FFN + residual + LN (row-tiled)
def _ffn_kernel(eps, x_ref, w1_ref, b1_ref, w2_ref, b2_ref, g_ref, bb_ref, o_ref):
    x = x_ref[...]
    h1 = _gelu(jnp.dot(x.astype(jnp.bfloat16), w1_ref[...],
                       preferred_element_type=jnp.float32) + b1_ref[...])
    y = (jnp.dot(h1.astype(jnp.bfloat16), w2_ref[...],
                 preferred_element_type=jnp.float32) + b2_ref[...] + x)
    o_ref[...] = _ln(y, g_ref[...], bb_ref[...], eps)


def ffn_residual_layernorm(x, w1_bf16, b1, w2_bf16, b2, g, beta, eps=1e-12):
    M, H = x.shape
    inter = w1_bf16.shape[1]
    tm = _row_tile(M)
    cost = pl.CostEstimate(
        flops=4 * M * H * inter,                       # two matmuls
        transcendentals=M * inter,                     # tanh in GELU
        bytes_accessed=2 * M * H * 4 + 2 * H * inter * 2)
    return pl.pallas_call(
        functools.partial(_ffn_kernel, eps),
        out_shape=jax.ShapeDtypeStruct((M, H), jnp.float32),
        grid=(M // tm,),
        in_specs=[pl.BlockSpec((tm, H), lambda i: (i, 0)),
                  pl.BlockSpec((H, inter), lambda i: (0, 0)),
                  pl.BlockSpec((1, inter), lambda i: (0, 0)),
                  pl.BlockSpec((inter, H), lambda i: (0, 0)),
                  pl.BlockSpec((1, H), lambda i: (0, 0)),
                  pl.BlockSpec((1, H), lambda i: (0, 0)),
                  pl.BlockSpec((1, H), lambda i: (0, 0))],
        out_specs=pl.BlockSpec((tm, H), lambda i: (i, 0)),
        compiler_params=pltpu.CompilerParams(
            dimension_semantics=("parallel",), vmem_limit_bytes=_VMEM_LIMIT_BYTES),
        cost_estimate=cost,
    )(x, w1_bf16, b1.reshape(1, inter), w2_bf16, b2.reshape(1, H),
      g.reshape(1, H), beta.reshape(1, H))


# ----------------------------------------------------------------------------- BiLSTM (both dirs) + FC -> emissions
def _lstm_cell(gates, c, Hd):
    i_g = _sigmoid(gates[:, 0 * Hd:1 * Hd])
    f_g = _sigmoid(gates[:, 1 * Hd:2 * Hd])
    g_g = jnp.tanh(gates[:, 2 * Hd:3 * Hd])
    o_g = _sigmoid(gates[:, 3 * Hd:4 * Hd])
    c_new = f_g * c + i_g * g_g
    h_new = o_g * jnp.tanh(c_new)
    return h_new, c_new


def _bilstm_emit_kernel(Bp, T, Hd, x_ref, wih_ref, bih_ref, whhblk_ref, fcw_ref, fcb_ref,
                        em_ref, xg_scr, h_scr):
    G = 4 * Hd
    # fused input projection for both directions ([fwd | bwd] gate columns, 8*Hd lanes)
    xg_scr[...] = jnp.dot(x_ref[...].astype(jnp.bfloat16), wih_ref[...],
                          preferred_element_type=jnp.float32) + bih_ref[...]
    whh_blk = whhblk_ref[...]                                   # bf16 block-diagonal [2Hd, 8Hd]

    def step(t, carry):
        hf, cf, hb, cb = carry
        tb = T - 1 - t
        rf = pl.multiple_of(t * Bp, 8)                          # sublane-aligned row starts
        rb = pl.multiple_of(tb * Bp, 8)
        xg_f = xg_scr[pl.ds(rf, Bp), 0:G]
        xg_b = xg_scr[pl.ds(rb, Bp), G:2 * G]
        # single fused recurrent matmul per step (block-diag weight, 8*Hd lane-dense output)
        h_cat = jnp.concatenate([hf, hb], axis=-1).astype(jnp.bfloat16)
        gates = (jnp.dot(h_cat, whh_blk, preferred_element_type=jnp.float32)
                 + jnp.concatenate([xg_f, xg_b], axis=-1))
        hf_n, cf_n = _lstm_cell(gates[:, 0:G], cf, Hd)
        hb_n, cb_n = _lstm_cell(gates[:, G:2 * G], cb, Hd)
        h_scr[pl.ds(rf, Bp), 0:Hd] = hf_n
        h_scr[pl.ds(rb, Bp), Hd:2 * Hd] = hb_n
        return hf_n, cf_n, hb_n, cb_n

    zero = jnp.zeros((Bp, Hd), jnp.float32)
    jax.lax.fori_loop(0, T, step, (zero, zero, zero, zero), unroll=True)

    # nn.Dropout(0.7) is identity at inference (eval mode). Emission FC from VMEM scratch,
    # output padded to a 128-lane-dense tag dimension.
    em_ref[...] = jnp.dot(h_scr[...].astype(jnp.bfloat16), fcw_ref[...],
                          preferred_element_type=jnp.float32) + fcb_ref[...]


def bilstm_emissions(x_tm_flat, w_ih_bf16, b_ih, whh_blk_bf16, fc_w_pad_bf16, fc_b_pad, *, Bp, T):
    G8 = w_ih_bf16.shape[1]
    Hd = G8 // 8
    NTP = fc_w_pad_bf16.shape[1]
    TB = x_tm_flat.shape[0]
    return pl.pallas_call(
        functools.partial(_bilstm_emit_kernel, Bp, T, Hd),
        out_shape=jax.ShapeDtypeStruct((TB, NTP), jnp.float32),
        scratch_shapes=[pltpu.VMEM((TB, G8), jnp.float32),          # projected gate inputs
                        pltpu.VMEM((TB, 2 * Hd), jnp.float32)],     # hidden states
        compiler_params=pltpu.CompilerParams(vmem_limit_bytes=_VMEM_LIMIT_BYTES),
    )(x_tm_flat, w_ih_bf16, b_ih.reshape(1, G8), whh_blk_bf16,
      fc_w_pad_bf16, fc_b_pad.reshape(1, NTP))


# ----------------------------------------------------------------------------- CRF Viterbi forward recursion
def _crf_kernel(Bp, T, nt, em_ref, mask_ref, start_ref, end_ref, trans_t_ref,
                hist_ref, final_ref):
    trans_t = trans_t_ref[...]                                    # [next j, prev i]
    score0 = start_ref[...] + em_ref[0:Bp, 0:nt]                  # [Bp, nt]

    def step(t, score):
        r = pl.multiple_of(t * Bp, 8)
        em_t = em_ref[pl.ds(r, Bp), 0:nt]
        # cand[b, j, i] = score[b, i] + transitions[i, j] + em[b, j]
        cand = score[:, None, :] + trans_t[None, :, :] + em_t[:, :, None]
        next_score = jnp.max(cand, axis=-1)
        maxv = jnp.max(cand, axis=-1, keepdims=True)
        iota = jax.lax.broadcasted_iota(jnp.int32, cand.shape, 2)
        idx = jnp.min(jnp.where(cand >= maxv, iota, nt), axis=-1).astype(jnp.int32)
        m_t = mask_ref[pl.ds(r, Bp), :]
        hist_ref[t - 1] = idx
        return jnp.where(m_t > 0.5, next_score, score)

    score = jax.lax.fori_loop(1, T, step, score0, unroll=True)
    final_ref[...] = score + end_ref[...]


def crf_viterbi(em_flat, mask_flat, crf_p, *, Bp, T, nt):
    # TODO(synk): hist last dim (nt) is below 128 lanes; tiny tensor, left unpadded.
    hist, final = pl.pallas_call(
        functools.partial(_crf_kernel, Bp, T, nt),
        out_shape=[jax.ShapeDtypeStruct((T - 1, Bp, nt), jnp.int32),
                   jax.ShapeDtypeStruct((Bp, nt), jnp.float32)],
        compiler_params=pltpu.CompilerParams(vmem_limit_bytes=_VMEM_LIMIT_BYTES),
    )(em_flat, mask_flat, crf_p["start"].reshape(1, nt), crf_p["end"].reshape(1, nt),
      crf_p["trans"].T)
    return hist, final


# ----------------------------------------------------------------------------- on-device Viterbi backtracking
def _viterbi_backtrack(final, hist, lengths):
    """final: [Bp, nt], hist: [T-1, Bp, nt] int32, lengths: [Bp] -> padded tags [Bp, T] int32."""
    Tm1 = hist.shape[0]
    last = jnp.argmax(final, axis=-1).astype(jnp.int32)

    def step(cur, t):
        h_t = hist[t]
        nxt = jnp.take_along_axis(h_t, cur[:, None], axis=1)[:, 0].astype(jnp.int32)
        cur_new = jnp.where(t <= lengths - 2, nxt, cur)
        return cur_new, cur_new

    ts = jnp.arange(Tm1 - 1, -1, -1)
    _, tags_rev = jax.lax.scan(step, last, ts)
    tags = jnp.concatenate([tags_rev[::-1], last[None, :]], axis=0).T
    return tags


# ----------------------------------------------------------------------------- full decode path (ONE jit)
@functools.partial(jax.jit, static_argnames=("num_heads",))
def _device_decode(params, input_ids, attention_mask, *, num_heads):
    B, T = input_ids.shape
    H = params["word_emb"].shape[1]
    nh = num_heads

    # -- embeddings (gather stays in XLA) + Pallas LayerNorm
    pos_ids = jnp.arange(T)
    x = (params["word_emb"][input_ids]
         + params["pos_emb"][pos_ids][None, :, :]
         + params["type_emb"][0][None, None, :])                           # [B, T, H]
    x2 = layernorm(x.reshape(B * T, H), params["emb_ln_g"], params["emb_ln_b"])

    mask_f = attention_mask.astype(jnp.float32)                            # [B, T]
    bias_b1t = ((1.0 - mask_f) * -1e9)[:, None, :]                         # [B, 1, T]

    # -- encoder layers: 3 fused pallas_calls each, no XLA ops in between
    for layer in params["layers"]:
        ctx = fused_qkv_attention(x2, layer["wqkv"], layer["bqkv"], bias_b1t,
                                  B=B, T=T, nh=nh)                         # [B*T, H] head-merged
        x2 = dense_residual_layernorm(ctx, layer["wo"], layer["bo"], x2,
                                      layer["ln1_g"], layer["ln1_b"])
        x2 = ffn_residual_layernorm(x2, layer["w1"], layer["b1"],
                                    layer["w2"], layer["b2"],
                                    layer["ln2_g"], layer["ln2_b"])

    # -- BiLSTM path: time-major layout with batch padded to a sublane multiple (8)
    Bp = max(8, ((B + 7) // 8) * 8)
    x_tm = jnp.transpose(x2.reshape(B, T, H), (1, 0, 2))                   # [T, B, H]
    x_tm = jnp.pad(x_tm, ((0, 0), (0, Bp - B), (0, 0)))                    # [T, Bp, H]
    x_tm_flat = x_tm.reshape(T * Bp, H)

    lp = params["lstm"]
    em_flat = bilstm_emissions(x_tm_flat, lp["w_ih"], lp["b_ih"], lp["whh_blk"],
                               params["fc_w_pad"], params["fc_b_pad"],
                               Bp=Bp, T=T)                                 # [T*Bp, NTP]

    # -- CRF Viterbi forward recursion
    mask_tm = jnp.pad(mask_f.T, ((0, 0), (0, Bp - B))).reshape(T * Bp, 1)
    nt = params["crf"]["trans"].shape[0]
    hist, final = crf_viterbi(em_flat, mask_tm, params["crf"], Bp=Bp, T=T, nt=nt)

    # -- on-device backtracking
    lengths = jnp.sum(attention_mask, axis=1).astype(jnp.int32)
    lengths_p = jnp.pad(lengths, (0, Bp - B))
    tags_p = _viterbi_backtrack(final, hist, lengths_p)                    # [Bp, T]
    return tags_p[:B], lengths


def bert_bilstm_crf_decode(params, input_ids, attention_mask, *, num_heads):
    tags_padded, lengths = _device_decode(params, input_ids, attention_mask,
                                          num_heads=num_heads)
    jax.block_until_ready((tags_padded, lengths))
    tags_np = np.asarray(tags_padded)
    lengths_np = np.asarray(lengths)
    return [tags_np[b, :int(lengths_np[b])].tolist() for b in range(tags_np.shape[0])]


# ----------------------------------------------------------------------------- deterministic parameter init
def init_params(key, vocab=100, H=32, nh=4, inter=64, nlayers=2, max_pos=16,
                lstm_hidden=32, num_tags=8):
    del nh  # head count is a runtime/static config, not a parameter
    ks = jax.random.split(key, 64)
    it = iter(ks)
    bf16 = jnp.bfloat16

    def nrm(shape, scale=0.02):
        return jax.random.normal(next(it), shape, jnp.float32) * scale

    def uni(shape, lo=-0.1, hi=0.1):
        return jax.random.uniform(next(it), shape, jnp.float32, lo, hi)

    params = {
        "word_emb": nrm((vocab, H)),
        "pos_emb": nrm((max_pos, H)),
        "type_emb": nrm((2, H)),
        "emb_ln_g": jnp.ones((H,), jnp.float32),
        "emb_ln_b": jnp.zeros((H,), jnp.float32),
        "layers": [],
    }
    for _ in range(nlayers):
        params["layers"].append({
            "wqkv": nrm((H, 3 * H)).astype(bf16), "bqkv": jnp.zeros((3 * H,), jnp.float32),
            "wo": nrm((H, H)).astype(bf16), "bo": jnp.zeros((H,), jnp.float32),
            "ln1_g": jnp.ones((H,), jnp.float32), "ln1_b": jnp.zeros((H,), jnp.float32),
            "w1": nrm((H, inter)).astype(bf16), "b1": jnp.zeros((inter,), jnp.float32),
            "w2": nrm((inter, H)).astype(bf16), "b2": jnp.zeros((H,), jnp.float32),
            "ln2_g": jnp.ones((H,), jnp.float32), "ln2_b": jnp.zeros((H,), jnp.float32),
        })

    Hd = lstm_hidden // 2
    whh_f = uni((Hd, 4 * Hd))
    whh_b = uni((Hd, 4 * Hd))
    whh_blk = (jnp.zeros((2 * Hd, 8 * Hd), jnp.float32)
               .at[0:Hd, 0:4 * Hd].set(whh_f)
               .at[Hd:2 * Hd, 4 * Hd:8 * Hd].set(whh_b))        # block-diagonal [fwd, bwd] recurrence
    params["lstm"] = {
        "w_ih": uni((H, 8 * Hd)).astype(bf16),    # [fwd | bwd] input->gates (i, f, g, o per dir)
        "b_ih": uni((8 * Hd,)),                   # combined (b_ih + b_hh) per direction
        "whh_blk": whh_blk.astype(bf16),
    }

    NTP = ((num_tags + 127) // 128) * 128          # lane-dense padded tag dim for emissions
    fc_w = nrm((lstm_hidden, num_tags))
    params["fc_w_pad"] = (jnp.zeros((lstm_hidden, NTP), jnp.float32)
                          .at[:, :num_tags].set(fc_w)).astype(bf16)
    params["fc_b_pad"] = jnp.zeros((NTP,), jnp.float32)

    params["crf"] = {
        "start": uni((num_tags,)),
        "end": uni((num_tags,)),
        "trans": uni((num_tags, num_tags)),
    }
    return params


# ----------------------------------------------------------------------------- main
if __name__ == "__main__":
    key = jax.random.PRNGKey(0)
    k_param, k_ids = jax.random.split(key)

    B, T = 2, 8
    vocab, H, nh, inter, nlayers = 100, 32, 4, 64, 2
    lstm_hidden, num_tags = 32, 8

    params = init_params(k_param, vocab=vocab, H=H, nh=nh, inter=inter,
                         nlayers=nlayers, max_pos=16,
                         lstm_hidden=lstm_hidden, num_tags=num_tags)

    input_ids = jax.random.randint(k_ids, (B, T), 0, vocab, dtype=jnp.int32)
    lengths = np.array([T, 6], dtype=np.int32)
    attention_mask = jnp.asarray(
        (np.arange(T)[None, :] < lengths[:, None]).astype(np.int32))

    tags = bert_bilstm_crf_decode(params, input_ids, attention_mask, num_heads=nh)
    assert len(tags) == B
    assert [len(t) for t in tags] == [int(l) for l in lengths]
    print("KERNEL_OK")
</pallas_src>

<mosaic_0001>
module attributes {stable_mosaic.version = 11 : i64} {
  func.func @_layernorm_kernel(%arg0: i32, %arg1: memref<16x32xf32, #tpu.memory_space<vmem>>, %arg2: memref<1x32xf32, #tpu.memory_space<vmem>>, %arg3: memref<1x32xf32, #tpu.memory_space<vmem>>, %arg4: memref<16x32xf32, #tpu.memory_space<vmem>>) attributes {dimension_semantics = [#tpu.dimension_semantics<parallel>], iteration_bounds = array<i64: 1>, scalar_prefetch = 0 : i64, scratch_operands = 0 : i64, tpu.core_type = #tpu.core_type<tc>, window_params = [{transform_indices = @transform_0, window_bounds = array<i64: 16, 32>}, {pipeline_mode = #tpu.pipeline_mode<synchronous>, transform_indices = @transform_1, window_bounds = array<i64: 1, 32>}, {pipeline_mode = #tpu.pipeline_mode<synchronous>, transform_indices = @transform_2, window_bounds = array<i64: 1, 32>}, {transform_indices = @transform_3, window_bounds = array<i64: 16, 32>}]} {
    %c0 = arith.constant 0 : index
    %c0_0 = arith.constant 0 : index
    %0 = vector.load %arg1[%c0, %c0_0] : memref<16x32xf32, #tpu.memory_space<vmem>>, vector<16x32xf32>
    %c0_1 = arith.constant 0 : index
    %c0_2 = arith.constant 0 : index
    %1 = vector.load %arg2[%c0_1, %c0_2] : memref<1x32xf32, #tpu.memory_space<vmem>>, vector<1x32xf32>
    %c0_3 = arith.constant 0 : index
    %c0_4 = arith.constant 0 : index
    %2 = vector.load %arg3[%c0_3, %c0_4] : memref<1x32xf32, #tpu.memory_space<vmem>>, vector<1x32xf32>
    %cst = arith.constant dense<0.000000e+00> : vector<16xf32>
    %3 = vector.multi_reduction <add>, %0, %cst [1] : vector<16x32xf32> to vector<16xf32>
    %4 = vector.shape_cast %3 : vector<16xf32> to vector<16x1xf32>
    %cst_5 = arith.constant 3.200000e+01 : f32
    %5 = vector.broadcast %cst_5 : f32 to vector<16x1xf32>
    %6 = arith.divf %4, %5 : vector<16x1xf32>
    %7 = vector.broadcast %6 : vector<16x1xf32> to vector<16x32xf32>
    %8 = arith.subf %0, %7 : vector<16x32xf32>
    %9 = arith.mulf %8, %8 : vector<16x32xf32>
    %cst_6 = arith.constant dense<0.000000e+00> : vector<16xf32>
    %10 = vector.multi_reduction <add>, %9, %cst_6 [1] : vector<16x32xf32> to vector<16xf32>
    %11 = vector.shape_cast %10 : vector<16xf32> to vector<16x1xf32>
    %cst_7 = arith.constant 3.200000e+01 : f32
    %12 = vector.broadcast %cst_7 : f32 to vector<16x1xf32>
    %13 = arith.divf %11, %12 : vector<16x1xf32>
    %cst_8 = arith.constant 9.99999996E-13 : f32
    %14 = vector.broadcast %cst_8 : f32 to vector<16x1xf32>
    %15 = arith.addf %13, %14 : vector<16x1xf32>
    %16 = math.rsqrt %15 : vector<16x1xf32>
    %17 = vector.broadcast %16 : vector<16x1xf32> to vector<16x32xf32>
    %18 = arith.mulf %8, %17 : vector<16x32xf32>
    %19 = vector.broadcast %1 : vector<1x32xf32> to vector<16x32xf32>
    %20 = arith.mulf %18, %19 : vector<16x32xf32>
    %21 = vector.broadcast %2 : vector<1x32xf32> to vector<16x32xf32>
    %22 = arith.addf %20, %21 : vector<16x32xf32>
    %c0_9 = arith.constant 0 : index
    %c0_10 = arith.constant 0 : index
    %23 = vector.load %arg4[%c0_9, %c0_10] : memref<16x32xf32, #tpu.memory_space<vmem>>, vector<16x32xf32>
    tpu.vector_store %arg4[%c0_9, %c0_10], %22 {strides = array<i32>} : memref<16x32xf32, #tpu.memory_space<vmem>>, vector<16x32xf32>,
    return
  }
  func.func @transform_0(%arg0: i32) -> (i32, i32) {
    %c0_i32 = arith.constant 0 : i32
    %c0_i32_0 = arith.constant 0 : i32
    return %arg0, %c0_i32 : i32, i32
  }
  func.func @transform_1(%arg0: i32) -> (i32, i32) {
    %c0_i32 = arith.constant 0 : i32
    %c0_i32_0 = arith.constant 0 : i32
    %c0_i32_1 = arith.constant 0 : i32
    return %c0_i32, %c0_i32_0 : i32, i32
  }
  func.func @transform_2(%arg0: i32) -> (i32, i32) {
    %c0_i32 = arith.constant 0 : i32
    %c0_i32_0 = arith.constant 0 : i32
    %c0_i32_1 = arith.constant 0 : i32
    return %c0_i32, %c0_i32_0 : i32, i32
  }
  func.func @transform_3(%arg0: i32) -> (i32, i32) {
    %c0_i32 = arith.constant 0 : i32
    %c0_i32_0 = arith.constant 0 : i32
    return %arg0, %c0_i32 : i32, i32
  }
}

module attributes {stable_mosaic.version = 11 : i64} {
  func.func @_qkv_attn_kernel(%arg0: i32, %arg1: memref<8x32xf32, #tpu.memory_space<vmem>>, %arg2: memref<32x96xbf16, #tpu.memory_space<vmem>>, %arg3: memref<1x96xf32, #tpu.memory_space<vmem>>, %arg4: memref<1x1x8xf32, #tpu.memory_space<vmem>>, %arg5: memref<8x32xf32, #tpu.memory_space<vmem>>) attributes {dimension_semantics = [#tpu.dimension_semantics<parallel>], iteration_bounds = array<i64: 2>, scalar_prefetch = 0 : i64, scratch_operands = 0 : i64, tpu.core_type = #tpu.core_type<tc>, window_params = [{transform_indices = @transform_0, window_bounds = array<i64: 8, 32>}, {pipeline_mode = #tpu.pipeline_mode<synchronous>, transform_indices = @transform_1, window_bounds = array<i64: 32, 96>}, {pipeline_mode = #tpu.pipeline_mode<synchronous>, transform_indices = @transform_2, window_bounds = array<i64: 1, 96>}, {transform_indices = @transform_3, window_bounds = array<i64: 1, 1, 8>}, {transform_indices = @transform_4, window_bounds = array<i64: 8, 32>}]} {
    %c0 = arith.constant 0 : index
    %c0_0 = arith.constant 0 : index
    %0 = vector.load %arg1[%c0, %c0_0] : memref<8x32xf32, #tpu.memory_space<vmem>>, vector<8x32xf32>
    %1 = arith.truncf %0 : vector<8x32xf32> to vector<8x32xbf16>
    %c0_1 = arith.constant 0 : index
    %c0_2 = arith.constant 0 : index
    %2 = vector.load %arg2[%c0_1, %c0_2] : memref<32x96xbf16, #tpu.memory_space<vmem>>, vector<32x96xbf16>
    %cst = arith.constant dense<0.000000e+00> : vector<8x96xf32>
    %3 = tpu.matmul %1, %2, %cst {dimension_numbers = #tpu.dot_dimension_numbers<[1], [0], [0], [1], [0, 0, 1, 1], [], []>} : vector<8x32xbf16>, vector<32x96xbf16>, vector<8x96xf32> -> vector<8x96xf32>
    %c0_3 = arith.constant 0 : index
    %c0_4 = arith.constant 0 : index
    %4 = vector.load %arg3[%c0_3, %c0_4] : memref<1x96xf32, #tpu.memory_space<vmem>>, vector<1x96xf32>
    %5 = vector.broadcast %4 : vector<1x96xf32> to vector<8x96xf32>
    %6 = arith.addf %3, %5 : vector<8x96xf32>
    %c0_5 = arith.constant 0 : index
    %c0_6 = arith.constant 0 : index
    %c0_7 = arith.constant 0 : index
    %7 = vector.load %arg4[%c0_5, %c0_6, %c0_7] : memref<1x1x8xf32, #tpu.memory_space<vmem>>, vector<1x1x8xf32>
    %8 = vector.shape_cast %7 : vector<1x1x8xf32> to vector<1x8xf32>
    %9 = vector.extract_strided_slice %6 {offsets = [0, 0], sizes = [8, 8], strides = [1, 1]} : vector<8x96xf32> to vector<8x8xf32>
    %10 = vector.extract_strided_slice %6 {offsets = [0, 32], sizes = [8, 8], strides = [1, 1]} : vector<8x96xf32> to vector<8x8xf32>
    %11 = vector.extract_strided_slice %6 {offsets = [0, 64], sizes = [8, 8], strides = [1, 1]} : vector<8x96xf32> to vector<8x8xf32>
    %12 = arith.truncf %9 : vector<8x8xf32> to vector<8x8xbf16>
    %13 = arith.truncf %10 : vector<8x8xf32> to vector<8x8xbf16>
    %cst_8 = arith.constant dense<0.000000e+00> : vector<8x8xf32>
    %14 = tpu.matmul %12, %13, %cst_8 {dimension_numbers = #tpu.dot_dimension_numbers<[1], [1], [0], [0], [0, 0, 1, 0], [], []>} : vector<8x8xbf16>, vector<8x8xbf16>, vector<8x8xf32> -> vector<8x8xf32>
    %cst_9 = arith.constant 0.353553385 : f32
    %15 = vector.broadcast %cst_9 : f32 to vector<8x8xf32>
    %16 = arith.mulf %14, %15 : vector<8x8xf32>
    %17 = vector.broadcast %8 : vector<1x8xf32> to vector<8x8xf32>
    %18 = arith.addf %16, %17 : vector<8x8xf32>
    %cst_10 = arith.constant dense<0xFF800000> : vector<8xf32>
    %19 = vector.multi_reduction <maximumf>, %18, %cst_10 [1] : vector<8x8xf32> to vector<8xf32>
    %20 = vector.shape_cast %19 : vector<8xf32> to vector<8x1xf32>
    %21 = vector.broadcast %20 : vector<8x1xf32> to vector<8x8xf32>
    %22 = arith.subf %18, %21 : vector<8x8xf32>
    %23 = math.exp %22 : vector<8x8xf32>
    %cst_11 = arith.constant dense<0.000000e+00> : vector<8xf32>
    %24 = vector.multi_reduction <add>, %23, %cst_11 [1] : vector<8x8xf32> to vector<8xf32>
    %25 = vector.shape_cast %24 : vector<8xf32> to vector<8x1xf32>
    %26 = tpu.reciprocal %25 {approx = true} : vector<8x1xf32> -> vector<8x1xf32>
    %27 = vector.broadcast %26 : vector<8x1xf32> to vector<8x8xf32>
    %28 = arith.mulf %23, %27 : vector<8x8xf32>
    %29 = arith.truncf %28 : vector<8x8xf32> to vector<8x8xbf16>
    %30 = arith.truncf %11 : vector<8x8xf32> to vector<8x8xbf16>
    %cst_12 = arith.constant dense<0.000000e+00> : vector<8x8xf32>
    %31 = tpu.matmul %29, %30, %cst_12 {dimension_numbers = #tpu.dot_dimension_numbers<[1], [0], [0], [1], [0, 0, 1, 1], [], []>} : vector<8x8xbf16>, vector<8x8xbf16>, vector<8x8xf32> -> vector<8x8xf32>
    %32 = vector.extract_strided_slice %6 {offsets = [0, 8], sizes = [8, 8], strides = [1, 1]} : vector<8x96xf32> to vector<8x8xf32>
    %33 = vector.extract_strided_slice %6 {offsets = [0, 40], sizes = [8, 8], strides = [1, 1]} : vector<8x96xf32> to vector<8x8xf32>
    %34 = vector.extract_strided_slice %6 {offsets = [0, 72], sizes = [8, 8], strides = [1, 1]} : vector<8x96xf32> to vector<8x8xf32>
    %35 = arith.truncf %32 : vector<8x8xf32> to vector<8x8xbf16>
    %36 = arith.truncf %33 : vector<8x8xf32> to vector<8x8xbf16>
    %cst_13 = arith.constant dense<0.000000e+00> : vector<8x8xf32>
    %37 = tpu.matmul %35, %36, %cst_13 {dimension_numbers = #tpu.dot_dimension_numbers<[1], [1], [0], [0], [0, 0, 1, 0], [], []>} : vector<8x8xbf16>, vector<8x8xbf16>, vector<8x8xf32> -> vector<8x8xf32>
    %cst_14 = arith.constant 0.353553385 : f32
    %38 = vector.broadcast %cst_14 : f32 to vector<8x8xf32>
    %39 = arith.mulf %37, %38 : vector<8x8xf32>
    %40 = vector.broadcast %8 : vector<1x8xf32> to vector<8x8xf32>
    %41 = arith.addf %39, %40 : vector<8x8xf32>
    %cst_15 = arith.constant dense<0xFF800000> : vector<8xf32>
    %42 = vector.multi_reduction <maximumf>, %41, %cst_15 [1] : vector<8x8xf32> to vector<8xf32>
    %43 = vector.shape_cast %42 : vector<8xf32> to vector<8x1xf32>
    %44 = vector.broadcast %43 : vector<8x1xf32> to vector<8x8xf32>
    %45 = arith.subf %41, %44 : vector<8x8xf32>
    %46 = math.exp %45 : vector<8x8xf32>
    %cst_16 = arith.constant dense<0.000000e+00> : vector<8xf32>
    %47 = vector.multi_reduction <add>, %46, %cst_16 [1] : vector<8x8xf32> to vector<8xf32>
    %48 = vector.shape_cast %47 : vector<8xf32> to vector<8x1xf32>
    %49 = tpu.reciprocal %48 {approx = true} : vector<8x1xf32> -> vector<8x1xf32>
    %50 = vector.broadcast %49 : vector<8x1xf32> to vector<8x8xf32>
    %51 = arith.mulf %46, %50 : vector<8x8xf32>
    %52 = arith.truncf %51 : vector<8x8xf32> to vector<8x8xbf16>
    %53 = arith.truncf %34 : vector<8x8xf32> to vector<8x8xbf16>
    %cst_17 = arith.constant dense<0.000000e+00> : vector<8x8xf32>
    %54 = tpu.matmul %52, %53, %cst_17 {dimension_numbers = #tpu.dot_dimension_numbers<[1], [0], [0], [1], [0, 0, 1, 1], [], []>} : vector<8x8xbf16>, vector<8x8xbf16>, vector<8x8xf32> -> vector<8x8xf32>
    %55 = vector.extract_strided_slice %6 {offsets = [0, 16], sizes = [8, 8], strides = [1, 1]} : vector<8x96xf32> to vector<8x8xf32>
    %56 = vector.extract_strided_slice %6 {offsets = [0, 48], sizes = [8, 8], strides = [1, 1]} : vector<8x96xf32> to vector<8x8xf32>
    %57 = vector.extract_strided_slice %6 {offsets = [0, 80], sizes = [8, 8], strides = [1, 1]} : vector<8x96xf32> to vector<8x8xf32>
    %58 = arith.truncf %55 : vector<8x8xf32> to vector<8x8xbf16>
    %59 = arith.truncf %56 : vector<8x8xf32> to vector<8x8xbf16>
    %cst_18 = arith.constant dense<0.000000e+00> : vector<8x8xf32>
    %60 = tpu.matmul %58, %59, %cst_18 {dimension_numbers = #tpu.dot_dimension_numbers<[1], [1], [0], [0], [0, 0, 1, 0], [], []>} : vector<8x8xbf16>, vector<8x8xbf16>, vector<8x8xf32> -> vector<8x8xf32>
    %cst_19 = arith.constant 0.353553385 : f32
    %61 = vector.broadcast %cst_19 : f32 to vector<8x8xf32>
    %62 = arith.mulf %60, %61 : vector<8x8xf32>
    %63 = vector.broadcast %8 : vector<1x8xf32> to vector<8x8xf32>
    %64 = arith.addf %62, %63 : vector<8x8xf32>
    %cst_20 = arith.constant dense<0xFF800000> : vector<8xf32>
    %65 = vector.multi_reduction <maximumf>, %64, %cst_20 [1] : vector<8x8xf32> to vector<8xf32>
    %66 = vector.shape_cast %65 : vector<8xf32> to vector<8x1xf32>
    %67 = vector.broadcast %66 : vector<8x1xf32> to vector<8x8xf32>
    %68 = arith.subf %64, %67 : vector<8x8xf32>
    %69 = math.exp %68 : vector<8x8xf32>
    %cst_21 = arith.constant dense<0.000000e+00> : vector<8xf32>
    %70 = vector.multi_reduction <add>, %69, %cst_21 [1] : vector<8x8xf32> to vector<8xf32>
    %71 = vector.shape_cast %70 : vector<8xf32> to vector<8x1xf32>
    %72 = tpu.reciprocal %71 {approx = true} : vector<8x1xf32> -> vector<8x1xf32>
    %73 = vector.broadcast %72 : vector<8x1xf32> to vector<8x8xf32>
    %74 = arith.mulf %69, %73 : vector<8x8xf32>
    %75 = arith.truncf %74 : vector<8x8xf32> to vector<8x8xbf16>
    %76 = arith.truncf %57 : vector<8x8xf32> to vector<8x8xbf16>
    %cst_22 = arith.constant dense<0.000000e+00> : vector<8x8xf32>
    %77 = tpu.matmul %75, %76, %cst_22 {dimension_numbers = #tpu.dot_dimension_numbers<[1], [0], [0], [1], [0, 0, 1, 1], [], []>} : vector<8x8xbf16>, vector<8x8xbf16>, vector<8x8xf32> -> vector<8x8xf32>
    %78 = vector.extract_strided_slice %6 {offsets = [0, 24], sizes = [8, 8], strides = [1, 1]} : vector<8x96xf32> to vector<8x8xf32>
    %79 = vector.extract_strided_slice %6 {offsets = [0, 56], sizes = [8, 8], strides = [1, 1]} : vector<8x96xf32> to vector<8x8xf32>
    %80 = vector.extract_strided_slice %6 {offsets = [0, 88], sizes = [8, 8], strides = [1, 1]} : vector<8x96xf32> to vector<8x8xf32>
    %81 = arith.truncf %78 : vector<8x8xf32> to vector<8x8xbf16>
    %82 = arith.truncf %79 : vector<8x8xf32> to vector<8x8xbf16>
    %cst_23 = arith.constant dense<0.000000e+00> : vector<8x8xf32>
    %83 = tpu.matmul %81, %82, %cst_23 {dimension_numbers = #tpu.dot_dimension_numbers<[1], [1], [0], [0], [0, 0, 1, 0], [], []>} : vector<8x8xbf16>, vector<8x8xbf16>, vector<8x8xf32> -> vector<8x8xf32>
    %cst_24 = arith.constant 0.353553385 : f32
    %84 = vector.broadcast %cst_24 : f32 to vector<8x8xf32>
    %85 = arith.mulf %83, %84 : vector<8x8xf32>
    %86 = vector.broadcast %8 : vector<1x8xf32> to vector<8x8xf32>
    %87 = arith.addf %85, %86 : vector<8x8xf32>
    %cst_25 = arith.constant dense<0xFF800000> : vector<8xf32>
    %88 = vector.multi_reduction <maximumf>, %87, %cst_25 [1] : vector<8x8xf32> to vector<8xf32>
    %89 = vector.shape_cast %88 : vector<8xf32> to vector<8x1xf32>
    %90 = vector.broadcast %89 : vector<8x1xf32> to vector<8x8xf32>
    %91 = arith.subf %87, %90 : vector<8x8xf32>
    %92 = math.exp %91 : vector<8x8xf32>
    %cst_26 = arith.constant dense<0.000000e+00> : vector<8xf32>
    %93 = vector.multi_reduction <add>, %92, %cst_26 [1] : vector<8x8xf32> to vector<8xf32>
    %94 = vector.shape_cast %93 : vector<8xf32> to vector<8x1xf32>
    %95 = tpu.reciprocal %94 {approx = true} : vector<8x1xf32> -> vector<8x1xf32>
    %96 = vector.broadcast %95 : vector<8x1xf32> to vector<8x8xf32>
    %97 = arith.mulf %92, %96 : vector<8x8xf32>
    %98 = arith.truncf %97 : vector<8x8xf32> to vector<8x8xbf16>
    %99 = arith.truncf %80 : vector<8x8xf32> to vector<8x8xbf16>
    %cst_27 = arith.constant dense<0.000000e+00> : vector<8x8xf32>
    %100 = tpu.matmul %98, %99, %cst_27 {dimension_numbers = #tpu.dot_dimension_numbers<[1], [0], [0], [1], [0, 0, 1, 1], [], []>} : vector<8x8xbf16>, vector<8x8xbf16>, vector<8x8xf32> -> vector<8x8xf32>
    %101 = tpu.concatenate %31, %54, %77, %100 in 1 : vector<8x8xf32>, vector<8x8xf32>, vector<8x8xf32>, vector<8x8xf32> -> vector<8x32xf32>
    %c0_28 = arith.constant 0 : index
    %c0_29 = arith.constant 0 : index
    %102 = vector.load %arg5[%c0_28, %c0_29] : memref<8x32xf32, #tpu.memory_space<vmem>>, vector<8x32xf32>
    tpu.vector_store %arg5[%c0_28, %c0_29], %101 {strides = array<i32>} : memref<8x32xf32, #tpu.memory_space<vmem>>, vector<8x32xf32>,
    return
  }
  func.func @transform_0(%arg0: i32) -> (i32, i32) {
    %c0_i32 = arith.constant 0 : i32
    %c0_i32_0 = arith.constant 0 : i32
    return %arg0, %c0_i32 : i32, i32
  }
  func.func @transform_1(%arg0: i32) -> (i32, i32) {
    %c0_i32 = arith.constant 0 : i32
    %c0_i32_0 = arith.constant 0 : i32
    %c0_i32_1 = arith.constant 0 : i32
    return %c0_i32, %c0_i32_0 : i32, i32
  }
  func.func @transform_2(%arg0: i32) -> (i32, i32) {
    %c0_i32 = arith.constant 0 : i32
    %c0_i32_0 = arith.constant 0 : i32
    %c0_i32_1 = arith.constant 0 : i32
    return %c0_i32, %c0_i32_0 : i32, i32
  }
  func.func @transform_3(%arg0: i32) -> (i32, i32, i32) {
    %c0_i32 = arith.constant 0 : i32
    %c0_i32_0 = arith.constant 0 : i32
    %c0_i32_1 = arith.constant 0 : i32
    return %arg0, %c0_i32, %c0_i32_0 : i32, i32, i32
  }
  func.func @transform_4(%arg0: i32) -> (i32, i32) {
    %c0_i32 = arith.constant 0 : i32
    %c0_i32_0 = arith.constant 0 : i32
    return %arg0, %c0_i32 : i32, i32
  }
}

module attributes {stable_mosaic.version = 11 : i64} {
  func.func @_dense_res_ln_kernel(%arg0: i32, %arg1: memref<16x32xf32, #tpu.memory_space<vmem>>, %arg2: memref<32x32xbf16, #tpu.memory_space<vmem>>, %arg3: memref<1x32xf32, #tpu.memory_space<vmem>>, %arg4: memref<16x32xf32, #tpu.memory_space<vmem>>, %arg5: memref<1x32xf32, #tpu.memory_space<vmem>>, %arg6: memref<1x32xf32, #tpu.memory_space<vmem>>, %arg7: memref<16x32xf32, #tpu.memory_space<vmem>>) attributes {dimension_semantics = [#tpu.dimension_semantics<parallel>], iteration_bounds = array<i64: 1>, scalar_prefetch = 0 : i64, scratch_operands = 0 : i64, tpu.core_type = #tpu.core_type<tc>, window_params = [{transform_indices = @transform_0, window_bounds = array<i64: 16, 32>}, {pipeline_mode = #tpu.pipeline_mode<synchronous>, transform_indices = @transform_1, window_bounds = array<i64: 32, 32>}, {pipeline_mode = #tpu.pipeline_mode<synchronous>, transform_indices = @transform_2, window_bounds = array<i64: 1, 32>}, {transform_indices = @transform_3, window_bounds = array<i64: 16, 32>}, {pipeline_mode = #tpu.pipeline_mode<synchronous>, transform_indices = @transform_4, window_bounds = array<i64: 1, 32>}, {pipeline_mode = #tpu.pipeline_mode<synchronous>, transform_indices = @transform_5, window_bounds = array<i64: 1, 32>}, {transform_indices = @transform_6, window_bounds = array<i64: 16, 32>}]} {
    %c0 = arith.constant 0 : index
    %c0_0 = arith.constant 0 : index
    %0 = vector.load %arg1[%c0, %c0_0] : memref<16x32xf32, #tpu.memory_space<vmem>>, vector<16x32xf32>
    %1 = arith.truncf %0 : vector<16x32xf32> to vector<16x32xbf16>
    %c0_1 = arith.constant 0 : index
    %c0_2 = arith.constant 0 : index
    %2 = vector.load %arg2[%c0_1, %c0_2] : memref<32x32xbf16, #tpu.memory_space<vmem>>, vector<32x32xbf16>
    %cst = arith.constant dense<0.000000e+00> : vector<16x32xf32>
    %3 = tpu.matmul %1, %2, %cst {dimension_numbers = #tpu.dot_dimension_numbers<[1], [0], [0], [1], [0, 0, 1, 1], [], []>} : vector<16x32xbf16>, vector<32x32xbf16>, vector<16x32xf32> -> vector<16x32xf32>
    %c0_3 = arith.constant 0 : index
    %c0_4 = arith.constant 0 : index
    %4 = vector.load %arg3[%c0_3, %c0_4] : memref<1x32xf32, #tpu.memory_space<vmem>>, vector<1x32xf32>
    %5 = vector.broadcast %4 : vector<1x32xf32> to vector<16x32xf32>
    %6 = arith.addf %3, %5 : vector<16x32xf32>
    %c0_5 = arith.constant 0 : index
    %c0_6 = arith.constant 0 : index
    %7 = vector.load %arg4[%c0_5, %c0_6] : memref<16x32xf32, #tpu.memory_space<vmem>>, vector<16x32xf32>
    %8 = arith.addf %6, %7 : vector<16x32xf32>
    %c0_7 = arith.constant 0 : index
    %c0_8 = arith.constant 0 : index
    %9 = vector.load %arg5[%c0_7, %c0_8] : memref<1x32xf32, #tpu.memory_space<vmem>>, vector<1x32xf32>
    %c0_9 = arith.constant 0 : index
    %c0_10 = arith.constant 0 : index
    %10 = vector.load %arg6[%c0_9, %c0_10] : memref<1x32xf32, #tpu.memory_space<vmem>>, vector<1x32xf32>
    %cst_11 = arith.constant dense<0.000000e+00> : vector<16xf32>
    %11 = vector.multi_reduction <add>, %8, %cst_11 [1] : vector<16x32xf32> to vector<16xf32>
    %12 = vector.shape_cast %11 : vector<16xf32> to vector<16x1xf32>
    %cst_12 = arith.constant 3.200000e+01 : f32
    %13 = vector.broadcast %cst_12 : f32 to vector<16x1xf32>
    %14 = arith.divf %12, %13 : vector<16x1xf32>
    %15 = vector.broadcast %14 : vector<16x1xf32> to vector<16x32xf32>
    %16 = arith.subf %8, %15 : vector<16x32xf32>
    %17 = arith.mulf %16, %16 : vector<16x32xf32>
    %cst_13 = arith.constant dense<0.000000e+00> : vector<16xf32>
    %18 = vector.multi_reduction <add>, %17, %cst_13 [1] : vector<16x32xf32> to vector<16xf32>
    %19 = vector.shape_cast %18 : vector<16xf32> to vector<16x1xf32>
    %cst_14 = arith.constant 3.200000e+01 : f32
    %20 = vector.broadcast %cst_14 : f32 to vector<16x1xf32>
    %21 = arith.divf %19, %20 : vector<16x1xf32>
    %cst_15 = arith.constant 9.99999996E-13 : f32
    %22 = vector.broadcast %cst_15 : f32 to vector<16x1xf32>
    %23 = arith.addf %21, %22 : vector<16x1xf32>
    %24 = math.rsqrt %23 : vector<16x1xf32>
    %25 = vector.broadcast %24 : vector<16x1xf32> to vector<16x32xf32>
    %26 = arith.mulf %16, %25 : vector<16x32xf32>
    %27 = vector.broadcast %9 : vector<1x32xf32> to vector<16x32xf32>
    %28 = arith.mulf %26, %27 : vector<16x32xf32>
    %29 = vector.broadcast %10 : vector<1x32xf32> to vector<16x32xf32>
    %30 = arith.addf %28, %29 : vector<16x32xf32>
    %c0_16 = arith.constant 0 : index
    %c0_17 = arith.constant 0 : index
    %31 = vector.load %arg7[%c0_16, %c0_17] : memref<16x32xf32, #tpu.memory_space<vmem>>, vector<16x32xf32>
    tpu.vector_store %arg7[%c0_16, %c0_17], %30 {strides = array<i32>} : memref<16x32xf32, #tpu.memory_space<vmem>>, vector<16x32xf32>,
    return
  }
  func.func @transform_0(%arg0: i32) -> (i32, i32) {
    %c0_i32 = arith.constant 0 : i32
    %c0_i32_0 = arith.constant 0 : i32
    return %arg0, %c0_i32 : i32, i32
  }
  func.func @transform_1(%arg0: i32) -> (i32, i32) {
    %c0_i32 = arith.constant 0 : i32
    %c0_i32_0 = arith.constant 0 : i32
    %c0_i32_1 = arith.constant 0 : i32
    return %c0_i32, %c0_i32_0 : i32, i32
  }
  func.func @transform_2(%arg0: i32) -> (i32, i32) {
    %c0_i32 = arith.constant 0 : i32
    %c0_i32_0 = arith.constant 0 : i32
    %c0_i32_1 = arith.constant 0 : i32
    return %c0_i32, %c0_i32_0 : i32, i32
  }
  func.func @transform_3(%arg0: i32) -> (i32, i32) {
    %c0_i32 = arith.constant 0 : i32
    %c0_i32_0 = arith.constant 0 : i32
    return %arg0, %c0_i32 : i32, i32
  }
  func.func @transform_4(%arg0: i32) -> (i32, i32) {
    %c0_i32 = arith.constant 0 : i32
    %c0_i32_0 = arith.constant 0 : i32
    %c0_i32_1 = arith.constant 0 : i32
    return %c0_i32, %c0_i32_0 : i32, i32
  }
  func.func @transform_5(%arg0: i32) -> (i32, i32) {
    %c0_i32 = arith.constant 0 : i32
    %c0_i32_0 = arith.constant 0 : i32
    %c0_i32_1 = arith.constant 0 : i32
    return %c0_i32, %c0_i32_0 : i32, i32
  }
  func.func @transform_6(%arg0: i32) -> (i32, i32) {
    %c0_i32 = arith.constant 0 : i32
    %c0_i32_0 = arith.constant 0 : i32
    return %arg0, %c0_i32 : i32, i32
  }
}

module attributes {stable_mosaic.version = 11 : i64} {
  func.func @_ffn_kernel(%arg0: i32, %arg1: memref<16x32xf32, #tpu.memory_space<vmem>>, %arg2: memref<32x64xbf16, #tpu.memory_space<vmem>>, %arg3: memref<1x64xf32, #tpu.memory_space<vmem>>, %arg4: memref<64x32xbf16, #tpu.memory_space<vmem>>, %arg5: memref<1x32xf32, #tpu.memory_space<vmem>>, %arg6: memref<1x32xf32, #tpu.memory_space<vmem>>, %arg7: memref<1x32xf32, #tpu.memory_space<vmem>>, %arg8: memref<16x32xf32, #tpu.memory_space<vmem>>) attributes {dimension_semantics = [#tpu.dimension_semantics<parallel>], iteration_bounds = array<i64: 1>, scalar_prefetch = 0 : i64, scratch_operands = 0 : i64, tpu.core_type = #tpu.core_type<tc>, window_params = [{transform_indices = @transform_0, window_bounds = array<i64: 16, 32>}, {pipeline_mode = #tpu.pipeline_mode<synchronous>, transform_indices = @transform_1, window_bounds = array<i64: 32, 64>}, {pipeline_mode = #tpu.pipeline_mode<synchronous>, transform_indices = @transform_2, window_bounds = array<i64: 1, 64>}, {pipeline_mode = #tpu.pipeline_mode<synchronous>, transform_indices = @transform_3, window_bounds = array<i64: 64, 32>}, {pipeline_mode = #tpu.pipeline_mode<synchronous>, transform_indices = @transform_4, window_bounds = array<i64: 1, 32>}, {pipeline_mode = #tpu.pipeline_mode<synchronous>, transform_indices = @transform_5, window_bounds = array<i64: 1, 32>}, {pipeline_mode = #tpu.pipeline_mode<synchronous>, transform_indices = @transform_6, window_bounds = array<i64: 1, 32>}, {transform_indices = @transform_7, window_bounds = array<i64: 16, 32>}]} {
    %c0 = arith.constant 0 : index
    %c0_0 = arith.constant 0 : index
    %0 = vector.load %arg1[%c0, %c0_0] : memref<16x32xf32, #tpu.memory_space<vmem>>, vector<16x32xf32>
    %1 = arith.truncf %0 : vector<16x32xf32> to vector<16x32xbf16>
    %c0_1 = arith.constant 0 : index
    %c0_2 = arith.constant 0 : index
    %2 = vector.load %arg2[%c0_1, %c0_2] : memref<32x64xbf16, #tpu.memory_space<vmem>>, vector<32x64xbf16>
    %cst = arith.constant dense<0.000000e+00> : vector<16x64xf32>
    %3 = tpu.matmul %1, %2, %cst {dimension_numbers = #tpu.dot_dimension_numbers<[1], [0], [0], [1], [0, 0, 1, 1], [], []>} : vector<16x32xbf16>, vector<32x64xbf16>, vector<16x64xf32> -> vector<16x64xf32>
    %c0_3 = arith.constant 0 : index
    %c0_4 = arith.constant 0 : index
    %4 = vector.load %arg3[%c0_3, %c0_4] : memref<1x64xf32, #tpu.memory_space<vmem>>, vector<1x64xf32>
    %5 = vector.broadcast %4 : vector<1x64xf32> to vector<16x64xf32>
    %6 = arith.addf %3, %5 : vector<16x64xf32>
    %cst_5 = arith.constant 5.000000e-01 : f32
    %7 = vector.broadcast %cst_5 : f32 to vector<16x64xf32>
    %8 = arith.mulf %7, %6 : vector<16x64xf32>
    %cst_6 = arith.constant 4.471500e-02 : f32
    %9 = vector.broadcast %cst_6 : f32 to vector<16x64xf32>
    %10 = arith.mulf %9, %6 : vector<16x64xf32>
    %11 = arith.mulf %10, %6 : vector<16x64xf32>
    %12 = arith.mulf %11, %6 : vector<16x64xf32>
    %13 = arith.addf %6, %12 : vector<16x64xf32>
    %cst_7 = arith.constant 0.797884583 : f32
    %14 = vector.broadcast %cst_7 : f32 to vector<16x64xf32>
    %15 = arith.mulf %14, %13 : vector<16x64xf32>
    %16 = math.tanh %15 : vector<16x64xf32>
    %cst_8 = arith.constant 1.000000e+00 : f32
    %17 = vector.broadcast %cst_8 : f32 to vector<16x64xf32>
    %18 = arith.addf %17, %16 : vector<16x64xf32>
    %19 = arith.mulf %8, %18 : vector<16x64xf32>
    %20 = arith.truncf %19 : vector<16x64xf32> to vector<16x64xbf16>
    %c0_9 = arith.constant 0 : index
    %c0_10 = arith.constant 0 : index
    %21 = vector.load %arg4[%c0_9, %c0_10] : memref<64x32xbf16, #tpu.memory_space<vmem>>, vector<64x32xbf16>
    %cst_11 = arith.constant dense<0.000000e+00> : vector<16x32xf32>
    %22 = tpu.matmul %20, %21, %cst_11 {dimension_numbers = #tpu.dot_dimension_numbers<[1], [0], [0], [1], [0, 0, 1, 1], [], []>} : vector<16x64xbf16>, vector<64x32xbf16>, vector<16x32xf32> -> vector<16x32xf32>
    %c0_12 = arith.constant 0 : index
    %c0_13 = arith.constant 0 : index
    %23 = vector.load %arg5[%c0_12, %c0_13] : memref<1x32xf32, #tpu.memory_space<vmem>>, vector<1x32xf32>
    %24 = vector.broadcast %23 : vector<1x32xf32> to vector<16x32xf32>
    %25 = arith.addf %22, %24 : vector<16x32xf32>
    %26 = arith.addf %25, %0 : vector<16x32xf32>
    %c0_14 = arith.constant 0 : index
    %c0_15 = arith.constant 0 : index
    %27 = vector.load %arg6[%c0_14, %c0_15] : memref<1x32xf32, #tpu.memory_space<vmem>>, vector<1x32xf32>
    %c0_16 = arith.constant 0 : index
    %c0_17 = arith.constant 0 : index
    %28 = vector.load %arg7[%c0_16, %c0_17] : memref<1x32xf32, #tpu.memory_space<vmem>>, vector<1x32xf32>
    %cst_18 = arith.constant dense<0.000000e+00> : vector<16xf32>
    %29 = vector.multi_reduction <add>, %26, %cst_18 [1] : vector<16x32xf32> to vector<16xf32>
    %30 = vector.shape_cast %29 : vector<16xf32> to vector<16x1xf32>
    %cst_19 = arith.constant 3.200000e+01 : f32
    %31 = vector.broadcast %cst_19 : f32 to vector<16x1xf32>
    %32 = arith.divf %30, %31 : vector<16x1xf32>
    %33 = vector.broadcast %32 : vector<16x1xf32> to vector<16x32xf32>
    %34 = arith.subf %26, %33 : vector<16x32xf32>
    %35 = arith.mulf %34, %34 : vector<16x32xf32>
    %cst_20 = arith.constant dense<0.000000e+00> : vector<16xf32>
    %36 = vector.multi_reduction <add>, %35, %cst_20 [1] : vector<16x32xf32> to vector<16xf32>
    %37 = vector.shape_cast %36 : vector<16xf32> to vector<16x1xf32>
    %cst_21 = arith.constant 3.200000e+01 : f32
    %38 = vector.broadcast %cst_21 : f32 to vector<16x1xf32>
    %39 = arith.divf %37, %38 : vector<16x1xf32>
    %cst_22 = arith.constant 9.99999996E-13 : f32
    %40 = vector.broadcast %cst_22 : f32 to vector<16x1xf32>
    %41 = arith.addf %39, %40 : vector<16x1xf32>
    %42 = math.rsqrt %41 : vector<16x1xf32>
    %43 = vector.broadcast %42 : vector<16x1xf32> to vector<16x32xf32>
    %44 = arith.mulf %34, %43 : vector<16x32xf32>
    %45 = vector.broadcast %27 : vector<1x32xf32> to vector<16x32xf32>
    %46 = arith.mulf %44, %45 : vector<16x32xf32>
    %47 = vector.broadcast %28 : vector<1x32xf32> to vector<16x32xf32>
    %48 = arith.addf %46, %47 : vector<16x32xf32>
    %c0_23 = arith.constant 0 : index
    %c0_24 = arith.constant 0 : index
    %49 = vector.load %arg8[%c0_23, %c0_24] : memref<16x32xf32, #tpu.memory_space<vmem>>, vector<16x32xf32>
    tpu.vector_store %arg8[%c0_23, %c0_24], %48 {strides = array<i32>} : memref<16x32xf32, #tpu.memory_space<vmem>>, vector<16x32xf32>,
    return
  }
  func.func @transform_0(%arg0: i32) -> (i32, i32) {
    %c0_i32 = arith.constant 0 : i32
    %c0_i32_0 = arith.constant 0 : i32
    return %arg0, %c0_i32 : i32, i32
  }
  func.func @transform_1(%arg0: i32) -> (i32, i32) {
    %c0_i32 = arith.constant 0 : i32
    %c0_i32_0 = arith.constant 0 : i32
    %c0_i32_1 = arith.constant 0 : i32
    return %c0_i32, %c0_i32_0 : i32, i32
  }
  func.func @transform_2(%arg0: i32) -> (i32, i32) {
    %c0_i32 = arith.constant 0 : i32
    %c0_i32_0 = arith.constant 0 : i32
    %c0_i32_1 = arith.constant 0 : i32
    return %c0_i32, %c0_i32_0 : i32, i32
  }
  func.func @transform_3(%arg0: i32) -> (i32, i32) {
    %c0_i32 = arith.constant 0 : i32
    %c0_i32_0 = arith.constant 0 : i32
    %c0_i32_1 = arith.constant 0 : i32
    return %c0_i32, %c0_i32_0 : i32, i32
  }
  func.func @transform_4(%arg0: i32) -> (i32, i32) {
    %c0_i32 = arith.constant 0 : i32
    %c0_i32_0 = arith.constant 0 : i32
    %c0_i32_1 = arith.constant 0 : i32
    return %c0_i32, %c0_i32_0 : i32, i32
  }
  func.func @transform_5(%arg0: i32) -> (i32, i32) {
    %c0_i32 = arith.constant 0 : i32
    %c0_i32_0 = arith.constant 0 : i32
    %c0_i32_1 = arith.constant 0 : i32
    return %c0_i32, %c0_i32_0 : i32, i32
  }
  func.func @transform_6(%arg0: i32) -> (i32, i32) {
    %c0_i32 = arith.constant 0 : i32
    %c0_i32_0 = arith.constant 0 : i32
    %c0_i32_1 = arith.constant 0 : i32
    return %c0_i32, %c0_i32_0 : i32, i32
  }
  func.func @transform_7(%arg0: i32) -> (i32, i32) {
    %c0_i32 = arith.constant 0 : i32
    %c0_i32_0 = arith.constant 0 : i32
    return %arg0, %c0_i32 : i32, i32
  }
}

module attributes {stable_mosaic.version = 11 : i64} {
  func.func @_bilstm_emit_kernel(%arg0: memref<64x32xf32, #tpu.memory_space<vmem>>, %arg1: memref<32x128xbf16, #tpu.memory_space<vmem>>, %arg2: memref<1x128xf32, #tpu.memory_space<vmem>>, %arg3: memref<32x128xbf16, #tpu.memory_space<vmem>>, %arg4: memref<32x128xbf16, #tpu.memory_space<vmem>>, %arg5: memref<1x128xf32, #tpu.memory_space<vmem>>, %arg6: memref<64x128xf32, #tpu.memory_space<vmem>>, %arg7: memref<64x128xf32, #tpu.memory_space<vmem>>, %arg8: memref<64x32xf32, #tpu.memory_space<vmem>>) attributes {dimension_semantics = [], scalar_prefetch = 0 : i64, scratch_operands = 2 : i64, tpu.core_type = #tpu.core_type<tc>} {
    %c0 = arith.constant 0 : index
    %c0_0 = arith.constant 0 : index
    %0 = vector.load %arg0[%c0, %c0_0] : memref<64x32xf32, #tpu.memory_space<vmem>>, vector<64x32xf32>
    %1 = arith.truncf %0 : vector<64x32xf32> to vector<64x32xbf16>
    %c0_1 = arith.constant 0 : index
    %c0_2 = arith.constant 0 : index
    %2 = vector.load %arg1[%c0_1, %c0_2] : memref<32x128xbf16, #tpu.memory_space<vmem>>, vector<32x128xbf16>
    %cst = arith.constant dense<0.000000e+00> : vector<64x128xf32>
    %3 = tpu.matmul %1, %2, %cst {dimension_numbers = #tpu.dot_dimension_numbers<[1], [0], [0], [1], [0, 0, 1, 1], [], []>} : vector<64x32xbf16>, vector<32x128xbf16>, vector<64x128xf32> -> vector<64x128xf32>
    %c0_3 = arith.constant 0 : index
    %c0_4 = arith.constant 0 : index
    %4 = vector.load %arg2[%c0_3, %c0_4] : memref<1x128xf32, #tpu.memory_space<vmem>>, vector<1x128xf32>
    %5 = vector.broadcast %4 : vector<1x128xf32> to vector<64x128xf32>
    %6 = arith.addf %3, %5 : vector<64x128xf32>
    %c0_5 = arith.constant 0 : index
    %c0_6 = arith.constant 0 : index
    %7 = vector.load %arg7[%c0_5, %c0_6] : memref<64x128xf32, #tpu.memory_space<vmem>>, vector<64x128xf32>
    tpu.vector_store %arg7[%c0_5, %c0_6], %6 {strides = array<i32>} : memref<64x128xf32, #tpu.memory_space<vmem>>, vector<64x128xf32>,
    %c0_7 = arith.constant 0 : index
    %c0_8 = arith.constant 0 : index
    %8 = vector.load %arg3[%c0_7, %c0_8] : memref<32x128xbf16, #tpu.memory_space<vmem>>, vector<32x128xbf16>
    %cst_9 = arith.constant 0.000000e+00 : f32
    %9 = vector.broadcast %cst_9 : f32 to vector<8x16xf32>
    %c0_i32 = arith.constant 0 : i32
    %c7_i32 = arith.constant 7 : i32
    %10 = arith.subi %c7_i32, %c0_i32 : i32
    %c8_i32 = arith.constant 8 : i32
    %11 = arith.muli %c0_i32, %c8_i32 : i32
    %12 = tpu.assume_multiple %11, 8 : i32
    %c8_i32_10 = arith.constant 8 : i32
    %13 = arith.muli %10, %c8_i32_10 : i32
    %14 = tpu.assume_multiple %13, 8 : i32
    %15 = arith.index_cast %12 : i32 to index
    %c0_11 = arith.constant 0 : index
    %16 = vector.load %arg7[%15, %c0_11] : memref<64x128xf32, #tpu.memory_space<vmem>>, vector<8x64xf32>
    %17 = arith.index_cast %14 : i32 to index
    %c64 = arith.constant 64 : index
    %18 = vector.load %arg7[%17, %c64] : memref<64x128xf32, #tpu.memory_space<vmem>>, vector<8x64xf32>
    %19 = tpu.concatenate %9, %9 in 1 : vector<8x16xf32>, vector<8x16xf32> -> vector<8x32xf32>
    %20 = arith.truncf %19 : vector<8x32xf32> to vector<8x32xbf16>
    %cst_12 = arith.constant dense<0.000000e+00> : vector<8x128xf32>
    %21 = tpu.matmul %20, %8, %cst_12 {dimension_numbers = #tpu.dot_dimension_numbers<[1], [0], [0], [1], [0, 0, 1, 1], [], []>} : vector<8x32xbf16>, vector<32x128xbf16>, vector<8x128xf32> -> vector<8x128xf32>
    %22 = tpu.concatenate %16, %18 in 1 : vector<8x64xf32>, vector<8x64xf32> -> vector<8x128xf32>
    %23 = arith.addf %21, %22 : vector<8x128xf32>
    %24 = vector.extract_strided_slice %23 {offsets = [0, 0], sizes = [8, 64], strides = [1, 1]} : vector<8x128xf32> to vector<8x64xf32>
    %25 = vector.extract_strided_slice %24 {offsets = [0, 0], sizes = [8, 16], strides = [1, 1]} : vector<8x64xf32> to vector<8x16xf32>
    %cst_13 = arith.constant 0.000000e+00 : f32
    %26 = vector.broadcast %cst_13 : f32 to vector<8x16xf32>
    %27 = arith.subf %26, %25 : vector<8x16xf32>
    %28 = math.exp %27 : vector<8x16xf32>
    %cst_14 = arith.constant 1.000000e+00 : f32
    %29 = vector.broadcast %cst_14 : f32 to vector<8x16xf32>
    %30 = arith.addf %29, %28 : vector<8x16xf32>
    %cst_15 = arith.constant 1.000000e+00 : f32
    %31 = vector.broadcast %cst_15 : f32 to vector<8x16xf32>
    %32 = arith.divf %31, %30 : vector<8x16xf32>
    %33 = vector.extract_strided_slice %24 {offsets = [0, 16], sizes = [8, 16], strides = [1, 1]} : vector<8x64xf32> to vector<8x16xf32>
    %cst_16 = arith.constant 0.000000e+00 : f32
    %34 = vector.broadcast %cst_16 : f32 to vector<8x16xf32>
    %35 = arith.subf %34, %33 : vector<8x16xf32>
    %36 = math.exp %35 : vector<8x16xf32>
    %cst_17 = arith.constant 1.000000e+00 : f32
    %37 = vector.broadcast %cst_17 : f32 to vector<8x16xf32>
    %38 = arith.addf %37, %36 : vector<8x16xf32>
    %cst_18 = arith.constant 1.000000e+00 : f32
    %39 = vector.broadcast %cst_18 : f32 to vector<8x16xf32>
    %40 = arith.divf %39, %38 : vector<8x16xf32>
    %41 = vector.extract_strided_slice %24 {offsets = [0, 32], sizes = [8, 16], strides = [1, 1]} : vector<8x64xf32> to vector<8x16xf32>
    %42 = math.tanh %41 : vector<8x16xf32>
    %43 = vector.extract_strided_slice %24 {offsets = [0, 48], sizes = [8, 16], strides = [1, 1]} : vector<8x64xf32> to vector<8x16xf32>
    %cst_19 = arith.constant 0.000000e+00 : f32
    %44 = vector.broadcast %cst_19 : f32 to vector<8x16xf32>
    %45 = arith.subf %44, %43 : vector<8x16xf32>
    %46 = math.exp %45 : vector<8x16xf32>
    %cst_20 = arith.constant 1.000000e+00 : f32
    %47 = vector.broadcast %cst_20 : f32 to vector<8x16xf32>
    %48 = arith.addf %47, %46 : vector<8x16xf32>
    %cst_21 = arith.constant 1.000000e+00 : f32
    %49 = vector.broadcast %cst_21 : f32 to vector<8x16xf32>
    %50 = arith.divf %49, %48 : vector<8x16xf32>
    %51 = arith.mulf %40, %9 : vector<8x16xf32>
    %52 = arith.mulf %32, %42 : vector<8x16xf32>
    %53 = arith.addf %51, %52 : vector<8x16xf32>
    %54 = math.tanh %53 : vector<8x16xf32>
    %55 = arith.mulf %50, %54 : vector<8x16xf32>
    %56 = vector.extract_strided_slice %23 {offsets = [0, 64], sizes = [8, 64], strides = [1, 1]} : vector<8x128xf32> to vector<8x64xf32>
    %57 = vector.extract_strided_slice %56 {offsets = [0, 0], sizes = [8, 16], strides = [1, 1]} : vector<8x64xf32> to vector<8x16xf32>
    %cst_22 = arith.constant 0.000000e+00 : f32
    %58 = vector.broadcast %cst_22 : f32 to vector<8x16xf32>
    %59 = arith.subf %58, %57 : vector<8x16xf32>
    %60 = math.exp %59 : vector<8x16xf32>
    %cst_23 = arith.constant 1.000000e+00 : f32
    %61 = vector.broadcast %cst_23 : f32 to vector<8x16xf32>
    %62 = arith.addf %61, %60 : vector<8x16xf32>
    %cst_24 = arith.constant 1.000000e+00 : f32
    %63 = vector.broadcast %cst_24 : f32 to vector<8x16xf32>
    %64 = arith.divf %63, %62 : vector<8x16xf32>
    %65 = vector.extract_strided_slice %56 {offsets = [0, 16], sizes = [8, 16], strides = [1, 1]} : vector<8x64xf32> to vector<8x16xf32>
    %cst_25 = arith.constant 0.000000e+00 : f32
    %66 = vector.broadcast %cst_25 : f32 to vector<8x16xf32>
    %67 = arith.subf %66, %65 : vector<8x16xf32>
    %68 = math.exp %67 : vector<8x16xf32>
    %cst_26 = arith.constant 1.000000e+00 : f32
    %69 = vector.broadcast %cst_26 : f32 to vector<8x16xf32>
    %70 = arith.addf %69, %68 : vector<8x16xf32>
    %cst_27 = arith.constant 1.000000e+00 : f32
    %71 = vector.broadcast %cst_27 : f32 to vector<8x16xf32>
    %72 = arith.divf %71, %70 : vector<8x16xf32>
    %73 = vector.extract_strided_slice %56 {offsets = [0, 32], sizes = [8, 16], strides = [1, 1]} : vector<8x64xf32> to vector<8x16xf32>
    %74 = math.tanh %73 : vector<8x16xf32>
    %75 = vector.extract_strided_slice %56 {offsets = [0, 48], sizes = [8, 16], strides = [1, 1]} : vector<8x64xf32> to vector<8x16xf32>
    %cst_28 = arith.constant 0.000000e+00 : f32
    %76 = vector.broadcast %cst_28 : f32 to vector<8x16xf32>
    %77 = arith.subf %76, %75 : vector<8x16xf32>
    %78 = math.exp %77 : vector<8x16xf32>
    %cst_29 = arith.constant 1.000000e+00 : f32
    %79 = vector.broadcast %cst_29 : f32 to vector<8x16xf32>
    %80 = arith.addf %79, %78 : vector<8x16xf32>
    %cst_30 = arith.constant 1.000000e+00 : f32
    %81 = vector.broadcast %cst_30 : f32 to vector<8x16xf32>
    %82 = arith.divf %81, %80 : vector<8x16xf32>
    %83 = arith.mulf %72, %9 : vector<8x16xf32>
    %84 = arith.mulf %64, %74 : vector<8x16xf32>
    %85 = arith.addf %83, %84 : vector<8x16xf32>
    %86 = math.tanh %85 : vector<8x16xf32>
    %87 = arith.mulf %82, %86 : vector<8x16xf32>
    %88 = arith.index_cast %12 : i32 to index
    %c0_31 = arith.constant 0 : index
    %89 = vector.load %arg8[%88, %c0_31] : memref<64x32xf32, #tpu.memory_space<vmem>>, vector<8x16xf32>
    tpu.vector_store %arg8[%88, %c0_31], %55 {strides = array<i32>} : memref<64x32xf32, #tpu.memory_space<vmem>>, vector<8x16xf32>,
    %90 = arith.index_cast %14 : i32 to index
    %c16 = arith.constant 16 : index
    %91 = vector.load %arg8[%90, %c16] : memref<64x32xf32, #tpu.memory_space<vmem>>, vector<8x16xf32>
    tpu.vector_store %arg8[%90, %c16], %87 {strides = array<i32>} : memref<64x32xf32, #tpu.memory_space<vmem>>, vector<8x16xf32>,
    %c1_i32 = arith.constant 1 : i32
    %c7_i32_32 = arith.constant 7 : i32
    %92 = arith.subi %c7_i32_32, %c1_i32 : i32
    %c8_i32_33 = arith.constant 8 : i32
    %93 = arith.muli %c1_i32, %c8_i32_33 : i32
    %94 = tpu.assume_multiple %93, 8 : i32
    %c8_i32_34 = arith.constant 8 : i32
    %95 = arith.muli %92, %c8_i32_34 : i32
    %96 = tpu.assume_multiple %95, 8 : i32
    %97 = arith.index_cast %94 : i32 to index
    %c0_35 = arith.constant 0 : index
    %98 = vector.load %arg7[%97, %c0_35] : memref<64x128xf32, #tpu.memory_space<vmem>>, vector<8x64xf32>
    %99 = arith.index_cast %96 : i32 to index
    %c64_36 = arith.constant 64 : index
    %100 = vector.load %arg7[%99, %c64_36] : memref<64x128xf32, #tpu.memory_space<vmem>>, vector<8x64xf32>
    %101 = tpu.concatenate %55, %87 in 1 : vector<8x16xf32>, vector<8x16xf32> -> vector<8x32xf32>
    %102 = arith.truncf %101 : vector<8x32xf32> to vector<8x32xbf16>
    %cst_37 = arith.constant dense<0.000000e+00> : vector<8x128xf32>
    %103 = tpu.matmul %102, %8, %cst_37 {dimension_numbers = #tpu.dot_dimension_numbers<[1], [0], [0], [1], [0, 0, 1, 1], [], []>} : vector<8x32xbf16>, vector<32x128xbf16>, vector<8x128xf32> -> vector<8x128xf32>
    %104 = tpu.concatenate %98, %100 in 1 : vector<8x64xf32>, vector<8x64xf32> -> vector<8x128xf32>
    %105 = arith.addf %103, %104 : vector<8x128xf32>
    %106 = vector.extract_strided_slice %105 {offsets = [0, 0], sizes = [8, 64], strides = [1, 1]} : vector<8x128xf32> to vector<8x64xf32>
    %107 = vector.extract_strided_slice %106 {offsets = [0, 0], sizes = [8, 16], strides = [1, 1]} : vector<8x64xf32> to vector<8x16xf32>
    %cst_38 = arith.constant 0.000000e+00 : f32
    %108 = vector.broadcast %cst_38 : f32 to vector<8x16xf32>
    %109 = arith.subf %108, %107 : vector<8x16xf32>
    %110 = math.exp %109 : vector<8x16xf32>
    %cst_39 = arith.constant 1.000000e+00 : f32
    %111 = vector.broadcast %cst_39 : f32 to vector<8x16xf32>
    %112 = arith.addf %111, %110 : vector<8x16xf32>
    %cst_40 = arith.constant 1.000000e+00 : f32
    %113 = vector.broadcast %cst_40 : f32 to vector<8x16xf32>
    %114 = arith.divf %113, %112 : vector<8x16xf32>
    %115 = vector.extract_strided_slice %106 {offsets = [0, 16], sizes = [8, 16], strides = [1, 1]} : vector<8x64xf32> to vector<8x16xf32>
    %cst_41 = arith.constant 0.000000e+00 : f32
    %116 = vector.broadcast %cst_41 : f32 to vector<8x16xf32>
    %117 = arith.subf %116, %115 : vector<8x16xf32>
    %118 = math.exp %117 : vector<8x16xf32>
    %cst_42 = arith.constant 1.000000e+00 : f32
    %119 = vector.broadcast %cst_42 : f32 to vector<8x16xf32>
    %120 = arith.addf %119, %118 : vector<8x16xf32>
    %cst_43 = arith.constant 1.000000e+00 : f32
    %121 = vector.broadcast %cst_43 : f32 to vector<8x16xf32>
    %122 = arith.divf %121, %120 : vector<8x16xf32>
    %123 = vector.extract_strided_slice %106 {offsets = [0, 32], sizes = [8, 16], strides = [1, 1]} : vector<8x64xf32> to vector<8x16xf32>
    %124 = math.tanh %123 : vector<8x16xf32>
    %125 = vector.extract_strided_slice %106 {offsets = [0, 48], sizes = [8, 16], strides = [1, 1]} : vector<8x64xf32> to vector<8x16xf32>
    %cst_44 = arith.constant 0.000000e+00 : f32
    %126 = vector.broadcast %cst_44 : f32 to vector<8x16xf32>
    %127 = arith.subf %126, %125 : vector<8x16xf32>
    %128 = math.exp %127 : vector<8x16xf32>
    %cst_45 = arith.constant 1.000000e+00 : f32
    %129 = vector.broadcast %cst_45 : f32 to vector<8x16xf32>
    %130 = arith.addf %129, %128 : vector<8x16xf32>
    %cst_46 = arith.constant 1.000000e+00 : f32
    %131 = vector.broadcast %cst_46 : f32 to vector<8x16xf32>
    %132 = arith.divf %131, %130 : vector<8x16xf32>
    %133 = arith.mulf %122, %53 : vector<8x16xf32>
    %134 = arith.mulf %114, %124 : vector<8x16xf32>
    %135 = arith.addf %133, %134 : vector<8x16xf32>
    %136 = math.tanh %135 : vector<8x16xf32>
    %137 = arith.mulf %132, %136 : vector<8x16xf32>
    %138 = vector.extract_strided_slice %105 {offsets = [0, 64], sizes = [8, 64], strides = [1, 1]} : vector<8x128xf32> to vector<8x64xf32>
    %139 = vector.extract_strided_slice %138 {offsets = [0, 0], sizes = [8, 16], strides = [1, 1]} : vector<8x64xf32> to vector<8x16xf32>
    %cst_47 = arith.constant 0.000000e+00 : f32
    %140 = vector.broadcast %cst_47 : f32 to vector<8x16xf32>
    %141 = arith.subf %140, %139 : vector<8x16xf32>
    %142 = math.exp %141 : vector<8x16xf32>
    %cst_48 = arith.constant 1.000000e+00 : f32
    %143 = vector.broadcast %cst_48 : f32 to vector<8x16xf32>
    %144 = arith.addf %143, %142 : vector<8x16xf32>
    %cst_49 = arith.constant 1.000000e+00 : f32
    %145 = vector.broadcast %cst_49 : f32 to vector<8x16xf32>
    %146 = arith.divf %145, %144 : vector<8x16xf32>
    %147 = vector.extract_strided_slice %138 {offsets = [0, 16], sizes = [8, 16], strides = [1, 1]} : vector<8x64xf32> to vector<8x16xf32>
    %cst_50 = arith.constant 0.000000e+00 : f32
    %148 = vector.broadcast %cst_50 : f32 to vector<8x16xf32>
    %149 = arith.subf %148, %147 : vector<8x16xf32>
    %150 = math.exp %149 : vector<8x16xf32>
    %cst_51 = arith.constant 1.000000e+00 : f32
    %151 = vector.broadcast %cst_51 : f32 to vector<8x16xf32>
    %152 = arith.addf %151, %150 : vector<8x16xf32>
    %cst_52 = arith.constant 1.000000e+00 : f32
    %153 = vector.broadcast %cst_52 : f32 to vector<8x16xf32>
    %154 = arith.divf %153, %152 : vector<8x16xf32>
    %155 = vector.extract_strided_slice %138 {offsets = [0, 32], sizes = [8, 16], strides = [1, 1]} : vector<8x64xf32> to vector<8x16xf32>
    %156 = math.tanh %155 : vector<8x16xf32>
    %157 = vector.extract_strided_slice %138 {offsets = [0, 48], sizes = [8, 16], strides = [1, 1]} : vector<8x64xf32> to vector<8x16xf32>
    %cst_53 = arith.constant 0.000000e+00 : f32
    %158 = vector.broadcast %cst_53 : f32 to vector<8x16xf32>
    %159 = arith.subf %158, %157 : vector<8x16xf32>
    %160 = math.exp %159 : vector<8x16xf32>
    %cst_54 = arith.constant 1.000000e+00 : f32
    %161 = vector.broadcast %cst_54 : f32 to vector<8x16xf32>
    %162 = arith.addf %161, %160 : vector<8x16xf32>
    %cst_55 = arith.constant 1.000000e+00 : f32
    %163 = vector.broadcast %cst_55 : f32 to vector<8x16xf32>
    %164 = arith.divf %163, %162 : vector<8x16xf32>
    %165 = arith.mulf %154, %85 : vector<8x16xf32>
    %166 = arith.mulf %146, %156 : vector<8x16xf32>
    %167 = arith.addf %165, %166 : vector<8x16xf32>
    %168 = math.tanh %167 : vector<8x16xf32>
    %169 = arith.mulf %164, %168 : vector<8x16xf32>
    %170 = arith.index_cast %94 : i32 to index
    %c0_56 = arith.constant 0 : index
    %171 = vector.load %arg8[%170, %c0_56] : memref<64x32xf32, #tpu.memory_space<vmem>>, vector<8x16xf32>
    tpu.vector_store %arg8[%170, %c0_56], %137 {strides = array<i32>} : memref<64x32xf32, #tpu.memory_space<vmem>>, vector<8x16xf32>,
    %172 = arith.index_cast %96 : i32 to index
    %c16_57 = arith.constant 16 : index
    %173 = vector.load %arg8[%172, %c16_57] : memref<64x32xf32, #tpu.memory_space<vmem>>, vector<8x16xf32>
    tpu.vector_store %arg8[%172, %c16_57], %169 {strides = array<i32>} : memref<64x32xf32, #tpu.memory_space<vmem>>, vector<8x16xf32>,
    %c2_i32 = arith.constant 2 : i32
    %c7_i32_58 = arith.constant 7 : i32
    %174 = arith.subi %c7_i32_58, %c2_i32 : i32
    %c8_i32_59 = arith.constant 8 : i32
    %175 = arith.muli %c2_i32, %c8_i32_59 : i32
    %176 = tpu.assume_multiple %175, 8 : i32
    %c8_i32_60 = arith.constant 8 : i32
    %177 = arith.muli %174, %c8_i32_60 : i32
    %178 = tpu.assume_multiple %177, 8 : i32
    %179 = arith.index_cast %176 : i32 to index
    %c0_61 = arith.constant 0 : index
    %180 = vector.load %arg7[%179, %c0_61] : memref<64x128xf32, #tpu.memory_space<vmem>>, vector<8x64xf32>
    %181 = arith.index_cast %178 : i32 to index
    %c64_62 = arith.constant 64 : index
    %182 = vector.load %arg7[%181, %c64_62] : memref<64x128xf32, #tpu.memory_space<vmem>>, vector<8x64xf32>
    %183 = tpu.concatenate %137, %169 in 1 : vector<8x16xf32>, vector<8x16xf32> -> vector<8x32xf32>
    %184 = arith.truncf %183 : vector<8x32xf32> to vector<8x32xbf16>
    %cst_63 = arith.constant dense<0.000000e+00> : vector<8x128xf32>
    %185 = tpu.matmul %184, %8, %cst_63 {dimension_numbers = #tpu.dot_dimension_numbers<[1], [0], [0], [1], [0, 0, 1, 1], [], []>} : vector<8x32xbf16>, vector<32x128xbf16>, vector<8x128xf32> -> vector<8x128xf32>
    %186 = tpu.concatenate %180, %182 in 1 : vector<8x64xf32>, vector<8x64xf32> -> vector<8x128xf32>
    %187 = arith.addf %185, %186 : vector<8x128xf32>
    %188 = vector.extract_strided_slice %187 {offsets = [0, 0], sizes = [8, 64], strides = [1, 1]} : vector<8x128xf32> to vector<8x64xf32>
    %189 = vector.extract_strided_slice %188 {offsets = [0, 0], sizes = [8, 16], strides = [1, 1]} : vector<8x64xf32> to vector<8x16xf32>
    %cst_64 = arith.constant 0.000000e+00 : f32
    %190 = vector.broadcast %cst_64 : f32 to vector<8x16xf32>
    %191 = arith.subf %190, %189 : vector<8x16xf32>
    %192 = math.exp %191 : vector<8x16xf32>
    %cst_65 = arith.constant 1.000000e+00 : f32
    %193 = vector.broadcast %cst_65 : f32 to vector<8x16xf32>
    %194 = arith.addf %193, %192 : vector<8x16xf32>
    %cst_66 = arith.constant 1.000000e+00 : f32
    %195 = vector.broadcast %cst_66 : f32 to vector<8x16xf32>
    %196 = arith.divf %195, %194 : vector<8x16xf32>
    %197 = vector.extract_strided_slice %188 {offsets = [0, 16], sizes = [8, 16], strides = [1, 1]} : vector<8x64xf32> to vector<8x16xf32>
    %cst_67 = arith.constant 0.000000e+00 : f32
    %198 = vector.broadcast %cst_67 : f32 to vector<8x16xf32>
    %199 = arith.subf %198, %197 : vector<8x16xf32>
    %200 = math.exp %199 : vector<8x16xf32>
    %cst_68 = arith.constant 1.000000e+00 : f32
    %201 = vector.broadcast %cst_68 : f32 to vector<8x16xf32>
    %202 = arith.addf %201, %200 : vector<8x16xf32>
    %cst_69 = arith.constant 1.000000e+00 : f32
    %203 = vector.broadcast %cst_69 : f32 to vector<8x16xf32>
    %204 = arith.divf %203, %202 : vector<8x16xf32>
    %205 = vector.extract_strided_slice %188 {offsets = [0, 32], sizes = [8, 16], strides = [1, 1]} : vector<8x64xf32> to vector<8x16xf32>
    %206 = math.tanh %205 : vector<8x16xf32>
    %207 = vector.extract_strided_slice %188 {offsets = [0, 48], sizes = [8, 16], strides = [1, 1]} : vector<8x64xf32> to vector<8x16xf32>
    %cst_70 = arith.constant 0.000000e+00 : f32
    %208 = vector.broadcast %cst_70 : f32 to vector<8x16xf32>
    %209 = arith.subf %208, %207 : vector<8x16xf32>
    %210 = math.exp %209 : vector<8x16xf32>
    %cst_71 = arith.constant 1.000000e+00 : f32
    %211 = vector.broadcast %cst_71 : f32 to vector<8x16xf32>
    %212 = arith.addf %211, %210 : vector<8x16xf32>
    %cst_72 = arith.constant 1.000000e+00 : f32
    %213 = vector.broadcast %cst_72 : f32 to vector<8x16xf32>
    %214 = arith.divf %213, %212 : vector<8x16xf32>
    %215 = arith.mulf %204, %135 : vector<8x16xf32>
    %216 = arith.mulf %196, %206 : vector<8x16xf32>
    %217 = arith.addf %215, %216 : vector<8x16xf32>
    %218 = math.tanh %217 : vector<8x16xf32>
    %219 = arith.mulf %214, %218 : vector<8x16xf32>
    %220 = vector.extract_strided_slice %187 {offsets = [0, 64], sizes = [8, 64], strides = [1, 1]} : vector<8x128xf32> to vector<8x64xf32>
    %221 = vector.extract_strided_slice %220 {offsets = [0, 0], sizes = [8, 16], strides = [1, 1]} : vector<8x64xf32> to vector<8x16xf32>
    %cst_73 = arith.constant 0.000000e+00 : f32
    %222 = vector.broadcast %cst_73 : f32 to vector<8x16xf32>
    %223 = arith.subf %222, %221 : vector<8x16xf32>
    %224 = math.exp %223 : vector<8x16xf32>
    %cst_74 = arith.constant 1.000000e+00 : f32
    %225 = vector.broadcast %cst_74 : f32 to vector<8x16xf32>
    %226 = arith.addf %225, %224 : vector<8x16xf32>
    %cst_75 = arith.constant 1.000000e+00 : f32
    %227 = vector.broadcast %cst_75 : f32 to vector<8x16xf32>
    %228 = arith.divf %227, %226 : vector<8x16xf32>
    %229 = vector.extract_strided_slice %220 {offsets = [0, 16], sizes = [8, 16], strides = [1, 1]} : vector<8x64xf32> to vector<8x16xf32>
    %cst_76 = arith.constant 0.000000e+00 : f32
    %230 = vector.broadcast %cst_76 : f32 to vector<8x16xf32>
    %231 = arith.subf %230, %229 : vector<8x16xf32>
    %232 = math.exp %231 : vector<8x16xf32>
    %cst_77 = arith.constant 1.000000e+00 : f32
    %233 = vector.broadcast %cst_77 : f32 to vector<8x16xf32>
    %234 = arith.addf %233, %232 : vector<8x16xf32>
    %cst_78 = arith.constant 1.000000e+00 : f32
    %235 = vector.broadcast %cst_78 : f32 to vector<8x16xf32>
    %236 = arith.divf %235, %234 : vector<8x16xf32>
    %237 = vector.extract_strided_slice %220 {offsets = [0, 32], sizes = [8, 16], strides = [1, 1]} : vector<8x64xf32> to vector<8x16xf32>
    %238 = math.tanh %237 : vector<8x16xf32>
    %239 = vector.extract_strided_slice %220 {offsets = [0, 48], sizes = [8, 16], strides = [1, 1]} : vector<8x64xf32> to vector<8x16xf32>
    %cst_79 = arith.constant 0.000000e+00 : f32
    %240 = vector.broadcast %cst_79 : f32 to vector<8x16xf32>
    %241 = arith.subf %240, %239 : vector<8x16xf32>
    %242 = math.exp %241 : vector<8x16xf32>
    %cst_80 = arith.constant 1.000000e+00 : f32
    %243 = vector.broadcast %cst_80 : f32 to vector<8x16xf32>
    %244 = arith.addf %243, %242 : vector<8x16xf32>
    %cst_81 = arith.constant 1.000000e+00 : f32
    %245 = vector.broadcast %cst_81 : f32 to vector<8x16xf32>
    %246 = arith.divf %245, %244 : vector<8x16xf32>
    %247 = arith.mulf %236, %167 : vector<8x16xf32>
    %248 = arith.mulf %228, %238 : vector<8x16xf32>
    %249 = arith.addf %247, %248 : vector<8x16xf32>
    %250 = math.tanh %249 : vector<8x16xf32>
    %251 = arith.mulf %246, %250 : vector<8x16xf32>
    %252 = arith.index_cast %176 : i32 to index
    %c0_82 = arith.constant 0 : index
    %253 = vector.load %arg8[%252, %c0_82] : memref<64x32xf32, #tpu.memory_space<vmem>>, vector<8x16xf32>
    tpu.vector_store %arg8[%252, %c0_82], %219 {strides = array<i32>} : memref<64x32xf32, #tpu.memory_space<vmem>>, vector<8x16xf32>,
    %254 = arith.index_cast %178 : i32 to index
    %c16_83 = arith.constant 16 : index
    %255 = vector.load %arg8[%254, %c16_83] : memref<64x32xf32, #tpu.memory_space<vmem>>, vector<8x16xf32>
    tpu.vector_store %arg8[%254, %c16_83], %251 {strides = array<i32>} : memref<64x32xf32, #tpu.memory_space<vmem>>, vector<8x16xf32>,
    %c3_i32 = arith.constant 3 : i32
    %c7_i32_84 = arith.constant 7 : i32
    %256 = arith.subi %c7_i32_84, %c3_i32 : i32
    %c8_i32_85 = arith.constant 8 : i32
    %257 = arith.muli %c3_i32, %c8_i32_85 : i32
    %258 = tpu.assume_multiple %257, 8 : i32
    %c8_i32_86 = arith.constant 8 : i32
    %259 = arith.muli %256, %c8_i32_86 : i32
    %260 = tpu.assume_multiple %259, 8 : i32
    %261 = arith.index_cast %258 : i32 to index
    %c0_87 = arith.constant 0 : index
    %262 = vector.load %arg7[%261, %c0_87] : memref<64x128xf32, #tpu.memory_space<vmem>>, vector<8x64xf32>
    %263 = arith.index_cast %260 : i32 to index
    %c64_88 = arith.constant 64 : index
    %264 = vector.load %arg7[%263, %c64_88] : memref<64x128xf32, #tpu.memory_space<vmem>>, vector<8x64xf32>
    %265 = tpu.concatenate %219, %251 in 1 : vector<8x16xf32>, vector<8x16xf32> -> vector<8x32xf32>
    %266 = arith.truncf %265 : vector<8x32xf32> to vector<8x32xbf16>
    %cst_89 = arith.constant dense<0.000000e+00> : vector<8x128xf32>
    %267 = tpu.matmul %266, %8, %cst_89 {dimension_numbers = #tpu.dot_dimension_numbers<[1], [0], [0], [1], [0, 0, 1, 1], [], []>} : vector<8x32xbf16>, vector<32x128xbf16>, vector<8x128xf32> -> vector<8x128xf32>
    %268 = tpu.concatenate %262, %264 in 1 : vector<8x64xf32>, vector<8x64xf32> -> vector<8x128xf32>
    %269 = arith.addf %267, %268 : vector<8x128xf32>
    %270 = vector.extract_strided_slice %269 {offsets = [0, 0], sizes = [8, 64], strides = [1, 1]} : vector<8x128xf32> to vector<8x64xf32>
    %271 = vector.extract_strided_slice %270 {offsets = [0, 0], sizes = [8, 16], strides = [1, 1]} : vector<8x64xf32> to vector<8x16xf32>
    %cst_90 = arith.constant 0.000000e+00 : f32
    %272 = vector.broadcast %cst_90 : f32 to vector<8x16xf32>
    %273 = arith.subf %272, %271 : vector<8x16xf32>
    %274 = math.exp %273 : vector<8x16xf32>
    %cst_91 = arith.constant 1.000000e+00 : f32
    %275 = vector.broadcast %cst_91 : f32 to vector<8x16xf32>
    %276 = arith.addf %275, %274 : vector<8x16xf32>
    %cst_92 = arith.constant 1.000000e+00 : f32
    %277 = vector.broadcast %cst_92 : f32 to vector<8x16xf32>
    %278 = arith.divf %277, %276 : vector<8x16xf32>
    %279 = vector.extract_strided_slice %270 {offsets = [0, 16], sizes = [8, 16], strides = [1, 1]} : vector<8x64xf32> to vector<8x16xf32>
    %cst_93 = arith.constant 0.000000e+00 : f32
    %280 = vector.broadcast %cst_93 : f32 to vector<8x16xf32>
    %281 = arith.subf %280, %279 : vector<8x16xf32>
    %282 = math.exp %281 : vector<8x16xf32>
    %cst_94 = arith.constant 1.000000e+00 : f32
    %283 = vector.broadcast %cst_94 : f32 to vector<8x16xf32>
    %284 = arith.addf %283, %282 : vector<8x16xf32>
    %cst_95 = arith.constant 1.000000e+00 : f32
    %285 = vector.broadcast %cst_95 : f32 to vector<8x16xf32>
    %286 = arith.divf %285, %284 : vector<8x16xf32>
    %287 = vector.extract_strided_slice %270 {offsets = [0, 32], sizes = [8, 16], strides = [1, 1]} : vector<8x64xf32> to vector<8x16xf32>
    %288 = math.tanh %287 : vector<8x16xf32>
    %289 = vector.extract_strided_slice %270 {offsets = [0, 48], sizes = [8, 16], strides = [1, 1]} : vector<8x64xf32> to vector<8x16xf32>
    %cst_96 = arith.constant 0.000000e+00 : f32
    %290 = vector.broadcast %cst_96 : f32 to vector<8x16xf32>
    %291 = arith.subf %290, %289 : vector<8x16xf32>
    %292 = math.exp %291 : vector<8x16xf32>
    %cst_97 = arith.constant 1.000000e+00 : f32
    %293 = vector.broadcast %cst_97 : f32 to vector<8x16xf32>
    %294 = arith.addf %293, %292 : vector<8x16xf32>
    %cst_98 = arith.constant 1.000000e+00 : f32
    %295 = vector.broadcast %cst_98 : f32 to vector<8x16xf32>
    %296 = arith.divf %295, %294 : vector<8x16xf32>
    %297 = arith.mulf %286, %217 : vector<8x16xf32>
    %298 = arith.mulf %278, %288 : vector<8x16xf32>
    %299 = arith.addf %297, %298 : vector<8x16xf32>
    %300 = math.tanh %299 : vector<8x16xf32>
    %301 = arith.mulf %296, %300 : vector<8x16xf32>
    %302 = vector.extract_strided_slice %269 {offsets = [0, 64], sizes = [8, 64], strides = [1, 1]} : vector<8x128xf32> to vector<8x64xf32>
    %303 = vector.extract_strided_slice %302 {offsets = [0, 0], sizes = [8, 16], strides = [1, 1]} : vector<8x64xf32> to vector<8x16xf32>
    %cst_99 = arith.constant 0.000000e+00 : f32
    %304 = vector.broadcast %cst_99 : f32 to vector<8x16xf32>
    %305 = arith.subf %304, %303 : vector<8x16xf32>
    %306 = math.exp %305 : vector<8x16xf32>
    %cst_100 = arith.constant 1.000000e+00 : f32
    %307 = vector.broadcast %cst_100 : f32 to vector<8x16xf32>
    %308 = arith.addf %307, %306 : vector<8x16xf32>
    %cst_101 = arith.constant 1.000000e+00 : f32
    %309 = vector.broadcast %cst_101 : f32 to vector<8x16xf32>
    %310 = arith.divf %309, %308 : vector<8x16xf32>
    %311 = vector.extract_strided_slice %302 {offsets = [0, 16], sizes = [8, 16], strides = [1, 1]} : vector<8x64xf32> to vector<8x16xf32>
    %cst_102 = arith.constant 0.000000e+00 : f32
    %312 = vector.broadcast %cst_102 : f32 to vector<8x16xf32>
    %313 = arith.subf %312, %311 : vector<8x16xf32>
    %314 = math.exp %313 : vector<8x16xf32>
    %cst_103 = arith.constant 1.000000e+00 : f32
    %315 = vector.broadcast %cst_103 : f32 to vector<8x16xf32>
    %316 = arith.addf %315, %314 : vector<8x16xf32>
    %cst_104 = arith.constant 1.000000e+00 : f32
    %317 = vector.broadcast %cst_104 : f32 to vector<8x16xf32>
    %318 = arith.divf %317, %316 : vector<8x16xf32>
    %319 = vector.extract_strided_slice %302 {offsets = [0, 32], sizes = [8, 16], strides = [1, 1]} : vector<8x64xf32> to vector<8x16xf32>
    %320 = math.tanh %319 : vector<8x16xf32>
    %321 = vector.extract_strided_slice %302 {offsets = [0, 48], sizes = [8, 16], strides = [1, 1]} : vector<8x64xf32> to vector<8x16xf32>
    %cst_105 = arith.constant 0.000000e+00 : f32
    %322 = vector.broadcast %cst_105 : f32 to vector<8x16xf32>
    %323 = arith.subf %322, %321 : vector<8x16xf32>
    %324 = math.exp %323 : vector<8x16xf32>
    %cst_106 = arith.constant 1.000000e+00 : f32
    %325 = vector.broadcast %cst_106 : f32 to vector<8x16xf32>
    %326 = arith.addf %325, %324 : vector<8x16xf32>
    %cst_107 = arith.constant 1.000000e+00 : f32
    %327 = vector.broadcast %cst_107 : f32 to vector<8x16xf32>
    %328 = arith.divf %327, %326 : vector<8x16xf32>
    %329 = arith.mulf %318, %249 : vector<8x16xf32>
    %330 = arith.mulf %310, %320 : vector<8x16xf32>
    %331 = arith.addf %329, %330 : vector<8x16xf32>
    %332 = math.tanh %331 : vector<8x16xf32>
    %333 = arith.mulf %328, %332 : vector<8x16xf32>
    %334 = arith.index_cast %258 : i32 to index
    %c0_108 = arith.constant 0 : index
    %335 = vector.load %arg8[%334, %c0_108] : memref<64x32xf32, #tpu.memory_space<vmem>>, vector<8x16xf32>
    tpu.vector_store %arg8[%334, %c0_108], %301 {strides = array<i32>} : memref<64x32xf32, #tpu.memory_space<vmem>>, vector<8x16xf32>,
    %336 = arith.index_cast %260 : i32 to index
    %c16_109 = arith.constant 16 : index
    %337 = vector.load %arg8[%336, %c16_109] : memref<64x32xf32, #tpu.memory_space<vmem>>, vector<8x16xf32>
    tpu.vector_store %arg8[%336, %c16_109], %333 {strides = array<i32>} : memref<64x32xf32, #tpu.memory_space<vmem>>, vector<8x16xf32>,
    %c4_i32 = arith.constant 4 : i32
    %c7_i32_110 = arith.constant 7 : i32
    %338 = arith.subi %c7_i32_110, %c4_i32 : i32
    %c8_i32_111 = arith.constant 8 : i32
    %339 = arith.muli %c4_i32, %c8_i32_111 : i32
    %340 = tpu.assume_multiple %339, 8 : i32
    %c8_i32_112 = arith.constant 8 : i32
    %341 = arith.muli %338, %c8_i32_112 : i32
    %342 = tpu.assume_multiple %341, 8 : i32
    %343 = arith.index_cast %340 : i32 to index
    %c0_113 = arith.constant 0 : index
    %344 = vector.load %arg7[%343, %c0_113] : memref<64x128xf32, #tpu.memory_space<vmem>>, vector<8x64xf32>
    %345 = arith.index_cast %342 : i32 to index
    %c64_114 = arith.constant 64 : index
    %346 = vector.load %arg7[%345, %c64_114] : memref<64x128xf32, #tpu.memory_space<vmem>>, vector<8x64xf32>
    %347 = tpu.concatenate %301, %333 in 1 : vector<8x16xf32>, vector<8x16xf32> -> vector<8x32xf32>
    %348 = arith.truncf %347 : vector<8x32xf32> to vector<8x32xbf16>
    %cst_115 = arith.constant dense<0.000000e+00> : vector<8x128xf32>
    %349 = tpu.matmul %348, %8, %cst_115 {dimension_numbers = #tpu.dot_dimension_numbers<[1], [0], [0], [1], [0, 0, 1, 1], [], []>} : vector<8x32xbf16>, vector<32x128xbf16>, vector<8x128xf32> -> vector<8x128xf32>
    %350 = tpu.concatenate %344, %346 in 1 : vector<8x64xf32>, vector<8x64xf32> -> vector<8x128xf32>
    %351 = arith.addf %349, %350 : vector<8x128xf32>
    %352 = vector.extract_strided_slice %351 {offsets = [0, 0], sizes = [8, 64], strides = [1, 1]} : vector<8x128xf32> to vector<8x64xf32>
    %353 = vector.extract_strided_slice %352 {offsets = [0, 0], sizes = [8, 16], strides = [1, 1]} : vector<8x64xf32> to vector<8x16xf32>
    %cst_116 = arith.constant 0.000000e+00 : f32
    %354 = vector.broadcast %cst_116 : f32 to vector<8x16xf32>
    %355 = arith.subf %354, %353 : vector<8x16xf32>
    %356 = math.exp %355 : vector<8x16xf32>
    %cst_117 = arith.constant 1.000000e+00 : f32
    %357 = vector.broadcast %cst_117 : f32 to vector<8x16xf32>
    %358 = arith.addf %357, %356 : vector<8x16xf32>
    %cst_118 = arith.constant 1.000000e+00 : f32
    %359 = vector.broadcast %cst_118 : f32 to vector<8x16xf32>
    %360 = arith.divf %359, %358 : vector<8x16xf32>
    %361 = vector.extract_strided_slice %352 {offsets = [0, 16], sizes = [8, 16], strides = [1, 1]} : vector<8x64xf32> to vector<8x16xf32>
    %cst_119 = arith.constant 0.000000e+00 : f32
    %362 = vector.broadcast %cst_119 : f32 to vector<8x16xf32>
    %363 = arith.subf %362, %361 : vector<8x16xf32>
    %364 = math.exp %363 : vector<8x16xf32>
    %cst_120 = arith.constant 1.000000e+00 : f32
    %365 = vector.broadcast %cst_120 : f32 to vector<8x16xf32>
    %366 = arith.addf %365, %364 : vector<8x16xf32>
    %cst_121 = arith.constant 1.000000e+00 : f32
    %367 = vector.broadcast %cst_121 : f32 to vector<8x16xf32>
    %368 = arith.divf %367, %366 : vector<8x16xf32>
    %369 = vector.extract_strided_slice %352 {offsets = [0, 32], sizes = [8, 16], strides = [1, 1]} : vector<8x64xf32> to vector<8x16xf32>
    %370 = math.tanh %369 : vector<8x16xf32>
    %371 = vector.extract_strided_slice %352 {offsets = [0, 48], sizes = [8, 16], strides = [1, 1]} : vector<8x64xf32> to vector<8x16xf32>
    %cst_122 = arith.constant 0.000000e+00 : f32
    %372 = vector.broadcast %cst_122 : f32 to vector<8x16xf32>
    %373 = arith.subf %372, %371 : vector<8x16xf32>
    %374 = math.exp %373 : vector<8x16xf32>
    %cst_123 = arith.constant 1.000000e+00 : f32
    %375 = vector.broadcast %cst_123 : f32 to vector<8x16xf32>
    %376 = arith.addf %375, %374 : vector<8x16xf32>
    %cst_124 = arith.constant 1.000000e+00 : f32
    %377 = vector.broadcast %cst_124 : f32 to vector<8x16xf32>
    %378 = arith.divf %377, %376 : vector<8x16xf32>
    %379 = arith.mulf %368, %299 : vector<8x16xf32>
    %380 = arith.mulf %360, %370 : vector<8x16xf32>
    %381 = arith.addf %379, %380 : vector<8x16xf32>
    %382 = math.tanh %381 : vector<8x16xf32>
    %383 = arith.mulf %378, %382 : vector<8x16xf32>
    %384 = vector.extract_strided_slice %351 {offsets = [0, 64], sizes = [8, 64], strides = [1, 1]} : vector<8x128xf32> to vector<8x64xf32>
    %385 = vector.extract_strided_slice %384 {offsets = [0, 0], sizes = [8, 16], strides = [1, 1]} : vector<8x64xf32> to vector<8x16xf32>
    %cst_125 = arith.constant 0.000000e+00 : f32
    %386 = vector.broadcast %cst_125 : f32 to vector<8x16xf32>
    %387 = arith.subf %386, %385 : vector<8x16xf32>
    %388 = math.exp %387 : vector<8x16xf32>
    %cst_126 = arith.constant 1.000000e+00 : f32
    %389 = vector.broadcast %cst_126 : f32 to vector<8x16xf32>
    %390 = arith.addf %389, %388 : vector<8x16xf32>
    %cst_127 = arith.constant 1.000000e+00 : f32
    %391 = vector.broadcast %cst_127 : f32 to vector<8x16xf32>
    %392 = arith.divf %391, %390 : vector<8x16xf32>
    %393 = vector.extract_strided_slice %384 {offsets = [0, 16], sizes = [8, 16], strides = [1, 1]} : vector<8x64xf32> to vector<8x16xf32>
    %cst_128 = arith.constant 0.000000e+00 : f32
    %394 = vector.broadcast %cst_128 : f32 to vector<8x16xf32>
    %395 = arith.subf %394, %393 : vector<8x16xf32>
    %396 = math.exp %395 : vector<8x16xf32>
    %cst_129 = arith.constant 1.000000e+00 : f32
    %397 = vector.broadcast %cst_129 : f32 to vector<8x16xf32>
    %398 = arith.addf %397, %396 : vector<8x16xf32>
    %cst_130 = arith.constant 1.000000e+00 : f32
    %399 = vector.broadcast %cst_130 : f32 to vector<8x16xf32>
    %400 = arith.divf %399, %398 : vector<8x16xf32>
    %401 = vector.extract_strided_slice %384 {offsets = [0, 32], sizes = [8, 16], strides = [1, 1]} : vector<8x64xf32> to vector<8x16xf32>
    %402 = math.tanh %401 : vector<8x16xf32>
    %403 = vector.extract_strided_slice %384 {offsets = [0, 48], sizes = [8, 16], strides = [1, 1]} : vector<8x64xf32> to vector<8x16xf32>
    %cst_131 = arith.constant 0.000000e+00 : f32
    %404 = vector.broadcast %cst_131 : f32 to vector<8x16xf32>
    %405 = arith.subf %404, %403 : vector<8x16xf32>
    %406 = math.exp %405 : vector<8x16xf32>
    %cst_132 = arith.constant 1.000000e+00 : f32
    %407 = vector.broadcast %cst_132 : f32 to vector<8x16xf32>
    %408 = arith.addf %407, %406 : vector<8x16xf32>
    %cst_133 = arith.constant 1.000000e+00 : f32
    %409 = vector.broadcast %cst_133 : f32 to vector<8x16xf32>
    %410 = arith.divf %409, %408 : vector<8x16xf32>
    %411 = arith.mulf %400, %331 : vector<8x16xf32>
    %412 = arith.mulf %392, %402 : vector<8x16xf32>
    %413 = arith.addf %411, %412 : vector<8x16xf32>
    %414 = math.tanh %413 : vector<8x16xf32>
    %415 = arith.mulf %410, %414 : vector<8x16xf32>
    %416 = arith.index_cast %340 : i32 to index
    %c0_134 = arith.constant 0 : index
    %417 = vector.load %arg8[%416, %c0_134] : memref<64x32xf32, #tpu.memory_space<vmem>>, vector<8x16xf32>
    tpu.vector_store %arg8[%416, %c0_134], %383 {strides = array<i32>} : memref<64x32xf32, #tpu.memory_space<vmem>>, vector<8x16xf32>,
    %418 = arith.index_cast %342 : i32 to index
    %c16_135 = arith.constant 16 : index
    %419 = vector.load %arg8[%418, %c16_135] : memref<64x32xf32, #tpu.memory_space<vmem>>, vector<8x16xf32>
    tpu.vector_store %arg8[%418, %c16_135], %415 {strides = array<i32>} : memref<64x32xf32, #tpu.memory_space<vmem>>, vector<8x16xf32>,
    %c5_i32 = arith.constant 5 : i32
    %c7_i32_136 = arith.constant 7 : i32
    %420 = arith.subi %c7_i32_136, %c5_i32 : i32
    %c8_i32_137 = arith.constant 8 : i32
    %421 = arith.muli %c5_i32, %c8_i32_137 : i32
    %422 = tpu.assume_multiple %421, 8 : i32
    %c8_i32_138 = arith.constant 8 : i32
    %423 = arith.muli %420, %c8_i32_138 : i32
    %424 = tpu.assume_multiple %423, 8 : i32
    %425 = arith.index_cast %422 : i32 to index
    %c0_139 = arith.constant 0 : index
    %426 = vector.load %arg7[%425, %c0_139] : memref<64x128xf32, #tpu.memory_space<vmem>>, vector<8x64xf32>
    %427 = arith.index_cast %424 : i32 to index
    %c64_140 = arith.constant 64 : index
    %428 = vector.load %arg7[%427, %c64_140] : memref<64x128xf32, #tpu.memory_space<vmem>>, vector<8x64xf32>
    %429 = tpu.concatenate %383, %415 in 1 : vector<8x16xf32>, vector<8x16xf32> -> vector<8x32xf32>
    %430 = arith.truncf %429 : vector<8x32xf32> to vector<8x32xbf16>
    %cst_141 = arith.constant dense<0.000000e+00> : vector<8x128xf32>
    %431 = tpu.matmul %430, %8, %cst_141 {dimension_numbers = #tpu.dot_dimension_numbers<[1], [0], [0], [1], [0, 0, 1, 1], [], []>} : vector<8x32xbf16>, vector<32x128xbf16>, vector<8x128xf32> -> vector<8x128xf32>
    %432 = tpu.concatenate %426, %428 in 1 : vector<8x64xf32>, vector<8x64xf32> -> vector<8x128xf32>
    %433 = arith.addf %431, %432 : vector<8x128xf32>
    %434 = vector.extract_strided_slice %433 {offsets = [0, 0], sizes = [8, 64], strides = [1, 1]} : vector<8x128xf32> to vector<8x64xf32>
    %435 = vector.extract_strided_slice %434 {offsets = [0, 0], sizes = [8, 16], strides = [1, 1]} : vector<8x64xf32> to vector<8x16xf32>
    %cst_142 = arith.constant 0.000000e+00 : f32
    %436 = vector.broadcast %cst_142 : f32 to vector<8x16xf32>
    %437 = arith.subf %436, %435 : vector<8x16xf32>
    %438 = math.exp %437 : vector<8x16xf32>
    %cst_143 = arith.constant 1.000000e+00 : f32
    %439 = vector.broadcast %cst_143 : f32 to vector<8x16xf32>
    %440 = arith.addf %439, %438 : vector<8x16xf32>
    %cst_144 = arith.constant 1.000000e+00 : f32
    %441 = vector.broadcast %cst_144 : f32 to vector<8x16xf32>
    %442 = arith.divf %441, %440 : vector<8x16xf32>
    %443 = vector.extract_strided_slice %434 {offsets = [0, 16], sizes = [8, 16], strides = [1, 1]} : vector<8x64xf32> to vector<8x16xf32>
    %cst_145 = arith.constant 0.000000e+00 : f32
    %444 = vector.broadcast %cst_145 : f32 to vector<8x16xf32>
    %445 = arith.subf %444, %443 : vector<8x16xf32>
    %446 = math.exp %445 : vector<8x16xf32>
    %cst_146 = arith.constant 1.000000e+00 : f32
    %447 = vector.broadcast %cst_146 : f32 to vector<8x16xf32>
    %448 = arith.addf %447, %446 : vector<8x16xf32>
    %cst_147 = arith.constant 1.000000e+00 : f32
    %449 = vector.broadcast %cst_147 : f32 to vector<8x16xf32>
    %450 = arith.divf %449, %448 : vector<8x16xf32>
    %451 = vector.extract_strided_slice %434 {offsets = [0, 32], sizes = [8, 16], strides = [1, 1]} : vector<8x64xf32> to vector<8x16xf32>
    %452 = math.tanh %451 : vector<8x16xf32>
    %453 = vector.extract_strided_slice %434 {offsets = [0, 48], sizes = [8, 16], strides = [1, 1]} : vector<8x64xf32> to vector<8x16xf32>
    %cst_148 = arith.constant 0.000000e+00 : f32
    %454 = vector.broadcast %cst_148 : f32 to vector<8x16xf32>
    %455 = arith.subf %454, %453 : vector<8x16xf32>
    %456 = math.exp %455 : vector<8x16xf32>
    %cst_149 = arith.constant 1.000000e+00 : f32
    %457 = vector.broadcast %cst_149 : f32 to vector<8x16xf32>
    %458 = arith.addf %457, %456 : vector<8x16xf32>
    %cst_150 = arith.constant 1.000000e+00 : f32
    %459 = vector.broadcast %cst_150 : f32 to vector<8x16xf32>
    %460 = arith.divf %459, %458 : vector<8x16xf32>
    %461 = arith.mulf %450, %381 : vector<8x16xf32>
    %462 = arith.mulf %442, %452 : vector<8x16xf32>
    %463 = arith.addf %461, %462 : vector<8x16xf32>
    %464 = math.tanh %463 : vector<8x16xf32>
    %465 = arith.mulf %460, %464 : vector<8x16xf32>
    %466 = vector.extract_strided_slice %433 {offsets = [0, 64], sizes = [8, 64], strides = [1, 1]} : vector<8x128xf32> to vector<8x64xf32>
    %467 = vector.extract_strided_slice %466 {offsets = [0, 0], sizes = [8, 16], strides = [1, 1]} : vector<8x64xf32> to vector<8x16xf32>
    %cst_151 = arith.constant 0.000000e+00 : f32
    %468 = vector.broadcast %cst_151 : f32 to vector<8x16xf32>
    %469 = arith.subf %468, %467 : vector<8x16xf32>
    %470 = math.exp %469 : vector<8x16xf32>
    %cst_152 = arith.constant 1.000000e+00 : f32
    %471 = vector.broadcast %cst_152 : f32 to vector<8x16xf32>
    %472 = arith.addf %471, %470 : vector<8x16xf32>
    %cst_153 = arith.constant 1.000000e+00 : f32
    %473 = vector.broadcast %cst_153 : f32 to vector<8x16xf32>
    %474 = arith.divf %473, %472 : vector<8x16xf32>
    %475 = vector.extract_strided_slice %466 {offsets = [0, 16], sizes = [8, 16], strides = [1, 1]} : vector<8x64xf32> to vector<8x16xf32>
    %cst_154 = arith.constant 0.000000e+00 : f32
    %476 = vector.broadcast %cst_154 : f32 to vector<8x16xf32>
    %477 = arith.subf %476, %475 : vector<8x16xf32>
    %478 = math.exp %477 : vector<8x16xf32>
    %cst_155 = arith.constant 1.000000e+00 : f32
    %479 = vector.broadcast %cst_155 : f32 to vector<8x16xf32>
    %480 = arith.addf %479, %478 : vector<8x16xf32>
    %cst_156 = arith.constant 1.000000e+00 : f32
    %481 = vector.broadcast %cst_156 : f32 to vector<8x16xf32>
    %482 = arith.divf %481, %480 : vector<8x16xf32>
    %483 = vector.extract_strided_slice %466 {offsets = [0, 32], sizes = [8, 16], strides = [1, 1]} : vector<8x64xf32> to vector<8x16xf32>
    %484 = math.tanh %483 : vector<8x16xf32>
    %485 = vector.extract_strided_slice %466 {offsets = [0, 48], sizes = [8, 16], strides = [1, 1]} : vector<8x64xf32> to vector<8x16xf32>
    %cst_157 = arith.constant 0.000000e+00 : f32
    %486 = vector.broadcast %cst_157 : f32 to vector<8x16xf32>
    %487 = arith.subf %486, %485 : vector<8x16xf32>
    %488 = math.exp %487 : vector<8x16xf32>
    %cst_158 = arith.constant 1.000000e+00 : f32
    %489 = vector.broadcast %cst_158 : f32 to vector<8x16xf32>
    %490 = arith.addf %489, %488 : vector<8x16xf32>
    %cst_159 = arith.constant 1.000000e+00 : f32
    %491 = vector.broadcast %cst_159 : f32 to vector<8x16xf32>
    %492 = arith.divf %491, %490 : vector<8x16xf32>
    %493 = arith.mulf %482, %413 : vector<8x16xf32>
    %494 = arith.mulf %474, %484 : vector<8x16xf32>
    %495 = arith.addf %493, %494 : vector<8x16xf32>
    %496 = math.tanh %495 : vector<8x16xf32>
    %497 = arith.mulf %492, %496 : vector<8x16xf32>
    %498 = arith.index_cast %422 : i32 to index
    %c0_160 = arith.constant 0 : index
    %499 = vector.load %arg8[%498, %c0_160] : memref<64x32xf32, #tpu.memory_space<vmem>>, vector<8x16xf32>
    tpu.vector_store %arg8[%498, %c0_160], %465 {strides = array<i32>} : memref<64x32xf32, #tpu.memory_space<vmem>>, vector<8x16xf32>,
    %500 = arith.index_cast %424 : i32 to index
    %c16_161 = arith.constant 16 : index
    %501 = vector.load %arg8[%500, %c16_161] : memref<64x32xf32, #tpu.memory_space<vmem>>, vector<8x16xf32>
    tpu.vector_store %arg8[%500, %c16_161], %497 {strides = array<i32>} : memref<64x32xf32, #tpu.memory_space<vmem>>, vector<8x16xf32>,
    %c6_i32 = arith.constant 6 : i32
    %c7_i32_162 = arith.constant 7 : i32
    %502 = arith.subi %c7_i32_162, %c6_i32 : i32
    %c8_i32_163 = arith.constant 8 : i32
    %503 = arith.muli %c6_i32, %c8_i32_163 : i32
    %504 = tpu.assume_multiple %503, 8 : i32
    %c8_i32_164 = arith.constant 8 : i32
    %505 = arith.muli %502, %c8_i32_164 : i32
    %506 = tpu.assume_multiple %505, 8 : i32
    %507 = arith.index_cast %504 : i32 to index
    %c0_165 = arith.constant 0 : index
    %508 = vector.load %arg7[%507, %c0_165] : memref<64x128xf32, #tpu.memory_space<vmem>>, vector<8x64xf32>
    %509 = arith.index_cast %506 : i32 to index
    %c64_166 = arith.constant 64 : index
    %510 = vector.load %arg7[%509, %c64_166] : memref<64x128xf32, #tpu.memory_space<vmem>>, vector<8x64xf32>
    %511 = tpu.concatenate %465, %497 in 1 : vector<8x16xf32>, vector<8x16xf32> -> vector<8x32xf32>
    %512 = arith.truncf %511 : vector<8x32xf32> to vector<8x32xbf16>
    %cst_167 = arith.constant dense<0.000000e+00> : vector<8x128xf32>
    %513 = tpu.matmul %512, %8, %cst_167 {dimension_numbers = #tpu.dot_dimension_numbers<[1], [0], [0], [1], [0, 0, 1, 1], [], []>} : vector<8x32xbf16>, vector<32x128xbf16>, vector<8x128xf32> -> vector<8x128xf32>
    %514 = tpu.concatenate %508, %510 in 1 : vector<8x64xf32>, vector<8x64xf32> -> vector<8x128xf32>
    %515 = arith.addf %513, %514 : vector<8x128xf32>
    %516 = vector.extract_strided_slice %515 {offsets = [0, 0], sizes = [8, 64], strides = [1, 1]} : vector<8x128xf32> to vector<8x64xf32>
    %517 = vector.extract_strided_slice %516 {offsets = [0, 0], sizes = [8, 16], strides = [1, 1]} : vector<8x64xf32> to vector<8x16xf32>
    %cst_168 = arith.constant 0.000000e+00 : f32
    %518 = vector.broadcast %cst_168 : f32 to vector<8x16xf32>
    %519 = arith.subf %518, %517 : vector<8x16xf32>
    %520 = math.exp %519 : vector<8x16xf32>
    %cst_169 = arith.constant 1.000000e+00 : f32
    %521 = vector.broadcast %cst_169 : f32 to vector<8x16xf32>
    %522 = arith.addf %521, %520 : vector<8x16xf32>
    %cst_170 = arith.constant 1.000000e+00 : f32
    %523 = vector.broadcast %cst_170 : f32 to vector<8x16xf32>
    %524 = arith.divf %523, %522 : vector<8x16xf32>
    %525 = vector.extract_strided_slice %516 {offsets = [0, 16], sizes = [8, 16], strides = [1, 1]} : vector<8x64xf32> to vector<8x16xf32>
    %cst_171 = arith.constant 0.000000e+00 : f32
    %526 = vector.broadcast %cst_171 : f32 to vector<8x16xf32>
    %527 = arith.subf %526, %525 : vector<8x16xf32>
    %528 = math.exp %527 : vector<8x16xf32>
    %cst_172 = arith.constant 1.000000e+00 : f32
    %529 = vector.broadcast %cst_172 : f32 to vector<8x16xf32>
    %530 = arith.addf %529, %528 : vector<8x16xf32>
    %cst_173 = arith.constant 1.000000e+00 : f32
    %531 = vector.broadcast %cst_173 : f32 to vector<8x16xf32>
    %532 = arith.divf %531, %530 : vector<8x16xf32>
    %533 = vector.extract_strided_slice %516 {offsets = [0, 32], sizes = [8, 16], strides = [1, 1]} : vector<8x64xf32> to vector<8x16xf32>
    %534 = math.tanh %533 : vector<8x16xf32>
    %535 = vector.extract_strided_slice %516 {offsets = [0, 48], sizes = [8, 16], strides = [1, 1]} : vector<8x64xf32> to vector<8x16xf32>
    %cst_174 = arith.constant 0.000000e+00 : f32
    %536 = vector.broadcast %cst_174 : f32 to vector<8x16xf32>
    %537 = arith.subf %536, %535 : vector<8x16xf32>
    %538 = math.exp %537 : vector<8x16xf32>
    %cst_175 = arith.constant 1.000000e+00 : f32
    %539 = vector.broadcast %cst_175 : f32 to vector<8x16xf32>
    %540 = arith.addf %539, %538 : vector<8x16xf32>
    %cst_176 = arith.constant 1.000000e+00 : f32
    %541 = vector.broadcast %cst_176 : f32 to vector<8x16xf32>
    %542 = arith.divf %541, %540 : vector<8x16xf32>
    %543 = arith.mulf %532, %463 : vector<8x16xf32>
    %544 = arith.mulf %524, %534 : vector<8x16xf32>
    %545 = arith.addf %543, %544 : vector<8x16xf32>
    %546 = math.tanh %545 : vector<8x16xf32>
    %547 = arith.mulf %542, %546 : vector<8x16xf32>
    %548 = vector.extract_strided_slice %515 {offsets = [0, 64], sizes = [8, 64], strides = [1, 1]} : vector<8x128xf32> to vector<8x64xf32>
    %549 = vector.extract_strided_slice %548 {offsets = [0, 0], sizes = [8, 16], strides = [1, 1]} : vector<8x64xf32> to vector<8x16xf32>
    %cst_177 = arith.constant 0.000000e+00 : f32
    %550 = vector.broadcast %cst_177 : f32 to vector<8x16xf32>
    %551 = arith.subf %550, %549 : vector<8x16xf32>
    %552 = math.exp %551 : vector<8x16xf32>
    %cst_178 = arith.constant 1.000000e+00 : f32
    %553 = vector.broadcast %cst_178 : f32 to vector<8x16xf32>
    %554 = arith.addf %553, %552 : vector<8x16xf32>
    %cst_179 = arith.constant 1.000000e+00 : f32
    %555 = vector.broadcast %cst_179 : f32 to vector<8x16xf32>
    %556 = arith.divf %555, %554 : vector<8x16xf32>
    %557 = vector.extract_strided_slice %548 {offsets = [0, 16], sizes = [8, 16], strides = [1, 1]} : vector<8x64xf32> to vector<8x16xf32>
    %cst_180 = arith.constant 0.000000e+00 : f32
    %558 = vector.broadcast %cst_180 : f32 to vector<8x16xf32>
    %559 = arith.subf %558, %557 : vector<8x16xf32>
    %560 = math.exp %559 : vector<8x16xf32>
    %cst_181 = arith.constant 1.000000e+00 : f32
    %561 = vector.broadcast %cst_181 : f32 to vector<8x16xf32>
    %562 = arith.addf %561, %560 : vector<8x16xf32>
    %cst_182 = arith.constant 1.000000e+00 : f32
    %563 = vector.broadcast %cst_182 : f32 to vector<8x16xf32>
    %564 = arith.divf %563, %562 : vector<8x16xf32>
    %565 = vector.extract_strided_slice %548 {offsets = [0, 32], sizes = [8, 16], strides = [1, 1]} : vector<8x64xf32> to vector<8x16xf32>
    %566 = math.tanh %565 : vector<8x16xf32>
    %567 = vector.extract_strided_slice %548 {offsets = [0, 48], sizes = [8, 16], strides = [1, 1]} : vector<8x64xf32> to vector<8x16xf32>
    %cst_183 = arith.constant 0.000000e+00 : f32
    %568 = vector.broadcast %cst_183 : f32 to vector<8x16xf32>
    %569 = arith.subf %568, %567 : vector<8x16xf32>
    %570 = math.exp %569 : vector<8x16xf32>
    %cst_184 = arith.constant 1.000000e+00 : f32
    %571 = vector.broadcast %cst_184 : f32 to vector<8x16xf32>
    %572 = arith.addf %571, %570 : vector<8x16xf32>
    %cst_185 = arith.constant 1.000000e+00 : f32
    %573 = vector.broadcast %cst_185 : f32 to vector<8x16xf32>
    %574 = arith.divf %573, %572 : vector<8x16xf32>
    %575 = arith.mulf %564, %495 : vector<8x16xf32>
    %576 = arith.mulf %556, %566 : vector<8x16xf32>
    %577 = arith.addf %575, %576 : vector<8x16xf32>
    %578 = math.tanh %577 : vector<8x16xf32>
    %579 = arith.mulf %574, %578 : vector<8x16xf32>
    %580 = arith.index_cast %504 : i32 to index
    %c0_186 = arith.constant 0 : index
    %581 = vector.load %arg8[%580, %c0_186] : memref<64x32xf32, #tpu.memory_space<vmem>>, vector<8x16xf32>
    tpu.vector_store %arg8[%580, %c0_186], %547 {strides = array<i32>} : memref<64x32xf32, #tpu.memory_space<vmem>>, vector<8x16xf32>,
    %582 = arith.index_cast %506 : i32 to index
    %c16_187 = arith.constant 16 : index
    %583 = vector.load %arg8[%582, %c16_187] : memref<64x32xf32, #tpu.memory_space<vmem>>, vector<8x16xf32>
    tpu.vector_store %arg8[%582, %c16_187], %579 {strides = array<i32>} : memref<64x32xf32, #tpu.memory_space<vmem>>, vector<8x16xf32>,
    %c7_i32_188 = arith.constant 7 : i32
    %c7_i32_189 = arith.constant 7 : i32
    %584 = arith.subi %c7_i32_189, %c7_i32_188 : i32
    %c8_i32_190 = arith.constant 8 : i32
    %585 = arith.muli %c7_i32_188, %c8_i32_190 : i32
    %586 = tpu.assume_multiple %585, 8 : i32
    %c8_i32_191 = arith.constant 8 : i32
    %587 = arith.muli %584, %c8_i32_191 : i32
    %588 = tpu.assume_multiple %587, 8 : i32
    %589 = arith.index_cast %586 : i32 to index
    %c0_192 = arith.constant 0 : index
    %590 = vector.load %arg7[%589, %c0_192] : memref<64x128xf32, #tpu.memory_space<vmem>>, vector<8x64xf32>
    %591 = arith.index_cast %588 : i32 to index
    %c64_193 = arith.constant 64 : index
    %592 = vector.load %arg7[%591, %c64_193] : memref<64x128xf32, #tpu.memory_space<vmem>>, vector<8x64xf32>
    %593 = tpu.concatenate %547, %579 in 1 : vector<8x16xf32>, vector<8x16xf32> -> vector<8x32xf32>
    %594 = arith.truncf %593 : vector<8x32xf32> to vector<8x32xbf16>
    %cst_194 = arith.constant dense<0.000000e+00> : vector<8x128xf32>
    %595 = tpu.matmul %594, %8, %cst_194 {dimension_numbers = #tpu.dot_dimension_numbers<[1], [0], [0], [1], [0, 0, 1, 1], [], []>} : vector<8x32xbf16>, vector<32x128xbf16>, vector<8x128xf32> -> vector<8x128xf32>
    %596 = tpu.concatenate %590, %592 in 1 : vector<8x64xf32>, vector<8x64xf32> -> vector<8x128xf32>
    %597 = arith.addf %595, %596 : vector<8x128xf32>
    %598 = vector.extract_strided_slice %597 {offsets = [0, 0], sizes = [8, 64], strides = [1, 1]} : vector<8x128xf32> to vector<8x64xf32>
    %599 = vector.extract_strided_slice %598 {offsets = [0, 0], sizes = [8, 16], strides = [1, 1]} : vector<8x64xf32> to vector<8x16xf32>
    %cst_195 = arith.constant 0.000000e+00 : f32
    %600 = vector.broadcast %cst_195 : f32 to vector<8x16xf32>
    %601 = arith.subf %600, %599 : vector<8x16xf32>
    %602 = math.exp %601 : vector<8x16xf32>
    %cst_196 = arith.constant 1.000000e+00 : f32
    %603 = vector.broadcast %cst_196 : f32 to vector<8x16xf32>
    %604 = arith.addf %603, %602 : vector<8x16xf32>
    %cst_197 = arith.constant 1.000000e+00 : f32
    %605 = vector.broadcast %cst_197 : f32 to vector<8x16xf32>
    %606 = arith.divf %605, %604 : vector<8x16xf32>
    %607 = vector.extract_strided_slice %598 {offsets = [0, 16], sizes = [8, 16], strides = [1, 1]} : vector<8x64xf32> to vector<8x16xf32>
    %cst_198 = arith.constant 0.000000e+00 : f32
    %608 = vector.broadcast %cst_198 : f32 to vector<8x16xf32>
    %609 = arith.subf %608, %607 : vector<8x16xf32>
    %610 = math.exp %609 : vector<8x16xf32>
    %cst_199 = arith.constant 1.000000e+00 : f32
    %611 = vector.broadcast %cst_199 : f32 to vector<8x16xf32>
    %612 = arith.addf %611, %610 : vector<8x16xf32>
    %cst_200 = arith.constant 1.000000e+00 : f32
    %613 = vector.broadcast %cst_200 : f32 to vector<8x16xf32>
    %614 = arith.divf %613, %612 : vector<8x16xf32>
    %615 = vector.extract_strided_slice %598 {offsets = [0, 32], sizes = [8, 16], strides = [1, 1]} : vector<8x64xf32> to vector<8x16xf32>
    %616 = math.tanh %615 : vector<8x16xf32>
    %617 = vector.extract_strided_slice %598 {offsets = [0, 48], sizes = [8, 16], strides = [1, 1]} : vector<8x64xf32> to vector<8x16xf32>
    %cst_201 = arith.constant 0.000000e+00 : f32
    %618 = vector.broadcast %cst_201 : f32 to vector<8x16xf32>
    %619 = arith.subf %618, %617 : vector<8x16xf32>
    %620 = math.exp %619 : vector<8x16xf32>
    %cst_202 = arith.constant 1.000000e+00 : f32
    %621 = vector.broadcast %cst_202 : f32 to vector<8x16xf32>
    %622 = arith.addf %621, %620 : vector<8x16xf32>
    %cst_203 = arith.constant 1.000000e+00 : f32
    %623 = vector.broadcast %cst_203 : f32 to vector<8x16xf32>
    %624 = arith.divf %623, %622 : vector<8x16xf32>
    %625 = arith.mulf %614, %545 : vector<8x16xf32>
    %626 = arith.mulf %606, %616 : vector<8x16xf32>
    %627 = arith.addf %625, %626 : vector<8x16xf32>
    %628 = math.tanh %627 : vector<8x16xf32>
    %629 = arith.mulf %624, %628 : vector<8x16xf32>
    %630 = vector.extract_strided_slice %597 {offsets = [0, 64], sizes = [8, 64], strides = [1, 1]} : vector<8x128xf32> to vector<8x64xf32>
    %631 = vector.extract_strided_slice %630 {offsets = [0, 0], sizes = [8, 16], strides = [1, 1]} : vector<8x64xf32> to vector<8x16xf32>
    %cst_204 = arith.constant 0.000000e+00 : f32
    %632 = vector.broadcast %cst_204 : f32 to vector<8x16xf32>
    %633 = arith.subf %632, %631 : vector<8x16xf32>
    %634 = math.exp %633 : vector<8x16xf32>
    %cst_205 = arith.constant 1.000000e+00 : f32
    %635 = vector.broadcast %cst_205 : f32 to vector<8x16xf32>
    %636 = arith.addf %635, %634 : vector<8x16xf32>
    %cst_206 = arith.constant 1.000000e+00 : f32
    %637 = vector.broadcast %cst_206 : f32 to vector<8x16xf32>
    %638 = arith.divf %637, %636 : vector<8x16xf32>
    %639 = vector.extract_strided_slice %630 {offsets = [0, 16], sizes = [8, 16], strides = [1, 1]} : vector<8x64xf32> to vector<8x16xf32>
    %cst_207 = arith.constant 0.000000e+00 : f32
    %640 = vector.broadcast %cst_207 : f32 to vector<8x16xf32>
    %641 = arith.subf %640, %639 : vector<8x16xf32>
    %642 = math.exp %641 : vector<8x16xf32>
    %cst_208 = arith.constant 1.000000e+00 : f32
    %643 = vector.broadcast %cst_208 : f32 to vector<8x16xf32>
    %644 = arith.addf %643, %642 : vector<8x16xf32>
    %cst_209 = arith.constant 1.000000e+00 : f32
    %645 = vector.broadcast %cst_209 : f32 to vector<8x16xf32>
    %646 = arith.divf %645, %644 : vector<8x16xf32>
    %647 = vector.extract_strided_slice %630 {offsets = [0, 32], sizes = [8, 16], strides = [1, 1]} : vector<8x64xf32> to vector<8x16xf32>
    %648 = math.tanh %647 : vector<8x16xf32>
    %649 = vector.extract_strided_slice %630 {offsets = [0, 48], sizes = [8, 16], strides = [1, 1]} : vector<8x64xf32> to vector<8x16xf32>
    %cst_210 = arith.constant 0.000000e+00 : f32
    %650 = vector.broadcast %cst_210 : f32 to vector<8x16xf32>
    %651 = arith.subf %650, %649 : vector<8x16xf32>
    %652 = math.exp %651 : vector<8x16xf32>
    %cst_211 = arith.constant 1.000000e+00 : f32
    %653 = vector.broadcast %cst_211 : f32 to vector<8x16xf32>
    %654 = arith.addf %653, %652 : vector<8x16xf32>
    %cst_212 = arith.constant 1.000000e+00 : f32
    %655 = vector.broadcast %cst_212 : f32 to vector<8x16xf32>
    %656 = arith.divf %655, %654 : vector<8x16xf32>
    %657 = arith.mulf %646, %577 : vector<8x16xf32>
    %658 = arith.mulf %638, %648 : vector<8x16xf32>
    %659 = arith.addf %657, %658 : vector<8x16xf32>
    %660 = math.tanh %659 : vector<8x16xf32>
    %661 = arith.mulf %656, %660 : vector<8x16xf32>
    %662 = arith.index_cast %586 : i32 to index
    %c0_213 = arith.constant 0 : index
    %663 = vector.load %arg8[%662, %c0_213] : memref<64x32xf32, #tpu.memory_space<vmem>>, vector<8x16xf32>
    tpu.vector_store %arg8[%662, %c0_213], %629 {strides = array<i32>} : memref<64x32xf32, #tpu.memory_space<vmem>>, vector<8x16xf32>,
    %664 = arith.index_cast %588 : i32 to index
    %c16_214 = arith.constant 16 : index
    %665 = vector.load %arg8[%664, %c16_214] : memref<64x32xf32, #tpu.memory_space<vmem>>, vector<8x16xf32>
    tpu.vector_store %arg8[%664, %c16_214], %661 {strides = array<i32>} : memref<64x32xf32, #tpu.memory_space<vmem>>, vector<8x16xf32>,
    %c8_i32_215 = arith.constant 8 : i32
    %c0_216 = arith.constant 0 : index
    %c0_217 = arith.constant 0 : index
    %666 = vector.load %arg8[%c0_216, %c0_217] : memref<64x32xf32, #tpu.memory_space<vmem>>, vector<64x32xf32>
    %667 = arith.truncf %666 : vector<64x32xf32> to vector<64x32xbf16>
    %c0_218 = arith.constant 0 : index
    %c0_219 = arith.constant 0 : index
    %668 = vector.load %arg4[%c0_218, %c0_219] : memref<32x128xbf16, #tpu.memory_space<vmem>>, vector<32x128xbf16>
    %cst_220 = arith.constant dense<0.000000e+00> : vector<64x128xf32>
    %669 = tpu.matmul %667, %668, %cst_220 {dimension_numbers = #tpu.dot_dimension_numbers<[1], [0], [0], [1], [0, 0, 1, 1], [], []>} : vector<64x32xbf16>, vector<32x128xbf16>, vector<64x128xf32> -> vector<64x128xf32>
    %c0_221 = arith.constant 0 : index
    %c0_222 = arith.constant 0 : index
    %670 = vector.load %arg5[%c0_221, %c0_222] : memref<1x128xf32, #tpu.memory_space<vmem>>, vector<1x128xf32>
    %671 = vector.broadcast %670 : vector<1x128xf32> to vector<64x128xf32>
    %672 = arith.addf %669, %671 : vector<64x128xf32>
    %c0_223 = arith.constant 0 : index
    %c0_224 = arith.constant 0 : index
    %673 = vector.load %arg6[%c0_223, %c0_224] : memref<64x128xf32, #tpu.memory_space<vmem>>, vector<64x128xf32>
    tpu.vector_store %arg6[%c0_223, %c0_224], %672 {strides = array<i32>} : memref<64x128xf32, #tpu.memory_space<vmem>>, vector<64x128xf32>,
    return
  }
}

module attributes {stable_mosaic.version = 11 : i64} {
  func.func @_crf_kernel(%arg0: memref<64x128xf32, #tpu.memory_space<vmem>>, %arg1: memref<64x1xf32, #tpu.memory_space<vmem>>, %arg2: memref<1x8xf32, #tpu.memory_space<vmem>>, %arg3: memref<1x8xf32, #tpu.memory_space<vmem>>, %arg4: memref<8x8xf32, #tpu.memory_space<vmem>>, %arg5: memref<7x8x8xi32, #tpu.memory_space<vmem>>, %arg6: memref<8x8xf32, #tpu.memory_space<vmem>>) attributes {dimension_semantics = [], scalar_prefetch = 0 : i64, scratch_operands = 0 : i64, tpu.core_type = #tpu.core_type<tc>} {
    %c0 = arith.constant 0 : index
    %c0_0 = arith.constant 0 : index
    %0 = vector.load %arg4[%c0, %c0_0] : memref<8x8xf32, #tpu.memory_space<vmem>>, vector<8x8xf32>
    %c0_1 = arith.constant 0 : index
    %c0_2 = arith.constant 0 : index
    %1 = vector.load %arg2[%c0_1, %c0_2] : memref<1x8xf32, #tpu.memory_space<vmem>>, vector<1x8xf32>
    %c0_3 = arith.constant 0 : index
    %c0_4 = arith.constant 0 : index
    %2 = vector.load %arg0[%c0_3, %c0_4] : memref<64x128xf32, #tpu.memory_space<vmem>>, vector<8x8xf32>
    %3 = vector.broadcast %1 : vector<1x8xf32> to vector<8x8xf32>
    %4 = arith.addf %3, %2 : vector<8x8xf32>
    %c1_i32 = arith.constant 1 : i32
    %c8_i32 = arith.constant 8 : i32
    %5 = arith.muli %c1_i32, %c8_i32 : i32
    %6 = tpu.assume_multiple %5, 8 : i32
    %7 = arith.index_cast %6 : i32 to index
    %c0_5 = arith.constant 0 : index
    %8 = vector.load %arg0[%7, %c0_5] : memref<64x128xf32, #tpu.memory_space<vmem>>, vector<8x8xf32>
    %9 = vector.shape_cast %4 : vector<8x8xf32> to vector<8x1x8xf32>
    %10 = vector.shape_cast %0 : vector<8x8xf32> to vector<1x8x8xf32>
    %11 = vector.broadcast %9 : vector<8x1x8xf32> to vector<8x8x8xf32>
    %12 = vector.broadcast %10 : vector<1x8x8xf32> to vector<8x8x8xf32>
    %13 = arith.addf %11, %12 : vector<8x8x8xf32>
    %14 = vector.shape_cast %8 : vector<8x8xf32> to vector<8x8x1xf32>
    %15 = vector.broadcast %14 : vector<8x8x1xf32> to vector<8x8x8xf32>
    %16 = arith.addf %13, %15 : vector<8x8x8xf32>
    %cst = arith.constant dense<0xFF800000> : vector<8x8xf32>
    %17 = vector.multi_reduction <maximumf>, %16, %cst [2] : vector<8x8x8xf32> to vector<8x8xf32>
    %cst_6 = arith.constant dense<0xFF800000> : vector<8x8xf32>
    %18 = vector.multi_reduction <maximumf>, %16, %cst_6 [2] : vector<8x8x8xf32> to vector<8x8xf32>
    %19 = vector.shape_cast %18 : vector<8x8xf32> to vector<8x8x1xf32>
    %20 = tpu.iota {dimensions = array<i32: 2>} : vector<8x8x8xi32>
    %21 = vector.broadcast %19 : vector<8x8x1xf32> to vector<8x8x8xf32>
    %22 = arith.cmpf oge, %16, %21 : vector<8x8x8xf32>
    %c8_i32_7 = arith.constant 8 : i32
    %23 = vector.broadcast %c8_i32_7 : i32 to vector<8x8x8xi32>
    %24 = arith.select %22, %20, %23 : vector<8x8x8xi1>, vector<8x8x8xi32>
    %cst_8 = arith.constant dense<2147483647> : vector<8x8xi32>
    %25 = vector.multi_reduction <minsi>, %24, %cst_8 [2] : vector<8x8x8xi32> to vector<8x8xi32>
    %26 = arith.index_cast %6 : i32 to index
    %c0_9 = arith.constant 0 : index
    %27 = vector.load %arg1[%26, %c0_9] : memref<64x1xf32, #tpu.memory_space<vmem>>, vector<8x1xf32>
    %c1_i32_10 = arith.constant 1 : i32
    %28 = arith.subi %c1_i32, %c1_i32_10 : i32
    %29 = arith.index_cast %28 : i32 to index
    %c0_11 = arith.constant 0 : index
    %c0_12 = arith.constant 0 : index
    %30 = vector.load %arg5[%29, %c0_11, %c0_12] : memref<7x8x8xi32, #tpu.memory_space<vmem>>, vector<1x8x8xi32>
    %31 = vector.shape_cast %30 : vector<1x8x8xi32> to vector<8x8xi32>
    %32 = vector.shape_cast %25 : vector<8x8xi32> to vector<1x8x8xi32>
    tpu.vector_store %arg5[%29, %c0_11, %c0_12], %32 {strides = array<i32>} : memref<7x8x8xi32, #tpu.memory_space<vmem>>, vector<1x8x8xi32>,
    %cst_13 = arith.constant 5.000000e-01 : f32
    %33 = vector.broadcast %cst_13 : f32 to vector<8x1xf32>
    %34 = arith.cmpf ogt, %27, %33 : vector<8x1xf32>
    %35 = vector.shape_cast %34 : vector<8x1xi1> to vector<8x1xi1>
    %36 = vector.broadcast %35 : vector<8x1xi1> to vector<8x8xi1>
    %37 = arith.select %36, %17, %4 : vector<8x8xi1>, vector<8x8xf32>
    %c2_i32 = arith.constant 2 : i32
    %c8_i32_14 = arith.constant 8 : i32
    %38 = arith.muli %c2_i32, %c8_i32_14 : i32
    %39 = tpu.assume_multiple %38, 8 : i32
    %40 = arith.index_cast %39 : i32 to index
    %c0_15 = arith.constant 0 : index
    %41 = vector.load %arg0[%40, %c0_15] : memref<64x128xf32, #tpu.memory_space<vmem>>, vector<8x8xf32>
    %42 = vector.shape_cast %37 : vector<8x8xf32> to vector<8x1x8xf32>
    %43 = vector.shape_cast %0 : vector<8x8xf32> to vector<1x8x8xf32>
    %44 = vector.broadcast %42 : vector<8x1x8xf32> to vector<8x8x8xf32>
    %45 = vector.broadcast %43 : vector<1x8x8xf32> to vector<8x8x8xf32>
    %46 = arith.addf %44, %45 : vector<8x8x8xf32>
    %47 = vector.shape_cast %41 : vector<8x8xf32> to vector<8x8x1xf32>
    %48 = vector.broadcast %47 : vector<8x8x1xf32> to vector<8x8x8xf32>
    %49 = arith.addf %46, %48 : vector<8x8x8xf32>
    %cst_16 = arith.constant dense<0xFF800000> : vector<8x8xf32>
    %50 = vector.multi_reduction <maximumf>, %49, %cst_16 [2] : vector<8x8x8xf32> to vector<8x8xf32>
    %cst_17 = arith.constant dense<0xFF800000> : vector<8x8xf32>
    %51 = vector.multi_reduction <maximumf>, %49, %cst_17 [2] : vector<8x8x8xf32> to vector<8x8xf32>
    %52 = vector.shape_cast %51 : vector<8x8xf32> to vector<8x8x1xf32>
    %53 = tpu.iota {dimensions = array<i32: 2>} : vector<8x8x8xi32>
    %54 = vector.broadcast %52 : vector<8x8x1xf32> to vector<8x8x8xf32>
    %55 = arith.cmpf oge, %49, %54 : vector<8x8x8xf32>
    %c8_i32_18 = arith.constant 8 : i32
    %56 = vector.broadcast %c8_i32_18 : i32 to vector<8x8x8xi32>
    %57 = arith.select %55, %53, %56 : vector<8x8x8xi1>, vector<8x8x8xi32>
    %cst_19 = arith.constant dense<2147483647> : vector<8x8xi32>
    %58 = vector.multi_reduction <minsi>, %57, %cst_19 [2] : vector<8x8x8xi32> to vector<8x8xi32>
    %59 = arith.index_cast %39 : i32 to index
    %c0_20 = arith.constant 0 : index
    %60 = vector.load %arg1[%59, %c0_20] : memref<64x1xf32, #tpu.memory_space<vmem>>, vector<8x1xf32>
    %c1_i32_21 = arith.constant 1 : i32
    %61 = arith.subi %c2_i32, %c1_i32_21 : i32
    %62 = arith.index_cast %61 : i32 to index
    %c0_22 = arith.constant 0 : index
    %c0_23 = arith.constant 0 : index
    %63 = vector.load %arg5[%62, %c0_22, %c0_23] : memref<7x8x8xi32, #tpu.memory_space<vmem>>, vector<1x8x8xi32>
    %64 = vector.shape_cast %63 : vector<1x8x8xi32> to vector<8x8xi32>
    %65 = vector.shape_cast %58 : vector<8x8xi32> to vector<1x8x8xi32>
    tpu.vector_store %arg5[%62, %c0_22, %c0_23], %65 {strides = array<i32>} : memref<7x8x8xi32, #tpu.memory_space<vmem>>, vector<1x8x8xi32>,
    %cst_24 = arith.constant 5.000000e-01 : f32
    %66 = vector.broadcast %cst_24 : f32 to vector<8x1xf32>
    %67 = arith.cmpf ogt, %60, %66 : vector<8x1xf32>
    %68 = vector.shape_cast %67 : vector<8x1xi1> to vector<8x1xi1>
    %69 = vector.broadcast %68 : vector<8x1xi1> to vector<8x8xi1>
    %70 = arith.select %69, %50, %37 : vector<8x8xi1>, vector<8x8xf32>
    %c3_i32 = arith.constant 3 : i32
    %c8_i32_25 = arith.constant 8 : i32
    %71 = arith.muli %c3_i32, %c8_i32_25 : i32
    %72 = tpu.assume_multiple %71, 8 : i32
    %73 = arith.index_cast %72 : i32 to index
    %c0_26 = arith.constant 0 : index
    %74 = vector.load %arg0[%73, %c0_26] : memref<64x128xf32, #tpu.memory_space<vmem>>, vector<8x8xf32>
    %75 = vector.shape_cast %70 : vector<8x8xf32> to vector<8x1x8xf32>
    %76 = vector.shape_cast %0 : vector<8x8xf32> to vector<1x8x8xf32>
    %77 = vector.broadcast %75 : vector<8x1x8xf32> to vector<8x8x8xf32>
    %78 = vector.broadcast %76 : vector<1x8x8xf32> to vector<8x8x8xf32>
    %79 = arith.addf %77, %78 : vector<8x8x8xf32>
    %80 = vector.shape_cast %74 : vector<8x8xf32> to vector<8x8x1xf32>
    %81 = vector.broadcast %80 : vector<8x8x1xf32> to vector<8x8x8xf32>
    %82 = arith.addf %79, %81 : vector<8x8x8xf32>
    %cst_27 = arith.constant dense<0xFF800000> : vector<8x8xf32>
    %83 = vector.multi_reduction <maximumf>, %82, %cst_27 [2] : vector<8x8x8xf32> to vector<8x8xf32>
    %cst_28 = arith.constant dense<0xFF800000> : vector<8x8xf32>
    %84 = vector.multi_reduction <maximumf>, %82, %cst_28 [2] : vector<8x8x8xf32> to vector<8x8xf32>
    %85 = vector.shape_cast %84 : vector<8x8xf32> to vector<8x8x1xf32>
    %86 = tpu.iota {dimensions = array<i32: 2>} : vector<8x8x8xi32>
    %87 = vector.broadcast %85 : vector<8x8x1xf32> to vector<8x8x8xf32>
    %88 = arith.cmpf oge, %82, %87 : vector<8x8x8xf32>
    %c8_i32_29 = arith.constant 8 : i32
    %89 = vector.broadcast %c8_i32_29 : i32 to vector<8x8x8xi32>
    %90 = arith.select %88, %86, %89 : vector<8x8x8xi1>, vector<8x8x8xi32>
    %cst_30 = arith.constant dense<2147483647> : vector<8x8xi32>
    %91 = vector.multi_reduction <minsi>, %90, %cst_30 [2] : vector<8x8x8xi32> to vector<8x8xi32>
    %92 = arith.index_cast %72 : i32 to index
    %c0_31 = arith.constant 0 : index
    %93 = vector.load %arg1[%92, %c0_31] : memref<64x1xf32, #tpu.memory_space<vmem>>, vector<8x1xf32>
    %c1_i32_32 = arith.constant 1 : i32
    %94 = arith.subi %c3_i32, %c1_i32_32 : i32
    %95 = arith.index_cast %94 : i32 to index
    %c0_33 = arith.constant 0 : index
    %c0_34 = arith.constant 0 : index
    %96 = vector.load %arg5[%95, %c0_33, %c0_34] : memref<7x8x8xi32, #tpu.memory_space<vmem>>, vector<1x8x8xi32>
    %97 = vector.shape_cast %96 : vector<1x8x8xi32> to vector<8x8xi32>
    %98 = vector.shape_cast %91 : vector<8x8xi32> to vector<1x8x8xi32>
    tpu.vector_store %arg5[%95, %c0_33, %c0_34], %98 {strides = array<i32>} : memref<7x8x8xi32, #tpu.memory_space<vmem>>, vector<1x8x8xi32>,
    %cst_35 = arith.constant 5.000000e-01 : f32
    %99 = vector.broadcast %cst_35 : f32 to vector<8x1xf32>
    %100 = arith.cmpf ogt, %93, %99 : vector<8x1xf32>
    %101 = vector.shape_cast %100 : vector<8x1xi1> to vector<8x1xi1>
    %102 = vector.broadcast %101 : vector<8x1xi1> to vector<8x8xi1>
    %103 = arith.select %102, %83, %70 : vector<8x8xi1>, vector<8x8xf32>
    %c4_i32 = arith.constant 4 : i32
    %c8_i32_36 = arith.constant 8 : i32
    %104 = arith.muli %c4_i32, %c8_i32_36 : i32
    %105 = tpu.assume_multiple %104, 8 : i32
    %106 = arith.index_cast %105 : i32 to index
    %c0_37 = arith.constant 0 : index
    %107 = vector.load %arg0[%106, %c0_37] : memref<64x128xf32, #tpu.memory_space<vmem>>, vector<8x8xf32>
    %108 = vector.shape_cast %103 : vector<8x8xf32> to vector<8x1x8xf32>
    %109 = vector.shape_cast %0 : vector<8x8xf32> to vector<1x8x8xf32>
    %110 = vector.broadcast %108 : vector<8x1x8xf32> to vector<8x8x8xf32>
    %111 = vector.broadcast %109 : vector<1x8x8xf32> to vector<8x8x8xf32>
    %112 = arith.addf %110, %111 : vector<8x8x8xf32>
    %113 = vector.shape_cast %107 : vector<8x8xf32> to vector<8x8x1xf32>
    %114 = vector.broadcast %113 : vector<8x8x1xf32> to vector<8x8x8xf32>
    %115 = arith.addf %112, %114 : vector<8x8x8xf32>
    %cst_38 = arith.constant dense<0xFF800000> : vector<8x8xf32>
    %116 = vector.multi_reduction <maximumf>, %115, %cst_38 [2] : vector<8x8x8xf32> to vector<8x8xf32>
    %cst_39 = arith.constant dense<0xFF800000> : vector<8x8xf32>
    %117 = vector.multi_reduction <maximumf>, %115, %cst_39 [2] : vector<8x8x8xf32> to vector<8x8xf32>
    %118 = vector.shape_cast %117 : vector<8x8xf32> to vector<8x8x1xf32>
    %119 = tpu.iota {dimensions = array<i32: 2>} : vector<8x8x8xi32>
    %120 = vector.broadcast %118 : vector<8x8x1xf32> to vector<8x8x8xf32>
    %121 = arith.cmpf oge, %115, %120 : vector<8x8x8xf32>
    %c8_i32_40 = arith.constant 8 : i32
    %122 = vector.broadcast %c8_i32_40 : i32 to vector<8x8x8xi32>
    %123 = arith.select %121, %119, %122 : vector<8x8x8xi1>, vector<8x8x8xi32>
    %cst_41 = arith.constant dense<2147483647> : vector<8x8xi32>
    %124 = vector.multi_reduction <minsi>, %123, %cst_41 [2] : vector<8x8x8xi32> to vector<8x8xi32>
    %125 = arith.index_cast %105 : i32 to index
    %c0_42 = arith.constant 0 : index
    %126 = vector.load %arg1[%125, %c0_42] : memref<64x1xf32, #tpu.memory_space<vmem>>, vector<8x1xf32>
    %c1_i32_43 = arith.constant 1 : i32
    %127 = arith.subi %c4_i32, %c1_i32_43 : i32
    %128 = arith.index_cast %127 : i32 to index
    %c0_44 = arith.constant 0 : index
    %c0_45 = arith.constant 0 : index
    %129 = vector.load %arg5[%128, %c0_44, %c0_45] : memref<7x8x8xi32, #tpu.memory_space<vmem>>, vector<1x8x8xi32>
    %130 = vector.shape_cast %129 : vector<1x8x8xi32> to vector<8x8xi32>
    %131 = vector.shape_cast %124 : vector<8x8xi32> to vector<1x8x8xi32>
    tpu.vector_store %arg5[%128, %c0_44, %c0_45], %131 {strides = array<i32>} : memref<7x8x8xi32, #tpu.memory_space<vmem>>, vector<1x8x8xi32>,
    %cst_46 = arith.constant 5.000000e-01 : f32
    %132 = vector.broadcast %cst_46 : f32 to vector<8x1xf32>
    %133 = arith.cmpf ogt, %126, %132 : vector<8x1xf32>
    %134 = vector.shape_cast %133 : vector<8x1xi1> to vector<8x1xi1>
    %135 = vector.broadcast %134 : vector<8x1xi1> to vector<8x8xi1>
    %136 = arith.select %135, %116, %103 : vector<8x8xi1>, vector<8x8xf32>
    %c5_i32 = arith.constant 5 : i32
    %c8_i32_47 = arith.constant 8 : i32
    %137 = arith.muli %c5_i32, %c8_i32_47 : i32
    %138 = tpu.assume_multiple %137, 8 : i32
    %139 = arith.index_cast %138 : i32 to index
    %c0_48 = arith.constant 0 : index
    %140 = vector.load %arg0[%139, %c0_48] : memref<64x128xf32, #tpu.memory_space<vmem>>, vector<8x8xf32>
    %141 = vector.shape_cast %136 : vector<8x8xf32> to vector<8x1x8xf32>
    %142 = vector.shape_cast %0 : vector<8x8xf32> to vector<1x8x8xf32>
    %143 = vector.broadcast %141 : vector<8x1x8xf32> to vector<8x8x8xf32>
    %144 = vector.broadcast %142 : vector<1x8x8xf32> to vector<8x8x8xf32>
    %145 = arith.addf %143, %144 : vector<8x8x8xf32>
    %146 = vector.shape_cast %140 : vector<8x8xf32> to vector<8x8x1xf32>
    %147 = vector.broadcast %146 : vector<8x8x1xf32> to vector<8x8x8xf32>
    %148 = arith.addf %145, %147 : vector<8x8x8xf32>
    %cst_49 = arith.constant dense<0xFF800000> : vector<8x8xf32>
    %149 = vector.multi_reduction <maximumf>, %148, %cst_49 [2] : vector<8x8x8xf32> to vector<8x8xf32>
    %cst_50 = arith.constant dense<0xFF800000> : vector<8x8xf32>
    %150 = vector.multi_reduction <maximumf>, %148, %cst_50 [2] : vector<8x8x8xf32> to vector<8x8xf32>
    %151 = vector.shape_cast %150 : vector<8x8xf32> to vector<8x8x1xf32>
    %152 = tpu.iota {dimensions = array<i32: 2>} : vector<8x8x8xi32>
    %153 = vector.broadcast %151 : vector<8x8x1xf32> to vector<8x8x8xf32>
    %154 = arith.cmpf oge, %148, %153 : vector<8x8x8xf32>
    %c8_i32_51 = arith.constant 8 : i32
    %155 = vector.broadcast %c8_i32_51 : i32 to vector<8x8x8xi32>
    %156 = arith.select %154, %152, %155 : vector<8x8x8xi1>, vector<8x8x8xi32>
    %cst_52 = arith.constant dense<2147483647> : vector<8x8xi32>
    %157 = vector.multi_reduction <minsi>, %156, %cst_52 [2] : vector<8x8x8xi32> to vector<8x8xi32>
    %158 = arith.index_cast %138 : i32 to index
    %c0_53 = arith.constant 0 : index
    %159 = vector.load %arg1[%158, %c0_53] : memref<64x1xf32, #tpu.memory_space<vmem>>, vector<8x1xf32>
    %c1_i32_54 = arith.constant 1 : i32
    %160 = arith.subi %c5_i32, %c1_i32_54 : i32
    %161 = arith.index_cast %160 : i32 to index
    %c0_55 = arith.constant 0 : index
    %c0_56 = arith.constant 0 : index
    %162 = vector.load %arg5[%161, %c0_55, %c0_56] : memref<7x8x8xi32, #tpu.memory_space<vmem>>, vector<1x8x8xi32>
    %163 = vector.shape_cast %162 : vector<1x8x8xi32> to vector<8x8xi32>
    %164 = vector.shape_cast %157 : vector<8x8xi32> to vector<1x8x8xi32>
    tpu.vector_store %arg5[%161, %c0_55, %c0_56], %164 {strides = array<i32>} : memref<7x8x8xi32, #tpu.memory_space<vmem>>, vector<1x8x8xi32>,
    %cst_57 = arith.constant 5.000000e-01 : f32
    %165 = vector.broadcast %cst_57 : f32 to vector<8x1xf32>
    %166 = arith.cmpf ogt, %159, %165 : vector<8x1xf32>
    %167 = vector.shape_cast %166 : vector<8x1xi1> to vector<8x1xi1>
    %168 = vector.broadcast %167 : vector<8x1xi1> to vector<8x8xi1>
    %169 = arith.select %168, %149, %136 : vector<8x8xi1>, vector<8x8xf32>
    %c6_i32 = arith.constant 6 : i32
    %c8_i32_58 = arith.constant 8 : i32
    %170 = arith.muli %c6_i32, %c8_i32_58 : i32
    %171 = tpu.assume_multiple %170, 8 : i32
    %172 = arith.index_cast %171 : i32 to index
    %c0_59 = arith.constant 0 : index
    %173 = vector.load %arg0[%172, %c0_59] : memref<64x128xf32, #tpu.memory_space<vmem>>, vector<8x8xf32>
    %174 = vector.shape_cast %169 : vector<8x8xf32> to vector<8x1x8xf32>
    %175 = vector.shape_cast %0 : vector<8x8xf32> to vector<1x8x8xf32>
    %176 = vector.broadcast %174 : vector<8x1x8xf32> to vector<8x8x8xf32>
    %177 = vector.broadcast %175 : vector<1x8x8xf32> to vector<8x8x8xf32>
    %178 = arith.addf %176, %177 : vector<8x8x8xf32>
    %179 = vector.shape_cast %173 : vector<8x8xf32> to vector<8x8x1xf32>
    %180 = vector.broadcast %179 : vector<8x8x1xf32> to vector<8x8x8xf32>
    %181 = arith.addf %178, %180 : vector<8x8x8xf32>
    %cst_60 = arith.constant dense<0xFF800000> : vector<8x8xf32>
    %182 = vector.multi_reduction <maximumf>, %181, %cst_60 [2] : vector<8x8x8xf32> to vector<8x8xf32>
    %cst_61 = arith.constant dense<0xFF800000> : vector<8x8xf32>
    %183 = vector.multi_reduction <maximumf>, %181, %cst_61 [2] : vector<8x8x8xf32> to vector<8x8xf32>
    %184 = vector.shape_cast %183 : vector<8x8xf32> to vector<8x8x1xf32>
    %185 = tpu.iota {dimensions = array<i32: 2>} : vector<8x8x8xi32>
    %186 = vector.broadcast %184 : vector<8x8x1xf32> to vector<8x8x8xf32>
    %187 = arith.cmpf oge, %181, %186 : vector<8x8x8xf32>
    %c8_i32_62 = arith.constant 8 : i32
    %188 = vector.broadcast %c8_i32_62 : i32 to vector<8x8x8xi32>
    %189 = arith.select %187, %185, %188 : vector<8x8x8xi1>, vector<8x8x8xi32>
    %cst_63 = arith.constant dense<2147483647> : vector<8x8xi32>
    %190 = vector.multi_reduction <minsi>, %189, %cst_63 [2] : vector<8x8x8xi32> to vector<8x8xi32>
    %191 = arith.index_cast %171 : i32 to index
    %c0_64 = arith.constant 0 : index
    %192 = vector.load %arg1[%191, %c0_64] : memref<64x1xf32, #tpu.memory_space<vmem>>, vector<8x1xf32>
    %c1_i32_65 = arith.constant 1 : i32
    %193 = arith.subi %c6_i32, %c1_i32_65 : i32
    %194 = arith.index_cast %193 : i32 to index
    %c0_66 = arith.constant 0 : index
    %c0_67 = arith.constant 0 : index
    %195 = vector.load %arg5[%194, %c0_66, %c0_67] : memref<7x8x8xi32, #tpu.memory_space<vmem>>, vector<1x8x8xi32>
    %196 = vector.shape_cast %195 : vector<1x8x8xi32> to vector<8x8xi32>
    %197 = vector.shape_cast %190 : vector<8x8xi32> to vector<1x8x8xi32>
    tpu.vector_store %arg5[%194, %c0_66, %c0_67], %197 {strides = array<i32>} : memref<7x8x8xi32, #tpu.memory_space<vmem>>, vector<1x8x8xi32>,
    %cst_68 = arith.constant 5.000000e-01 : f32
    %198 = vector.broadcast %cst_68 : f32 to vector<8x1xf32>
    %199 = arith.cmpf ogt, %192, %198 : vector<8x1xf32>
    %200 = vector.shape_cast %199 : vector<8x1xi1> to vector<8x1xi1>
    %201 = vector.broadcast %200 : vector<8x1xi1> to vector<8x8xi1>
    %202 = arith.select %201, %182, %169 : vector<8x8xi1>, vector<8x8xf32>
    %c7_i32 = arith.constant 7 : i32
    %c8_i32_69 = arith.constant 8 : i32
    %203 = arith.muli %c7_i32, %c8_i32_69 : i32
    %204 = tpu.assume_multiple %203, 8 : i32
    %205 = arith.index_cast %204 : i32 to index
    %c0_70 = arith.constant 0 : index
    %206 = vector.load %arg0[%205, %c0_70] : memref<64x128xf32, #tpu.memory_space<vmem>>, vector<8x8xf32>
    %207 = vector.shape_cast %202 : vector<8x8xf32> to vector<8x1x8xf32>
    %208 = vector.shape_cast %0 : vector<8x8xf32> to vector<1x8x8xf32>
    %209 = vector.broadcast %207 : vector<8x1x8xf32> to vector<8x8x8xf32>
    %210 = vector.broadcast %208 : vector<1x8x8xf32> to vector<8x8x8xf32>
    %211 = arith.addf %209, %210 : vector<8x8x8xf32>
    %212 = vector.shape_cast %206 : vector<8x8xf32> to vector<8x8x1xf32>
    %213 = vector.broadcast %212 : vector<8x8x1xf32> to vector<8x8x8xf32>
    %214 = arith.addf %211, %213 : vector<8x8x8xf32>
    %cst_71 = arith.constant dense<0xFF800000> : vector<8x8xf32>
    %215 = vector.multi_reduction <maximumf>, %214, %cst_71 [2] : vector<8x8x8xf32> to vector<8x8xf32>
    %cst_72 = arith.constant dense<0xFF800000> : vector<8x8xf32>
    %216 = vector.multi_reduction <maximumf>, %214, %cst_72 [2] : vector<8x8x8xf32> to vector<8x8xf32>
    %217 = vector.shape_cast %216 : vector<8x8xf32> to vector<8x8x1xf32>
    %218 = tpu.iota {dimensions = array<i32: 2>} : vector<8x8x8xi32>
    %219 = vector.broadcast %217 : vector<8x8x1xf32> to vector<8x8x8xf32>
    %220 = arith.cmpf oge, %214, %219 : vector<8x8x8xf32>
    %c8_i32_73 = arith.constant 8 : i32
    %221 = vector.broadcast %c8_i32_73 : i32 to vector<8x8x8xi32>
    %222 = arith.select %220, %218, %221 : vector<8x8x8xi1>, vector<8x8x8xi32>
    %cst_74 = arith.constant dense<2147483647> : vector<8x8xi32>
    %223 = vector.multi_reduction <minsi>, %222, %cst_74 [2] : vector<8x8x8xi32> to vector<8x8xi32>
    %224 = arith.index_cast %204 : i32 to index
    %c0_75 = arith.constant 0 : index
    %225 = vector.load %arg1[%224, %c0_75] : memref<64x1xf32, #tpu.memory_space<vmem>>, vector<8x1xf32>
    %c1_i32_76 = arith.constant 1 : i32
    %226 = arith.subi %c7_i32, %c1_i32_76 : i32
    %227 = arith.index_cast %226 : i32 to index
    %c0_77 = arith.constant 0 : index
    %c0_78 = arith.constant 0 : index
    %228 = vector.load %arg5[%227, %c0_77, %c0_78] : memref<7x8x8xi32, #tpu.memory_space<vmem>>, vector<1x8x8xi32>
    %229 = vector.shape_cast %228 : vector<1x8x8xi32> to vector<8x8xi32>
    %230 = vector.shape_cast %223 : vector<8x8xi32> to vector<1x8x8xi32>
    tpu.vector_store %arg5[%227, %c0_77, %c0_78], %230 {strides = array<i32>} : memref<7x8x8xi32, #tpu.memory_space<vmem>>, vector<1x8x8xi32>,
    %cst_79 = arith.constant 5.000000e-01 : f32
    %231 = vector.broadcast %cst_79 : f32 to vector<8x1xf32>
    %232 = arith.cmpf ogt, %225, %231 : vector<8x1xf32>
    %233 = vector.shape_cast %232 : vector<8x1xi1> to vector<8x1xi1>
    %234 = vector.broadcast %233 : vector<8x1xi1> to vector<8x8xi1>
    %235 = arith.select %234, %215, %202 : vector<8x8xi1>, vector<8x8xf32>
    %c7_i32_80 = arith.constant 7 : i32
    %c0_81 = arith.constant 0 : index
    %c0_82 = arith.constant 0 : index
    %236 = vector.load %arg3[%c0_81, %c0_82] : memref<1x8xf32, #tpu.memory_space<vmem>>, vector<1x8xf32>
    %237 = vector.broadcast %236 : vector<1x8xf32> to vector<8x8xf32>
    %238 = arith.addf %235, %237 : vector<8x8xf32>
    %c0_83 = arith.constant 0 : index
    %c0_84 = arith.constant 0 : index
    %239 = vector.load %arg6[%c0_83, %c0_84] : memref<8x8xf32, #tpu.memory_space<vmem>>, vector<8x8xf32>
    tpu.vector_store %arg6[%c0_83, %c0_84], %238 {strides = array<i32>} : memref<8x8xf32, #tpu.memory_space<vmem>>, vector<8x8xf32>,
    return
  }
}

</mosaic_0001>

<bundles_post_ra>
// kernel: _device_decode.9
= control target key start
LH: loop header
LB: loop body
LE: loop exit
PB: predicated region body
PF: predicated region fallthrough
CT: control target
= control target key end

     0   :  { %vm18_vm0 = vcmask 261120   ;;  %s118_s0 = inlined_call_operand.vmem [shape: f32[16,32], index: 0, kind: input, shape index: {}]   ;;  %s119_s1 = inlined_call_operand.vmem [shape: f32[1,32], index: 1, kind: input, shape index: {}]   ;;  %s120_s2 = inlined_call_operand.vmem [shape: f32[1,32], index: 2, kind: input, shape index: {}]   ;;  %s121_s3 = inlined_call_operand.vmem [shape: f32[16,32], index: 3, kind: output, shape index: {}]  }
   0x1   :  { %v14_v0 = vld [vmem:[%s118_s0] sm:$0xff]  ;;  %v15_v1 = vld [vmem:[%s118_s0 + $0x8] sm:$0xff] }
   0x2   :  { %v19_v2 = vsel %vm18_vm0, %v14_v0, 0.0  ;;  %v22_v3 = vsel %vm18_vm0, %v15_v1, 0.0  ;;  %v68_v21 = vld [vmem:[%s119_s1] ss:$0 sm:$0xff] }
   0x3   :  { %20 = vadd.xlane.f32.xlu0 %v19_v2  ;;  %v69_v23 = vld [vmem:[%s120_s2] ss:$0 sm:$0xff] }
   0x7   :  { %23 = vadd.xlane.f32.xlu0 %v22_v3 }
  0x90   :  { %v21_v4 = vpop.xlane.xlu0 %20 }
  0x91   :  { %v26_v5 = vmul.f32 0.03125, %v21_v4 }
  0x93   :  { %v28_v6 = vsub.f32 %v14_v0, %v26_v5 }
  0x94   :  { %v24_v7 = vpop.xlane.xlu0 %23 }
  0x95   :  { %v27_v8 = vmul.f32 0.03125, %v24_v7  ;;  %v30_v9 = vmul.f32 %v28_v6, %v28_v6 }
  0x97   :  { %v29_v10 = vsub.f32 %v15_v1, %v27_v8  ;;  %v32_v11 = vsel %vm18_vm0, %v30_v9, 0.0 }
  0x98   :  { %33 = vadd.xlane.f32.xlu1 %v32_v11 }
  0x99   :  { %v31_v12 = vmul.f32 %v29_v10, %v29_v10 }
  0x9b   :  { %v35_v13 = vsel %vm18_vm0, %v31_v12, 0.0 }
  0x9c   :  { %36 = vadd.xlane.f32.xlu1 %v35_v13 }
 0x125   :  { %v34_v14 = vpop.xlane.xlu1 %33 }
 0x126   :  { %v38_v15 = vmul.f32 0.03125, %v34_v14 }
 0x128   :  { %v40_v16 = vadd.f32 1e-12, %v38_v15 }
 0x129   :  { %v37_v17 = vpop.xlane.xlu1 %36 }
 0x12a   :  { %70 = vrsqrt.f32 %v40_v16  ;;  %v39_v18 = vmul.f32 0.03125, %v37_v17 }
 0x12c   :  { %v41_v19 = vadd.f32 1e-12, %v39_v18 }
 0x12e   :  { %72 = vrsqrt.f32 %v41_v19 }
 0x134   :  { %v71_v20 = vpop.eup %70 }
 0x135   :  { %v44_v22 = vmul.f32 %v71_v20, %v28_v6 }
 0x137   :  { %v52_v24 = vmul.f32 %v68_v21, %v44_v22 }
 0x138   :  { %v73_v25 = vpop.eup %72 }
 0x139   :  { %v60_v26 = vadd.f32 %v69_v23, %v52_v24  ;;  %v45_v27 = vmul.f32 %v73_v25, %v29_v10 }
 0x13b   :  { %62 = vst.msk [vmem:[%s121_s3] sm:$0xff] %vm18_vm0, %v60_v26  ;;  %v53_v28 = vmul.f32 %v68_v21, %v45_v27 }
 0x13d   :  { %v61_v29 = vadd.f32 %v69_v23, %v53_v28 }
 0x13f   :  { %63 = vst.msk [vmem:[%s121_s3 + $0x8] sm:$0xff] %vm18_vm0, %v61_v29 }

// kernel: _device_decode.11
= control target key start
LH: loop header
LB: loop body
LE: loop exit
PB: predicated region body
PF: predicated region fallthrough
CT: control target
= control target key end

     0   :  { %v175_v0 = vmov 0.0   ;;  %vm176_vm0 = vmmov 0   ;;  %vm50_vm1 = vcmask 261120   ;;  %s252_s1 = inlined_call_operand.vmem [shape: bf16[32,32], index: 1, kind: input, shape index: {}]   ;;  %s253_s0 = inlined_call_operand.vmem [shape: f32[16,32], index: 0, kind: input, shape index: {}]   ;;  %s254_s2 = inlined_call_operand.vmem [shape: f32[1,32], index: 2, kind: input, shape index: {}]   ;;  %s255_s3 = inlined_call_operand.vmem [shape: f32[16,32], index: 3, kind: input, shape index: {}]   ;;  %s256_s4 = inlined_call_operand.vmem [shape: f32[1,32], index: 4, kind: input, shape index: {}]   ;;  %s257_s5 = inlined_call_operand.vmem [shape: f32[1,32], index: 5, kind: input, shape index: {}]   ;;  %s258_s6 = inlined_call_operand.vmem [shape: f32[16,32], index: 6, kind: output, shape index: {}]  }
   0x1   :  { %159 = vmatprep.subr.bf16.mxu0 %v175_v0  ;;  %v169_v1 = vld [vmem:[%s252_s1] sm:$0xff]   ;;  %163 = vmatprep.mubr.msk.bf16.mxu0 %vm176_vm0, %v175_v0  ;;  %v170_v2 = vld [vmem:[%s252_s1 + $0x8] sm:$0xff]  }
   0x2   :  { %160 = vmatpush3.bf16.msra.mxu0 %v169_v1  ;;  %v24_v3 = vld [vmem:[%s253_s0] sm:$0xff]  ;;  %v25_v4 = vld [vmem:[%s253_s0 + $0x8] sm:$0xff] }
   0x3   :  { %161 = vmatprep.subr.bf16.mxu0 %v175_v0  ;;  %v26_v5 = vpack.c.bf16 %v25_v4, %v24_v3  ;;  %v150_v6 = vld [vmem:[%s254_s2] ss:$0 sm:$0xff]  ;;  %v96_v12 = vld [vmem:[%s255_s3 + $0x8] sm:$0xff] }
   0x4   :  { %v95_v8 = vld [vmem:[%s255_s3] sm:$0xff] }
   0x5   :  { %v154_v36 = vld [vmem:[%s256_s4] ss:$0 sm:$0xff] }
   0x6   :  { %162 = vmatpush3.bf16.msra.mxu0 %v170_v2  ;;  %v155_v38 = vld [vmem:[%s257_s5] ss:$0 sm:$0xff] }
   0x9   :  { %164 = vmatmul.mubr.msk.bf16.vlgmr.msra.gmra.mrb[0].mxu0 %vm50_vm1, %v26_v5 }
  0xdc   :  { %v88_v7 = vpop.f32.mrb[0].mxu0 }
  0xdd   :  { %v89_v9 = vadd.f32 %v150_v6, %v88_v7  ;;  %v165_v10 = vpop.f32.mrb[1].mxu0 }
  0xde   :  { %v91_v11 = vpop.f32.mrb[2].mxu0 }
  0xdf   :  { %v92_v13 = vadd.f32 %v150_v6, %v91_v11  ;;  %v166_v14 = vpop.f32.mrb[3].mxu0  ;;  %v97_v15 = vadd.f32 %v95_v8, %v89_v9 }
  0xe1   :  { %v101_v16 = vsel %vm50_vm1, %v97_v15, 0.0  ;;  %v98_v17 = vadd.f32 %v96_v12, %v92_v13 }
  0xe2   :  { %102 = vadd.xlane.f32.xlu0 %v101_v16 }
  0xe3   :  { %v104_v18 = vsel %vm50_vm1, %v98_v17, 0.0 }
  0xe6   :  { %105 = vadd.xlane.f32.xlu0 %v104_v18 }
 0x16f   :  { %v103_v19 = vpop.xlane.xlu0 %102 }
 0x170   :  { %v108_v20 = vmul.f32 0.03125, %v103_v19 }
 0x172   :  { %v110_v21 = vsub.f32 %v97_v15, %v108_v20 }
 0x173   :  { %v106_v22 = vpop.xlane.xlu0 %105 }
 0x174   :  { %v109_v23 = vmul.f32 0.03125, %v106_v22  ;;  %v112_v24 = vmul.f32 %v110_v21, %v110_v21 }
 0x176   :  { %v111_v25 = vsub.f32 %v98_v17, %v109_v23  ;;  %v114_v26 = vsel %vm50_vm1, %v112_v24, 0.0 }
 0x177   :  { %115 = vadd.xlane.f32.xlu1 %v114_v26 }
 0x178   :  { %v113_v27 = vmul.f32 %v111_v25, %v111_v25 }
 0x17a   :  { %v117_v28 = vsel %vm50_vm1, %v113_v27, 0.0 }
 0x17b   :  { %118 = vadd.xlane.f32.xlu1 %v117_v28 }
 0x204   :  { %v116_v29 = vpop.xlane.xlu1 %115 }
 0x205   :  { %v120_v30 = vmul.f32 0.03125, %v116_v29 }
 0x207   :  { %v122_v31 = vadd.f32 1e-12, %v120_v30 }
 0x208   :  { %v119_v32 = vpop.xlane.xlu1 %118 }
 0x209   :  { %171 = vrsqrt.f32 %v122_v31  ;;  %v121_v33 = vmul.f32 0.03125, %v119_v32 }
 0x20b   :  { %v123_v34 = vadd.f32 1e-12, %v121_v33 }
 0x20d   :  { %173 = vrsqrt.f32 %v123_v34 }
 0x213   :  { %v172_v35 = vpop.eup %171 }
 0x214   :  { %v126_v37 = vmul.f32 %v172_v35, %v110_v21 }
 0x216   :  { %v134_v39 = vmul.f32 %v154_v36, %v126_v37 }
 0x217   :  { %v174_v40 = vpop.eup %173 }
 0x218   :  { %v142_v41 = vadd.f32 %v155_v38, %v134_v39  ;;  %v127_v42 = vmul.f32 %v174_v40, %v111_v25 }
 0x21a   :  { %144 = vst.msk [vmem:[%s258_s6] sm:$0xff] %vm50_vm1, %v142_v41  ;;  %v135_v43 = vmul.f32 %v154_v36, %v127_v42 }
 0x21c   :  { %v143_v44 = vadd.f32 %v155_v38, %v135_v43 }
 0x21e   :  { %145 = vst.msk [vmem:[%s258_s6 + $0x8] sm:$0xff] %vm50_vm1, %v143_v44 }

// kernel: _device_decode.12
= control target key start
LH: loop header
LB: loop body
LE: loop exit
PB: predicated region body
PF: predicated region fallthrough
CT: control target
= control target key end

     0   :  { %v310_v0 = vmov 0.0   ;;  %vm311_vm0 = vmmov 0   ;;  %vm53_vm1 = vcmask 261120   ;;  %vm156_vm2 = vcmask 523264   ;;  %s401_s1 = inlined_call_operand.vmem [shape: bf16[32,64], index: 1, kind: input, shape index: {}]   ;;  %s402_s0 = inlined_call_operand.vmem [shape: f32[16,32], index: 0, kind: input, shape index: {}]   ;;  %s403_s3 = inlined_call_operand.vmem [shape: bf16[64,32], index: 3, kind: input, shape index: {}]   ;;  %s404_s2 = inlined_call_operand.vmem [shape: f32[1,64], index: 2, kind: input, shape index: {}]   ;;  %s405_s4 = inlined_call_operand.vmem [shape: f32[1,32], index: 4, kind: input, shape index: {}]   ;;  %s406_s5 = inlined_call_operand.vmem [shape: f32[1,32], index: 5, kind: input, shape index: {}]   ;;  %s407_s6 = inlined_call_operand.vmem [shape: f32[1,32], index: 6, kind: input, shape index: {}]   ;;  %s408_s7 = inlined_call_operand.vmem [shape: f32[16,32], index: 7, kind: output, shape index: {}]  }
   0x1   :  { %274 = vmatprep.subr.bf16.mxu0 %v310_v0  ;;  %v296_v1 = vld [vmem:[%s401_s1] sm:$0xff]   ;;  %278 = vmatprep.mubr.msk.bf16.mxu0 %vm311_vm0, %v310_v0  ;;  %v297_v2 = vld [vmem:[%s401_s1 + $0x8] sm:$0xff]   ;;  %v300_v8 = vld [vmem:[%s403_s3 + $0x10] sm:$0xff]  }
   0x2   :  { %282 = vmatprep.subr.bf16.mxu1 %v310_v0  ;;  %290 = vmatprep.mubr.msk.bf16.mxu1 %vm311_vm0, %v310_v0  ;;  %v27_v3 = vld [vmem:[%s402_s0] sm:$0xff]  ;;  %v28_v4 = vld [vmem:[%s402_s0 + $0x8] sm:$0xff]  ;;  %v301_v9 = vld [vmem:[%s403_s3 + $0x18] sm:$0xff]  }
   0x3   :  { %275 = vmatpush3.bf16.msra.mxu0 %v296_v1  ;;  %v29_v5 = vpack.c.bf16 %v28_v4, %v27_v3  ;;  %v298_v6 = vld [vmem:[%s403_s3] sm:$0xff]   ;;  %v299_v7 = vld [vmem:[%s403_s3 + $0x8] sm:$0xff]  }
   0x4   :  { %276 = vmatprep.subr.bf16.mxu0 %v310_v0  ;;  %283 = vmatpush3.bf16.msra.mxu1 %v298_v6  ;;  %v254_v10 = vld [vmem:[%s404_s2] ss:$0 sm:$0xff] }
   0x5   :  { %284 = vmatprep.subr.bf16.mxu1 %v310_v0  ;;  %v258_v36 = vld [vmem:[%s405_s4] ss:$0 sm:$0xff] }
   0x7   :  { %277 = vmatpush3.bf16.msra.mxu0 %v297_v2  ;;  %v265_v2 = vld [vmem:[%s407_s6] ss:$0 sm:$0xff] }
   0x8   :  { %285 = vmatpush3.bf16.msra.mxu1 %v299_v7 }
   0x9   :  { %286 = vmatprep.subr.bf16.mxu1 %v310_v0 }
   0xa   :  { %279 = vmatmul.mubr.msk.bf16.vlgmr.msra.gmra.mrb[0].mxu0 %vm53_vm1, %v29_v5 }
   0xc   :  { %287 = vmatpush3.bf16.msra.mxu1 %v300_v8 }
   0xd   :  { %288 = vmatprep.subr.bf16.mxu1 %v310_v0  ;;  %v264_v0 = vld [vmem:[%s406_s5] ss:$0 sm:$0xff] }
  0x10   :  { %289 = vmatpush3.bf16.msra.mxu1 %v301_v9 }
  0xdd   :  { %v91_v11 = vpop.f32.mrb[0].mxu0 }
  0xde   :  { %v92_v12 = vadd.f32 %v254_v10, %v91_v11  ;;  %v280_v13 = vpop.f32.mrb[1].mxu0 }
  0xdf   :  { %v94_v14 = vpop.f32.mrb[2].mxu0 }
  0xe0   :  { %v100_v15 = vmul.f32 0.044715, %v92_v12  ;;  %v95_v16 = vadd.f32 %v254_v10, %v94_v14  ;;  %v281_v17 = vpop.f32.mrb[3].mxu0  ;;  %v98_v30 = vmul.f32 0.5, %v92_v12 }
  0xe2   :  { %v102_v18 = vmul.f32 %v100_v15, %v92_v12  ;;  %v101_v19 = vmul.f32 0.044715, %v95_v16  ;;  %v99_v31 = vmul.f32 0.5, %v95_v16 }
  0xe4   :  { %v104_v20 = vmul.f32 %v102_v18, %v92_v12  ;;  %v103_v21 = vmul.f32 %v101_v19, %v95_v16 }
  0xe6   :  { %v106_v22 = vadd.f32 %v104_v20, %v92_v12  ;;  %v105_v23 = vmul.f32 %v103_v21, %v95_v16 }
  0xe8   :  { %v108_v24 = vmul.f32 0.7978846, %v106_v22  ;;  %v107_v25 = vadd.f32 %v105_v23, %v95_v16 }
  0xea   :  { %302 = vtanh.f32 %v108_v24  ;;  %v109_v26 = vmul.f32 0.7978846, %v107_v25 }
  0xec   :  { %304 = vtanh.f32 %v109_v26 }
  0xf4   :  { %v303_v27 = vpop.eup %302 }
  0xf5   :  { %v112_v28 = vadd.f32 1.0, %v303_v27 }
  0xf6   :  { %v305_v29 = vpop.eup %304 }
  0xf7   :  { %v113_v32 = vadd.f32 1.0, %v305_v29  ;;  %v114_v33 = vmul.f32 %v112_v28, %v98_v30 }
  0xf9   :  { %v115_v34 = vmul.f32 %v113_v32, %v99_v31 }
  0xfb   :  { %v116_v35 = vpack.c.bf16 %v115_v34, %v114_v33 }
  0xfd   :  { %291 = vmatmul.mubr.msk.bf16.vlgmr.msra.gmra.mrb[0].mxu1 %vm156_vm2, %v116_v35 }
 0x1d0   :  { %v194_v37 = vpop.f32.mrb[0].mxu1 }
 0x1d1   :  { %v195_v38 = vadd.f32 %v258_v36, %v194_v37  ;;  %v292_v39 = vpop.f32.mrb[1].mxu1 }
 0x1d2   :  { %v197_v40 = vpop.f32.mrb[2].mxu1 }
 0x1d3   :  { %v198_v41 = vadd.f32 %v258_v36, %v197_v40  ;;  %v293_v42 = vpop.f32.mrb[3].mxu1  ;;  %v201_v43 = vadd.f32 %v195_v38, %v27_v3 }
 0x1d5   :  { %v205_v44 = vsel %vm53_vm1, %v201_v43, 0.0  ;;  %v202_v45 = vadd.f32 %v198_v41, %v28_v4 }
 0x1d6   :  { %206 = vadd.xlane.f32.xlu0 %v205_v44 }
 0x1d7   :  { %v208_v46 = vsel %vm53_vm1, %v202_v45, 0.0 }
 0x1da   :  { %209 = vadd.xlane.f32.xlu0 %v208_v46 }
 0x263   :  { %v207_v47 = vpop.xlane.xlu0 %206 }
 0x264   :  { %v212_v48 = vmul.f32 0.03125, %v207_v47 }
 0x266   :  { %v214_v49 = vsub.f32 %v201_v43, %v212_v48 }
 0x267   :  { %v210_v50 = vpop.xlane.xlu0 %209 }
 0x268   :  { %v213_v51 = vmul.f32 0.03125, %v210_v50  ;;  %v216_v52 = vmul.f32 %v214_v49, %v214_v49 }
 0x26a   :  { %v215_v53 = vsub.f32 %v202_v45, %v213_v51  ;;  %v218_v54 = vsel %vm53_vm1, %v216_v52, 0.0 }
 0x26b   :  { %219 = vadd.xlane.f32.xlu1 %v218_v54 }
 0x26c   :  { %v217_v55 = vmul.f32 %v215_v53, %v215_v53 }
 0x26e   :  { %v221_v56 = vsel %vm53_vm1, %v217_v55, 0.0 }
 0x26f   :  { %222 = vadd.xlane.f32.xlu1 %v221_v56 }
 0x2f8   :  { %v220_v57 = vpop.xlane.xlu1 %219 }
 0x2f9   :  { %v224_v58 = vmul.f32 0.03125, %v220_v57 }
 0x2fb   :  { %v226_v59 = vadd.f32 1e-12, %v224_v58 }
 0x2fc   :  { %v223_v60 = vpop.xlane.xlu1 %222 }
 0x2fd   :  { %306 = vrsqrt.f32 %v226_v59  ;;  %v225_v61 = vmul.f32 0.03125, %v223_v60 }
 0x2ff   :  { %v227_v62 = vadd.f32 1e-12, %v225_v61 }
 0x301   :  { %308 = vrsqrt.f32 %v227_v62 }
 0x307   :  { %v307_v63 = vpop.eup %306 }
 0x308   :  { %v230_v1 = vmul.f32 %v307_v63, %v214_v49 }
 0x30a   :  { %v238_v3 = vmul.f32 %v264_v0, %v230_v1 }
 0x30b   :  { %v309_v4 = vpop.eup %308 }
 0x30c   :  { %v246_v5 = vadd.f32 %v265_v2, %v238_v3  ;;  %v231_v6 = vmul.f32 %v309_v4, %v215_v53 }
 0x30e   :  { %248 = vst.msk [vmem:[%s408_s7] sm:$0xff] %vm53_vm1, %v246_v5  ;;  %v239_v7 = vmul.f32 %v264_v0, %v231_v6 }
 0x310   :  { %v247_v8 = vadd.f32 %v265_v2, %v239_v7 }
 0x312   :  { %249 = vst.msk [vmem:[%s408_s7 + $0x8] sm:$0xff] %vm53_vm1, %v247_v8 }

// kernel: _device_decode.10
= control target key start
LH: loop header
LB: loop body
LE: loop exit
PB: predicated region body
PF: predicated region fallthrough
CT: control target
= control target key end

     0   :  { %s1002_s15 = smov 0   ;;  %s1108_s0 = inlined_call_operand.vmem [shape: f32[16,32], index: 0, kind: input, shape index: {}]   ;;  %s1109_s1 = inlined_call_operand.vmem [shape: bf16[32,96], index: 1, kind: input, shape index: {}]   ;;  %s1110_s2 = inlined_call_operand.vmem [shape: f32[1,96], index: 2, kind: input, shape index: {}]   ;;  %s1111_s3 = inlined_call_operand.vmem [shape: f32[2,1,8], index: 3, kind: input, shape index: {}]   ;;  %s1112_s4 = inlined_call_operand.vmem [shape: f32[16,32], index: 4, kind: output, shape index: {}]  }
   0x1 LB: > { %s814_s16 = sadd.s32 4294967295, %s959_s15   ;;  %p818_p0 = scmp.ge.s32.totalorder %s959_s15, 1  ;;  %s959_s15 = sphi %s1002_s15, %s14_s15  }
   0x2   : > { %p169_p1 = scmp.lt.s32.totalorder %s959_s15, 3 }
   0x4   : > { %p170_p2 = pnand %p818_p0, %p169_p1 }
   0x5   : > { %v935_v0 = vld [vmem:[%s1109_s1] sm:$0xff] (!%p170_p2)   ;;  %v961_v1 = vmov (!%p170_p2), 0.0   ;;  %v936_v2 = vld [vmem:[%s1109_s1 + $0x8] sm:$0xff] (!%p170_p2)   ;;  %vm962_vm0 = vmmov (!%p170_p2), 0   ;;  %p196_p3 = scmp.lt.s32.totalorder (!%p170_p2), %s814_s16, 1  ;;  %vm233_vm1 = vcmask (!%p170_p2), 261120  }
   0x6   : > { %173 = sbr.rel (%p170_p2) target bundleno = 1281 (0x501), region = 36  ;;  %855 = vmatprep.subr.bf16.mxu0 (!%p170_p2), %v961_v1  ;;  %863 = vmatprep.subr.bf16.mxu1 (!%p170_p2), %v961_v1  ;;  %v821_v5 = vld [vmem:[%s1110_s2] ss:$0 sm:$0xff] (!%p170_p2)  ;;  %s963_s27 = smov (!%p170_p2), 120   ;;  %vm282_vm2 = vcmask (!%p170_p2), 64512   ;;  %vm354_vm3 = vcmask (!%p170_p2), 1043456  }
   0x7   : > { %856 = vmatpush3.bf16.msra.mxu0 (!%p170_p2), %v935_v0  ;;  %859 = vmatprep.mubr.msk.bf16.mxu0 (!%p170_p2), %vm962_vm0, %v961_v1  ;;  %s964_s28 = smov (!%p170_p2), 96   ;;  %s965_s29 = smov (!%p170_p2), 80   ;;  %vm747_vm4 = vcmask (!%p170_p2), 130048   ;;  %vm749_vm5 = vcmask (!%p170_p2), 195584  }
   0x8   : > { %857 = vmatprep.subr.bf16.mxu0 (!%p170_p2), %v961_v1  ;;  %865 = vmatprep.mubr.msk.bf16.mxu1 (!%p170_p2), %vm962_vm0, %v961_v1  ;;  %s966_s30 = smov (!%p170_p2), 88   ;;  %s967_s5 = smov (!%p170_p2), 72  }
   0x9   : > { %s968_s6 = smov (!%p170_p2), 112   ;;  %s969_s7 = smov (!%p170_p2), 104  }
   0xa   : > { %s970_s11 = smov (!%p170_p2), 56   ;;  %s971_s12 = smov (!%p170_p2), 64  }
   0xb   : > { %858 = vmatpush3.bf16.msra.mxu0 (!%p170_p2), %v936_v2  ;;  %s972_s13 = smov (!%p170_p2), 40   ;;  %s973_s14 = smov (!%p170_p2), 48  }
   0xc   : > { %869 = vmatprep.subr.bf16.mxu0 (!%p170_p2), %v961_v1  ;;  %s974_s17 = smov (!%p170_p2), 8   ;;  %s975_s18 = smov (!%p170_p2), 16  }
   0xd   : > { %s1114_s16 = smov (!%p196_p3, %s814_s16), 1  ;;  %s976_s19 = smov 24  }
   0xe   : > { %s819_s21 = sshll.u32 %s1114_s16, 3  ;;  %s202_s10 = scalar_lea.vmem %s1111_s3, %s1114_s16 }
   0xf   : > { %s199_s24 = scalar_lea.vmem %s1108_s0, %s819_s21  ;;  %v826_v24 = vld [vmem:[%s202_s10] ss:$0 sm:$0xff]  ;;  %s206_s23 = scalar_lea.vmem %s1112_s4, %s819_s21 }
  0x10   : > { %v208_v3 = vld [vmem:[%s199_s24] sm:$0xff] }
  0x11   : > { %v209_v4 = vpack.c.bf16 %v208_v3, %v208_v3 }
  0x13   : > { %860 = vmatmul.mubr.msk.bf16.vlgmr.msra.gmra.mrb[0].mxu0 %vm233_vm1, %v209_v4 }
  0x14   : > { %871 = vmatprep.mubr.msk.bf16.mxu0 %vm962_vm0, %v961_v1 }
  0xe6   : > { %v271_v6 = vpop.f32.mrb[0].mxu0 }
  0xe7   : > { %v272_v7 = vadd.f32 %v821_v5, %v271_v6  ;;  %v861_v8 = vpop.f32.mrb[1].mxu0 }
  0xe8   : > { %v274_v9 = vpop.f32.mrb[2].mxu0 }
  0xe9   : > { %v1038_v10 = vpack.c.bf16 %v272_v7, %v272_v7  ;;  %v862_v11 = vpop.f32.mrb[3].mxu0 }
  0xeb   : > { %398 = vrot.lane.b32.xlu1 %v1038_v10, %s963_s27  ;;  %280 = vrot.lane.b32.xlu0 %v1038_v10, %s964_s28 }
  0xef   : > { %512 = vrot.lane.b32.xlu1 %v1038_v10, %s965_s29  ;;  %400 = vrot.lane.b32.xlu0 %v1038_v10, %s966_s30 }
  0xf3   : > { %624 = vrot.lane.b32.xlu1 %v1038_v10, %s967_s5  ;;  %510 = vrot.lane.b32.xlu0 %v1038_v10, %s968_s6 }
  0xf7   : > { %622 = vrot.lane.b32.xlu0 %v1038_v10, %s969_s7 }
 0x15d   : > { %v281_v12 = vpop.permute.xlu0 %280  ;;  %v399_v15 = vpop.permute.xlu1 %398 }
 0x15e   : > { %v287_v13 = vsel %vm282_vm2, %v281_v12, 0 }
 0x15f   : > { %864 = vmatpush3.bf16.xpose.msra.mxu1 %v287_v13 }
 0x160   : > { %875 = vmatprep.subr.bf16.mxu1 %v961_v1 }
 0x161   : > { %v401_v14 = vpop.permute.xlu0 %400  ;;  %v513_v17 = vpop.permute.xlu1 %512 }
 0x162   : > { %v406_v16 = vsel %vm282_vm2, %v401_v14, 0  ;;  %v518_v18 = vsel %vm282_vm2, %v513_v17, 0 }
 0x165   : > { %v625_v19 = vpop.permute.xlu1 %624  ;;  %v511_v20 = vpop.permute.xlu0 %510 }
 0x166   : > { %866 = vmatmul.mubr.msk.bf16.vlgmr.msra.gmra.mrb[0].mxu1 %vm282_vm2, %v1038_v10  ;;  %v630_v21 = vsel %vm282_vm2, %v625_v19, 0 }
 0x167   : > { %876 = vmatpush3.bf16.xpose.msra.mxu1 %v406_v16  ;;  %877 = vmatprep.mubr.msk.bf16.mxu1 %vm962_vm0, %v961_v1 }
 0x168   : > { %887 = vmatprep.subr.bf16.mxu1 %v961_v1 }
 0x169   : > { %v623_v22 = vpop.permute.xlu0 %622 }
 0x16e   : > { %878 = vmatmul.mubr.msk.bf16.vlgmr.msra.gmra.mrb[4].mxu1 %vm282_vm2, %v399_v15 }
 0x16f   : > { %888 = vmatpush3.bf16.xpose.msra.mxu1 %v518_v18  ;;  %889 = vmatprep.mubr.msk.bf16.mxu1 %vm962_vm0, %v961_v1 }
 0x170   : > { %899 = vmatprep.subr.bf16.mxu1 %v961_v1 }
 0x176   : > { %890 = vmatmul.mubr.msk.bf16.vlgmr.msra.gmra.mrb[8].mxu1 %vm282_vm2, %v511_v20 }
 0x177   : > { %900 = vmatpush3.bf16.xpose.msra.mxu1 %v630_v21  ;;  %901 = vmatprep.mubr.msk.bf16.mxu1 %vm962_vm0, %v961_v1 }
 0x17e   : > { %902 = vmatmul.mubr.msk.bf16.vlgmr.msra.gmra.mrb[12].mxu1 %vm282_vm2, %v623_v22 }
 0x239   : > { %v323_v23 = vpop.f32.mrb[0].mxu1 }
 0x23a   : > { %v329_v25 = vmul.f32 0.35355338, %v323_v23  ;;  %v867_v26 = vpop.f32.mrb[1].mxu1 }
 0x23b   : > { %v326_v27 = vpop.f32.mrb[2].mxu1 }
 0x23c   : > { %v868_v28 = vpop.f32.mrb[3].mxu1  ;;  %v336_v29 = vadd.f32 %v826_v24, %v329_v25 }
 0x23e   : > { %v337_v30 = vsel %vm282_vm2, %v336_v29, -inf }
 0x23f   : > { %338 = vmax.xlane.f32.xlu1 %v337_v30 }
 0x241   : > { %v442_v31 = vpop.f32.mrb[4].mxu1 }
 0x242   : > { %v448_v32 = vmul.f32 0.35355338, %v442_v31  ;;  %v879_v33 = vpop.f32.mrb[5].mxu1 }
 0x243   : > { %v445_v34 = vpop.f32.mrb[6].mxu1 }
 0x244   : > { %v880_v35 = vpop.f32.mrb[7].mxu1  ;;  %v449_v36 = vadd.f32 %v826_v24, %v448_v32 }
 0x246   : > { %v450_v37 = vsel %vm282_vm2, %v449_v36, -inf }
 0x247   : > { %451 = vmax.xlane.f32.xlu0 %v450_v37 }
 0x249   : > { %v554_v38 = vpop.f32.mrb[8].mxu1 }
 0x24a   : > { %v560_v39 = vmul.f32 0.35355338, %v554_v38  ;;  %v891_v40 = vpop.f32.mrb[9].mxu1 }
 0x24b   : > { %v557_v41 = vpop.f32.mrb[10].mxu1 }
 0x24c   : > { %v892_v42 = vpop.f32.mrb[11].mxu1  ;;  %v561_v43 = vadd.f32 %v826_v24, %v560_v39 }
 0x24e   : > { %v562_v44 = vsel %vm282_vm2, %v561_v43, -inf }
 0x24f   : > { %563 = vmax.xlane.f32.xlu0 %v562_v44 }
 0x251   : > { %v666_v45 = vpop.f32.mrb[12].mxu1 }
 0x252   : > { %v672_v46 = vmul.f32 0.35355338, %v666_v45  ;;  %v903_v47 = vpop.f32.mrb[13].mxu1 }
 0x253   : > { %v669_v48 = vpop.f32.mrb[14].mxu1 }
 0x254   : > { %v904_v49 = vpop.f32.mrb[15].mxu1  ;;  %v673_v50 = vadd.f32 %v826_v24, %v672_v46 }
 0x256   : > { %v674_v51 = vsel %vm282_vm2, %v673_v50, -inf }
 0x257   : > { %675 = vmax.xlane.f32.xlu1 %v674_v51 }
 0x2cc   : > { %v339_v52 = vpop.xlane.xlu1 %338 }
 0x2cd   : > { %v340_v53 = vsub.f32 %v336_v29, %v339_v52 }
 0x2cf   : > { %v341_v54 = vmul.f32 1.442695, %v340_v53 }
 0x2d1   : > { %937 = vpow2.f32 %v341_v54 }
 0x2d4   : > { %v452_v55 = vpop.xlane.xlu0 %451 }
 0x2d5   : > { %v453_v56 = vsub.f32 %v449_v36, %v452_v55 }
 0x2d7   : > { %v454_v57 = vmul.f32 1.442695, %v453_v56 }
 0x2d9   : > { %939 = vpow2.f32 %v454_v57 }
 0x2db   : > { %v938_v58 = vpop.eup %937 }
 0x2dc   : > { %v564_v59 = vpop.xlane.xlu0 %563  ;;  %v343_v60 = vsel %vm282_vm2, %v938_v58, 0.0 }
 0x2dd   : > { %v565_v61 = vsub.f32 %v561_v43, %v564_v59  ;;  %344 = vadd.xlane.f32.xlu0 %v343_v60 }
 0x2df   : > { %v566_v62 = vmul.f32 1.442695, %v565_v61 }
 0x2e1   : > { %941 = vpow2.f32 %v566_v62 }
 0x2e3   : > { %v940_v63 = vpop.eup %939 }
 0x2e4   : > { %v456_v0 = vsel %vm282_vm2, %v940_v63, 0.0  ;;  %v676_v4 = vpop.xlane.xlu1 %675 }
 0x2e5   : > { %457 = vadd.xlane.f32.xlu1 %v456_v0  ;;  %v677_v5 = vsub.f32 %v673_v50, %v676_v4 }
 0x2e7   : > { %v678_v6 = vmul.f32 1.442695, %v677_v5 }
 0x2e9   : > { %943 = vpow2.f32 %v678_v6 }
 0x2eb   : > { %v942_v2 = vpop.eup %941 }
 0x2ec   : > { %v568_v3 = vsel %vm282_vm2, %v942_v2, 0.0 }
 0x2ed   : > { %569 = vadd.xlane.f32.xlu0 %v568_v3 }
 0x2f3   : > { %v944_v7 = vpop.eup %943 }
 0x2f4   : > { %v680_v8 = vsel %vm282_vm2, %v944_v7, 0.0 }
 0x2f6   : > { %462 = vrot.lane.b32.xlu1 %v1038_v10, %s970_s11 }
 0x303   : > { %349 = vrot.lane.b32.xlu0 %v1038_v10, %s971_s12 }
 0x307   : > { %686 = vrot.lane.b32.xlu0 %v1038_v10, %s972_s13 }
 0x31a   : > { %681 = vadd.xlane.f32.xlu1 %v680_v8 }
 0x32b   : > { %574 = vrot.lane.b32.xlu1 %v1038_v10, %s973_s14 }
 0x36a   : > { %v345_v9 = vpop.xlane.xlu0 %344 }
 0x36b   : > { %945 = vrcp.f32 %v345_v9 }
 0x372   : > { %v458_v11 = vpop.xlane.xlu1 %457 }
 0x373   : > { %947 = vrcp.f32 %v458_v11 }
 0x375   : > { %v946_v12 = vpop.eup %945 }
 0x376   : > { %v347_v14 = vmul.f32 %v946_v12, %v938_v58  ;;  %v463_v17 = vpop.permute.xlu1 %462 }
 0x377   : > { %v468_v20 = vsel %vm354_vm3, %v463_v17, 0 }
 0x378   : > { %v348_v18 = vpack.c.bf16 %v347_v14, %v347_v14 }
 0x37a   : > { %v570_v13 = vpop.xlane.xlu0 %569 }
 0x37b   : > { %949 = vrcp.f32 %v570_v13 }
 0x37d   : > { %v948_v19 = vpop.eup %947 }
 0x37e   : > { %v350_v15 = vpop.permute.xlu0 %349  ;;  %v460_v10 = vmul.f32 %v948_v19, %v940_v63 }
 0x37f   : > { %v356_v16 = vsel %vm354_vm3, %v350_v15, 0 }
 0x380   : > { %870 = vmatpush3.bf16.msra.mxu0 %v356_v16  ;;  %v461_v21 = vpack.c.bf16 %v460_v10, %v460_v10 }
 0x381   : > { %881 = vmatprep.subr.bf16.mxu0 %v961_v1 }
 0x382   : > { %v687_v27 = vpop.permute.xlu0 %686 }
 0x383   : > { %872 = vmatmul.mubr.msk.bf16.vlgmr.msra.gmra.mrb[4].mxu0 %vm282_vm2, %v348_v18  ;;  %v692_v29 = vsel %vm354_vm3, %v687_v27, 0 }
 0x384   : > { %882 = vmatpush3.bf16.msra.mxu0 %v468_v20  ;;  %883 = vmatprep.mubr.msk.bf16.mxu0 %vm962_vm0, %v961_v1 }
 0x385   : > { %893 = vmatprep.subr.bf16.mxu0 %v961_v1  ;;  %v950_v22 = vpop.eup %949 }
 0x386   : > { %v572_v24 = vmul.f32 %v950_v22, %v942_v2 }
 0x388   : > { %v573_v28 = vpack.c.bf16 %v572_v24, %v572_v24 }
 0x38b   : > { %884 = vmatmul.mubr.msk.bf16.vlgmr.msra.gmra.mrb[8].mxu0 %vm282_vm2, %v461_v21 }
 0x38c   : > { %895 = vmatprep.mubr.msk.bf16.mxu0 %vm962_vm0, %v961_v1 }
 0x3a7   : > { %v682_v23 = vpop.xlane.xlu1 %681 }
 0x3a8   : > { %951 = vrcp.f32 %v682_v23 }
 0x3ab   : > { %v575_v25 = vpop.permute.xlu1 %574 }
 0x3ac   : > { %v580_v26 = vsel %vm354_vm3, %v575_v25, 0 }
 0x3ad   : > { %894 = vmatpush3.bf16.msra.mxu0 %v580_v26 }
 0x3ae   : > { %905 = vmatprep.subr.bf16.mxu0 %v961_v1 }
 0x3b0   : > { %896 = vmatmul.mubr.msk.bf16.vlgmr.msra.gmra.mrb[12].mxu0 %vm282_vm2, %v573_v28 }
 0x3b1   : > { %906 = vmatpush3.bf16.msra.mxu0 %v692_v29  ;;  %907 = vmatprep.mubr.msk.bf16.mxu0 %vm962_vm0, %v961_v1 }
 0x3b2   : > { %v952_v30 = vpop.eup %951 }
 0x3b3   : > { %v684_v31 = vmul.f32 %v952_v30, %v944_v7 }
 0x3b5   : > { %v685_v32 = vpack.c.bf16 %v684_v31, %v684_v31 }
 0x3b8   : > { %908 = vmatmul.mubr.msk.bf16.vlgmr.msra.gmra.mrb[16].mxu0 %vm282_vm2, %v685_v32 }
 0x456   : > { %v392_v33 = vpop.f32.mrb[4].mxu0 }
 0x457   : > { %v873_v34 = vpop.f32.mrb[5].mxu0 }
 0x458   : > { %v395_v35 = vpop.f32.mrb[6].mxu0 }
 0x459   : > { %v874_v36 = vpop.f32.mrb[7].mxu0 }
 0x45e   : > { %v504_v37 = vpop.f32.mrb[8].mxu0 }
 0x45f   : > { %735 = vrot.lane.b32.xlu1 %v504_v37, %s974_s17  ;;  %v885_v38 = vpop.f32.mrb[9].mxu0 }
 0x460   : > { %v507_v39 = vpop.f32.mrb[10].mxu0 }
 0x461   : > { %v886_v40 = vpop.f32.mrb[11].mxu0 }
 0x483   : > { %v616_v41 = vpop.f32.mrb[12].mxu0 }
 0x484   : > { %739 = vrot.lane.b32.xlu0 %v616_v41, %s975_s18  ;;  %v897_v1 = vpop.f32.mrb[13].mxu0 }
 0x485   : > { %v619_v42 = vpop.f32.mrb[14].mxu0 }
 0x486   : > { %v898_v43 = vpop.f32.mrb[15].mxu0 }
 0x48b   : > { %v728_v44 = vpop.f32.mrb[16].mxu0 }
 0x48c   : > { %743 = vrot.lane.b32.xlu1 %v728_v44, %s976_s19  ;;  %v909_v45 = vpop.f32.mrb[17].mxu0 }
 0x48d   : > { %v731_v46 = vpop.f32.mrb[18].mxu0 }
 0x48e   : > { %v910_v47 = vpop.f32.mrb[19].mxu0 }
 0x4d1   : > { %v736_v48 = vpop.permute.xlu1 %735 }
 0x4d2   : > { %v746_v50 = vsel %vm282_vm2, %v392_v33, %v736_v48 }
 0x4f6   : > { %v740_v49 = vpop.permute.xlu0 %739 }
 0x4f7   : > { %v748_v51 = vsel %vm747_vm4, %v746_v50, %v740_v49 }
 0x4fe   : > { %v744_v52 = vpop.permute.xlu1 %743 }
 0x4ff   : > { %v750_v53 = vsel %vm749_vm5, %v748_v51, %v744_v52 }
 0x500   : > { %751 = vst.msk [vmem:[%s206_s23] sm:$0xff] %vm233_vm1, %v750_v53 }
 0x501 PF: > { %s14_s15 = sadd.s32 1, %s959_s15  }
 0x502   : > { %p11_p4 = scmp.ge.s32.totalorder %s14_s15, 4  }
 0x504   :  { %13 = sbr.rel (!%p11_p4) target bundleno = 1 (0x1), region = 69 }

// kernel: custom-call.6
= control target key start
LH: loop header
LB: loop body
LE: loop exit
PB: predicated region body
PF: predicated region fallthrough
CT: control target
= control target key end

     0   :  { %s6_s0 = inlined_call_operand.vmem [shape: s32[7,8], index: 0, kind: output, shape index: {}]  }

// kernel: _device_decode.16
= control target key start
LH: loop header
LB: loop body
LE: loop exit
PB: predicated region body
PF: predicated region fallthrough
CT: control target
= control target key end

     0   :  { %vm59_vm0 = vcmask 261120   ;;  %v1177_v15 = vmov 0.0   ;;  %vm1178_vm1 = vmmov 0   ;;  %v1179_v17 = vmov 0.0|0.0   ;;  %s1181_s20 = smov 16   ;;  %s1182_s21 = smov 32   ;;  %s1439_s1 = inlined_call_operand.vmem [shape: bf16[32,128], index: 1, kind: input, shape index: {}]   ;;  %s1440_s0 = inlined_call_operand.vmem [shape: f32[64,32], index: 0, kind: input, shape index: {}]   ;;  %s1441_s3 = inlined_call_operand.vmem [shape: bf16[32,128], index: 3, kind: input, shape index: {}]   ;;  %s1442_s2 = inlined_call_operand.vmem [shape: f32[1,128], index: 2, kind: input, shape index: {}]   ;;  %s1443_s4 = inlined_call_operand.vmem [shape: bf16[32,128], index: 4, kind: input, shape index: {}]   ;;  %s1444_s5 = inlined_call_operand.vmem [shape: f32[1,128], index: 5, kind: input, shape index: {}]   ;;  %s1445_s6 = inlined_call_operand.vmem [shape: f32[64,128], index: 6, kind: output, shape index: {}]  }
   0x1   :  { %v1107_v0 = vld [vmem:[%s1439_s1] sm:$0xff]   ;;  %v1108_v1 = vld [vmem:[%s1439_s1 + $0x8] sm:$0xff]   ;;  %v26_v7 = vld [vmem:[%s1440_s0 + $0x10] sm:$0xff]  ;;  %vm153_vm2 = vcmask 523264   ;;  %s1183_s22 = smov 80   ;;  %vm244_vm3 = vcmask 261248  }
   0x2   :  { %1008 = vmatprep.subr.bf16.mxu0 %v1107_v0  ;;  %1096 = vmatprep.subr.bf16.mxu1 %v1107_v0  ;;  %v24_v2 = vld [vmem:[%s1440_s0] sm:$0xff]  ;;  %v25_v3 = vld [vmem:[%s1440_s0 + $0x8] sm:$0xff]  ;;  %v27_v8 = vld [vmem:[%s1440_s0 + $0x18] sm:$0xff]  ;;  %vm238_vm4 = vcmask 130048  }
   0x3   :  { %v28_v4 = vld [vmem:[%s1440_s0 + $0x20] sm:$0xff]  ;;  %1009 = vmatpush3.bf16.msra.mxu0 %v1107_v0  ;;  %1098 = vmatpush3.bf16.msra.mxu1 %v1107_v0  ;;  %v32_v5 = vpack.c.bf16 %v25_v3, %v24_v2  ;;  %v29_v6 = vld [vmem:[%s1440_s0 + $0x28] sm:$0xff]  ;;  %v30_v10 = vld [vmem:[%s1440_s0 + $0x30] sm:$0xff]  ;;  %v33_v12 = vpack.c.bf16 %v27_v8, %v26_v7 }
   0x4   :  { %1010 = vmatprep.subr.bf16.mxu0 %v1108_v1  ;;  %1097 = vmatprep.subr.bf16.mxu1 %v1108_v1  ;;  %v34_v9 = vpack.c.bf16 %v29_v6, %v28_v4  ;;  %v31_v11 = vld [vmem:[%s1440_s0 + $0x38] sm:$0xff]  ;;  %v1254_v14 = vld [vmem:[%s1441_s3] sm:$0xff]   ;;  %v1264_v16 = vld [vmem:[%s1441_s3 + $0x8] sm:$0xff]  }
   0x5   :  { %1012 = vmatprep.mubr.msk.bf16.mxu0 %vm59_vm0, %v32_v5  ;;  %v35_v13 = vpack.c.bf16 %v31_v11, %v30_v10  ;;  %v949_v18 = vld [vmem:[%s1442_s2] ss:$0 sm:$0xff]  ;;  %s1180_s2 = smov 96  }
   0x6   :  { %1016 = vmatprep.mubr.msk.bf16.mxu1 %vm59_vm0, %v34_v9 }
   0x7   :  { %1011 = vmatpush3.bf16.msra.mxu0 %v1108_v1  ;;  %1099 = vmatpush3.bf16.msra.mxu1 %v1108_v1 }
   0x8   :  { %1020 = vmatprep.subr.bf16.mxu1 %v1177_v15  ;;  %1036 = vmatprep.subr.bf16.mxu0 %v1177_v15 }
   0xa   :  { %1013 = vmatmul.mubr.msk.bf16.vlgmr.msra.gmra.mrb[0].mxu0 %vm59_vm0, %v33_v12  ;;  %1017 = vmatmul.mubr.msk.bf16.vlgmr.msra.gmra.mrb[0].mxu1 %vm59_vm0, %v35_v13 }
   0xb   :  { %1021 = vmatpush3.bf16.msra.mxu1 %v1254_v14  ;;  %1024 = vmatprep.mubr.msk.bf16.mxu1 %vm1178_vm1, %v1177_v15 }
   0xc   :  { %1022 = vmatprep.subr.bf16.mxu1 %v1177_v15  ;;  %1037 = vmatpush3.bf16.msra.mxu0 %v1254_v14 }
   0xd   :  { %1038 = vmatprep.subr.bf16.mxu0 %v1177_v15  ;;  %1040 = vmatprep.mubr.msk.bf16.mxu0 %vm1178_vm1, %v1177_v15 }
   0xf   :  { %1023 = vmatpush3.bf16.msra.mxu1 %v1264_v16 }
  0x10   :  { %1028 = vmatprep.subr.bf16.mxu1 %v1177_v15  ;;  %1039 = vmatpush3.bf16.msra.mxu0 %v1264_v16 }
  0x11   :  { %1052 = vmatprep.subr.bf16.mxu0 %v1177_v15 }
  0x12   :  { %1025 = vmatmul.mubr.bf16.vlgmr.msra.gmra.mrb[4].mxu1 %v1179_v17 }
  0x13   :  { %1029 = vmatpush3.bf16.msra.mxu1 %v1254_v14  ;;  %1032 = vmatprep.mubr.msk.bf16.mxu1 %vm1178_vm1, %v1177_v15 }
  0x14   :  { %1030 = vmatprep.subr.bf16.mxu1 %v1177_v15 }
  0x17   :  { %1031 = vmatpush3.bf16.msra.mxu1 %v1264_v16 }
  0x18   :  { %1044 = vmatprep.subr.bf16.mxu1 %v1177_v15 }
  0xdd   :  { %v1014_v19 = vpop.f32.mrb[0].mxu0  ;;  %v1018_v20 = vpop.f32.mrb[0].mxu1 }
  0xde   :  { %v115_v21 = vadd.f32 %v1014_v19, %v949_v18  ;;  %v131_v22 = vadd.f32 %v1018_v20, %v949_v18  ;;  %v106_v23 = vpop.f32.mrb[1].mxu0  ;;  %v122_v24 = vpop.f32.mrb[1].mxu1 }
  0xdf   :  { %v107_v25 = vadd.f32 %v949_v18, %v106_v23  ;;  %v123_v26 = vadd.f32 %v949_v18, %v122_v24  ;;  %v1015_v27 = vpop.f32.mrb[2].mxu0  ;;  %v1019_v28 = vpop.f32.mrb[2].mxu1 }
  0xe0   :  { %v118_v29 = vadd.f32 %v1015_v27, %v949_v18  ;;  %v134_v30 = vadd.f32 %v1019_v28, %v949_v18  ;;  %v109_v31 = vpop.f32.mrb[3].mxu0  ;;  %v125_v32 = vpop.f32.mrb[3].mxu1 }
  0xe1   :  { %v110_v33 = vadd.f32 %v949_v18, %v109_v31  ;;  %v126_v34 = vadd.f32 %v949_v18, %v125_v32 }
  0xe2   :  { %v154_v35 = vsel %vm153_vm2, %v107_v25, %v134_v30  ;;  %v1286_v36 = vsel %vm153_vm2, %v118_v29, %v123_v26  ;;  %v1288_v37 = vsel %vm153_vm2, %v123_v26, %v118_v29  ;;  %v1290_v38 = vsel %vm153_vm2, %v134_v30, %v107_v25 }
  0xe3   :  { %v252_v39 = vsel %vm153_vm2, %v110_v33, %v131_v22  ;;  %v1292_v40 = vsel %vm153_vm2, %v115_v21, %v126_v34  ;;  %v1294_v41 = vsel %vm153_vm2, %v126_v34, %v115_v21  ;;  %v1296_v42 = vsel %vm153_vm2, %v131_v22, %v110_v33 }
  0xe5   :  { %v204_v43 = vpop.f32.mrb[4].mxu1 }
  0xe6   :  { %v205_v44 = vadd.f32 %v204_v43, %v154_v35  ;;  %v1026_v45 = vpop.f32.mrb[5].mxu1 }
  0xe7   :  { %v207_v46 = vpop.f32.mrb[6].mxu1 }
  0xe8   :  { %1113 = vtanh.f32 %v205_v44  ;;  %v1027_v47 = vpop.f32.mrb[7].mxu1  ;;  %v210_v49 = vsub.f32 0.0, %v205_v44 }
  0xea   :  { %v211_v50 = vmul.f32 1.442695, %v210_v49 }
  0xec   :  { %1115 = vpow2.f32 %v211_v50 }
  0xf2   :  { %v1114_v48 = vpop.eup %1113 }
  0xf3   :  { %219 = vrot.lane.b32.xlu0 %v1114_v48, %s1180_s2 }
  0xf6   :  { %v1116_v51 = vpop.eup %1115 }
  0xf7   :  { %v213_v52 = vadd.f32 1.0, %v1116_v51 }
  0xf9   :  { %1117 = vrcp.f32 %v213_v52 }
 0x103   :  { %v1118_v53 = vpop.eup %1117 }
 0x104   :  { %v217_v56 = vmul.f32 0.0, %v1118_v53 }
 0x165   :  { %v220_v54 = vpop.permute.xlu0 %219 }
 0x166   :  { %v222_v55 = vmul.f32 %v1118_v53, %v220_v54 }
 0x168   :  { %224 = vrot.lane.b32.xlu0 %v222_v55, %s1181_s20 }
 0x1da   :  { %v225_v57 = vpop.permute.xlu0 %224 }
 0x1db   :  { %v227_v58 = vadd.f32 %v225_v57, %v217_v56 }
 0x1dd   :  { %1119 = vtanh.f32 %v227_v58 }
 0x1e7   :  { %v1120_v59 = vpop.eup %1119 }
 0x1e8   :  { %230 = vrot.lane.b32.xlu1 %v1120_v59, %s1182_s21 }
 0x25a   :  { %v231_v60 = vpop.permute.xlu1 %230 }
 0x25b   :  { %v233_v61 = vmul.f32 %v1118_v53, %v231_v60 }
 0x25d   :  { %240 = vrot.lane.b32.xlu0 %v233_v61, %s1182_s21  ;;  %235 = vrot.lane.b32.xlu1 %v233_v61, %s1183_s22 }
 0x2cf   :  { %v241_v62 = vpop.permute.xlu0 %240  ;;  %v236_v63 = vpop.permute.xlu1 %235 }
 0x2d0   :  { %245 = vst.msk [vmem:[#allocation3 + $0x38] sm:$0xff] %vm244_vm3, %v241_v62  ;;  %v250_v0 = vsel %vm238_vm4, %v236_v63, %v241_v62 }
 0x2d1   :  { %239 = vst.msk [vmem:[#allocation3] sm:$0xff] %vm238_vm4, %v236_v63  ;;  %v251_v1 = vpack.c.bf16 %v250_v0, %v250_v0 }
 0x2d3   :  { %1033 = vmatmul.mubr.msk.bf16.vlgmr.msra.gmra.mrb[8].mxu1 %vm59_vm0, %v251_v1 }
 0x2d4   :  { %1045 = vmatpush3.bf16.msra.mxu1 %v1254_v14  ;;  %1048 = vmatprep.mubr.msk.bf16.mxu1 %vm1178_vm1, %v1177_v15 }
 0x2d5   :  { %1046 = vmatprep.subr.bf16.mxu1 %v1177_v15 }
 0x2d8   :  { %1047 = vmatpush3.bf16.msra.mxu1 %v1264_v16 }
 0x2d9   :  { %1060 = vmatprep.subr.bf16.mxu1 %v1177_v15 }
 0x3a6   :  { %v290_v2 = vpop.f32.mrb[8].mxu1 }
 0x3a7   :  { %v291_v3 = vadd.f32 %v290_v2, %v252_v39  ;;  %v1034_v4 = vpop.f32.mrb[9].mxu1 }
 0x3a8   :  { %v293_v5 = vpop.f32.mrb[10].mxu1 }
 0x3a9   :  { %1121 = vtanh.f32 %v291_v3  ;;  %v1035_v6 = vpop.f32.mrb[11].mxu1  ;;  %v296_v8 = vsub.f32 0.0, %v291_v3 }
 0x3ab   :  { %v297_v9 = vmul.f32 1.442695, %v296_v8 }
 0x3ad   :  { %1123 = vpow2.f32 %v297_v9 }
 0x3b3   :  { %v1122_v7 = vpop.eup %1121 }
 0x3b4   :  { %305 = vrot.lane.b32.xlu1 %v1122_v7, %s1180_s2 }
 0x3b7   :  { %v1124_v10 = vpop.eup %1123 }
 0x3b8   :  { %v299_v11 = vadd.f32 1.0, %v1124_v10 }
 0x3ba   :  { %1125 = vrcp.f32 %v299_v11 }
 0x3c4   :  { %v1126_v12 = vpop.eup %1125 }
 0x3c5   :  { %v303_v18 = vmul.f32 %v1126_v12, %v227_v58 }
 0x426   :  { %v306_v13 = vpop.permute.xlu1 %305 }
 0x427   :  { %v308_v17 = vmul.f32 %v1126_v12, %v306_v13 }
 0x429   :  { %310 = vrot.lane.b32.xlu0 %v308_v17, %s1181_s20 }
 0x49b   :  { %v311_v19 = vpop.permute.xlu0 %310 }
 0x49c   :  { %v313_v20 = vadd.f32 %v311_v19, %v303_v18 }
 0x49e   :  { %1127 = vtanh.f32 %v313_v20 }
 0x4a8   :  { %v1128_v21 = vpop.eup %1127 }
 0x4a9   :  { %316 = vrot.lane.b32.xlu1 %v1128_v21, %s1182_s21 }
 0x51b   :  { %v317_v22 = vpop.permute.xlu1 %316 }
 0x51c   :  { %v319_v23 = vmul.f32 %v1126_v12, %v317_v22 }
 0x51e   :  { %326 = vrot.lane.b32.xlu1 %v319_v23, %s1182_s21  ;;  %321 = vrot.lane.b32.xlu0 %v319_v23, %s1183_s22 }
 0x590   :  { %v327_v24 = vpop.permute.xlu1 %326  ;;  %v322_v25 = vpop.permute.xlu0 %321 }
 0x591   :  { %330 = vst.msk [vmem:[#allocation3 + $0x30] sm:$0xff] %vm244_vm3, %v327_v24  ;;  %v335_v26 = vsel %vm238_vm4, %v322_v25, %v327_v24 }
 0x592   :  { %325 = vst.msk [vmem:[#allocation3 + $0x8] sm:$0xff] %vm238_vm4, %v322_v25  ;;  %v336_v27 = vpack.c.bf16 %v335_v26, %v335_v26 }
 0x594   :  { %1041 = vmatmul.mubr.msk.bf16.vlgmr.msra.gmra.mrb[4].mxu0 %vm59_vm0, %v336_v27 }
 0x595   :  { %1053 = vmatpush3.bf16.msra.mxu0 %v1254_v14  ;;  %1056 = vmatprep.mubr.msk.bf16.mxu0 %vm1178_vm1, %v1177_v15 }
 0x596   :  { %1054 = vmatprep.subr.bf16.mxu0 %v1177_v15 }
 0x599   :  { %1055 = vmatpush3.bf16.msra.mxu0 %v1264_v16 }
 0x59a   :  { %1068 = vmatprep.subr.bf16.mxu0 %v1177_v15 }
 0x667   :  { %v375_v28 = vpop.f32.mrb[4].mxu0 }
 0x668   :  { %v376_v29 = vadd.f32 %v375_v28, %v1292_v40  ;;  %v1042_v30 = vpop.f32.mrb[5].mxu0 }
 0x669   :  { %v378_v31 = vpop.f32.mrb[6].mxu0 }
 0x66a   :  { %1129 = vtanh.f32 %v376_v29  ;;  %v1043_v32 = vpop.f32.mrb[7].mxu0  ;;  %v381_v34 = vsub.f32 0.0, %v376_v29 }
 0x66c   :  { %v382_v35 = vmul.f32 1.442695, %v381_v34 }
 0x66e   :  { %1131 = vpow2.f32 %v382_v35 }
 0x674   :  { %v1130_v33 = vpop.eup %1129 }
 0x675   :  { %390 = vrot.lane.b32.xlu0 %v1130_v33, %s1180_s2 }
 0x678   :  { %v1132_v39 = vpop.eup %1131 }
 0x679   :  { %v384_v43 = vadd.f32 1.0, %v1132_v39 }
 0x67b   :  { %1133 = vrcp.f32 %v384_v43 }
 0x685   :  { %v1134_v44 = vpop.eup %1133 }
 0x686   :  { %v388_v47 = vmul.f32 %v1134_v44, %v313_v20 }
 0x6e7   :  { %v391_v45 = vpop.permute.xlu0 %390 }
 0x6e8   :  { %v393_v46 = vmul.f32 %v1134_v44, %v391_v45 }
 0x6ea   :  { %395 = vrot.lane.b32.xlu1 %v393_v46, %s1181_s20 }
 0x75c   :  { %v396_v40 = vpop.permute.xlu1 %395 }
 0x75d   :  { %v398_v48 = vadd.f32 %v396_v40, %v388_v47 }
 0x75f   :  { %1135 = vtanh.f32 %v398_v48 }
 0x769   :  { %v1136_v49 = vpop.eup %1135 }
 0x76a   :  { %401 = vrot.lane.b32.xlu0 %v1136_v49, %s1182_s21 }
 0x7dc   :  { %v402_v50 = vpop.permute.xlu0 %401 }
 0x7dd   :  { %v404_v51 = vmul.f32 %v1134_v44, %v402_v50 }
 0x7df   :  { %411 = vrot.lane.b32.xlu0 %v404_v51, %s1182_s21  ;;  %406 = vrot.lane.b32.xlu1 %v404_v51, %s1183_s22 }
 0x851   :  { %v412_v52 = vpop.permute.xlu0 %411  ;;  %v407_v53 = vpop.permute.xlu1 %406 }
 0x852   :  { %415 = vst.msk [vmem:[#allocation3 + $0x28] sm:$0xff] %vm244_vm3, %v412_v52  ;;  %v420_v54 = vsel %vm238_vm4, %v407_v53, %v412_v52 }
 0x853   :  { %410 = vst.msk [vmem:[#allocation3 + $0x10] sm:$0xff] %vm238_vm4, %v407_v53  ;;  %v421_v55 = vpack.c.bf16 %v420_v54, %v420_v54 }
 0x855   :  { %1049 = vmatmul.mubr.msk.bf16.vlgmr.msra.gmra.mrb[12].mxu1 %vm59_vm0, %v421_v55 }
 0x856   :  { %1061 = vmatpush3.bf16.msra.mxu1 %v1254_v14  ;;  %1064 = vmatprep.mubr.msk.bf16.mxu1 %vm1178_vm1, %v1177_v15 }
 0x857   :  { %1062 = vmatprep.subr.bf16.mxu1 %v1177_v15 }
 0x85a   :  { %1063 = vmatpush3.bf16.msra.mxu1 %v1264_v16 }
 0x85b   :  { %1076 = vmatprep.subr.bf16.mxu1 %v1177_v15 }
 0x928   :  { %v460_v56 = vpop.f32.mrb[12].mxu1 }
 0x929   :  { %v461_v57 = vadd.f32 %v460_v56, %v1286_v36  ;;  %v1050_v58 = vpop.f32.mrb[13].mxu1 }
 0x92a   :  { %v463_v59 = vpop.f32.mrb[14].mxu1 }
 0x92b   :  { %1137 = vtanh.f32 %v461_v57  ;;  %v1051_v60 = vpop.f32.mrb[15].mxu1  ;;  %v466_v62 = vsub.f32 0.0, %v461_v57 }
 0x92d   :  { %v467_v63 = vmul.f32 1.442695, %v466_v62 }
 0x92f   :  { %1139 = vpow2.f32 %v467_v63 }
 0x935   :  { %v1138_v61 = vpop.eup %1137 }
 0x936   :  { %475 = vrot.lane.b32.xlu1 %v1138_v61, %s1180_s2 }
 0x939   :  { %v1140_v0 = vpop.eup %1139 }
 0x93a   :  { %v469_v1 = vadd.f32 1.0, %v1140_v0 }
 0x93c   :  { %1141 = vrcp.f32 %v469_v1 }
 0x946   :  { %v1142_v2 = vpop.eup %1141 }
 0x947   :  { %v473_v5 = vmul.f32 %v1142_v2, %v398_v48 }
 0x9a8   :  { %v476_v3 = vpop.permute.xlu1 %475 }
 0x9a9   :  { %v478_v4 = vmul.f32 %v1142_v2, %v476_v3 }
 0x9ab   :  { %480 = vrot.lane.b32.xlu0 %v478_v4, %s1181_s20 }
 0xa1d   :  { %v481_v36 = vpop.permute.xlu0 %480 }
 0xa1e   :  { %v483_v6 = vadd.f32 %v481_v36, %v473_v5 }
 0xa20   :  { %1143 = vtanh.f32 %v483_v6 }
 0xa2a   :  { %v1144_v7 = vpop.eup %1143 }
 0xa2b   :  { %486 = vrot.lane.b32.xlu1 %v1144_v7, %s1182_s21 }
 0xa9d   :  { %v487_v8 = vpop.permute.xlu1 %486 }
 0xa9e   :  { %v489_v9 = vmul.f32 %v1142_v2, %v487_v8 }
 0xaa0   :  { %496 = vrot.lane.b32.xlu1 %v489_v9, %s1182_s21  ;;  %491 = vrot.lane.b32.xlu0 %v489_v9, %s1183_s22 }
 0xb12   :  { %v497_v10 = vpop.permute.xlu1 %496  ;;  %v492_v11 = vpop.permute.xlu0 %491 }
 0xb13   :  { %500 = vst.msk [vmem:[#allocation3 + $0x20] sm:$0xff] %vm244_vm3, %v497_v10  ;;  %v503_v12 = vsel %vm238_vm4, %v492_v11, %v497_v10 }
 0xb14   :  { %495 = vst.msk [vmem:[#allocation3 + $0x18] sm:$0xff] %vm238_vm4, %v492_v11  ;;  %v504_v13 = vpack.c.bf16 %v503_v12, %v503_v12 }
 0xb16   :  { %1057 = vmatmul.mubr.msk.bf16.vlgmr.msra.gmra.mrb[8].mxu0 %vm59_vm0, %v504_v13 }
 0xb17   :  { %1069 = vmatpush3.bf16.msra.mxu0 %v1254_v14  ;;  %1072 = vmatprep.mubr.msk.bf16.mxu0 %vm1178_vm1, %v1177_v15 }
 0xb18   :  { %1070 = vmatprep.subr.bf16.mxu0 %v1177_v15 }
 0xb1b   :  { %1071 = vmatpush3.bf16.msra.mxu0 %v1264_v16 }
 0xbe9   :  { %v543_v17 = vpop.f32.mrb[8].mxu0 }
 0xbea   :  { %v544_v18 = vadd.f32 %v543_v17, %v1288_v37  ;;  %v1058_v19 = vpop.f32.mrb[9].mxu0 }
 0xbeb   :  { %v546_v20 = vpop.f32.mrb[10].mxu0 }
 0xbec   :  { %1145 = vtanh.f32 %v544_v18  ;;  %v1059_v21 = vpop.f32.mrb[11].mxu0  ;;  %v549_v23 = vsub.f32 0.0, %v544_v18 }
 0xbee   :  { %v550_v24 = vmul.f32 1.442695, %v549_v23 }
 0xbf0   :  { %1147 = vpow2.f32 %v550_v24 }
 0xbf6   :  { %v1146_v22 = vpop.eup %1145 }
 0xbf7   :  { %558 = vrot.lane.b32.xlu0 %v1146_v22, %s1180_s2 }
 0xbfa   :  { %v1148_v25 = vpop.eup %1147 }
 0xbfb   :  { %v552_v26 = vadd.f32 1.0, %v1148_v25 }
 0xbfd   :  { %1149 = vrcp.f32 %v552_v26 }
 0xc07   :  { %v1150_v27 = vpop.eup %1149 }
 0xc08   :  { %v556_v30 = vmul.f32 %v1150_v27, %v483_v6 }
 0xc69   :  { %v559_v28 = vpop.permute.xlu0 %558 }
 0xc6a   :  { %v561_v29 = vmul.f32 %v1150_v27, %v559_v28 }
 0xc6c   :  { %563 = vrot.lane.b32.xlu1 %v561_v29, %s1181_s20 }
 0xcde   :  { %v564_v37 = vpop.permute.xlu1 %563 }
 0xcdf   :  { %v566_v31 = vadd.f32 %v564_v37, %v556_v30 }
 0xce1   :  { %1151 = vtanh.f32 %v566_v31 }
 0xceb   :  { %v1152_v32 = vpop.eup %1151 }
 0xcec   :  { %569 = vrot.lane.b32.xlu0 %v1152_v32, %s1182_s21 }
 0xd5e   :  { %v570_v33 = vpop.permute.xlu0 %569 }
 0xd5f   :  { %v572_v34 = vmul.f32 %v1150_v27, %v570_v33 }
 0xd61   :  { %578 = vrot.lane.b32.xlu0 %v572_v34, %s1182_s21  ;;  %574 = vrot.lane.b32.xlu1 %v572_v34, %s1183_s22 }
 0xdd3   :  { %v579_v35 = vpop.permute.xlu0 %578  ;;  %v575_v39 = vpop.permute.xlu1 %574 }
 0xdd4   :  { %581 = vst.msk [vmem:[#allocation3 + $0x18] sm:$0xff] %vm244_vm3, %v579_v35  ;;  %v584_v43 = vsel %vm238_vm4, %v575_v39, %v579_v35 }
 0xdd5   :  { %577 = vst.msk [vmem:[#allocation3 + $0x20] sm:$0xff] %vm238_vm4, %v575_v39  ;;  %v585_v44 = vpack.c.bf16 %v584_v43, %v584_v43 }
 0xdd7   :  { %1065 = vmatmul.mubr.msk.bf16.vlgmr.msra.gmra.mrb[16].mxu1 %vm59_vm0, %v585_v44  ;;  %v1111_v44 = vld [vmem:[%s1443_s4] sm:$0xff]  }
 0xdd8   :  { %1077 = vmatpush3.bf16.msra.mxu1 %v1254_v14  ;;  %1080 = vmatprep.mubr.msk.bf16.mxu1 %vm1178_vm1, %v1177_v15 }
 0xdd9   :  { %1078 = vmatprep.subr.bf16.mxu1 %v1177_v15  ;;  %1084 = vmatprep.subr.bf16.mxu0 %v1111_v44 }
 0xddc   :  { %1079 = vmatpush3.bf16.msra.mxu1 %v1264_v16 }
 0xeaa   :  { %v624_v45 = vpop.f32.mrb[16].mxu1 }
 0xeab   :  { %v625_v46 = vadd.f32 %v624_v45, %v1294_v41  ;;  %v1066_v47 = vpop.f32.mrb[17].mxu1  ;;  %v1112_v45 = vld [vmem:[%s1443_s4 + $0x8] sm:$0xff]  }
 0xeac   :  { %v627_v40 = vpop.f32.mrb[18].mxu1 }
 0xead   :  { %1153 = vtanh.f32 %v625_v46  ;;  %v1067_v48 = vpop.f32.mrb[19].mxu1  ;;  %v630_v50 = vsub.f32 0.0, %v625_v46 }
 0xeaf   :  { %v631_v51 = vmul.f32 1.442695, %v630_v50 }
 0xeb1   :  { %1155 = vpow2.f32 %v631_v51 }
 0xeb7   :  { %v1154_v49 = vpop.eup %1153 }
 0xeb8   :  { %639 = vrot.lane.b32.xlu1 %v1154_v49, %s1180_s2 }
 0xebb   :  { %v1156_v14 = vpop.eup %1155 }
 0xebc   :  { %v633_v52 = vadd.f32 1.0, %v1156_v14 }
 0xebe   :  { %1157 = vrcp.f32 %v633_v52 }
 0xec8   :  { %v1158_v53 = vpop.eup %1157 }
 0xec9   :  { %v637_v16 = vmul.f32 %v1158_v53, %v566_v31 }
 0xf2a   :  { %v640_v15 = vpop.permute.xlu1 %639 }
 0xf2b   :  { %v642_v54 = vmul.f32 %v1158_v53, %v640_v15 }
 0xf2d   :  { %644 = vrot.lane.b32.xlu0 %v642_v54, %s1181_s20  ;;  %v829_v54 = vld [vmem:[#allocation3 + $0x20] sm:$0xff] }
 0xf9f   :  { %v645_v41 = vpop.permute.xlu0 %644 }
 0xfa0   :  { %v647_v55 = vadd.f32 %v645_v41, %v637_v16 }
 0xfa2   :  { %1159 = vtanh.f32 %v647_v55 }
 0xfac   :  { %v1160_v56 = vpop.eup %1159 }
 0xfad   :  { %650 = vrot.lane.b32.xlu1 %v1160_v56, %s1182_s21 }
0x101f   :  { %v651_v57 = vpop.permute.xlu1 %650 }
0x1020   :  { %v653_v58 = vmul.f32 %v1158_v53, %v651_v57  ;;  %v828_v53 = vld [vmem:[#allocation3 + $0x18] sm:$0xff]  ;;  %v965_v57 = vld [vmem:[%s1444_s5] ss:$0 sm:$0xff] }
0x1022   :  { %659 = vrot.lane.b32.xlu1 %v653_v58, %s1182_s21  ;;  %655 = vrot.lane.b32.xlu0 %v653_v58, %s1183_s22 }
0x1094   :  { %v660_v59 = vpop.permute.xlu1 %659  ;;  %v656_v60 = vpop.permute.xlu0 %655 }
0x1095   :  { %662 = vst.msk [vmem:[#allocation3 + $0x10] sm:$0xff] %vm244_vm3, %v660_v59  ;;  %v665_v61 = vsel %vm238_vm4, %v656_v60, %v660_v59 }
0x1096   :  { %658 = vst.msk [vmem:[#allocation3 + $0x28] sm:$0xff] %vm238_vm4, %v656_v60  ;;  %v666_v62 = vpack.c.bf16 %v665_v61, %v665_v61 }
0x1098   :  { %1073 = vmatmul.mubr.msk.bf16.vlgmr.msra.gmra.mrb[12].mxu0 %vm59_vm0, %v666_v62 }
0x1099   :  { %1085 = vmatpush3.bf16.msra.mxu0 %v1111_v44 }
0x109a   :  { %1086 = vmatprep.subr.bf16.mxu0 %v1112_v45 }
0x109c   :  { %v827_v49 = vld [vmem:[#allocation3 + $0x10] sm:$0xff] }
0x109d   :  { %1087 = vmatpush3.bf16.msra.mxu0 %v1112_v45  ;;  %v830_v14 = vld [vmem:[#allocation3 + $0x28] sm:$0xff]  ;;  %v834_v15 = vpack.c.bf16 %v828_v53, %v827_v49 }
0x109e   :  { %v835_v16 = vpack.c.bf16 %v830_v14, %v829_v54 }
0x116b   :  { %v705_v63 = vpop.f32.mrb[12].mxu0 }
0x116c   :  { %v706_v0 = vadd.f32 %v705_v63, %v1296_v42  ;;  %v1074_v1 = vpop.f32.mrb[13].mxu0 }
0x116d   :  { %v708_v2 = vpop.f32.mrb[14].mxu0 }
0x116e   :  { %1161 = vtanh.f32 %v706_v0  ;;  %v1075_v3 = vpop.f32.mrb[15].mxu0  ;;  %v711_v5 = vsub.f32 0.0, %v706_v0 }
0x1170   :  { %v712_v36 = vmul.f32 1.442695, %v711_v5 }
0x1172   :  { %1163 = vpow2.f32 %v712_v36 }
0x1178   :  { %v1162_v4 = vpop.eup %1161 }
0x1179   :  { %720 = vrot.lane.b32.xlu0 %v1162_v4, %s1180_s2 }
0x117c   :  { %v1164_v6 = vpop.eup %1163 }
0x117d   :  { %v714_v7 = vadd.f32 1.0, %v1164_v6 }
0x117f   :  { %1165 = vrcp.f32 %v714_v7 }
0x1189   :  { %v1166_v8 = vpop.eup %1165 }
0x118a   :  { %v718_v11 = vmul.f32 %v1166_v8, %v647_v55 }
0x11eb   :  { %v721_v9 = vpop.permute.xlu0 %720 }
0x11ec   :  { %v723_v10 = vmul.f32 %v1166_v8, %v721_v9 }
0x11ee   :  { %725 = vrot.lane.b32.xlu1 %v723_v10, %s1181_s20 }
0x1260   :  { %v726_v42 = vpop.permute.xlu1 %725 }
0x1261   :  { %v728_v12 = vadd.f32 %v726_v42, %v718_v11 }
0x1263   :  { %1167 = vtanh.f32 %v728_v12 }
0x126d   :  { %v1168_v13 = vpop.eup %1167 }
0x126e   :  { %731 = vrot.lane.b32.xlu0 %v1168_v13, %s1182_s21 }
0x12e0   :  { %v732_v17 = vpop.permute.xlu0 %731 }
0x12e1   :  { %v734_v18 = vmul.f32 %v1166_v8, %v732_v17 }
0x12e3   :  { %740 = vrot.lane.b32.xlu0 %v734_v18, %s1182_s21  ;;  %736 = vrot.lane.b32.xlu1 %v734_v18, %s1183_s22 }
0x1355   :  { %v741_v19 = vpop.permute.xlu0 %740  ;;  %v737_v20 = vpop.permute.xlu1 %736 }
0x1356   :  { %743 = vst.msk [vmem:[#allocation3 + $0x8] sm:$0xff] %vm244_vm3, %v741_v19  ;;  %v746_v21 = vsel %vm238_vm4, %v737_v20, %v741_v19 }
0x1357   :  { %739 = vst.msk [vmem:[#allocation3 + $0x30] sm:$0xff] %vm238_vm4, %v737_v20  ;;  %v747_v22 = vpack.c.bf16 %v746_v21, %v746_v21 }
0x1359   :  { %1081 = vmatmul.mubr.msk.bf16.vlgmr.msra.gmra.mrb[20].mxu1 %vm59_vm0, %v747_v22 }
0x135d   :  { %v826_v51 = vld [vmem:[#allocation3 + $0x8] sm:$0xff] }
0x135e   :  { %v831_v55 = vld [vmem:[#allocation3 + $0x30] sm:$0xff] }
0x142c   :  { %v786_v23 = vpop.f32.mrb[20].mxu1 }
0x142d   :  { %v787_v24 = vadd.f32 %v786_v23, %v1290_v38  ;;  %v1082_v25 = vpop.f32.mrb[21].mxu1 }
0x142e   :  { %v789_v26 = vpop.f32.mrb[22].mxu1 }
0x142f   :  { %1169 = vtanh.f32 %v787_v24  ;;  %v1083_v27 = vpop.f32.mrb[23].mxu1  ;;  %v792_v29 = vsub.f32 0.0, %v787_v24 }
0x1431   :  { %v793_v30 = vmul.f32 1.442695, %v792_v29 }
0x1433   :  { %1171 = vpow2.f32 %v793_v30 }
0x1439   :  { %v1170_v28 = vpop.eup %1169 }
0x143a   :  { %801 = vrot.lane.b32.xlu1 %v1170_v28, %s1180_s2 }
0x143d   :  { %v1172_v37 = vpop.eup %1171 }
0x143e   :  { %v795_v31 = vadd.f32 1.0, %v1172_v37 }
0x1440   :  { %1173 = vrcp.f32 %v795_v31 }
0x144a   :  { %v1174_v32 = vpop.eup %1173 }
0x144b   :  { %v799_v35 = vmul.f32 %v1174_v32, %v728_v12 }
0x14ac   :  { %v802_v33 = vpop.permute.xlu1 %801 }
0x14ad   :  { %v804_v34 = vmul.f32 %v1174_v32, %v802_v33 }
0x14af   :  { %806 = vrot.lane.b32.xlu0 %v804_v34, %s1181_s20 }
0x1521   :  { %v807_v38 = vpop.permute.xlu0 %806 }
0x1522   :  { %v809_v39 = vadd.f32 %v807_v38, %v799_v35 }
0x1524   :  { %1175 = vtanh.f32 %v809_v39 }
0x152e   :  { %v1176_v43 = vpop.eup %1175 }
0x152f   :  { %812 = vrot.lane.b32.xlu1 %v1176_v43, %s1182_s21 }
0x15a1   :  { %v813_v46 = vpop.permute.xlu1 %812 }
0x15a2   :  { %v815_v47 = vmul.f32 %v1174_v32, %v813_v46 }
0x15a4   :  { %817 = vrot.lane.b32.xlu1 %v815_v47, %s1183_s22  ;;  %821 = vrot.lane.b32.xlu0 %v815_v47, %s1182_s21 }
0x1616   :  { %v818_v40 = vpop.permute.xlu1 %817  ;;  %v822_v48 = vpop.permute.xlu0 %821 }
0x1617   :  { %820 = vst.msk [vmem:[#allocation3 + $0x38] sm:$0xff] %vm238_vm4, %v818_v40 }
0x1618   :  { %824 = vst.msk [vmem:[#allocation3] sm:$0xff] %vm244_vm3, %v822_v48 }
0x161e   :  { %v832_v41 = vld [vmem:[#allocation3 + $0x38] sm:$0xff] }
0x161f   :  { %v825_v50 = vld [vmem:[#allocation3] sm:$0xff]  ;;  %v836_v56 = vpack.c.bf16 %v832_v41, %v831_v55 }
0x1620   :  { %v833_v52 = vpack.c.bf16 %v826_v51, %v825_v50 }
0x1622   :  { %1088 = vmatprep.mubr.msk.bf16.mxu0 %vm59_vm0, %v833_v52 }
0x1623   :  { %1089 = vmatmul.mubr.msk.bf16.vlgmr.msra.gmra.mrb[16].mxu0 %vm59_vm0, %v834_v15 }
0x1624   :  { %1092 = vmatprep.mubr.msk.bf16.mxu0 %vm59_vm0, %v835_v16 }
0x162b   :  { %1093 = vmatmul.mubr.msk.bf16.gmra.mrb[20].mxu0 %vm59_vm0, %v836_v56 }
0x16f6   :  { %v1090_v58 = vpop.f32.mrb[16].mxu0 }
0x16f7   :  { %v915_v59 = vadd.f32 %v1090_v58, %v965_v57  ;;  %v906_v60 = vpop.f32.mrb[17].mxu0 }
0x16f8   :  { %v907_v61 = vadd.f32 %v965_v57, %v906_v60  ;;  %v1091_v62 = vpop.f32.mrb[18].mxu0 }
0x16f9   :  { %939 = vst [vmem:[%s1445_s6 + $0x10] sm:$0xff] %v915_v59  ;;  %v918_v63 = vadd.f32 %v1091_v62, %v965_v57  ;;  %v909_v0 = vpop.f32.mrb[19].mxu0 }
0x16fa   :  { %937 = vst [vmem:[%s1445_s6] sm:$0xff] %v907_v61  ;;  %v910_v1 = vadd.f32 %v965_v57, %v909_v0 }
0x16fb   :  { %940 = vst [vmem:[%s1445_s6 + $0x18] sm:$0xff] %v918_v63 }
0x16fc   :  { %938 = vst [vmem:[%s1445_s6 + $0x8] sm:$0xff] %v910_v1 }
0x16fe   :  { %v1094_v2 = vpop.f32.mrb[20].mxu0 }
0x16ff   :  { %v931_v3 = vadd.f32 %v1094_v2, %v965_v57  ;;  %v922_v4 = vpop.f32.mrb[21].mxu0 }
0x1700   :  { %v923_v5 = vadd.f32 %v965_v57, %v922_v4  ;;  %v1095_v36 = vpop.f32.mrb[22].mxu0 }
0x1701   :  { %943 = vst [vmem:[%s1445_s6 + $0x30] sm:$0xff] %v931_v3  ;;  %v934_v6 = vadd.f32 %v1095_v36, %v965_v57  ;;  %v925_v7 = vpop.f32.mrb[23].mxu0 }
0x1702   :  { %941 = vst [vmem:[%s1445_s6 + $0x20] sm:$0xff] %v923_v5  ;;  %v926_v8 = vadd.f32 %v965_v57, %v925_v7 }
0x1703   :  { %944 = vst [vmem:[%s1445_s6 + $0x38] sm:$0xff] %v934_v6 }
0x1704   :  { %942 = vst [vmem:[%s1445_s6 + $0x28] sm:$0xff] %v926_v8 }

// kernel: _device_decode.17
= control target key start
LH: loop header
LB: loop body
LE: loop exit
PB: predicated region body
PF: predicated region fallthrough
CT: control target
= control target key end

     0   :  { %v39_v0 = vlaneseq  ;;  %v5200_v1 = vmov 0   ;;  %v3040_v29 = vmov 1966171168   ;;  %vm196_vm1 = vcmask 64512   ;;  %s5193_s0 = inlined_call_operand.vmem [shape: f32[64,128], index: 0, kind: input, shape index: {}]   ;;  %s5194_s1 = inlined_call_operand.vmem [shape: f32[64,1], index: 1, kind: input, shape index: {}]   ;;  %s5195_s2 = inlined_call_operand.vmem [shape: f32[1,8], index: 2, kind: input, shape index: {}]   ;;  %s5196_s4 = inlined_call_operand.vmem [shape: f32[8,8], index: 4, kind: input, shape index: {}]   ;;  %s5197_s5 = inlined_call_operand.vmem [shape: s32[7,8,8], index: 5, kind: output, shape index: {0}]   ;;  %s5198_s3 = inlined_call_operand.vmem [shape: f32[1,8], index: 3, kind: input, shape index: {}]   ;;  %s5199_s6 = inlined_call_operand.vmem [shape: f32[8,8], index: 6, kind: output, shape index: {1}]  }
   0x1   :  { %3036 = vset.pattern.permute.xlu1 %v5200_v1  ;;  %3037 = vset.pattern.permute.xlu0 %v5200_v1  ;;  %v3013_v3 = vld [vmem:[%s5193_s0 + $0x8] sm:$0xff]  ;;  %v3122_v21 = vld [vmem:[%s5193_s0 + $0x10] sm:$0xff]  ;;  %v37_v30 = vunpack.c.l.s4 %v3040_v29  ;;  %v3012_v32 = vld [vmem:[%s5195_s2] ss:$0 sm:$0xff]  ;;  %vm393_vm3 = vcmask 1041409   ;;  %vm395_vm4 = vcmask 1042434  }
   0x2   :  { %v3079_v2 = vshrl.u32 %v39_v0, 7  ;;  %v3014_v18 = vld [vmem:[%s5194_s1 + $0x8] sm:$0xff]  ;;  %v24_v33 = vld [vmem:[%s5193_s0] sm:$0xff]  ;;  %vm397_vm5 = vcmask 1043459   ;;  %vm399_vm6 = vcmask 1044484   ;;  %vm401_vm7 = vcmask 1045509  }
   0x3   :  { %vm408_vm0 = vcmp.gt.f32.partialorder %v3014_v18, 0.5  ;;  %v38_v31 = vunpack.c.0.s8 %v37_v30  ;;  %v3146_v35 = vadd.f32 %v3012_v32, %v24_v33  ;;  %v3160_v47 = vld [vmem:[%s5196_s4] sm:$0xff]  ;;  %v3209_v33 = vld [vmem:[%s5193_s0 + $0x18] sm:$0xff]  ;;  %vm403_vm8 = vcmask 1046534  }
   0x4   :  { %v3085_v4 = vsub.s32 0, %v3079_v2  ;;  %v3088_v5 = vsub.s32 2, %v3079_v2  ;;  %v3091_v6 = vsub.s32 1, %v3079_v2  ;;  %v3094_v7 = vsub.s32 3, %v3079_v2 }
   0x5   :  { %v3101_v12 = vsub.s32 4, %v3079_v2  ;;  %v3104_v13 = vsub.s32 5, %v3079_v2  ;;  %v3109_v16 = vsub.s32 6, %v3079_v2  ;;  %v3112_v17 = vsub.s32 7, %v3079_v2 }
   0x6   :  { %v135_v8 = vrot.slane %v3013_v3, %v3085_v4  ;;  %v149_v9 = vrot.slane %v3013_v3, %v3088_v5  ;;  %v142_v10 = vrot.slane %v3013_v3, %v3091_v6  ;;  %v156_v11 = vrot.slane %v3013_v3, %v3094_v7 }
   0x7   :  { %v163_v14 = vrot.slane %v3013_v3, %v3101_v12  ;;  %v170_v15 = vrot.slane %v3013_v3, %v3104_v13  ;;  %v177_v19 = vrot.slane %v3013_v3, %v3109_v16  ;;  %v184_v20 = vrot.slane %v3013_v3, %v3112_v17 }
   0x8   :  { %137 = vbcast.lane.b32.xlu0 %v135_v8, 256  ;;  %151 = vbcast.lane.b32.xlu1 %v149_v9, 256  ;;  %v566_v22 = vrot.slane %v3122_v21, %v3085_v4  ;;  %v409_v23 = vsel %vm408_vm0, 1, %v5200_v1  ;;  %v573_v24 = vrot.slane %v3122_v21, %v3091_v6  ;;  %v587_v25 = vrot.slane %v3122_v21, %v3094_v7 }
   0x9   :  { %v580_v26 = vrot.slane %v3122_v21, %v3088_v5  ;;  %v601_v27 = vrot.slane %v3122_v21, %v3104_v13  ;;  %v594_v28 = vrot.slane %v3122_v21, %v3101_v12  ;;  %v3144_v34 = vsub.s32 %v38_v31, %v3079_v2 }
   0xa   :  { %v35_v39 = vcombine.high %v3146_v35, %v3146_v35  ;;  %v608_v32 = vrot.slane %v3122_v21, %v3109_v16  ;;  %vm405_vm9 = vcmask 1047559  }
   0xb   :  { %5341 = vst [vmem:[#allocation2_spill] sm:$0xff] %v3144_v34  ;;  %v42_v36 = vrot.slane %v3146_v35, %v3144_v34 }
   0xc   :  { %144 = vbcast.lane.b32.xlu0 %v142_v10, 256  ;;  %158 = vbcast.lane.b32.xlu1 %v156_v11, 256  ;;  %v49_v42 = vrot.slane %v35_v39, %v3144_v34  ;;  %v1002_v39 = vrot.slane %v3209_v33, %v3088_v5 }
   0xd   :  { %v58_v37 = vrot.slane %v42_v36, %v3144_v34  ;;  %v50_v38 = vcombine.high %v42_v36, %v42_v36  ;;  %v615_v36 = vrot.slane %v3122_v21, %v3112_v17  ;;  %v1016_v21 = vrot.slane %v3209_v33, %v3101_v12 }
   0xe   :  { %v51_v46 = vcombine.high %v49_v42, %v49_v42  ;;  %v65_v49 = vrot.slane %v49_v42, %v3144_v34  ;;  %v1023_v42 = vrot.slane %v3209_v33, %v3104_v13 }
   0xf   :  { %v80_v40 = vcombine.high %v58_v37, %v58_v37  ;;  %v72_v41 = vrot.slane %v50_v38, %v3144_v34  ;;  %v87_v43 = vrot.slane %v58_v37, %v3085_v4  ;;  %v988_v37 = vrot.slane %v3209_v33, %v3085_v4 }
  0x10   :  { %165 = vbcast.lane.b32.xlu0 %v163_v14, 256  ;;  %172 = vbcast.lane.b32.xlu1 %v170_v15, 256  ;;  %v79_v53 = vrot.slane %v51_v46, %v3144_v34  ;;  %v103_v57 = vrot.slane %v65_v49, %v3085_v4  ;;  %v81_v58 = vcombine.high %v65_v49, %v65_v49 }
  0x11   :  { %v95_v44 = vrot.slane %v80_v40, %v3085_v4  ;;  %v82_v45 = vcombine.high %v72_v41, %v72_v41  ;;  %v91_v48 = vrot.slane %v72_v41, %v3085_v4  ;;  %v124_v50 = vadd.f32 %v87_v43, %v3160_v47 }
  0x12   :  { %v107_v62 = vrot.slane %v79_v53, %v3085_v4  ;;  %v128_v9 = vadd.f32 %v103_v57, %v3160_v47  ;;  %v111_v10 = vrot.slane %v81_v58, %v3085_v4  ;;  %v995_v38 = vrot.slane %v3209_v33, %v3091_v6 }
  0x13   :  { %v126_v51 = vadd.f32 %v95_v44, %v3160_v47  ;;  %v99_v52 = vrot.slane %v82_v45, %v3085_v4  ;;  %v125_v56 = vadd.f32 %v91_v48, %v3160_v47  ;;  %v1009_v40 = vrot.slane %v3209_v33, %v3094_v7 }
  0x14   :  { %179 = vbcast.lane.b32.xlu0 %v177_v19, 256  ;;  %186 = vbcast.lane.b32.xlu1 %v184_v20, 256  ;;  %v129_v18 = vadd.f32 %v107_v62, %v3160_v47  ;;  %v83_v41 = vcombine.high %v79_v53, %v79_v53  ;;  %v1030_v44 = vrot.slane %v3209_v33, %v3109_v16 }
  0x15   :  { %v127_v61 = vadd.f32 %v99_v52, %v3160_v47 }
  0x16   :  { %v115_v43 = vrot.slane %v83_v41, %v3085_v4 }
  0x18   :  { %411 = vperm.xlu1 %3036, %v409_v23   ;;  %568 = vbcast.lane.b32.xlu0 %v566_v22, 256  ;;  %v131_v45 = vadd.f32 %v115_v43, %v3160_v47 }
  0x1c   :  { %575 = vbcast.lane.b32.xlu1 %v573_v24, 256  ;;  %589 = vbcast.lane.b32.xlu0 %v587_v25, 256  ;;  %v130_v25 = vadd.f32 %v111_v10, %v3160_v47 }
  0x20   :  { %582 = vbcast.lane.b32.xlu1 %v580_v26, 256  ;;  %603 = vbcast.lane.b32.xlu0 %v601_v27, 256 }
  0x24   :  { %596 = vbcast.lane.b32.xlu1 %v594_v28, 256 }
  0x7a   :  { %v138_v54 = vpop.permute.xlu0 %137  ;;  %v152_v55 = vpop.permute.xlu1 %151 }
  0x7b   :  { %v3170_v59 = vadd.f32 %v138_v54, %v124_v50  ;;  %v3172_v60 = vadd.f32 %v152_v55, %v126_v51  ;;  %v3016_v50 = vld [vmem:[%s5194_s1 + $0x10] sm:$0xff] }
  0x7c   :  { %vm830_vm2 = vcmp.gt.f32.partialorder %v3016_v50, 0.5 }
  0x7d   :  { %v197_v63 = vsel %vm196_vm1, %v3170_v59, -inf  ;;  %v203_v15 = vsel %vm196_vm1, %v3172_v60, -inf  ;;  %v831_v51 = vsel %vm830_vm2, 1, %v5200_v1 }
  0x7e   :  { %v145_v3 = vpop.permute.xlu0 %144  ;;  %198 = vmax.xlane.f32.xlu0 %v197_v63  ;;  %v159_v8 = vpop.permute.xlu1 %158  ;;  %v3252_v63 = vand.u32 127, %v39_v0 }
  0x7f   :  { %v3180_v11 = vadd.f32 %v145_v3, %v125_v56  ;;  %v3182_v14 = vadd.f32 %v159_v8, %v127_v61 }
  0x80   :  { %5343 = vst [vmem:[#allocation4_spill] sm:$0xff] %v3252_v63 }
  0x81   :  { %5342 = vst [vmem:[#allocation3_spill] sm:$0xff] %v3180_v11  ;;  %v200_v19 = vsel %vm196_vm1, %v3180_v11, -inf  ;;  %v206_v26 = vsel %vm196_vm1, %v3182_v14, -inf }
  0x82   :  { %v166_v20 = vpop.permute.xlu0 %165  ;;  %204 = vmax.xlane.f32.xlu0 %v203_v15  ;;  %201 = vmax.xlane.f32.xlu1 %v200_v19  ;;  %v173_v22 = vpop.permute.xlu1 %172 }
  0x83   :  { %v3189_v23 = vadd.f32 %v166_v20, %v128_v9  ;;  %v3191_v24 = vadd.f32 %v173_v22, %v129_v18  ;;  %v3260_v9 = vsub.s32 %v3252_v63, %v3079_v2 }
  0x85   :  { %v209_v27 = vsel %vm196_vm1, %v3189_v23, -inf  ;;  %v212_v30 = vsel %vm196_vm1, %v3191_v24, -inf  ;;  %5345 = vst [vmem:[#allocation6_spill] sm:$0xff] %v3260_v9 }
  0x86   :  { %v180_v28 = vpop.permute.xlu0 %179  ;;  %207 = vmax.xlane.f32.xlu0 %v206_v26  ;;  %210 = vmax.xlane.f32.xlu1 %v209_v27  ;;  %v187_v46 = vpop.permute.xlu1 %186 }
  0x87   :  { %v3198_v29 = vadd.f32 %v180_v28, %v130_v25  ;;  %v3229_v48 = vadd.f32 %v187_v46, %v131_v45 }
  0x89   :  { %v215_v31 = vsel %vm196_vm1, %v3198_v29, -inf  ;;  %v218_v49 = vsel %vm196_vm1, %v3229_v48, -inf }
  0x8a   :  { %216 = vmax.xlane.f32.xlu1 %v215_v31  ;;  %213 = vmax.xlane.f32.xlu0 %v212_v30  ;;  %v569_v52 = vpop.permute.xlu0 %568 }
  0x8e   :  { %v3237_v54 = vpop.permute.xlu0 %589 }
  0x92   :  { %v3241_v56 = vpop.permute.xlu0 %603 }
  0x97   :  { %v412_v53 = vpop.permute.xlu1 %411 }
  0x98   :  { %vm413_vm10 = vcmp.eq.s32.totalorder %v412_v53, 1 }
  0x9b   :  { %610 = vbcast.lane.b32.xlu1 %v608_v32, 256  ;;  %v3239_v55 = vpop.permute.xlu1 %575 }
  0x9f   :  { %990 = vbcast.lane.b32.xlu1 %v988_v37, 256  ;;  %v3245_v58 = vpop.permute.xlu1 %582 }
  0xa0   :  { %617 = vbcast.lane.b32.xlu0 %v615_v36, 256 }
  0xa3   :  { %997 = vbcast.lane.b32.xlu1 %v995_v38, 256  ;;  %v3249_v62 = vpop.permute.xlu1 %596 }
  0xa7   :  { %1004 = vbcast.lane.b32.xlu1 %v1002_v39, 256 }
  0xab   :  { %1011 = vbcast.lane.b32.xlu1 %v1009_v40, 256 }
  0xaf   :  { %1018 = vbcast.lane.b32.xlu1 %v1016_v21, 256 }
  0xb3   :  { %1025 = vbcast.lane.b32.xlu1 %v1023_v42, 256 }
  0xb7   :  { %1032 = vbcast.lane.b32.xlu1 %v1030_v44, 256 }
  0xbf   :  { %219 = vmax.xlane.f32.xlu0 %v218_v49 }
  0xd5   :  { %833 = vperm.xlu0 %3037, %v831_v51  }
 0x10b   :  { %v3243_v57 = vpop.xlane.xlu0 %198 }
 0x10c   :  { %v425_v15 = vrot.slane %v3243_v57, %v3260_v9  ;;  %vm223_vm2 = vcmp.ge.f32.partialorder %v3170_v59, %v3243_v57  ;;  %v3028_v59 = vld [vmem:[%s5194_s1 + $0x30] sm:$0xff] }
 0x10f   :  { %v3247_v61 = vpop.xlane.xlu0 %204  ;;  %v3254_v3 = vpop.xlane.xlu1 %201 }
 0x110   :  { %5344 = vst [vmem:[#allocation5_spill] sm:$0xff] %v3254_v3  ;;  %v429_v10 = vrot.slane %v3254_v3, %v3260_v9  ;;  %v433_v0 = vrot.slane %v3247_v61, %v3260_v9 }
 0x112   :  { %v454_v20 = vsel %vm393_vm3, %v429_v10, %v425_v15 }
 0x113   :  { %v3256_v8 = vpop.xlane.xlu0 %207  ;;  %v3266_v18 = vpop.xlane.xlu1 %210  ;;  %v455_v22 = vsel %vm395_vm4, %v433_v0, %v454_v20 }
 0x114   :  { %v437_v2 = vrot.slane %v3256_v8, %v3260_v9  ;;  %v441_v25 = vrot.slane %v3266_v18, %v3260_v9 }
 0x116   :  { %v456_v26 = vsel %vm397_vm5, %v437_v2, %v455_v22 }
 0x117   :  { %v3270_v19 = vpop.xlane.xlu0 %213  ;;  %v3279_v27 = vpop.xlane.xlu1 %216  ;;  %v457_v31 = vsel %vm399_vm6, %v441_v25, %v456_v26 }
 0x118   :  { %v445_v28 = vrot.slane %v3270_v19, %v3260_v9  ;;  %v449_v32 = vrot.slane %v3279_v27, %v3260_v9 }
 0x11a   :  { %v458_v36 = vsel %vm401_vm7, %v445_v28, %v457_v31 }
 0x11b   :  { %v618_v30 = vpop.permute.xlu0 %617  ;;  %v459_v39 = vsel %vm403_vm8, %v449_v32, %v458_v36 }
 0x14c   :  { %v3287_v37 = vpop.xlane.xlu0 %219 }
 0x14d   :  { %v453_v38 = vrot.slane %v3287_v37, %v3260_v9 }
 0x14f   :  { %v460_v40 = vsel %vm405_vm9, %v453_v38, %v459_v39 }
 0x150   :  { %v3294_v21 = vsel %vm413_vm10, %v460_v40, %v3146_v35  ;;  %vm2518_vm10 = vcmp.gt.f32.partialorder %v3028_v59, 0.5 }
 0x151   :  { %v466_v41 = vcombine.high %v3294_v21, %v3294_v21  ;;  %v473_v42 = vrot.slane %v3294_v21, %v3144_v34 }
 0x153   :  { %v480_v43 = vrot.slane %v466_v41, %v3144_v34  ;;  %v489_v44 = vrot.slane %v473_v42, %v3144_v34  ;;  %v481_v45 = vcombine.high %v473_v42, %v473_v42 }
 0x155   :  { %v496_v46 = vrot.slane %v480_v43, %v3144_v34  ;;  %v518_v49 = vrot.slane %v489_v44, %v3085_v4  ;;  %v503_v50 = vrot.slane %v481_v45, %v3144_v34  ;;  %v511_v51 = vcombine.high %v489_v44, %v489_v44 }
 0x156   :  { %v482_v35 = vcombine.high %v480_v43, %v480_v43 }
 0x157   :  { %v555_v53 = vadd.f32 %v518_v49, %v3160_v47  ;;  %v522_v10 = vrot.slane %v503_v50, %v3085_v4  ;;  %v513_v15 = vcombine.high %v503_v50, %v503_v50  ;;  %v512_v0 = vcombine.high %v496_v46, %v496_v46 }
 0x158   :  { %v526_v20 = vrot.slane %v511_v51, %v3085_v4  ;;  %v510_v2 = vrot.slane %v482_v35, %v3144_v34  ;;  %v534_v28 = vrot.slane %v496_v46, %v3085_v4  ;;  %v611_v35 = vpop.permute.xlu1 %610 }
 0x159   :  { %v3309_v22 = vadd.f32 %v569_v52, %v555_v53  ;;  %v556_v25 = vadd.f32 %v522_v10, %v3160_v47  ;;  %v530_v26 = vrot.slane %v513_v15, %v3085_v4  ;;  %v542_v40 = vrot.slane %v512_v0, %v3085_v4 }
 0x15a   :  { %v557_v31 = vadd.f32 %v526_v20, %v3160_v47  ;;  %v538_v32 = vrot.slane %v510_v2, %v3085_v4  ;;  %v514_v36 = vcombine.high %v510_v2, %v510_v2  ;;  %v1037_v20 = vrot.slane %v3209_v33, %v3112_v17  ;;  %v3021_v2 = vld [vmem:[%s5193_s0 + $0x20] sm:$0xff] }
 0x15b   :  { %v627_v38 = vsel %vm196_vm1, %v3309_v22, -inf  ;;  %v3319_v39 = vadd.f32 %v3239_v55, %v556_v25  ;;  %v558_v52 = vadd.f32 %v530_v26, %v3160_v47  ;;  %v559_v55 = vadd.f32 %v534_v28, %v3160_v47 }
 0x15c   :  { %628 = vmax.xlane.f32.xlu1 %v627_v38  ;;  %v560_v41 = vadd.f32 %v538_v32, %v3160_v47  ;;  %v546_v42 = vrot.slane %v514_v36, %v3085_v4  ;;  %v3331_v45 = vadd.f32 %v3245_v58, %v557_v31  ;;  %v561_v51 = vadd.f32 %v542_v40, %v3160_v47  ;;  %v3022_v38 = vld [vmem:[%s5194_s1 + $0x20] sm:$0xff] }
 0x15d   :  { %5346 = vst [vmem:[#allocation7_spill] sm:$0xff] %v3319_v39  ;;  %v630_v43 = vsel %vm196_vm1, %v3319_v39, -inf  ;;  %v3328_v44 = vadd.f32 %v3237_v54, %v558_v52  ;;  %v3344_v58 = vadd.f32 %v3249_v62, %v559_v55  ;;  %v1410_v26 = vrot.slane %v3021_v2, %v3085_v4 }
 0x15e   :  { %5348 = vst [vmem:[#allocation9_spill] sm:$0xff] %v3331_v45  ;;  %631 = vmax.xlane.f32.xlu0 %v630_v43  ;;  %v3337_v49 = vadd.f32 %v3241_v56, %v560_v41  ;;  %v562_v50 = vadd.f32 %v546_v42, %v3160_v47  ;;  %v633_v54 = vsel %vm196_vm1, %v3331_v45, -inf  ;;  %v3350_v56 = vadd.f32 %v611_v35, %v561_v51  ;;  %v3381_v41 = vld [vmem:[%s5193_s0 + $0x28] sm:$0xff] }
 0x15f   :  { %5347 = vst [vmem:[#allocation8_spill] sm:$0xff] %v3328_v44  ;;  %v636_v46 = vsel %vm196_vm1, %v3328_v44, -inf  ;;  %5350 = vst [vmem:[#allocation11_spill] sm:$0xff] %v3344_v58  ;;  %v639_v15 = vsel %vm196_vm1, %v3344_v58, -inf  ;;  %v1417_v28 = vrot.slane %v3021_v2, %v3091_v6  ;;  %v1431_v31 = vrot.slane %v3021_v2, %v3094_v7 }
 0x160   :  { %5349 = vst [vmem:[#allocation10_spill] sm:$0xff] %v3337_v49  ;;  %637 = vmax.xlane.f32.xlu1 %v636_v46  ;;  %v642_v53 = vsel %vm196_vm1, %v3337_v49, -inf  ;;  %v3348_v10 = vadd.f32 %v618_v30, %v562_v50  ;;  %5352 = vst [vmem:[#allocation13_spill] sm:$0xff] %v3350_v56  ;;  %v645_v62 = vsel %vm196_vm1, %v3350_v56, -inf  ;;  %v3019_v30 = vld [vmem:[%s5194_s1 + $0x18] sm:$0xff]  ;;  %v1424_v32 = vrot.slane %v3021_v2, %v3088_v5 }
 0x161   :  { %vm1252_vm11 = vcmp.gt.f32.partialorder %v3019_v30, 0.5  ;;  %v1445_v33 = vrot.slane %v3021_v2, %v3104_v13  ;;  %v1438_v36 = vrot.slane %v3021_v2, %v3101_v12  ;;  %v1459_v52 = vrot.slane %v3021_v2, %v3112_v17 }
 0x162   :  { %634 = vmax.xlane.f32.xlu0 %v633_v54  ;;  %5351 = vst [vmem:[#allocation12_spill] sm:$0xff] %v3348_v10  ;;  %v648_v0 = vsel %vm196_vm1, %v3348_v10, -inf  ;;  %v1253_v25 = vsel %vm1252_vm11, 1, %v5200_v1  ;;  %v1452_v40 = vrot.slane %v3021_v2, %v3109_v16  ;;  %vm1674_vm12 = vcmp.gt.f32.partialorder %v3022_v38, 0.5  ;;  %v991_v54 = vpop.permute.xlu1 %990 }
 0x163   :  { %v1675_v42 = vsel %vm1674_vm12, 1, %v5200_v1  ;;  %v1832_v43 = vrot.slane %v3381_v41, %v3085_v4  ;;  %v1846_v55 = vrot.slane %v3381_v41, %v3088_v5  ;;  %v1839_v46 = vrot.slane %v3381_v41, %v3091_v6 }
 0x164   :  { %643 = vmax.xlane.f32.xlu1 %v642_v53  ;;  %v1860_v50 = vrot.slane %v3381_v41, %v3101_v12  ;;  %v1853_v51 = vrot.slane %v3381_v41, %v3094_v7  ;;  %vm225_vm12 = vcmp.ge.f32.partialorder %v3172_v60, %v3247_v61 }
 0x166   :  { %640 = vmax.xlane.f32.xlu0 %v639_v15  ;;  %v998_v35 = vpop.permute.xlu1 %997 }
 0x168   :  { %649 = vmax.xlane.f32.xlu1 %v648_v0 }
 0x16a   :  { %646 = vmax.xlane.f32.xlu0 %v645_v62  ;;  %v1005_v53 = vpop.permute.xlu1 %1004 }
 0x16e   :  { %v3394_v15 = vpop.permute.xlu1 %1011 }
 0x172   :  { %v1019_v0 = vpop.permute.xlu1 %1018 }
 0x176   :  { %v3396_v62 = vpop.permute.xlu1 %1025 }
 0x179   :  { %1039 = vbcast.lane.b32.xlu1 %v1037_v20, 256  ;;  %v834_v20 = vpop.permute.xlu0 %833 }
 0x17a   :  { %v3398_v30 = vpop.permute.xlu1 %1032  ;;  %vm835_vm13 = vcmp.eq.s32.totalorder %v834_v20, 1 }
 0x17d   :  { %1255 = vperm.xlu1 %3036, %v1253_v25  }
 0x180   :  { %1412 = vbcast.lane.b32.xlu0 %v1410_v26, 256 }
 0x181   :  { %1419 = vbcast.lane.b32.xlu1 %v1417_v28, 256 }
 0x184   :  { %1433 = vbcast.lane.b32.xlu0 %v1431_v31, 256 }
 0x185   :  { %1426 = vbcast.lane.b32.xlu1 %v1424_v32, 256 }
 0x188   :  { %1447 = vbcast.lane.b32.xlu0 %v1445_v33, 256 }
 0x189   :  { %1440 = vbcast.lane.b32.xlu1 %v1438_v36, 256 }
 0x18c   :  { %1461 = vbcast.lane.b32.xlu0 %v1459_v52, 256 }
 0x18d   :  { %1454 = vbcast.lane.b32.xlu1 %v1452_v40, 256 }
 0x190   :  { %1677 = vperm.xlu0 %3037, %v1675_v42  }
 0x191   :  { %1834 = vbcast.lane.b32.xlu1 %v1832_v43, 256 }
 0x194   :  { %1848 = vbcast.lane.b32.xlu0 %v1846_v55, 256 }
 0x195   :  { %1841 = vbcast.lane.b32.xlu1 %v1839_v46, 256 }
 0x198   :  { %1862 = vbcast.lane.b32.xlu0 %v1860_v50, 256 }
 0x199   :  { %1855 = vbcast.lane.b32.xlu1 %v1853_v51, 256 }
 0x1e9   :  { %v3400_v2 = vpop.xlane.xlu1 %628 }
 0x1ea   :  { %v847_v31 = vrot.slane %v3400_v2, %v3260_v9 }
 0x1eb   :  { %v3402_v25 = vpop.xlane.xlu0 %631 }
 0x1ec   :  { %5353 = vst [vmem:[#allocation14_spill] sm:$0xff] %v3402_v25  ;;  %v851_v26 = vrot.slane %v3402_v25, %v3260_v9 }
 0x1ed   :  { %v3406_v28 = vpop.xlane.xlu1 %637 }
 0x1ee   :  { %5354 = vst [vmem:[#allocation15_spill] sm:$0xff] %v3406_v28  ;;  %v876_v36 = vsel %vm393_vm3, %v851_v26, %v847_v31  ;;  %v859_v40 = vrot.slane %v3406_v28, %v3260_v9 }
 0x1ef   :  { %v3410_v32 = vpop.xlane.xlu0 %634 }
 0x1f0   :  { %5355 = vst [vmem:[#allocation16_spill] sm:$0xff] %v3410_v32  ;;  %v855_v33 = vrot.slane %v3410_v32, %v3260_v9 }
 0x1f1   :  { %v3415_v38 = vpop.xlane.xlu1 %643 }
 0x1f2   :  { %5356 = vst [vmem:[#allocation17_spill] sm:$0xff] %v3415_v38  ;;  %v877_v52 = vsel %vm395_vm4, %v855_v33, %v876_v36  ;;  %v867_v51 = vrot.slane %v3415_v38, %v3260_v9 }
 0x1f3   :  { %v3420_v42 = vpop.xlane.xlu0 %640  ;;  %v878_v55 = vsel %vm397_vm5, %v859_v40, %v877_v52 }
 0x1f4   :  { %5357 = vst [vmem:[#allocation18_spill] sm:$0xff] %v3420_v42  ;;  %v863_v43 = vrot.slane %v3420_v42, %v3260_v9 }
 0x1f5   :  { %v3426_v50 = vpop.xlane.xlu1 %649 }
 0x1f6   :  { %v879_v46 = vsel %vm399_vm6, %v863_v43, %v878_v55  ;;  %5358 = vst [vmem:[#allocation19_spill] sm:$0xff] %v3426_v50  ;;  %v875_v33 = vrot.slane %v3426_v50, %v3260_v9 }
 0x1f7   :  { %v3430_v26 = vpop.xlane.xlu0 %646  ;;  %v880_v36 = vsel %vm401_vm7, %v867_v51, %v879_v46 }
 0x1f8   :  { %5359 = vst [vmem:[#allocation20_spill] sm:$0xff] %v3430_v26  ;;  %v871_v31 = vrot.slane %v3430_v26, %v3260_v9 }
 0x1fa   :  { %v881_v1 = vsel %vm403_vm8, %v871_v31, %v880_v36 }
 0x1fb   :  { %v882_v52 = vsel %vm405_vm9, %v875_v33, %v881_v1 }
 0x1fc   :  { %v3440_v40 = vsel %vm835_vm13, %v882_v52, %v3294_v21  ;;  %vm226_vm13 = vcmp.ge.f32.partialorder %v3182_v14, %v3256_v8 }
 0x1fd   :  { %v888_v43 = vcombine.high %v3440_v40, %v3440_v40  ;;  %v895_v55 = vrot.slane %v3440_v40, %v3144_v34 }
 0x1ff   :  { %v902_v10 = vrot.slane %v888_v43, %v3144_v34  ;;  %v911_v50 = vrot.slane %v895_v55, %v3144_v34  ;;  %v903_v11 = vcombine.high %v895_v55, %v895_v55 }
 0x201   :  { %v904_v46 = vcombine.high %v902_v10, %v902_v10  ;;  %v940_v51 = vrot.slane %v911_v50, %v3085_v4  ;;  %v925_v20 = vrot.slane %v903_v11, %v3144_v34  ;;  %v933_v1 = vcombine.high %v911_v50, %v911_v50 }
 0x202   :  { %v918_v21 = vrot.slane %v902_v10, %v3144_v34 }
 0x203   :  { %v932_v31 = vrot.slane %v904_v46, %v3144_v34  ;;  %v977_v33 = vadd.f32 %v940_v51, %v3160_v47  ;;  %v944_v36 = vrot.slane %v925_v20, %v3085_v4  ;;  %v948_v52 = vrot.slane %v933_v1, %v3085_v4 }
 0x204   :  { %v956_v43 = vrot.slane %v918_v21, %v3085_v4  ;;  %v935_v3 = vcombine.high %v925_v20, %v925_v20  ;;  %v934_v55 = vcombine.high %v918_v21, %v918_v21 }
 0x205   :  { %v3456_v56 = vadd.f32 %v991_v54, %v977_v33  ;;  %v978_v26 = vadd.f32 %v944_v36, %v3160_v47  ;;  %v979_v11 = vadd.f32 %v948_v52, %v3160_v47  ;;  %v960_v54 = vrot.slane %v932_v31, %v3085_v4 }
 0x206   :  { %v981_v10 = vadd.f32 %v956_v43, %v3160_v47  ;;  %v952_v50 = vrot.slane %v935_v3, %v3085_v4  ;;  %v964_v46 = vrot.slane %v934_v55, %v3085_v4 }
 0x207   :  { %5360 = vst [vmem:[#allocation21_spill] sm:$0xff] %v3456_v56  ;;  %v1049_v51 = vsel %vm196_vm1, %v3456_v56, -inf  ;;  %v3465_v1 = vadd.f32 %v998_v35, %v978_v26  ;;  %v3467_v49 = vadd.f32 %v1005_v53, %v979_v11  ;;  %v982_v53 = vadd.f32 %v960_v54, %v3160_v47  ;;  %v3025_v11 = vld [vmem:[%s5194_s1 + $0x28] sm:$0xff] }
 0x208   :  { %1050 = vmax.xlane.f32.xlu0 %v1049_v51  ;;  %v980_v20 = vadd.f32 %v952_v50, %v3160_v47  ;;  %v3473_v33 = vadd.f32 %v1019_v0, %v981_v10  ;;  %v983_v3 = vadd.f32 %v964_v46, %v3160_v47  ;;  %vm2096_vm14 = vcmp.gt.f32.partialorder %v3025_v11, 0.5  ;;  %v3508_v50 = vld [vmem:[%s5193_s0 + $0x30] sm:$0xff] }
 0x209   :  { %5361 = vst [vmem:[#allocation22_spill] sm:$0xff] %v3465_v1  ;;  %5362 = vst [vmem:[#allocation23_spill] sm:$0xff] %v3467_v49  ;;  %v1052_v21 = vsel %vm196_vm1, %v3465_v1, -inf  ;;  %v1055_v36 = vsel %vm196_vm1, %v3467_v49, -inf  ;;  %v3490_v43 = vadd.f32 %v3396_v62, %v982_v53  ;;  %v1881_v62 = vrot.slane %v3381_v41, %v3112_v17  ;;  %v1040_v53 = vpop.permute.xlu1 %1039 }
 0x20a   :  { %5363 = vst [vmem:[#allocation24_spill] sm:$0xff] %v3473_v33  ;;  %1053 = vmax.xlane.f32.xlu1 %v1052_v21  ;;  %v3479_v35 = vadd.f32 %v3394_v15, %v980_v20  ;;  %v1061_v26 = vsel %vm196_vm1, %v3473_v33, -inf  ;;  %v3485_v52 = vadd.f32 %v3398_v30, %v983_v3  ;;  %v1867_v30 = vrot.slane %v3381_v41, %v3104_v13 }
 0x20b   :  { %5366 = vst [vmem:[#allocation27_spill] sm:$0xff] %v3490_v43  ;;  %v1064_v55 = vsel %vm196_vm1, %v3490_v43, -inf  ;;  %v1874_v10 = vrot.slane %v3381_v41, %v3109_v16  ;;  %v5367_v46 = vmov 0   ;;  %v2254_v54 = vrot.slane %v3508_v50, %v3085_v4 }
 0x20c   :  { %5364 = vst [vmem:[#allocation25_spill] sm:$0xff] %v3479_v35  ;;  %1056 = vmax.xlane.f32.xlu0 %v1055_v36  ;;  %5365 = vst [vmem:[#allocation26_spill] sm:$0xff] %v3485_v52  ;;  %v1058_v0 = vsel %vm196_vm1, %v3479_v35, -inf  ;;  %v1067_v15 = vsel %vm196_vm1, %v3485_v52, -inf  ;;  %v2097_v51 = vsel %vm2096_vm14, 1, %v5367_v46  ;;  %v2261_v20 = vrot.slane %v3508_v50, %v3091_v6 }
 0x20d   :  { %v2268_v41 = vrot.slane %v3508_v50, %v3088_v5  ;;  %v936_v21 = vcombine.high %v932_v31, %v932_v31  ;;  %v1256_v11 = vpop.permute.xlu1 %1255 }
 0x20e   :  { %1062 = vmax.xlane.f32.xlu1 %v1061_v26  ;;  %vm1257_vm15 = vcmp.eq.s32.totalorder %v1256_v11, 1 }
 0x20f   :  { %v968_v3 = vrot.slane %v936_v21, %v3085_v4 }
 0x210   :  { %1059 = vmax.xlane.f32.xlu0 %v1058_v0 }
 0x211   :  { %v984_v36 = vadd.f32 %v968_v3, %v3160_v47 }
 0x212   :  { %1068 = vmax.xlane.f32.xlu1 %v1067_v15  ;;  %v2275_v15 = vrot.slane %v3508_v50, %v3094_v7 }
 0x213   :  { %v3519_v26 = vadd.f32 %v1040_v53, %v984_v36 }
 0x214   :  { %1065 = vmax.xlane.f32.xlu0 %v1064_v55  ;;  %v1413_v55 = vpop.permute.xlu0 %1412 }
 0x215   :  { %5368 = vst [vmem:[#allocation28_spill] sm:$0xff] %v3519_v26  ;;  %v1070_v0 = vsel %vm196_vm1, %v3519_v26, -inf }
 0x223   :  { %1869 = vbcast.lane.b32.xlu1 %v1867_v30, 256  ;;  %v3525_v30 = vpop.permute.xlu0 %1433 }
 0x227   :  { %1883 = vbcast.lane.b32.xlu1 %v1881_v62, 256  ;;  %v3527_v31 = vpop.permute.xlu0 %1447  ;;  %v1420_v62 = vpop.permute.xlu1 %1419 }
 0x22a   :  { %1876 = vbcast.lane.b32.xlu0 %v1874_v10, 256 }
 0x22b   :  { %2099 = vperm.xlu1 %3036, %v2097_v51   ;;  %v3529_v10 = vpop.permute.xlu0 %1461  ;;  %v3531_v51 = vpop.permute.xlu1 %1426 }
 0x22e   :  { %2256 = vbcast.lane.b32.xlu0 %v2254_v54, 256 }
 0x22f   :  { %2263 = vbcast.lane.b32.xlu1 %v2261_v20, 256  ;;  %v3533_v54 = vpop.permute.xlu0 %1677  ;;  %v3535_v20 = vpop.permute.xlu1 %1440 }
 0x230   :  { %vm1679_vm0 = vcmp.eq.s32.totalorder %v3533_v54, 1 }
 0x233   :  { %2270 = vbcast.lane.b32.xlu1 %v2268_v41, 256  ;;  %v3537_v41 = vpop.permute.xlu0 %1848  ;;  %v3539_v21 = vpop.permute.xlu1 %1454 }
 0x237   :  { %v3541_v3 = vpop.permute.xlu0 %1862  ;;  %v3543_v36 = vpop.permute.xlu1 %1834 }
 0x24d   :  { %1071 = vmax.xlane.f32.xlu0 %v1070_v0  ;;  %v3547_v0 = vpop.permute.xlu1 %1841 }
 0x251   :  { %v3551_v26 = vpop.permute.xlu1 %1855 }
 0x263   :  { %2277 = vbcast.lane.b32.xlu0 %v2275_v15, 256 }
 0x295   :  { %v3545_v53 = vpop.xlane.xlu0 %1050 }
 0x296   :  { %5369 = vst [vmem:[#allocation29_spill] sm:$0xff] %v3545_v53  ;;  %v1269_v49 = vrot.slane %v3545_v53, %v3260_v9 }
 0x297   :  { %v3555_v43 = vpop.xlane.xlu1 %1053 }
 0x298   :  { %5372 = vst [vmem:[#allocation32_spill] sm:$0xff] %v3555_v43  ;;  %v1273_v35 = vrot.slane %v3555_v43, %v3260_v9 }
 0x299   :  { %v3549_v15 = vpop.xlane.xlu0 %1056 }
 0x29a   :  { %5370 = vst [vmem:[#allocation30_spill] sm:$0xff] %v3549_v15  ;;  %v1277_v1 = vrot.slane %v3549_v15, %v3260_v9  ;;  %v1298_v38 = vsel %vm393_vm3, %v1273_v35, %v1269_v49 }
 0x29b   :  { %v3568_v58 = vpop.xlane.xlu1 %1062 }
 0x29c   :  { %5374 = vst [vmem:[#allocation34_spill] sm:$0xff] %v3568_v58  ;;  %v1299_v44 = vsel %vm395_vm4, %v1277_v1, %v1298_v38  ;;  %v1285_v53 = vrot.slane %v3568_v58, %v3260_v9 }
 0x29d   :  { %v3553_v52 = vpop.xlane.xlu0 %1059 }
 0x29e   :  { %5371 = vst [vmem:[#allocation31_spill] sm:$0xff] %v3553_v52  ;;  %v1281_v42 = vrot.slane %v3553_v52, %v3260_v9 }
 0x29f   :  { %v3580_v45 = vpop.xlane.xlu1 %1068 }
 0x2a0   :  { %v1300_v28 = vsel %vm397_vm5, %v1281_v42, %v1299_v44  ;;  %5375 = vst [vmem:[#allocation35_spill] sm:$0xff] %v3580_v45  ;;  %v1293_v52 = vrot.slane %v3580_v45, %v3260_v9 }
 0x2a1   :  { %v3557_v33 = vpop.xlane.xlu0 %1065  ;;  %v1301_v49 = vsel %vm399_vm6, %v1285_v53, %v1300_v28 }
 0x2a2   :  { %5373 = vst [vmem:[#allocation33_spill] sm:$0xff] %v3557_v33  ;;  %v1289_v43 = vrot.slane %v3557_v33, %v3260_v9 }
 0x2a4   :  { %v1302_v35 = vsel %vm401_vm7, %v1289_v43, %v1301_v49 }
 0x2a5   :  { %v3565_v56 = vpop.permute.xlu0 %1876  ;;  %v1303_v42 = vsel %vm403_vm8, %v1293_v52, %v1302_v35 }
 0x2a9   :  { %v3578_v15 = vpop.permute.xlu0 %2256 }
 0x2da   :  { %v3586_v38 = vpop.xlane.xlu0 %1071 }
 0x2db   :  { %5376 = vst [vmem:[#allocation36_spill] sm:$0xff] %v3586_v38  ;;  %v1297_v44 = vrot.slane %v3586_v38, %v3260_v9 }
 0x2dd   :  { %v1304_v1 = vsel %vm405_vm9, %v1297_v44, %v1303_v42 }
 0x2de   :  { %v3593_v33 = vsel %vm1257_vm15, %v1304_v1, %v3440_v40  ;;  %vm227_vm15 = vcmp.ge.f32.partialorder %v3189_v23, %v3266_v18 }
 0x2df   :  { %v1310_v28 = vcombine.high %v3593_v33, %v3593_v33  ;;  %v1317_v43 = vrot.slane %v3593_v33, %v3144_v34 }
 0x2e1   :  { %v1333_v53 = vrot.slane %v1317_v43, %v3144_v34  ;;  %v1325_v49 = vcombine.high %v1317_v43, %v1317_v43  ;;  %v1324_v45 = vrot.slane %v1310_v28, %v3144_v34 }
 0x2e3   :  { %v1362_v38 = vrot.slane %v1333_v53, %v3085_v4  ;;  %v1347_v52 = vrot.slane %v1325_v49, %v3144_v34  ;;  %v1355_v11 = vcombine.high %v1333_v53, %v1333_v53  ;;  %v1326_v35 = vcombine.high %v1324_v45, %v1324_v45 }
 0x2e4   :  { %v1340_v40 = vrot.slane %v1324_v45, %v3144_v34 }
 0x2e5   :  { %v1399_v44 = vadd.f32 %v1362_v38, %v3160_v47  ;;  %v1366_v42 = vrot.slane %v1347_v52, %v3085_v4  ;;  %v1357_v1 = vcombine.high %v1347_v52, %v1347_v52  ;;  %v1370_v58 = vrot.slane %v1355_v11, %v3085_v4 }
 0x2e6   :  { %v1354_v32 = vrot.slane %v1326_v35, %v3144_v34  ;;  %v1378_v43 = vrot.slane %v1340_v40, %v3085_v4  ;;  %v1356_v28 = vcombine.high %v1340_v40, %v1340_v40 }
 0x2e7   :  { %v3609_v39 = vadd.f32 %v1413_v55, %v1399_v44  ;;  %v1400_v49 = vadd.f32 %v1366_v42, %v3160_v47  ;;  %v1374_v53 = vrot.slane %v1357_v1, %v3085_v4  ;;  %v1401_v45 = vadd.f32 %v1370_v58, %v3160_v47 }
 0x2e8   :  { %v1382_v38 = vrot.slane %v1354_v32, %v3085_v4  ;;  %v1358_v25 = vcombine.high %v1354_v32, %v1354_v32  ;;  %v1403_v40 = vadd.f32 %v1378_v43, %v3160_v47 }
 0x2e9   :  { %v1471_v52 = vsel %vm196_vm1, %v3609_v39, -inf  ;;  %v3617_v11 = vadd.f32 %v1420_v62, %v1400_v49  ;;  %v1402_v35 = vadd.f32 %v1374_v53, %v3160_v47  ;;  %v3629_v32 = vadd.f32 %v3531_v51, %v1401_v45 }
 0x2ea   :  { %1472 = vmax.xlane.f32.xlu1 %v1471_v52  ;;  %v1404_v55 = vadd.f32 %v1382_v38, %v3160_v47  ;;  %v1390_v44 = vrot.slane %v1358_v25, %v3085_v4  ;;  %v1386_v62 = vrot.slane %v1356_v28, %v3085_v4  ;;  %v2289_v52 = vrot.slane %v3508_v50, %v3104_v13 }
 0x2eb   :  { %5377 = vst [vmem:[#allocation37_spill] sm:$0xff] %v3617_v11  ;;  %v1474_v58 = vsel %vm196_vm1, %v3617_v11, -inf  ;;  %v3626_v42 = vadd.f32 %v3525_v30, %v1402_v35  ;;  %5379 = vst [vmem:[#allocation39_spill] sm:$0xff] %v3629_v32  ;;  %v1477_v43 = vsel %vm196_vm1, %v3629_v32, -inf  ;;  %v3641_v30 = vadd.f32 %v3535_v20, %v1403_v40  ;;  %v3662_v35 = vpop.permute.xlu1 %1869 }
 0x2ec   :  { %1475 = vmax.xlane.f32.xlu0 %v1474_v58  ;;  %v3635_v49 = vadd.f32 %v3527_v31, %v1404_v55  ;;  %v1406_v25 = vadd.f32 %v1390_v44, %v3160_v47  ;;  %v1405_v51 = vadd.f32 %v1386_v62, %v3160_v47  ;;  %v3672_v58 = vpop.permute.xlu0 %2277 }
 0x2ed   :  { %5378 = vst [vmem:[#allocation38_spill] sm:$0xff] %v3626_v42  ;;  %v1480_v1 = vsel %vm196_vm1, %v3626_v42, -inf  ;;  %5381 = vst [vmem:[#allocation41_spill] sm:$0xff] %v3641_v30  ;;  %v1483_v31 = vsel %vm196_vm1, %v3641_v30, -inf }
 0x2ee   :  { %5380 = vst [vmem:[#allocation40_spill] sm:$0xff] %v3635_v49  ;;  %1481 = vmax.xlane.f32.xlu1 %v1480_v1  ;;  %v1486_v28 = vsel %vm196_vm1, %v3635_v49, -inf  ;;  %v3647_v53 = vadd.f32 %v3529_v10, %v1406_v25  ;;  %v3652_v45 = vadd.f32 %v3539_v21, %v1405_v51  ;;  %v2282_v10 = vrot.slane %v3508_v50, %v3101_v12 }
 0x2ef   :  { %v3664_v21 = vpop.permute.xlu1 %1883 }
 0x2f0   :  { %1478 = vmax.xlane.f32.xlu0 %v1477_v43  ;;  %5382 = vst [vmem:[#allocation42_spill] sm:$0xff] %v3647_v53  ;;  %5383 = vst [vmem:[#allocation43_spill] sm:$0xff] %v3652_v45  ;;  %v1492_v20 = vsel %vm196_vm1, %v3647_v53, -inf  ;;  %v1489_v38 = vsel %vm196_vm1, %v3652_v45, -inf }
 0x2f2   :  { %1487 = vmax.xlane.f32.xlu1 %v1486_v28 }
 0x2f3   :  { %v3666_v55 = vpop.permute.xlu1 %2099 }
 0x2f4   :  { %1484 = vmax.xlane.f32.xlu0 %v1483_v31  ;;  %vm2101_vm11 = vcmp.eq.s32.totalorder %v3666_v55, 1 }
 0x2f6   :  { %1493 = vmax.xlane.f32.xlu1 %v1492_v20 }
 0x2f7   :  { %v3668_v40 = vpop.permute.xlu1 %2263 }
 0x2f8   :  { %1490 = vmax.xlane.f32.xlu0 %v1489_v38 }
 0x2fb   :  { %v3670_v44 = vpop.permute.xlu1 %2270 }
 0x307   :  { %2284 = vbcast.lane.b32.xlu1 %v2282_v10, 256 }
 0x30e   :  { %2291 = vbcast.lane.b32.xlu0 %v2289_v52, 256 }
 0x377   :  { %v3674_v62 = vpop.xlane.xlu1 %1472 }
 0x378   :  { %v1691_v51 = vrot.slane %v3674_v62, %v3260_v9 }
 0x379   :  { %v3676_v1 = vpop.xlane.xlu0 %1475 }
 0x37a   :  { %5384 = vst [vmem:[#allocation44_spill] sm:$0xff] %v3676_v1  ;;  %v1695_v25 = vrot.slane %v3676_v1, %v3260_v9 }
 0x37b   :  { %v3680_v43 = vpop.xlane.xlu1 %1481 }
 0x37c   :  { %5385 = vst [vmem:[#allocation45_spill] sm:$0xff] %v3680_v43  ;;  %v1720_v20 = vsel %vm393_vm3, %v1695_v25, %v1691_v51  ;;  %v1703_v52 = vrot.slane %v3680_v43, %v3260_v9 }
 0x37d   :  { %v3684_v28 = vpop.xlane.xlu0 %1478 }
 0x37e   :  { %v1699_v31 = vrot.slane %v3684_v28, %v3260_v9 }
 0x37f   :  { %v3689_v38 = vpop.xlane.xlu1 %1487 }
 0x380   :  { %5386 = vst [vmem:[#allocation46_spill] sm:$0xff] %v3689_v38  ;;  %v1721_v10 = vsel %vm395_vm4, %v1699_v31, %v1720_v20  ;;  %v1711_v25 = vrot.slane %v3689_v38, %v3260_v9 }
 0x381   :  { %v3694_v45 = vpop.xlane.xlu0 %1484  ;;  %v1722_v1 = vsel %vm397_vm5, %v1703_v52, %v1721_v10 }
 0x382   :  { %5387 = vst [vmem:[#allocation47_spill] sm:$0xff] %v3694_v45  ;;  %v1707_v11 = vrot.slane %v3694_v45, %v3260_v9 }
 0x383   :  { %v3700_v49 = vpop.xlane.xlu1 %1493 }
 0x384   :  { %v1723_v53 = vsel %vm399_vm6, %v1707_v11, %v1722_v1  ;;  %5388 = vst [vmem:[#allocation48_spill] sm:$0xff] %v3700_v49  ;;  %v1719_v20 = vrot.slane %v3700_v49, %v3260_v9 }
 0x385   :  { %v3704_v51 = vpop.xlane.xlu0 %1490  ;;  %v1724_v30 = vsel %vm401_vm7, %v1711_v25, %v1723_v53 }
 0x386   :  { %5389 = vst [vmem:[#allocation49_spill] sm:$0xff] %v3704_v51  ;;  %v1715_v31 = vrot.slane %v3704_v51, %v3260_v9 }
 0x388   :  { %v1725_v45 = vsel %vm403_vm8, %v1715_v31, %v1724_v30 }
 0x389   :  { %v1726_v11 = vsel %vm405_vm9, %v1719_v20, %v1725_v45 }
 0x38a   :  { %v3715_v1 = vsel %vm1679_vm0, %v1726_v11, %v3593_v33  ;;  %vm228_vm0 = vcmp.ge.f32.partialorder %v3191_v24, %v3270_v19 }
 0x38b   :  { %v1739_v10 = vrot.slane %v3715_v1, %v3144_v34  ;;  %v1732_v52 = vcombine.high %v3715_v1, %v3715_v1 }
 0x38d   :  { %v1755_v51 = vrot.slane %v1739_v10, %v3144_v34  ;;  %v1747_v49 = vcombine.high %v1739_v10, %v1739_v10  ;;  %v1746_v53 = vrot.slane %v1732_v52, %v3144_v34 }
 0x38f   :  { %v1784_v30 = vrot.slane %v1755_v51, %v3085_v4  ;;  %v1769_v54 = vrot.slane %v1747_v49, %v3144_v34  ;;  %v1777_v25 = vcombine.high %v1755_v51, %v1755_v51  ;;  %v1762_v45 = vrot.slane %v1746_v53, %v3144_v34 }
 0x390   :  { %v1748_v33 = vcombine.high %v1746_v53, %v1746_v53 }
 0x391   :  { %v1821_v31 = vadd.f32 %v1784_v30, %v3160_v47  ;;  %v1788_v20 = vrot.slane %v1769_v54, %v3085_v4  ;;  %v1792_v11 = vrot.slane %v1777_v25, %v3085_v4  ;;  %v1800_v38 = vrot.slane %v1762_v45, %v3085_v4 }
 0x392   :  { %v1779_v42 = vcombine.high %v1769_v54, %v1769_v54  ;;  %v1778_v10 = vcombine.high %v1762_v45, %v1762_v45  ;;  %v1776_v52 = vrot.slane %v1748_v33, %v3144_v34 }
 0x393   :  { %v3732_v43 = vadd.f32 %v3543_v36, %v1821_v31  ;;  %v1822_v49 = vadd.f32 %v1788_v20, %v3160_v47  ;;  %v1823_v51 = vadd.f32 %v1792_v11, %v3160_v47  ;;  %v1825_v53 = vadd.f32 %v1800_v38, %v3160_v47 }
 0x394   :  { %v1796_v30 = vrot.slane %v1779_v42, %v3085_v4  ;;  %v1808_v32 = vrot.slane %v1778_v10, %v3085_v4  ;;  %v1804_v36 = vrot.slane %v1776_v52, %v3085_v4 }
 0x395   :  { %v1893_v25 = vsel %vm196_vm1, %v3732_v43, -inf  ;;  %v3742_v54 = vadd.f32 %v3547_v0, %v1822_v49  ;;  %v3745_v45 = vadd.f32 %v3537_v41, %v1823_v51  ;;  %v3752_v42 = vadd.f32 %v3541_v3, %v1825_v53 }
 0x396   :  { %1894 = vmax.xlane.f32.xlu0 %v1893_v25  ;;  %v1824_v33 = vadd.f32 %v1796_v30, %v3160_v47  ;;  %v1827_v31 = vadd.f32 %v1808_v32, %v3160_v47  ;;  %v1826_v20 = vadd.f32 %v1804_v36, %v3160_v47  ;;  %v2303_v51 = vrot.slane %v3508_v50, %v3112_v17 }
 0x397   :  { %5390 = vst [vmem:[#allocation50_spill] sm:$0xff] %v3742_v54  ;;  %5391 = vst [vmem:[#allocation51_spill] sm:$0xff] %v3745_v45  ;;  %v1896_v38 = vsel %vm196_vm1, %v3742_v54, -inf  ;;  %v1899_v0 = vsel %vm196_vm1, %v3745_v45, -inf  ;;  %v1905_v11 = vsel %vm196_vm1, %v3752_v42, -inf  ;;  %v231_v25 = vsel %vm223_vm2, %v3252_v63, 8 }
 0x398   :  { %5392 = vst [vmem:[#allocation52_spill] sm:$0xff] %v3752_v42  ;;  %1897 = vmax.xlane.f32.xlu1 %v1896_v38  ;;  %v3758_v41 = vadd.f32 %v3551_v26, %v1824_v33  ;;  %v3764_v10 = vadd.f32 %v3565_v56, %v1827_v31  ;;  %v3769_v32 = vadd.f32 %v3662_v35, %v1826_v20  ;;  %v3782_v35 = vld [vmem:[%s5193_s0 + $0x38] sm:$0xff] }
 0x399   :  { %v2296_v56 = vrot.slane %v3508_v50, %v3109_v16  ;;  %v2676_v53 = vrot.slane %v3782_v35, %v3085_v4  ;;  %v2697_v30 = vrot.slane %v3782_v35, %v3094_v7  ;;  %v3792_v50 = vsel %vm196_vm1, %v231_v25, 2147483647 }
 0x39a   :  { %5393 = vst [vmem:[#allocation53_spill] sm:$0xff] %v3758_v41  ;;  %1900 = vmax.xlane.f32.xlu0 %v1899_v0  ;;  %v1902_v3 = vsel %vm196_vm1, %v3758_v41, -inf  ;;  %5394 = vst [vmem:[#allocation54_spill] sm:$0xff] %v3769_v32  ;;  %v1911_v26 = vsel %vm196_vm1, %v3764_v10, -inf  ;;  %v1908_v49 = vsel %vm196_vm1, %v3769_v32, -inf  ;;  %v1780_v36 = vcombine.high %v1776_v52, %v1776_v52 }
 0x39b   :  { %v241_v33 = vshra.s32 %v3792_v50, 16  ;;  %v2519_v52 = vsel %vm2518_vm10, 1, %v5367_v46  ;;  %v2683_v20 = vrot.slane %v3782_v35, %v3091_v6  ;;  %v240_v60 = vand.u32 65535, %v3792_v50 }
 0x39c   :  { %1906 = vmax.xlane.f32.xlu1 %v1905_v11  ;;  %v1812_v38 = vrot.slane %v1780_v36, %v3085_v4  ;;  %v2711_v11 = vrot.slane %v3782_v35, %v3104_v13  ;;  %v234_v50 = vsel %vm226_vm13, %v3252_v63, 8  ;;  %vm229_vm2 = vcmp.ge.f32.partialorder %v3198_v29, %v3279_v27 }
 0x39d   :  { %v3796_v31 = vcvt.s32.f32 %v241_v33  ;;  %v242_v8 = vcvt.s32.f32 %v240_v60  ;;  %vm230_vm10 = vcmp.ge.f32.partialorder %v3229_v48, %v3287_v37  ;;  %v5406_v60 = vld [vmem:[#allocation14_spill] sm:$0xff] }
 0x39e   :  { %1903 = vmax.xlane.f32.xlu0 %v1902_v3  ;;  %v1828_v7 = vadd.f32 %v1812_v38, %v3160_v47  ;;  %v2690_v47 = vrot.slane %v3782_v35, %v3088_v5  ;;  %v2718_v3 = vrot.slane %v3782_v35, %v3109_v16  ;;  %v238_v27 = vsel %vm230_vm10, %v3252_v63, 8 }
 0x39f   :  { %v3995_v48 = vsel %vm196_vm1, %v238_v27, 2147483647  ;;  %v5413_v27 = vld [vmem:[#allocation11_spill] sm:$0xff] }
 0x3a0   :  { %1912 = vmax.xlane.f32.xlu1 %v1911_v26  ;;  %v3801_v0 = vadd.f32 %v3664_v21, %v1828_v7  ;;  %v2704_v21 = vrot.slane %v3782_v35, %v3101_v12  ;;  %v3819_v26 = vpop.permute.xlu0 %2291 }
 0x3a2   :  { %1909 = vmax.xlane.f32.xlu0 %v1908_v49  ;;  %5395 = vst [vmem:[#allocation55_spill] sm:$0xff] %v3801_v0  ;;  %v1914_v57 = vsel %vm196_vm1, %v3801_v0, -inf }
 0x3b1   :  { %2298 = vbcast.lane.b32.xlu1 %v2296_v56, 256  ;;  %v2285_v56 = vpop.permute.xlu1 %2284 }
 0x3b8   :  { %2305 = vbcast.lane.b32.xlu0 %v2303_v51, 256 }
 0x3bc   :  { %2678 = vbcast.lane.b32.xlu0 %v2676_v53, 256 }
 0x3c0   :  { %2699 = vbcast.lane.b32.xlu0 %v2697_v30, 256 }
 0x3d5   :  { %244 = vmin.xlane.f32.xlu1 %v3796_v31 }
 0x3df   :  { %1915 = vmax.xlane.f32.xlu0 %v1914_v57 }
 0x3e6   :  { %2521 = vperm.xlu1 %3036, %v2519_v52  }
 0x3ea   :  { %2685 = vbcast.lane.b32.xlu1 %v2683_v20, 256 }
 0x3ee   :  { %2692 = vbcast.lane.b32.xlu1 %v2690_v47, 256 }
 0x3f2   :  { %2706 = vbcast.lane.b32.xlu1 %v2704_v21, 256 }
 0x3f5   :  { %2713 = vbcast.lane.b32.xlu0 %v2711_v11, 256 }
 0x3f6   :  { %2720 = vbcast.lane.b32.xlu1 %v2718_v3, 256 }
 0x423   :  { %v3821_v6 = vpop.xlane.xlu0 %1894 }
 0x424   :  { %v2113_v53 = vrot.slane %v3821_v6, %v3260_v9 }
 0x425   :  { %v3829_v12 = vpop.xlane.xlu1 %1897 }
 0x426   :  { %5399 = vst [vmem:[#allocation59_spill] sm:$0xff] %v3829_v12  ;;  %v2117_v16 = vrot.slane %v3829_v12, %v3260_v9 }
 0x427   :  { %v3823_v49 = vpop.xlane.xlu0 %1900 }
 0x428   :  { %5396 = vst [vmem:[#allocation56_spill] sm:$0xff] %v3823_v49  ;;  %v2121_v30 = vrot.slane %v3823_v49, %v3260_v9  ;;  %v2142_v36 = vsel %vm393_vm3, %v2117_v16, %v2113_v53 }
 0x429   :  { %v3842_v33 = vpop.xlane.xlu1 %1906 }
 0x42a   :  { %5400 = vst [vmem:[#allocation60_spill] sm:$0xff] %v3842_v33  ;;  %v2143_v7 = vsel %vm395_vm4, %v2121_v30, %v2142_v36  ;;  %v2129_v52 = vrot.slane %v3842_v33, %v3260_v9  ;;  %v5430_v33 = vld [vmem:[#allocation22_spill] sm:$0xff] }
 0x42b   :  { %v3825_v5 = vpop.xlane.xlu0 %1903 }
 0x42c   :  { %5397 = vst [vmem:[#allocation57_spill] sm:$0xff] %v3825_v5  ;;  %v2125_v38 = vrot.slane %v3825_v5, %v3260_v9  ;;  %v5434_v5 = vld [vmem:[#allocation23_spill] sm:$0xff] }
 0x42d   :  { %v3854_v47 = vpop.xlane.xlu1 %1912 }
 0x42e   :  { %v2144_v59 = vsel %vm397_vm5, %v2125_v38, %v2143_v7  ;;  %v2137_v3 = vrot.slane %v3854_v47, %v3260_v9 }
 0x42f   :  { %v3827_v51 = vpop.xlane.xlu0 %1909  ;;  %v2145_v21 = vsel %vm399_vm6, %v2129_v52, %v2144_v59 }
 0x430   :  { %5398 = vst [vmem:[#allocation58_spill] sm:$0xff] %v3827_v51  ;;  %v2133_v57 = vrot.slane %v3827_v51, %v3260_v9 }
 0x432   :  { %v2146_v11 = vsel %vm401_vm7, %v2133_v57, %v2145_v21 }
 0x433   :  { %v3831_v13 = vpop.permute.xlu0 %2305  ;;  %v2147_v30 = vsel %vm403_vm8, %v2137_v3, %v2146_v11 }
 0x437   :  { %v3839_v25 = vpop.permute.xlu0 %2678 }
 0x43b   :  { %v3852_v20 = vpop.permute.xlu0 %2699 }
 0x43c   :  { %5401 = vst [vmem:[#allocation61_spill] sm:$0xff] %v3852_v20 }
 0x46c   :  { %v3860_v16 = vpop.xlane.xlu0 %1915 }
 0x46d   :  { %5402 = vst [vmem:[#allocation62_spill] sm:$0xff] %v3860_v16  ;;  %v2141_v53 = vrot.slane %v3860_v16, %v3260_v9 }
 0x46f   :  { %v2148_v36 = vsel %vm405_vm9, %v2141_v53, %v2147_v30  ;;  %v3882_v30 = vld [vmem:[%s5196_s4] sm:$0xff] }
 0x470   :  { %v3868_v38 = vsel %vm2101_vm11, %v2148_v36, %v3715_v1  ;;  %vm651_vm11 = vcmp.ge.f32.partialorder %v3309_v22, %v3400_v2 }
 0x471   :  { %v2154_v7 = vcombine.high %v3868_v38, %v3868_v38  ;;  %v2161_v59 = vrot.slane %v3868_v38, %v3144_v34  ;;  %v659_v37 = vsel %vm651_vm11, %v3252_v63, 8 }
 0x472   :  { %v4005_v22 = vsel %vm196_vm1, %v659_v37, 2147483647 }
 0x473   :  { %v2177_v57 = vrot.slane %v2161_v59, %v3144_v34  ;;  %v2169_v52 = vcombine.high %v2161_v59, %v2161_v59  ;;  %v2168_v21 = vrot.slane %v2154_v7, %v3144_v34 }
 0x475   :  { %v2206_v11 = vrot.slane %v2177_v57, %v3085_v4  ;;  %v2199_v3 = vcombine.high %v2177_v57, %v2177_v57  ;;  %v2191_v55 = vrot.slane %v2169_v52, %v3144_v34  ;;  %v2184_v53 = vrot.slane %v2168_v21, %v3144_v34 }
 0x476   :  { %v2170_v1 = vcombine.high %v2168_v21, %v2168_v21 }
 0x477   :  { %v2243_v36 = vadd.f32 %v3882_v30, %v2206_v11  ;;  %v2214_v46 = vrot.slane %v2199_v3, %v3085_v4  ;;  %v2210_v59 = vrot.slane %v2191_v55, %v3085_v4  ;;  %v2222_v7 = vrot.slane %v2184_v53, %v3085_v4 }
 0x478   :  { %v2201_v0 = vcombine.high %v2191_v55, %v2191_v55  ;;  %v2200_v57 = vcombine.high %v2184_v53, %v2184_v53  ;;  %v2198_v52 = vrot.slane %v2170_v1, %v3144_v34 }
 0x479   :  { %v3890_v16 = vadd.f32 %v3578_v15, %v2243_v36  ;;  %v2245_v21 = vadd.f32 %v3882_v30, %v2214_v46  ;;  %v2244_v32 = vadd.f32 %v3882_v30, %v2210_v59  ;;  %v2247_v51 = vadd.f32 %v3882_v30, %v2222_v7  ;;  %v2299_v36 = vpop.permute.xlu1 %2298 }
 0x47a   :  { %v2218_v11 = vrot.slane %v2201_v0, %v3085_v4  ;;  %v2230_v3 = vrot.slane %v2200_v57, %v3085_v4  ;;  %v2226_v42 = vrot.slane %v2198_v52, %v3085_v4  ;;  %v2202_v46 = vcombine.high %v2198_v52, %v2198_v52 }
 0x47b   :  { %v2315_v55 = vsel %vm196_vm1, %v3890_v16, -inf  ;;  %v3901_v53 = vadd.f32 %v3670_v44, %v2245_v21  ;;  %v3904_v15 = vadd.f32 %v3668_v40, %v2244_v32  ;;  %v3909_v59 = vadd.f32 %v2285_v56, %v2247_v51 }
 0x47c   :  { %2316 = vmax.xlane.f32.xlu0 %v2315_v55  ;;  %v2246_v1 = vadd.f32 %v3882_v30, %v2218_v11  ;;  %v2249_v7 = vadd.f32 %v3882_v30, %v2230_v3  ;;  %v2248_v32 = vadd.f32 %v3882_v30, %v2226_v42  ;;  %v2234_v57 = vrot.slane %v2202_v46, %v3085_v4 }
 0x47d   :  { %5403 = vst [vmem:[#allocation63_spill] sm:$0xff] %v3904_v15  ;;  %v2321_v0 = vsel %vm196_vm1, %v3901_v53, -inf  ;;  %v2318_v40 = vsel %vm196_vm1, %v3904_v15, -inf  ;;  %v2327_v56 = vsel %vm196_vm1, %v3909_v59, -inf  ;;  %v233_v52 = vsel %vm225_vm12, %v3252_v63, 8  ;;  %v3929_v61 = vpop.xlane.xlu1 %244  ;;  %v5438_v15 = vld [vmem:[#allocation25_spill] sm:$0xff] }
 0x47e   :  { %2322 = vmax.xlane.f32.xlu1 %v2321_v0  ;;  %v3917_v44 = vadd.f32 %v3672_v58, %v2246_v1  ;;  %v3923_v51 = vadd.f32 %v2299_v36, %v2249_v7  ;;  %5405 = vst [vmem:[#allocation65_spill] sm:$0xff] %v3929_v61  ;;  %v3934_v42 = vadd.f32 %v3819_v26, %v2248_v32  ;;  %v3940_v3 = vsel %vm196_vm1, %v233_v52, 2147483647 }
 0x47f   :  { %v2250_v21 = vadd.f32 %v3882_v30, %v2234_v57  ;;  %vm246_vm14 = vcmp.eq.f32.partialorder %v3796_v31, %v3929_v61  ;;  %v271_v55 = vshra.s32 %v3940_v3, 16  ;;  %v3954_v1 = vsel %vm196_vm1, %v234_v50, 2147483647 }
 0x480   :  { %2319 = vmax.xlane.f32.xlu0 %v2318_v40  ;;  %5404 = vst [vmem:[#allocation64_spill] sm:$0xff] %v3923_v51  ;;  %v2324_v58 = vsel %vm196_vm1, %v3917_v44, -inf  ;;  %v2333_v11 = vsel %vm196_vm1, %v3923_v51, -inf  ;;  %v2330_v14 = vsel %vm196_vm1, %v3934_v42, -inf  ;;  %v247_v46 = vsel %vm246_vm14, %v242_v8, inf  ;;  %v5409_v8 = vld [vmem:[#allocation9_spill] sm:$0xff] }
 0x481   :  { %v3950_v26 = vadd.f32 %v3831_v13, %v2250_v21  ;;  %v235_v36 = vsel %vm227_vm15, %v3252_v63, 8  ;;  %v3961_v18 = vcvt.s32.f32 %v271_v55  ;;  %v286_v31 = vshra.s32 %v3954_v1, 16  ;;  %v5429_v51 = vld [vmem:[#allocation32_spill] sm:$0xff] }
 0x482   :  { %2328 = vmax.xlane.f32.xlu1 %v2327_v56  ;;  %v3965_v13 = vsel %vm196_vm1, %v235_v36, 2147483647  ;;  %v236_v0 = vsel %vm228_vm0, %v3252_v63, 8  ;;  %v237_v40 = vsel %vm229_vm2, %v3252_v63, 8  ;;  %v2725_v50 = vrot.slane %v3782_v35, %v3112_v17 }
 0x483   :  { %v2336_v23 = vsel %vm196_vm1, %v3950_v26, -inf  ;;  %v3971_v7 = vcvt.s32.f32 %v286_v31  ;;  %v301_v24 = vshra.s32 %v3965_v13, 16  ;;  %v3975_v19 = vsel %vm196_vm1, %v236_v0, 2147483647  ;;  %v5410_v31 = vld [vmem:[#allocation15_spill] sm:$0xff]  ;;  %v5411_v0 = vld [vmem:[#allocation8_spill] sm:$0xff] }
 0x484   :  { %2325 = vmax.xlane.f32.xlu0 %v2324_v58  ;;  %v316_v57 = vshra.s32 %v3975_v19, 16  ;;  %v3985_v29 = vsel %vm196_vm1, %v237_v40, 2147483647  ;;  %v5407_v58 = vld [vmem:[#allocation7_spill] sm:$0xff]  ;;  %vm654_vm14 = vcmp.ge.f32.partialorder %v5411_v0, %v5410_v31  ;;  %v5417_v31 = vld [vmem:[#allocation13_spill] sm:$0xff] }
 0x485   :  { %v3981_v32 = vcvt.s32.f32 %v301_v24  ;;  %v331_v52 = vshra.s32 %v3985_v29, 16  ;;  %vm652_vm12 = vcmp.ge.f32.partialorder %v5407_v58, %v5406_v60  ;;  %v662_v40 = vsel %vm654_vm14, %v3252_v63, 8 }
 0x486   :  { %2334 = vmax.xlane.f32.xlu1 %v2333_v11  ;;  %v3991_v56 = vcvt.s32.f32 %v316_v57  ;;  %v346_v11 = vshra.s32 %v3995_v48, 16  ;;  %v660_v2 = vsel %vm652_vm12, %v3252_v63, 8  ;;  %v5412_v57 = vld [vmem:[#allocation18_spill] sm:$0xff]  ;;  %v4037_v60 = vsel %vm196_vm1, %v662_v40, 2147483647 }
 0x487   :  { %v4001_v21 = vcvt.s32.f32 %v331_v52  ;;  %v4017_v36 = vsel %vm196_vm1, %v660_v2, 2147483647  ;;  %vm655_vm15 = vcmp.ge.f32.partialorder %v5413_v27, %v5412_v57  ;;  %v5415_v2 = vld [vmem:[#allocation10_spill] sm:$0xff]  ;;  %v5419_v57 = vld [vmem:[#allocation5_spill] sm:$0xff]  ;;  %v5420_v27 = vld [vmem:[#allocation3_spill] sm:$0xff] }
 0x488   :  { %2331 = vmax.xlane.f32.xlu0 %v2330_v14  ;;  %v5408_v14 = vld [vmem:[#allocation16_spill] sm:$0xff]  ;;  %v4013_v55 = vcvt.s32.f32 %v346_v11  ;;  %v684_v17 = vshra.s32 %v4017_v36, 16  ;;  %v663_v58 = vsel %vm655_vm15, %v3252_v63, 8  ;;  %v5414_v11 = vld [vmem:[#allocation17_spill] sm:$0xff]  ;;  %vm224_vm10 = vcmp.ge.f32.partialorder %v5420_v27, %v5419_v57 }
 0x489   :  { %vm653_vm13 = vcmp.ge.f32.partialorder %v5409_v8, %v5408_v14  ;;  %vm656_vm0 = vcmp.ge.f32.partialorder %v5415_v2, %v5414_v11  ;;  %v714_v14 = vshra.s32 %v4037_v60, 16  ;;  %v4047_v8 = vsel %vm196_vm1, %v663_v58, 2147483647  ;;  %v5421_v58 = vld [vmem:[#allocation19_spill] sm:$0xff]  ;;  %v5422_v11 = vld [vmem:[#allocation12_spill] sm:$0xff]  ;;  %v5425_v57 = vld [vmem:[#allocation29_spill] sm:$0xff] }
 0x48a   :  { %248 = vmin.xlane.f32.xlu1 %v247_v46  ;;  %v669_v46 = vshra.s32 %v4005_v22, 16  ;;  %v4033_v52 = vcvt.s32.f32 %v684_v17  ;;  %v729_v17 = vshra.s32 %v4047_v8, 16  ;;  %vm658_vm11 = vcmp.ge.f32.partialorder %v5422_v11, %v5421_v58  ;;  %v5426_v27 = vld [vmem:[#allocation21_spill] sm:$0xff] }
 0x48b   :  { %v4053_v0 = vcvt.s32.f32 %v714_v14  ;;  %vm1073_vm12 = vcmp.ge.f32.partialorder %v5426_v27, %v5425_v57 }
 0x48c   :  { %2337 = vmax.xlane.f32.xlu0 %v2336_v23  ;;  %v661_v23 = vsel %vm653_vm13, %v3252_v63, 8  ;;  %v4023_v24 = vcvt.s32.f32 %v669_v46  ;;  %v664_v46 = vsel %vm656_vm0, %v3252_v63, 8  ;;  %v4065_v2 = vcvt.s32.f32 %v729_v17 }
 0x48d   :  { %v4027_v35 = vsel %vm196_vm1, %v661_v23, 2147483647  ;;  %v5416_v23 = vld [vmem:[#allocation20_spill] sm:$0xff]  ;;  %v4057_v40 = vsel %vm196_vm1, %v664_v46, 2147483647  ;;  %v666_v46 = vsel %vm658_vm11, %v3252_v63, 8  ;;  %vm1074_vm13 = vcmp.ge.f32.partialorder %v5430_v33, %v5429_v51 }
 0x48e   :  { %274 = vmin.xlane.f32.xlu1 %v3961_v18  ;;  %v699_v37 = vshra.s32 %v4027_v35, 16  ;;  %vm657_vm2 = vcmp.ge.f32.partialorder %v5417_v31, %v5416_v23  ;;  %5418 = vst [vmem:[#allocation14_spill] sm:$0xff] %v4057_v40  ;;  %5423 = vst [vmem:[#allocation7_spill] sm:$0xff] %v4065_v2  ;;  %v744_v14 = vshra.s32 %v4057_v40, 16  ;;  %v232_v23 = vsel %vm224_vm10, %v3252_v63, 8 }
 0x48f   :  { %v4080_v17 = vsel %vm196_vm1, %v232_v23, 2147483647  ;;  %v4083_v11 = vsel %vm196_vm1, %v666_v46, 2147483647  ;;  %v1082_v23 = vsel %vm1074_vm13, %v3252_v63, 8  ;;  %v5433_v46 = vld [vmem:[#allocation30_spill] sm:$0xff]  ;;  %vm1495_vm11 = vcmp.ge.f32.partialorder %v3609_v39, %v3674_v62 }
 0x490   :  { %v4076_v61 = vcvt.s32.f32 %v744_v14  ;;  %5428 = vst [vmem:[#allocation15_spill] sm:$0xff] %v4083_v11  ;;  %v256_v41 = vshra.s32 %v4080_v17, 16  ;;  %v774_v14 = vshra.s32 %v4083_v11, 16  ;;  %vm1075_vm14 = vcmp.ge.f32.partialorder %v5434_v5, %v5433_v46 }
 0x491   :  { %v4107_v51 = vsel %vm196_vm1, %v1082_v23, 2147483647 }
 0x492   :  { %289 = vmin.xlane.f32.xlu1 %v3971_v7  ;;  %5427 = vst [vmem:[#allocation9_spill] sm:$0xff] %v4076_v61  ;;  %v4100_v45 = vcvt.s32.f32 %v256_v41  ;;  %v4102_v49 = vcvt.s32.f32 %v774_v14  ;;  %5436 = vst [vmem:[#allocation17_spill] sm:$0xff] %v4107_v51  ;;  %v1106_v41 = vshra.s32 %v4107_v51, 16  ;;  %v4137_v51 = vpop.permute.xlu0 %2713 }
 0x493   :  { %5446 = vst [vmem:[#allocation29_spill] sm:$0xff] %v4137_v51 }
 0x494   :  { %5435 = vst [vmem:[#allocation11_spill] sm:$0xff] %v4102_v49  ;;  %v4121_v23 = vcvt.s32.f32 %v1106_v41 }
 0x496   :  { %304 = vmin.xlane.f32.xlu1 %v3981_v32  ;;  %5441 = vst [vmem:[#allocation13_spill] sm:$0xff] %v4121_v23 }
 0x49a   :  { %319 = vmin.xlane.f32.xlu1 %v3991_v56 }
 0x49e   :  { %334 = vmin.xlane.f32.xlu1 %v4001_v21 }
 0x4a2   :  { %349 = vmin.xlane.f32.xlu1 %v4013_v55  ;;  %2727 = vbcast.lane.b32.xlu0 %v2725_v50, 256  ;;  %v4043_v50 = vcvt.s32.f32 %v699_v37  ;;  %v665_v37 = vsel %vm657_vm2, %v3252_v63, 8 }
 0x4a3   :  { %v4070_v31 = vsel %vm196_vm1, %v665_v37, 2147483647  ;;  %v1081_v37 = vsel %vm1073_vm12, %v3252_v63, 8  ;;  %vm1917_vm12 = vcmp.ge.f32.partialorder %v3732_v43, %v3821_v6 }
 0x4a4   :  { %5424 = vst [vmem:[#allocation16_spill] sm:$0xff] %v4070_v31  ;;  %v759_v58 = vshra.s32 %v4070_v31, 16  ;;  %v4094_v27 = vsel %vm196_vm1, %v1081_v37, 2147483647  ;;  %v5437_v37 = vld [vmem:[#allocation31_spill] sm:$0xff] }
 0x4a5   :  { %5432 = vst [vmem:[#allocation18_spill] sm:$0xff] %v4094_v27  ;;  %v1091_v33 = vshra.s32 %v4094_v27, 16  ;;  %vm1076_vm15 = vcmp.ge.f32.partialorder %v5438_v15, %v5437_v37  ;;  %v2522_v37 = vpop.permute.xlu1 %2521 }
 0x4a6   :  { %672 = vmin.xlane.f32.xlu1 %v4023_v24  ;;  %v4090_v57 = vcvt.s32.f32 %v759_v58  ;;  %v1083_v58 = vsel %vm1075_vm14, %v3252_v63, 8  ;;  %v1084_v14 = vsel %vm1076_vm15, %v3252_v63, 8  ;;  %vm2523_vm0 = vcmp.eq.s32.totalorder %v2522_v37, 1 }
 0x4a7   :  { %v4113_v54 = vcvt.s32.f32 %v1091_v33  ;;  %v4117_v5 = vsel %vm196_vm1, %v1083_v58, 2147483647  ;;  %v4125_v12 = vsel %vm196_vm1, %v1084_v14, 2147483647 }
 0x4a8   :  { %5431 = vst [vmem:[#allocation8_spill] sm:$0xff] %v4090_v57  ;;  %5440 = vst [vmem:[#allocation20_spill] sm:$0xff] %v4117_v5  ;;  %v1121_v46 = vshra.s32 %v4117_v5, 16  ;;  %v1136_v33 = vshra.s32 %v4125_v12, 16 }
 0x4a9   :  { %5439 = vst [vmem:[#allocation10_spill] sm:$0xff] %v4113_v54  ;;  %5442 = vst [vmem:[#allocation5_spill] sm:$0xff] %v4125_v12  ;;  %v4135_v41 = vpop.permute.xlu1 %2685 }
 0x4aa   :  { %687 = vmin.xlane.f32.xlu1 %v4033_v52  ;;  %v4128_v15 = vcvt.s32.f32 %v1121_v46  ;;  %v4132_v58 = vcvt.s32.f32 %v1136_v33  ;;  %5445 = vst [vmem:[#allocation12_spill] sm:$0xff] %v4135_v41 }
 0x4ac   :  { %5443 = vst [vmem:[#allocation3_spill] sm:$0xff] %v4128_v15  ;;  %5444 = vst [vmem:[#allocation19_spill] sm:$0xff] %v4132_v58 }
 0x4ad   :  { %v2693_v20 = vpop.permute.xlu1 %2692 }
 0x4ae   :  { %702 = vmin.xlane.f32.xlu1 %v4043_v50 }
 0x4b1   :  { %v2707_v5 = vpop.permute.xlu1 %2706 }
 0x4b2   :  { %717 = vmin.xlane.f32.xlu1 %v4053_v0 }
 0x4b5   :  { %v2721_v14 = vpop.permute.xlu1 %2720 }
 0x4b6   :  { %732 = vmin.xlane.f32.xlu1 %v4065_v2 }
 0x4ba   :  { %747 = vmin.xlane.f32.xlu1 %v4076_v61 }
 0x4be   :  { %762 = vmin.xlane.f32.xlu1 %v4090_v57 }
 0x4c1   :  { %259 = vmin.xlane.f32.xlu0 %v4100_v45 }
 0x4c2   :  { %777 = vmin.xlane.f32.xlu1 %v4102_v49 }
 0x4c6   :  { %1094 = vmin.xlane.f32.xlu1 %v4113_v54 }
 0x4ca   :  { %1109 = vmin.xlane.f32.xlu1 %v4121_v23 }
 0x4ce   :  { %1124 = vmin.xlane.f32.xlu1 %v4128_v15 }
 0x4d2   :  { %1139 = vmin.xlane.f32.xlu1 %v4132_v58 }
 0x509   :  { %v4139_v54 = vpop.xlane.xlu0 %2316 }
 0x50a   :  { %v2535_v33 = vrot.slane %v4139_v54, %v3260_v9  ;;  %vm2339_vm13 = vcmp.ge.f32.partialorder %v3890_v16, %v4139_v54 }
 0x50b   :  { %v4141_v46 = vpop.xlane.xlu1 %2322 }
 0x50c   :  { %v2543_v51 = vrot.slane %v4141_v46, %v3260_v9  ;;  %vm2341_vm15 = vcmp.ge.f32.partialorder %v3901_v53, %v4141_v46 }
 0x50d   :  { %v4143_v23 = vpop.xlane.xlu0 %2319 }
 0x50e   :  { %5447 = vst [vmem:[#allocation21_spill] sm:$0xff] %v4143_v23  ;;  %v2539_v58 = vrot.slane %v4143_v23, %v3260_v9 }
 0x50f   :  { %v4150_v41 = vpop.xlane.xlu1 %2328 }
 0x510   :  { %v2564_v12 = vsel %vm393_vm3, %v2539_v58, %v2535_v33  ;;  %v2551_v57 = vrot.slane %v4150_v41, %v3260_v9 }
 0x511   :  { %v4154_v15 = vpop.xlane.xlu0 %2325  ;;  %v2565_v49 = vsel %vm395_vm4, %v2543_v51, %v2564_v12 }
 0x512   :  { %v2547_v27 = vrot.slane %v4154_v15, %v3260_v9 }
 0x513   :  { %v4164_v58 = vpop.xlane.xlu1 %2334 }
 0x514   :  { %v2566_v11 = vsel %vm397_vm5, %v2547_v27, %v2565_v49  ;;  %5448 = vst [vmem:[#allocation32_spill] sm:$0xff] %v4164_v58  ;;  %v2559_v40 = vrot.slane %v4164_v58, %v3260_v9 }
 0x515   :  { %v4162_v23 = vpop.xlane.xlu0 %2331  ;;  %v2567_v31 = vsel %vm399_vm6, %v2551_v57, %v2566_v11 }
 0x516   :  { %v2555_v33 = vrot.slane %v4162_v23, %v3260_v9 }
 0x518   :  { %v2568_v61 = vsel %vm401_vm7, %v2555_v33, %v2567_v31 }
 0x519   :  { %v4172_v12 = vpop.xlane.xlu0 %2337  ;;  %v2569_v27 = vsel %vm403_vm8, %v2559_v40, %v2568_v61 }
 0x51a   :  { %v2563_v49 = vrot.slane %v4172_v12, %v3260_v9  ;;  %v4202_v9 = vpop.xlane.xlu1 %248 }
 0x51c   :  { %v2570_v51 = vsel %vm405_vm9, %v2563_v49, %v2569_v27 }
 0x51d   :  { %v4179_v2 = vsel %vm2523_vm0, %v2570_v51, %v3868_v38 }
 0x51e   :  { %5449 = vst [vmem:[#allocation22_spill] sm:$0xff] %v4179_v2  ;;  %v2576_v11 = vcombine.high %v4179_v2, %v4179_v2  ;;  %v4185_v31 = vrot.slane %v4179_v2, %v3144_v34 }
 0x520   :  { %v4188_v57 = vrot.slane %v2576_v11, %v3144_v34  ;;  %v2599_v33 = vrot.slane %v4185_v31, %v3144_v34 }
 0x522   :  { %5450 = vst [vmem:[#allocation30_spill] sm:$0xff] %v4188_v57  ;;  %v2628_v61 = vrot.slane %v2599_v33, %v3085_v4  ;;  %v2621_v40 = vcombine.high %v2599_v33, %v2599_v33  ;;  %v2606_v38 = vrot.slane %v4188_v57, %v3144_v34  ;;  %v5453_v34 = vld [vmem:[#allocation24_spill] sm:$0xff] }
 0x524   :  { %v2665_v37 = vadd.f32 %v3882_v30, %v2628_v61  ;;  %v2636_v49 = vrot.slane %v2621_v40, %v3085_v4  ;;  %v2644_v27 = vrot.slane %v2606_v38, %v3085_v4  ;;  %v2622_v51 = vcombine.high %v2606_v38, %v2606_v38  ;;  %v5452_v40 = vld [vmem:[#allocation34_spill] sm:$0xff] }
 0x525   :  { %vm1077_vm2 = vcmp.ge.f32.partialorder %v5453_v34, %v5452_v40 }
 0x526   :  { %v4199_v2 = vadd.f32 %v3839_v25, %v2665_v37  ;;  %v2667_v11 = vadd.f32 %v3882_v30, %v2636_v49  ;;  %v2669_v57 = vadd.f32 %v3882_v30, %v2644_v27  ;;  %v2652_v61 = vrot.slane %v2622_v51, %v3085_v4  ;;  %v4220_v27 = vpop.xlane.xlu1 %274 }
 0x527   :  { %v1085_v49 = vsel %vm1077_vm2, %v3252_v63, 8  ;;  %vm2342_vm2 = vcmp.ge.f32.partialorder %v3917_v44, %v4154_v15 }
 0x528   :  { %v2737_v33 = vsel %vm196_vm1, %v4199_v2, -inf  ;;  %v4206_v58 = vadd.f32 %v2693_v20, %v2667_v11  ;;  %v4214_v38 = vadd.f32 %v2707_v5, %v2669_v57  ;;  %v2671_v37 = vadd.f32 %v3882_v30, %v2652_v61  ;;  %v5455_v20 = vld [vmem:[#allocation33_spill] sm:$0xff]  ;;  %v5456_v11 = vld [vmem:[#allocation27_spill] sm:$0xff] }
 0x529   :  { %2738 = vmax.xlane.f32.xlu1 %v2737_v33  ;;  %vm1078_vm10 = vcmp.ge.f32.partialorder %v5456_v11, %v5455_v20  ;;  %v4227_v34 = vsel %vm196_vm1, %v1085_v49, 2147483647  ;;  %v1925_v49 = vsel %vm1917_vm12, %v3252_v63, 8  ;;  %vm276_vm12 = vcmp.eq.f32.partialorder %v3961_v18, %v4220_v27  ;;  %v5470_v18 = vld [vmem:[#allocation40_spill] sm:$0xff] }
 0x52a   :  { %5451 = vst [vmem:[#allocation23_spill] sm:$0xff] %v4206_v58  ;;  %v2743_v25 = vsel %vm196_vm1, %v4206_v58, -inf  ;;  %5454 = vst [vmem:[#allocation31_spill] sm:$0xff] %v4214_v38  ;;  %v2749_v51 = vsel %vm196_vm1, %v4214_v38, -inf  ;;  %v4224_v33 = vadd.f32 %v2721_v14, %v2671_v37  ;;  %v1086_v5 = vsel %vm1078_vm10, %v3252_v63, 8  ;;  %v4233_v61 = vpop.xlane.xlu1 %289 }
 0x52b   :  { %v1151_v57 = vshra.s32 %v4227_v34, 16  ;;  %v1503_v14 = vsel %vm1495_vm11, %v3252_v63, 8  ;;  %v4259_v6 = vsel %vm196_vm1, %v1925_v49, 2147483647 }
 0x52c   :  { %v2755_v40 = vsel %vm196_vm1, %v4224_v33, -inf  ;;  %v4247_v62 = vsel %vm196_vm1, %v1503_v14, 2147483647  ;;  %5457 = vst [vmem:[#allocation25_spill] sm:$0xff] %v4259_v6  ;;  %v1935_v54 = vshra.s32 %v4259_v6, 16 }
 0x52d   :  { %2744 = vmax.xlane.f32.xlu1 %v2743_v25  ;;  %v4238_v25 = vsel %vm196_vm1, %v1086_v5, 2147483647  ;;  %v4243_v37 = vcvt.s32.f32 %v1151_v57  ;;  %v1513_v43 = vshra.s32 %v4247_v62, 16  ;;  %v5458_v5 = vld [vmem:[#allocation39_spill] sm:$0xff] }
 0x52e   :  { %v1166_v39 = vshra.s32 %v4238_v25, 16  ;;  %v4253_v20 = vpop.xlane.xlu1 %304  ;;  %vm1497_vm14 = vcmp.ge.f32.partialorder %v5458_v5, %v3684_v28  ;;  %v5463_v5 = vld [vmem:[#allocation38_spill] sm:$0xff] }
 0x52f   :  { %v4265_v57 = vcvt.s32.f32 %v1513_v43  ;;  %v1505_v14 = vsel %vm1497_vm14, %v3252_v63, 8  ;;  %v2349_v43 = vsel %vm2341_vm15, %v3252_v63, 8  ;;  %vm291_vm14 = vcmp.eq.f32.partialorder %v3971_v7, %v4233_v61 }
 0x530   :  { %v4255_v11 = vcvt.s32.f32 %v1166_v39  ;;  %v4277_v39 = vcvt.s32.f32 %v1935_v54  ;;  %v4281_v49 = vsel %vm196_vm1, %v1505_v14, 2147483647  ;;  %v4293_v46 = vsel %vm196_vm1, %v2349_v43, 2147483647  ;;  %v4299_v14 = vpop.permute.xlu0 %2727 }
 0x531   :  { %2750 = vmax.xlane.f32.xlu1 %v2749_v51  ;;  %v2347_v51 = vsel %vm2339_vm13, %v3252_v63, 8  ;;  %5461 = vst [vmem:[#allocation33_spill] sm:$0xff] %v4281_v49  ;;  %v1543_v53 = vshra.s32 %v4281_v49, 16  ;;  %5465 = vst [vmem:[#allocation39_spill] sm:$0xff] %v4293_v46  ;;  %v2350_v49 = vsel %vm2342_vm2, %v3252_v63, 8  ;;  %vm2343_vm13 = vcmp.ge.f32.partialorder %v3909_v59, %v4150_v41  ;;  %v5469_v59 = vld [vmem:[#allocation46_spill] sm:$0xff] }
 0x532   :  { %v4268_v16 = vpop.xlane.xlu1 %319  ;;  %5460 = vst [vmem:[#allocation24_spill] sm:$0xff] %v4277_v39  ;;  %v4323_v6 = vsel %vm196_vm1, %v2350_v49, 2147483647  ;;  %vm1500_vm15 = vcmp.ge.f32.partialorder %v5470_v18, %v5469_v59  ;;  %v300_v41 = vand.u32 65535, %v3965_v13  ;;  %vm2344_vm2 = vcmp.ge.f32.partialorder %v3934_v42, %v4162_v23  ;;  %v5472_v42 = vld [vmem:[#allocation35_spill] sm:$0xff] }
 0x533   :  { %v2402_v49 = vshra.s32 %v4323_v6, 16  ;;  %v315_v7 = vand.u32 65535, %v3975_v19  ;;  %v2352_v18 = vsel %vm2344_vm2, %v3252_v63, 8  ;;  %vm2346_vm2 = vcmp.ge.f32.partialorder %v3950_v26, %v4172_v12 }
 0x534   :  { %v302_v13 = vcvt.s32.f32 %v300_v41 }
 0x535   :  { %2756 = vmax.xlane.f32.xlu1 %v2755_v40  ;;  %v4271_v40 = vsel %vm196_vm1, %v2347_v51, 2147483647  ;;  %v5462_v51 = vld [vmem:[#allocation45_spill] sm:$0xff]  ;;  %v317_v23 = vcvt.s32.f32 %v315_v7 }
 0x536   :  { %5459 = vst [vmem:[#allocation34_spill] sm:$0xff] %v4271_v40  ;;  %v2357_v28 = vshra.s32 %v4271_v40, 16  ;;  %vm1498_vm0 = vcmp.ge.f32.partialorder %v5463_v5, %v5462_v51  ;;  %v4287_v38 = vpop.xlane.xlu1 %334  ;;  %v255_v51 = vand.u32 65535, %v4080_v17  ;;  %v4302_v5 = vcvt.s32.f32 %v1543_v53 }
 0x537   :  { %v1506_v54 = vsel %vm1498_vm0, %v3252_v63, 8  ;;  %v270_v17 = vand.u32 65535, %v3940_v3  ;;  %vm306_vm0 = vcmp.eq.f32.partialorder %v3981_v32, %v4253_v20  ;;  %v5473_v32 = vld [vmem:[#allocation26_spill] sm:$0xff] }
 0x538   :  { %v4289_v58 = vcvt.s32.f32 %v2357_v28  ;;  %5466 = vst [vmem:[#allocation45_spill] sm:$0xff] %v4302_v5  ;;  %v2387_v28 = vshra.s32 %v4293_v46, 16  ;;  %v4308_v43 = vsel %vm196_vm1, %v1506_v54, 2147483647  ;;  %v257_v15 = vcvt.s32.f32 %v255_v51 }
 0x539   :  { %1154 = vmin.xlane.f32.xlu1 %v4243_v37  ;;  %v1558_v54 = vshra.s32 %v4308_v43, 16 }
 0x53a   :  { %5464 = vst [vmem:[#allocation27_spill] sm:$0xff] %v4289_v58  ;;  %v4305_v40 = vpop.xlane.xlu1 %349  ;;  %v4317_v53 = vcvt.s32.f32 %v2387_v28 }
 0x53d   :  { %1169 = vmin.xlane.f32.xlu1 %v4255_v11 }
 0x53e   :  { %v4331_v3 = vpop.xlane.xlu1 %672 }
 0x541   :  { %1516 = vmin.xlane.f32.xlu1 %v4265_v57 }
 0x545   :  { %1938 = vmin.xlane.f32.xlu1 %v4277_v39  ;;  %v5468_v39 = vld [vmem:[#allocation41_spill] sm:$0xff] }
 0x549   :  { %2360 = vmin.xlane.f32.xlu1 %v4289_v58  ;;  %v5467_v58 = vld [vmem:[#allocation47_spill] sm:$0xff] }
 0x54a   :  { %vm1499_vm10 = vcmp.ge.f32.partialorder %v5468_v39, %v5467_v58  ;;  %v285_v58 = vand.u32 65535, %v3954_v1  ;;  %v4334_v39 = vcvt.s32.f32 %v1558_v54 }
 0x54c   :  { %v287_v1 = vcvt.s32.f32 %v285_v58 }
 0x54d   :  { %1546 = vmin.xlane.f32.xlu1 %v4302_v5  ;;  %v1507_v5 = vsel %vm1499_vm10, %v3252_v63, 8  ;;  %vm321_vm10 = vcmp.eq.f32.partialorder %v3991_v56, %v4268_v16  ;;  %v345_v56 = vand.u32 65535, %v3995_v48 }
 0x54e   :  { %v4314_v44 = vpop.xlane.xlu0 %259  ;;  %v4338_v28 = vsel %vm196_vm1, %v1507_v5, 2147483647  ;;  %v4350_v5 = vpop.xlane.xlu1 %687  ;;  %v292_v54 = vsel %vm291_vm14, %v287_v1, inf  ;;  %v330_v1 = vand.u32 65535, %v3985_v29  ;;  %vm351_vm14 = vcmp.eq.f32.partialorder %v4013_v55, %v4305_v40 }
 0x54f   :  { %vm261_vm11 = vcmp.eq.f32.partialorder %v4100_v45, %v4314_v44  ;;  %v272_v45 = vcvt.s32.f32 %v270_v17  ;;  %v1573_v17 = vshra.s32 %v4338_v28, 16  ;;  %v347_v48 = vcvt.s32.f32 %v345_v56 }
 0x550   :  { %v262_v46 = vsel %vm261_vm11, %v257_v15, inf  ;;  %v4347_v15 = vcvt.s32.f32 %v2402_v49  ;;  %vm1079_vm11 = vcmp.ge.f32.partialorder %v5473_v32, %v5472_v42  ;;  %v332_v29 = vcvt.s32.f32 %v330_v1 }
 0x551   :  { %2390 = vmin.xlane.f32.xlu1 %v4317_v53  ;;  %263 = vmin.xlane.f32.xlu0 %v262_v46  ;;  %v277_v51 = vsel %vm276_vm12, %v272_v45, inf  ;;  %v2351_v46 = vsel %vm2343_vm13, %v3252_v63, 8  ;;  %v4362_v58 = vcvt.s32.f32 %v1573_v17  ;;  %vm336_vm12 = vcmp.eq.f32.partialorder %v4001_v21, %v4287_v38 }
 0x552   :  { %v4353_v45 = vsel %vm196_vm1, %v2351_v46, 2147483647  ;;  %v307_v46 = vsel %vm306_vm0, %v302_v13, inf  ;;  %v4374_v19 = vpop.xlane.xlu1 %702  ;;  %v1087_v13 = vsel %vm1079_vm11, %v3252_v63, 8  ;;  %vm1923_vm13 = vcmp.ge.f32.partialorder %v3764_v10, %v3854_v47  ;;  %v5476_v10 = vld [vmem:[#allocation48_spill] sm:$0xff]  ;;  %v5477_v47 = vld [vmem:[#allocation42_spill] sm:$0xff] }
 0x553   :  { %v2417_v49 = vshra.s32 %v4353_v45, 16  ;;  %v4396_v42 = vsel %vm196_vm1, %v1087_v13, 2147483647  ;;  %v1931_v32 = vsel %vm1923_vm13, %v3252_v63, 8  ;;  %v668_v21 = vand.u32 65535, %v4005_v22 }
 0x554   :  { %v1181_v1 = vshra.s32 %v4396_v42, 16  ;;  %vm674_vm0 = vcmp.eq.f32.partialorder %v4023_v24, %v4331_v3  ;;  %v698_v24 = vand.u32 65535, %v4027_v35  ;;  %vm704_vm11 = vcmp.eq.f32.partialorder %v4043_v50, %v4374_v19 }
 0x555   :  { %1561 = vmin.xlane.f32.xlu1 %v4334_v39  ;;  %278 = vmin.xlane.f32.xlu0 %v277_v51  ;;  %v1508_v51 = vsel %vm1500_vm15, %v3252_v63, 8  ;;  %v4377_v41 = vcvt.s32.f32 %v2417_v49  ;;  %vm1502_vm15 = vcmp.ge.f32.partialorder %v5477_v47, %v5476_v10  ;;  %v670_v55 = vcvt.s32.f32 %v668_v21 }
 0x556   :  { %v4366_v59 = vsel %vm196_vm1, %v1508_v51, 2147483647  ;;  %v4381_v51 = vsel %vm196_vm1, %v2352_v18, 2147483647  ;;  %v337_v18 = vsel %vm336_vm12, %v332_v29, inf  ;;  %v1510_v13 = vsel %vm1502_vm15, %v3252_v63, 8 }
 0x557   :  { %5471 = vst [vmem:[#allocation38_spill] sm:$0xff] %v4366_v59  ;;  %v1588_v17 = vshra.s32 %v4366_v59, 16  ;;  %5474 = vst [vmem:[#allocation47_spill] sm:$0xff] %v4381_v51  ;;  %v2432_v49 = vshra.s32 %v4381_v51, 16  ;;  %v683_v29 = vand.u32 65535, %v4017_v36  ;;  %v4420_v56 = vcvt.s32.f32 %v1181_v1 }
 0x558   :  { %v2354_v10 = vsel %vm2346_vm2, %v3252_v63, 8  ;;  %v713_v1 = vand.u32 65535, %v4037_v60  ;;  %v5485_v60 = vld [vmem:[#allocation7_spill] sm:$0xff] }
 0x559   :  { %2405 = vmin.xlane.f32.xlu1 %v4347_v15  ;;  %293 = vmin.xlane.f32.xlu0 %v292_v54  ;;  %v322_v54 = vsel %vm321_vm10, %v317_v23, inf  ;;  %v4390_v7 = vcvt.s32.f32 %v1588_v17  ;;  %v4405_v23 = vcvt.s32.f32 %v2432_v49  ;;  %v352_v17 = vsel %vm351_vm14, %v347_v48, inf }
 0x55a   :  { %vm689_vm10 = vcmp.eq.f32.partialorder %v4033_v52, %v4350_v5  ;;  %v685_v26 = vcvt.s32.f32 %v683_v29  ;;  %v4437_v21 = vsel %vm196_vm1, %v2354_v10, 2147483647  ;;  %v700_v52 = vcvt.s32.f32 %v698_v24 }
 0x55b   :  { %5475 = vst [vmem:[#allocation41_spill] sm:$0xff] %v4390_v7  ;;  %5478 = vst [vmem:[#allocation46_spill] sm:$0xff] %v4405_v23  ;;  %v715_v29 = vcvt.s32.f32 %v713_v1 }
 0x55c   :  { %v690_v48 = vsel %vm689_vm10, %v685_v26, inf  ;;  %5482 = vst [vmem:[#allocation48_spill] sm:$0xff] %v4437_v21  ;;  %v5486_v26 = vld [vmem:[#allocation14_spill] sm:$0xff] }
 0x55d   :  { %1576 = vmin.xlane.f32.xlu1 %v4362_v58  ;;  %308 = vmin.xlane.f32.xlu0 %v307_v46  ;;  %v4393_v46 = vpop.xlane.xlu1 %717  ;;  %v743_v24 = vand.u32 65535, %v5486_v26 }
 0x55e   :  { %vm719_vm12 = vcmp.eq.f32.partialorder %v4053_v0, %v4393_v46 }
 0x561   :  { %2420 = vmin.xlane.f32.xlu1 %v4377_v41  ;;  %323 = vmin.xlane.f32.xlu0 %v322_v54  ;;  %v4409_v54 = vsel %vm196_vm1, %v1931_v32, 2147483647  ;;  %v4417_v22 = vpop.xlane.xlu1 %732  ;;  %v4424_v32 = vsel %vm196_vm1, %v1510_v13, 2147483647  ;;  %v705_v13 = vsel %vm704_vm11, %v700_v52, inf  ;;  %v5488_v52 = vld [vmem:[#allocation16_spill] sm:$0xff] }
 0x562   :  { %5479 = vst [vmem:[#allocation40_spill] sm:$0xff] %v4409_v54  ;;  %v2025_v49 = vshra.s32 %v4409_v54, 16  ;;  %5480 = vst [vmem:[#allocation35_spill] sm:$0xff] %v4424_v32  ;;  %v1618_v12 = vshra.s32 %v4424_v32, 16  ;;  %vm734_vm13 = vcmp.eq.f32.partialorder %v5485_v60, %v4417_v22  ;;  %v758_v1 = vand.u32 65535, %v5488_v52 }
 0x564   :  { %v4431_v36 = vcvt.s32.f32 %v2025_v49  ;;  %v4443_v35 = vcvt.s32.f32 %v1618_v12  ;;  %v728_v49 = vand.u32 65535, %v4047_v8  ;;  %v745_v8 = vcvt.s32.f32 %v743_v24 }
 0x565   :  { %1591 = vmin.xlane.f32.xlu1 %v4390_v7  ;;  %338 = vmin.xlane.f32.xlu0 %v337_v18  ;;  %v675_v18 = vsel %vm674_vm0, %v670_v55, inf  ;;  %v4434_v47 = vpop.xlane.xlu1 %747 }
 0x566   :  { %5481 = vst [vmem:[#allocation26_spill] sm:$0xff] %v4431_v36  ;;  %5483 = vst [vmem:[#allocation42_spill] sm:$0xff] %v4443_v35  ;;  %v730_v10 = vcvt.s32.f32 %v728_v49  ;;  %v760_v49 = vcvt.s32.f32 %v758_v1  ;;  %v5494_v1 = vld [vmem:[#allocation10_spill] sm:$0xff] }
 0x568   :  { %v735_v0 = vsel %vm734_vm13, %v730_v10, inf  ;;  %v2591_v10 = vcombine.high %v4185_v31, %v4185_v31  ;;  %v5496_v31 = vld [vmem:[#allocation30_spill] sm:$0xff] }
 0x569   :  { %2435 = vmin.xlane.f32.xlu1 %v4405_v23  ;;  %353 = vmin.xlane.f32.xlu0 %v352_v17  ;;  %v2462_v17 = vshra.s32 %v4437_v21, 16  ;;  %v4449_v55 = vpop.xlane.xlu1 %762  ;;  %v5499_v21 = vld [vmem:[#allocation20_spill] sm:$0xff]  ;;  %v326_v23 = vcvt.f32.s32 %v4268_v16 }
 0x56b   :  { %v4452_v50 = vcvt.s32.f32 %v2462_v17  ;;  %v327_v7 = vshll.u32 %v326_v23, 16 }
 0x56d   :  { %1184 = vmin.xlane.f32.xlu1 %v4420_v56  ;;  %676 = vmin.xlane.f32.xlu0 %v675_v18  ;;  %5484 = vst [vmem:[#allocation66_spill] sm:$0xff] %v4452_v50  ;;  %v720_v18 = vsel %vm719_vm12, %v715_v29, inf  ;;  %v4458_v12 = vpop.xlane.xlu1 %777 }
 0x571   :  { %2028 = vmin.xlane.f32.xlu1 %v4431_v36  ;;  %691 = vmin.xlane.f32.xlu0 %v690_v48  ;;  %v5487_v48 = vld [vmem:[#allocation9_spill] sm:$0xff]  ;;  %v4465_v29 = vpop.xlane.xlu1 %1094 }
 0x572   :  { %vm749_vm14 = vcmp.eq.f32.partialorder %v5487_v48, %v4434_v47  ;;  %v5491_v48 = vld [vmem:[#allocation11_spill] sm:$0xff]  ;;  %vm1096_vm2 = vcmp.eq.f32.partialorder %v5494_v1, %v4465_v29  ;;  %v1120_v1 = vand.u32 65535, %v5499_v21 }
 0x573   :  { %v750_v17 = vsel %vm749_vm14, %v745_v8, inf  ;;  %vm779_vm0 = vcmp.eq.f32.partialorder %v5491_v48, %v4458_v12 }
 0x575   :  { %1621 = vmin.xlane.f32.xlu1 %v4443_v35  ;;  %706 = vmin.xlane.f32.xlu0 %v705_v13  ;;  %v5489_v13 = vld [vmem:[#allocation8_spill] sm:$0xff]  ;;  %v4473_v52 = vpop.xlane.xlu1 %1109 }
 0x576   :  { %vm764_vm15 = vcmp.eq.f32.partialorder %v5489_v13, %v4449_v55 }
 0x577   :  { %v765_v26 = vsel %vm764_vm15, %v760_v49, inf }
 0x579   :  { %2465 = vmin.xlane.f32.xlu1 %v4452_v50  ;;  %721 = vmin.xlane.f32.xlu0 %v720_v18  ;;  %v5490_v18 = vld [vmem:[#allocation15_spill] sm:$0xff]  ;;  %v2592_v50 = vcombine.high %v5496_v31, %v5496_v31 }
 0x57a   :  { %v773_v60 = vand.u32 65535, %v5490_v18  ;;  %v5495_v18 = vld [vmem:[#allocation17_spill] sm:$0xff] }
 0x57b   :  { %v1105_v54 = vand.u32 65535, %v5495_v18 }
 0x57c   :  { %v775_v24 = vcvt.s32.f32 %v773_v60 }
 0x57d   :  { %736 = vmin.xlane.f32.xlu0 %v735_v0  ;;  %v5492_v0 = vld [vmem:[#allocation18_spill] sm:$0xff] }
 0x57e   :  { %v1090_v8 = vand.u32 65535, %v5492_v0  ;;  %v780_v13 = vsel %vm779_vm0, %v775_v24, inf  ;;  %v5497_v0 = vld [vmem:[#allocation13_spill] sm:$0xff]  ;;  %v4484_v24 = vpop.xlane.xlu1 %1124 }
 0x57f   :  { %vm1111_vm10 = vcmp.eq.f32.partialorder %v5497_v0, %v4473_v52  ;;  %5498 = vst [vmem:[#allocation7_spill] sm:$0xff] %v4484_v24 }
 0x580   :  { %v1092_v49 = vcvt.s32.f32 %v1090_v8 }
 0x581   :  { %751 = vmin.xlane.f32.xlu0 %v750_v17  ;;  %v5493_v17 = vld [vmem:[#allocation2_spill] sm:$0xff] }
 0x582   :  { %v2613_v36 = vrot.slane %v2591_v10, %v5493_v17  ;;  %v1097_v48 = vsel %vm1096_vm2, %v1092_v49, inf  ;;  %v1107_v10 = vcvt.s32.f32 %v1105_v54  ;;  %v2620_v8 = vrot.slane %v2592_v50, %v5493_v17  ;;  %v5500_v49 = vld [vmem:[#allocation3_spill] sm:$0xff] }
 0x583   :  { %vm1126_vm11 = vcmp.eq.f32.partialorder %v5500_v49, %v4484_v24  ;;  %v5509_v49 = vld [vmem:[#allocation5_spill] sm:$0xff] }
 0x584   :  { %v2632_v60 = vrot.slane %v2613_v36, %v3085_v4  ;;  %v2624_v35 = vcombine.high %v2620_v8, %v2620_v8  ;;  %v2648_v21 = vrot.slane %v2620_v8, %v3085_v4  ;;  %v4515_v8 = vpop.xlane.xlu1 %1139 }
 0x585   :  { %766 = vmin.xlane.f32.xlu0 %v765_v26  ;;  %v2623_v26 = vcombine.high %v2613_v36, %v2613_v36  ;;  %v1122_v36 = vcvt.s32.f32 %v1120_v1  ;;  %5508 = vst [vmem:[#allocation15_spill] sm:$0xff] %v4515_v8 }
 0x586   :  { %v2666_v18 = vadd.f32 %v3882_v30, %v2632_v60  ;;  %v2656_v50 = vrot.slane %v2624_v35, %v3085_v4  ;;  %v5503_v60 = vld [vmem:[#allocation61_spill] sm:$0xff] }
 0x587   :  { %v2640_v31 = vrot.slane %v2623_v26, %v3085_v4  ;;  %v1127_v0 = vsel %vm1126_vm11, %v1122_v36, inf  ;;  %v1135_v36 = vand.u32 65535, %v5509_v49 }
 0x588   :  { %v2672_v1 = vadd.f32 %v3882_v30, %v2656_v50 }
 0x589   :  { %781 = vmin.xlane.f32.xlu0 %v780_v13  ;;  %v1112_v13 = vsel %vm1111_vm10, %v1107_v10, inf  ;;  %v2668_v54 = vadd.f32 %v3882_v30, %v2640_v31  ;;  %v2670_v10 = vadd.f32 %v3882_v30, %v2648_v21 }
 0x58a   :  { %v4511_v4 = vadd.f32 %v4299_v14, %v2672_v1 }
 0x58b   :  { %v4501_v26 = vadd.f32 %v5503_v60, %v2668_v54 }
 0x58c   :  { %5507 = vst [vmem:[#allocation8_spill] sm:$0xff] %v4511_v4  ;;  %v2758_v30 = vsel %vm196_vm1, %v4511_v4, -inf  ;;  %v5552_v4 = vld [vmem:[#allocation28_spill] sm:$0xff] }
 0x58d   :  { %1098 = vmin.xlane.f32.xlu0 %v1097_v48  ;;  %v5501_v48 = vld [vmem:[#allocation12_spill] sm:$0xff]  ;;  %5504 = vst [vmem:[#allocation9_spill] sm:$0xff] %v4501_v26 }
 0x58e   :  { %v4493_v32 = vadd.f32 %v5501_v48, %v2666_v18  ;;  %v5505_v18 = vld [vmem:[#allocation29_spill] sm:$0xff]  ;;  %v1137_v48 = vcvt.s32.f32 %v1135_v36 }
 0x58f   :  { %v4508_v31 = vadd.f32 %v5505_v18, %v2670_v10  ;;  %v5517_v18 = vld [vmem:[#allocation37_spill] sm:$0xff] }
 0x590   :  { %5502 = vst [vmem:[#allocation14_spill] sm:$0xff] %v4493_v32  ;;  %v2740_v17 = vsel %vm196_vm1, %v4493_v32, -inf  ;;  %v281_v32 = vcvt.f32.s32 %v4220_v27  ;;  %v250_v27 = vcvt.f32.s32 %v4202_v9 }
 0x591   :  { %1113 = vmin.xlane.f32.xlu0 %v1112_v13  ;;  %v2746_v13 = vsel %vm196_vm1, %v4501_v26, -inf  ;;  %5506 = vst [vmem:[#allocation16_spill] sm:$0xff] %v4508_v31  ;;  %v2752_v35 = vsel %vm196_vm1, %v4508_v31, -inf  ;;  %v266_v26 = vcvt.f32.s32 %v4314_v44 }
 0x595   :  { %1128 = vmin.xlane.f32.xlu0 %v1127_v0  ;;  %v5510_v0 = vld [vmem:[#allocation19_spill] sm:$0xff] }
 0x596   :  { %vm1141_vm12 = vcmp.eq.f32.partialorder %v5510_v0, %v4515_v8  ;;  %v5520_v0 = vld [vmem:[#allocation59_spill] sm:$0xff] }
 0x597   :  { %v1142_v54 = vsel %vm1141_vm12, %v1137_v48, inf  ;;  %v5521_v48 = vld [vmem:[#allocation50_spill] sm:$0xff] }
 0x598   :  { %vm1918_vm0 = vcmp.ge.f32.partialorder %v5521_v48, %v5520_v0  ;;  %v5525_v0 = vld [vmem:[#allocation21_spill] sm:$0xff]  ;;  %v5526_v48 = vld [vmem:[#allocation63_spill] sm:$0xff] }
 0x599   :  { %2741 = vmax.xlane.f32.xlu0 %v2740_v17  ;;  %vm2340_vm10 = vcmp.ge.f32.partialorder %v5526_v48, %v5525_v0 }
 0x59d   :  { %2747 = vmax.xlane.f32.xlu0 %v2746_v13  ;;  %v5516_v13 = vld [vmem:[#allocation44_spill] sm:$0xff] }
 0x59e   :  { %vm1496_vm14 = vcmp.ge.f32.partialorder %v5517_v18, %v5516_v13 }
 0x59f   :  { %v1504_v36 = vsel %vm1496_vm14, %v3252_v63, 8 }
 0x5a0   :  { %v4561_v18 = vsel %vm196_vm1, %v1504_v36, 2147483647 }
 0x5a1   :  { %2753 = vmax.xlane.f32.xlu0 %v2752_v35  ;;  %5524 = vst [vmem:[#allocation12_spill] sm:$0xff] %v4561_v18 }
 0x5a5   :  { %2759 = vmax.xlane.f32.xlu0 %v2758_v30 }
 0x5a9   :  { %1143 = vmin.xlane.f32.xlu0 %v1142_v54 }
 0x5b6   :  { %v4522_v14 = vpop.xlane.xlu1 %2738 }
 0x5b7   :  { %5511 = vst [vmem:[#allocation11_spill] sm:$0xff] %v4522_v14  ;;  %vm2761_vm13 = vcmp.ge.f32.partialorder %v4199_v2, %v4522_v14  ;;  %v1150_v2 = vand.u32 65535, %v4227_v34  ;;  %v1165_v34 = vand.u32 65535, %v4238_v25 }
 0x5b8   :  { %v2769_v21 = vsel %vm2761_vm13, %v3252_v63, 8 }
 0x5b9   :  { %v4528_v50 = vsel %vm196_vm1, %v2769_v21, 2147483647  ;;  %v1152_v21 = vcvt.s32.f32 %v1150_v2  ;;  %v1167_v25 = vcvt.s32.f32 %v1165_v34 }
 0x5ba   :  { %5512 = vst [vmem:[#allocation18_spill] sm:$0xff] %v4528_v50  ;;  %v4530_v17 = vpop.xlane.xlu1 %2744  ;;  %v2779_v60 = vshra.s32 %v4528_v50, 16 }
 0x5bb   :  { %5513 = vst [vmem:[#allocation2_spill] sm:$0xff] %v4530_v17  ;;  %v267_v17 = vshll.u32 %v266_v26, 16 }
 0x5bc   :  { %v4533_v10 = vcvt.s32.f32 %v2779_v60 }
 0x5be   :  { %5514 = vst [vmem:[#allocation10_spill] sm:$0xff] %v4533_v10  ;;  %v4535_v1 = vpop.xlane.xlu1 %2750  ;;  %2782 = vmin.xlane.f32.xlu1 %v4533_v10 }
 0x5bf   :  { %5515 = vst [vmem:[#allocation17_spill] sm:$0xff] %v4535_v1 }
 0x5c2   :  { %v4540_v35 = vpop.xlane.xlu1 %2756 }
 0x5c3   :  { %5518 = vst [vmem:[#allocation30_spill] sm:$0xff] %v4540_v35  ;;  %vm2767_vm15 = vcmp.ge.f32.partialorder %v4224_v33, %v4540_v35 }
 0x5c4   :  { %v2775_v49 = vsel %vm2767_vm15, %v3252_v63, 8 }
 0x5c5   :  { %v4548_v30 = vsel %vm196_vm1, %v2775_v49, 2147483647  ;;  %v1926_v49 = vsel %vm1918_vm0, %v3252_v63, 8 }
 0x5c6   :  { %5519 = vst [vmem:[#allocation13_spill] sm:$0xff] %v4548_v30  ;;  %v4552_v54 = vpop.xlane.xlu1 %1154  ;;  %v2869_v60 = vshra.s32 %v4548_v30, 16  ;;  %v4573_v36 = vsel %vm196_vm1, %v1926_v49, 2147483647  ;;  %v5530_v30 = vld [vmem:[#allocation51_spill] sm:$0xff]  ;;  %v5533_v49 = vld [vmem:[#allocation57_spill] sm:$0xff] }
 0x5c7   :  { %5522 = vst [vmem:[#allocation20_spill] sm:$0xff] %v4552_v54  ;;  %vm1156_vm2 = vcmp.eq.f32.partialorder %v4243_v37, %v4552_v54  ;;  %v1528_v37 = vshra.s32 %v4561_v18, 16  ;;  %5528 = vst [vmem:[#allocation29_spill] sm:$0xff] %v4573_v36  ;;  %v1950_v34 = vshra.s32 %v4573_v36, 16  ;;  %v5538_v36 = vld [vmem:[#allocation52_spill] sm:$0xff] }
 0x5c8   :  { %v1157_v33 = vsel %vm1156_vm2, %v1152_v21, inf  ;;  %v4558_v13 = vcvt.s32.f32 %v2869_v60  ;;  %v2348_v60 = vsel %vm2340_vm10, %v3252_v63, 8  ;;  %v5551_v54 = vld [vmem:[#allocation36_spill] sm:$0xff] }
 0x5c9   :  { %1158 = vmin.xlane.f32.xlu0 %v1157_v33  ;;  %v5529_v33 = vld [vmem:[#allocation56_spill] sm:$0xff]  ;;  %v4580_v48 = vcvt.s32.f32 %v1528_v37  ;;  %v4592_v10 = vcvt.s32.f32 %v1950_v34  ;;  %vm1080_vm10 = vcmp.ge.f32.partialorder %v5552_v4, %v5551_v54  ;;  %v5556_v4 = vld [vmem:[#allocation65_spill] sm:$0xff] }
 0x5ca   :  { %5523 = vst [vmem:[#allocation3_spill] sm:$0xff] %v4558_v13  ;;  %v4566_v2 = vpop.xlane.xlu1 %1169  ;;  %2872 = vmin.xlane.f32.xlu1 %v4558_v13  ;;  %vm1919_vm12 = vcmp.ge.f32.partialorder %v5530_v30, %v5529_v33  ;;  %v5534_v13 = vld [vmem:[#allocation53_spill] sm:$0xff]  ;;  %v251_v54 = vcvt.f32.s32 %v5556_v4 }
 0x5cb   :  { %5527 = vst [vmem:[#allocation61_spill] sm:$0xff] %v4566_v2  ;;  %vm1171_vm11 = vcmp.eq.f32.partialorder %v4255_v11, %v4566_v2  ;;  %5531 = vst [vmem:[#allocation5_spill] sm:$0xff] %v4580_v48  ;;  %v4584_v11 = vsel %vm196_vm1, %v2348_v60, 2147483647  ;;  %vm1920_vm13 = vcmp.ge.f32.partialorder %v5534_v13, %v5533_v49  ;;  %v5537_v60 = vld [vmem:[#allocation60_spill] sm:$0xff] }
 0x5cc   :  { %v1172_v21 = vsel %vm1171_vm11, %v1167_v25, inf  ;;  %5532 = vst [vmem:[#allocation19_spill] sm:$0xff] %v4584_v11  ;;  %v1927_v25 = vsel %vm1919_vm12, %v3252_v63, 8  ;;  %5535 = vst [vmem:[#allocation44_spill] sm:$0xff] %v4592_v10  ;;  %v2372_v30 = vshra.s32 %v4584_v11, 16  ;;  %v1928_v33 = vsel %vm1920_vm13, %v3252_v63, 8 }
 0x5cd   :  { %1173 = vmin.xlane.f32.xlu0 %v1172_v21  ;;  %v4596_v37 = vsel %vm196_vm1, %v1927_v25, 2147483647  ;;  %vm1921_vm14 = vcmp.ge.f32.partialorder %v5538_v36, %v5537_v60  ;;  %v4608_v34 = vsel %vm196_vm1, %v1928_v33, 2147483647  ;;  %v5541_v25 = vld [vmem:[#allocation58_spill] sm:$0xff]  ;;  %v5545_v60 = vld [vmem:[#allocation49_spill] sm:$0xff] }
 0x5ce   :  { %v4578_v0 = vpop.xlane.xlu1 %1516  ;;  %5536 = vst [vmem:[#allocation37_spill] sm:$0xff] %v4596_v37  ;;  %v1965_v13 = vshra.s32 %v4596_v37, 16  ;;  %5540 = vst [vmem:[#allocation50_spill] sm:$0xff] %v4608_v34  ;;  %v1929_v49 = vsel %vm1921_vm14, %v3252_v63, 8  ;;  %v5542_v11 = vld [vmem:[#allocation54_spill] sm:$0xff]  ;;  %v1980_v36 = vshra.s32 %v4608_v34, 16 }
 0x5cf   :  { %vm1922_vm15 = vcmp.ge.f32.partialorder %v5542_v11, %v5541_v25  ;;  %v5546_v37 = vld [vmem:[#allocation43_spill] sm:$0xff]  ;;  %v252_v44 = vshll.u32 %v251_v54, 16  ;;  %vm1518_vm13 = vcmp.eq.f32.partialorder %v4265_v57, %v4578_v0  ;;  %v5565_v57 = vld [vmem:[#allocation34_spill] sm:$0xff] }
 0x5d0   :  { %v4616_v18 = vcvt.s32.f32 %v1965_v13  ;;  %vm1501_vm0 = vcmp.ge.f32.partialorder %v5546_v37, %v5545_v60  ;;  %v1930_v33 = vsel %vm1922_vm15, %v3252_v63, 8  ;;  %v4628_v11 = vcvt.s32.f32 %v1980_v36  ;;  %v5550_v37 = vld [vmem:[#allocation64_spill] sm:$0xff] }
 0x5d1   :  { %1531 = vmin.xlane.f32.xlu0 %v4580_v48  ;;  %v4604_v48 = vcvt.s32.f32 %v2372_v30  ;;  %v4620_v30 = vsel %vm196_vm1, %v1929_v49, 2147483647  ;;  %v1509_v25 = vsel %vm1501_vm0, %v3252_v63, 8  ;;  %v4633_v34 = vsel %vm196_vm1, %v1930_v33, 2147483647  ;;  %v5549_v49 = vld [vmem:[#allocation32_spill] sm:$0xff] }
 0x5d2   :  { %v4590_v21 = vpop.xlane.xlu1 %1938  ;;  %5543 = vst [vmem:[#allocation21_spill] sm:$0xff] %v4616_v18  ;;  %5544 = vst [vmem:[#allocation63_spill] sm:$0xff] %v4620_v30  ;;  %v1995_v13 = vshra.s32 %v4620_v30, 16  ;;  %vm2345_vm2 = vcmp.ge.f32.partialorder %v5550_v37, %v5549_v49  ;;  %v2010_v30 = vshra.s32 %v4633_v34, 16  ;;  %v4646_v8 = vsel %vm196_vm1, %v1509_v25, 2147483647 }
 0x5d3   :  { %5539 = vst [vmem:[#allocation59_spill] sm:$0xff] %v4604_v48  ;;  %5547 = vst [vmem:[#allocation56_spill] sm:$0xff] %v4628_v11  ;;  %v2353_v33 = vsel %vm2345_vm2, %v3252_v63, 8  ;;  %v1603_v35 = vshra.s32 %v4646_v8, 16 }
 0x5d4   :  { %5548 = vst [vmem:[#allocation51_spill] sm:$0xff] %v4633_v34  ;;  %v4642_v36 = vcvt.s32.f32 %v1995_v13  ;;  %5554 = vst [vmem:[#allocation53_spill] sm:$0xff] %v4646_v8  ;;  %v4654_v31 = vcvt.s32.f32 %v2010_v30  ;;  %v5557_v13 = vld [vmem:[#allocation62_spill] sm:$0xff]  ;;  %v5558_v34 = vld [vmem:[#allocation55_spill] sm:$0xff]  ;;  %v4660_v25 = vsel %vm196_vm1, %v2353_v33, 2147483647 }
 0x5d5   :  { %1953 = vmin.xlane.f32.xlu0 %v4592_v10  ;;  %vm1924_vm11 = vcmp.ge.f32.partialorder %v5558_v34, %v5557_v13  ;;  %5559 = vst [vmem:[#allocation52_spill] sm:$0xff] %v4660_v25  ;;  %v4670_v1 = vcvt.s32.f32 %v1603_v35  ;;  %v296_v34 = vcvt.f32.s32 %v4233_v61  ;;  %v2447_v13 = vshra.s32 %v4660_v25, 16 }
 0x5d6   :  { %v4602_v50 = vpop.xlane.xlu1 %2360  ;;  %5553 = vst [vmem:[#allocation57_spill] sm:$0xff] %v4642_v36  ;;  %5555 = vst [vmem:[#allocation60_spill] sm:$0xff] %v4654_v31  ;;  %v1932_v4 = vsel %vm1924_vm11, %v3252_v63, 8  ;;  %v341_v61 = vcvt.f32.s32 %v4287_v38 }
 0x5d7   :  { %5561 = vst [vmem:[#allocation54_spill] sm:$0xff] %v4670_v1  ;;  %v4686_v9 = vcvt.s32.f32 %v2447_v13 }
 0x5d8   :  { %v342_v38 = vshll.u32 %v341_v61, 16 }
 0x5d9   :  { %2375 = vmin.xlane.f32.xlu0 %v4604_v48 }
 0x5da   :  { %v4614_v10 = vpop.xlane.xlu1 %1546 }
 0x5dd   :  { %1968 = vmin.xlane.f32.xlu0 %v4616_v18 }
 0x5de   :  { %v4626_v48 = vpop.xlane.xlu1 %2390  ;;  %v264_v2 = vpop.xlane.xlu0 %263 }
 0x5df   :  { %v265_v33 = vcvt.f32.s32 %v264_v2  ;;  %vm2392_vm2 = vcmp.eq.f32.partialorder %v4317_v53, %v4626_v48 }
 0x5e1   :  { %1983 = vmin.xlane.f32.xlu0 %v4628_v11  ;;  %v1088_v11 = vsel %vm1080_vm10, %v3252_v63, 8  ;;  %v282_v63 = vshll.u32 %v281_v32, 16 }
 0x5e2   :  { %v4638_v60 = vpop.xlane.xlu1 %1561  ;;  %v279_v18 = vpop.xlane.xlu0 %278 }
 0x5e3   :  { %v280_v14 = vcvt.f32.s32 %v279_v18  ;;  %v297_v18 = vshll.u32 %v296_v34, 16  ;;  %v5562_v34 = vld [vmem:[#allocation6_spill] sm:$0xff]  ;;  %vm1563_vm10 = vcmp.eq.f32.partialorder %v4334_v39, %v4638_v60 }
 0x5e5   :  { %1998 = vmin.xlane.f32.xlu0 %v4642_v36  ;;  %v4665_v36 = vsel %vm196_vm1, %v1088_v11, 2147483647  ;;  %v283_v26 = vadd.s32 %v282_v63, %v280_v14 }
 0x5e6   :  { %v4651_v49 = vpop.xlane.xlu1 %2405  ;;  %v294_v37 = vpop.xlane.xlu0 %293  ;;  %5560 = vst [vmem:[#allocation58_spill] sm:$0xff] %v4665_v36  ;;  %v1196_v11 = vshra.s32 %v4665_v36, 16  ;;  %v268_v36 = vadd.s32 %v267_v17, %v265_v33  ;;  %v356_v17 = vcvt.f32.s32 %v4305_v40  ;;  %v1180_v40 = vand.u32 65535, %v4396_v42 }
 0x5e7   :  { %v295_v35 = vcvt.f32.s32 %v294_v37  ;;  %v253_v37 = vadd.s32 %v252_v44, %v250_v27  ;;  %v372_v23 = vrot.slane %v283_v26, %v5562_v34  ;;  %vm2407_vm11 = vcmp.eq.f32.partialorder %v4347_v15, %v4651_v49 }
 0x5e8   :  { %v4691_v24 = vcvt.s32.f32 %v1196_v11  ;;  %v368_v33 = vrot.slane %v268_v36, %v5562_v34 }
 0x5e9   :  { %2013 = vmin.xlane.f32.xlu0 %v4654_v31  ;;  %v311_v31 = vcvt.f32.s32 %v4253_v20  ;;  %v4684_v20 = vsel %vm196_vm1, %v1932_v4, 2147483647  ;;  %v364_v14 = vrot.slane %v253_v37, %v5562_v34  ;;  %v1182_v37 = vcvt.s32.f32 %v1180_v40 }
 0x5ea   :  { %v4668_v8 = vpop.xlane.xlu1 %1576  ;;  %v309_v30 = vpop.xlane.xlu0 %308  ;;  %v2040_v4 = vshra.s32 %v4684_v20, 16  ;;  %v694_v40 = vcvt.f32.s32 %v4350_v5 }
 0x5eb   :  { %v310_v2 = vcvt.f32.s32 %v309_v30  ;;  %v312_v16 = vshll.u32 %v311_v31, 16 }
 0x5ec   :  { %v4703_v61 = vcvt.s32.f32 %v2040_v4  ;;  %v695_v5 = vshll.u32 %v694_v40, 16 }
 0x5ed   :  { %1606 = vmin.xlane.f32.xlu0 %v4670_v1  ;;  %v298_v1 = vadd.s32 %v297_v18, %v295_v35  ;;  %v313_v32 = vadd.s32 %v312_v16, %v310_v2 }
 0x5ee   :  { %v4681_v51 = vpop.xlane.xlu1 %2420  ;;  %v324_v54 = vpop.xlane.xlu0 %323 }
 0x5ef   :  { %v325_v25 = vcvt.f32.s32 %v324_v54  ;;  %v376_v13 = vrot.slane %v298_v1, %v5562_v34  ;;  %v380_v11 = vrot.slane %v313_v32, %v5562_v34 }
 0x5f1   :  { %2450 = vmin.xlane.f32.xlu0 %v4686_v9  ;;  %v328_v31 = vadd.s32 %v327_v7, %v325_v25  ;;  %v357_v7 = vshll.u32 %v356_v17, 16 }
 0x5f2   :  { %v4689_v30 = vpop.xlane.xlu1 %1591  ;;  %v339_v59 = vpop.xlane.xlu0 %338 }
 0x5f3   :  { %v340_v63 = vcvt.f32.s32 %v339_v59  ;;  %v394_v59 = vsel %vm393_vm3, %v368_v33, %v364_v14  ;;  %v384_v36 = vrot.slane %v328_v31, %v5562_v34 }
 0x5f4   :  { %v396_v1 = vsel %vm395_vm4, %v372_v23, %v394_v59  ;;  %v5563_v23 = vld [vmem:[#allocation25_spill] sm:$0xff] }
 0x5f5   :  { %v343_v44 = vadd.s32 %v342_v38, %v340_v63  ;;  %1199 = vmin.xlane.f32.xlu0 %v4691_v24  ;;  %v398_v54 = vsel %vm397_vm5, %v376_v13, %v396_v1  ;;  %v1512_v38 = vand.u32 65535, %v4247_v62  ;;  %v1934_v14 = vand.u32 65535, %v5563_v23  ;;  %v5566_v1 = vld [vmem:[#allocation27_spill] sm:$0xff] }
 0x5f6   :  { %v4701_v27 = vpop.xlane.xlu1 %2435  ;;  %v354_v35 = vpop.xlane.xlu0 %353  ;;  %v400_v16 = vsel %vm399_vm6, %v380_v11, %v398_v54  ;;  %vm2362_vm15 = vcmp.eq.f32.partialorder %v5566_v1, %v4602_v50  ;;  %v739_v54 = vcvt.f32.s32 %v4417_v22 }
 0x5f7   :  { %v355_v25 = vcvt.f32.s32 %v354_v35  ;;  %v388_v2 = vrot.slane %v343_v44, %v5562_v34  ;;  %v402_v32 = vsel %vm401_vm7, %v384_v36, %v400_v16  ;;  %v1514_v63 = vcvt.s32.f32 %v1512_v38  ;;  %v5567_v38 = vld [vmem:[#allocation33_spill] sm:$0xff] }
 0x5f8   :  { %v1936_v11 = vcvt.s32.f32 %v1934_v14  ;;  %v2356_v35 = vand.u32 65535, %v5565_v57  ;;  %v679_v36 = vcvt.f32.s32 %v4331_v3 }
 0x5f9   :  { %v358_v18 = vadd.s32 %v357_v7, %v355_v25  ;;  %2043 = vmin.xlane.f32.xlu0 %v4703_v61  ;;  %v404_v17 = vsel %vm403_vm8, %v388_v2, %v402_v32  ;;  %v1519_v13 = vsel %vm1518_vm13, %v1514_v63, inf  ;;  %v709_v7 = vcvt.f32.s32 %v4374_v19 }
 0x5fa   :  { %v4713_v26 = vpop.xlane.xlu1 %1184  ;;  %v677_v42 = vpop.xlane.xlu0 %676  ;;  %v724_v25 = vcvt.f32.s32 %v4393_v46  ;;  %v1542_v32 = vand.u32 65535, %v5567_v38  ;;  %v680_v3 = vshll.u32 %v679_v36, 16  ;;  %v5568_v46 = vld [vmem:[#allocation45_spill] sm:$0xff]  ;;  %vm2422_vm13 = vcmp.eq.f32.partialorder %v4377_v41, %v4681_v51 }
 0x5fb   :  { %v392_v4 = vrot.slane %v358_v18, %v5562_v34  ;;  %vm1186_vm12 = vcmp.eq.f32.partialorder %v4420_v56, %v4713_v26  ;;  %v5564_v56 = vld [vmem:[#allocation24_spill] sm:$0xff]  ;;  %vm1548_vm0 = vcmp.eq.f32.partialorder %v5568_v46, %v4614_v10  ;;  %v5572_v41 = vld [vmem:[#allocation41_spill] sm:$0xff] }
 0x5fc   :  { %v1187_v33 = vsel %vm1186_vm12, %v1182_v37, inf  ;;  %vm1940_vm14 = vcmp.eq.f32.partialorder %v5564_v56, %v4590_v21  ;;  %v2358_v37 = vcvt.s32.f32 %v2356_v35  ;;  %v1544_v14 = vcvt.s32.f32 %v1542_v32 }
 0x5fd   :  { %v406_v31 = vsel %vm405_vm9, %v392_v4, %v404_v17  ;;  %1188 = vmin.xlane.f32.xlu1 %v1187_v33  ;;  %v1941_v59 = vsel %vm1940_vm14, %v1936_v11, inf  ;;  %v678_v4 = vcvt.f32.s32 %v677_v42  ;;  %v710_v17 = vshll.u32 %v709_v7, 16 }
 0x5fe   :  { %407 = vst.msk [vmem:[%s5197_s5] sm:$0xff] %vm196_vm1, %v406_v31  ;;  %v692_v62 = vpop.xlane.xlu0 %691  ;;  %v2363_v33 = vsel %vm2362_vm15, %v2358_v37, inf  ;;  %v725_v31 = vshll.u32 %v724_v25, 16  ;;  %v1549_v35 = vsel %vm1548_vm0, %v1544_v14, inf  ;;  %v1101_v14 = vcvt.f32.s32 %v4465_v29 }
 0x5ff   :  { %v693_v2 = vcvt.f32.s32 %v692_v62  ;;  %v740_v62 = vshll.u32 %v739_v54, 16  ;;  %v681_v11 = vadd.s32 %v680_v3, %v678_v4  ;;  %vm1578_vm12 = vcmp.eq.f32.partialorder %v4362_v58, %v4668_v8 }
 0x600   :  { %vm1593_vm14 = vcmp.eq.f32.partialorder %v5572_v41, %v4689_v30 }
 0x601   :  { %1520 = vmin.xlane.f32.xlu1 %v1519_v13  ;;  %v696_v63 = vadd.s32 %v695_v5, %v693_v2  ;;  %v5569_v13 = vld [vmem:[#allocation39_spill] sm:$0xff]  ;;  %v1557_v2 = vand.u32 65535, %v4308_v43  ;;  %v792_v54 = vrot.slane %v681_v11, %v5562_v34 }
 0x602   :  { %v707_v44 = vpop.xlane.xlu0 %706  ;;  %v2386_v56 = vand.u32 65535, %v5569_v13 }
 0x603   :  { %v708_v18 = vcvt.f32.s32 %v707_v44  ;;  %v754_v44 = vcvt.f32.s32 %v4434_v47  ;;  %v796_v40 = vrot.slane %v696_v63, %v5562_v34  ;;  %v1559_v4 = vcvt.s32.f32 %v1557_v2  ;;  %v5571_v2 = vld [vmem:[#allocation38_spill] sm:$0xff] }
 0x604   :  { %v2388_v1 = vcvt.s32.f32 %v2386_v56 }
 0x605   :  { %1942 = vmin.xlane.f32.xlu1 %v1941_v59  ;;  %v711_v23 = vadd.s32 %v710_v17, %v708_v18  ;;  %v769_v59 = vcvt.f32.s32 %v4449_v55  ;;  %v755_v47 = vshll.u32 %v754_v44, 16  ;;  %v821_v55 = vsel %vm393_vm3, %v796_v40, %v792_v54 }
 0x606   :  { %v722_v16 = vpop.xlane.xlu0 %721  ;;  %v2393_v37 = vsel %vm2392_vm2, %v2388_v1, inf  ;;  %v784_v17 = vcvt.f32.s32 %v4458_v12  ;;  %v1564_v46 = vsel %vm1563_vm10, %v1559_v4, inf  ;;  %v1102_v40 = vshll.u32 %v1101_v14, 16  ;;  %v5575_v4 = vld [vmem:[#allocation23_spill] sm:$0xff]  ;;  %v5579_v14 = vld [vmem:[#allocation17_spill] sm:$0xff] }
 0x607   :  { %v723_v19 = vcvt.f32.s32 %v722_v16  ;;  %v800_v36 = vrot.slane %v711_v23, %v5562_v34  ;;  %v770_v32 = vshll.u32 %v769_v59, 16 }
 0x608   :  { %v785_v12 = vshll.u32 %v784_v17, 16 }
 0x609   :  { %2364 = vmin.xlane.f32.xlu1 %v2363_v33  ;;  %v726_v42 = vadd.s32 %v725_v31, %v723_v19  ;;  %v822_v5 = vsel %vm395_vm4, %v800_v36, %v821_v55  ;;  %v2401_v19 = vand.u32 65535, %v4323_v6  ;;  %v1572_v6 = vand.u32 65535, %v4338_v28 }
 0x60a   :  { %v737_v22 = vpop.xlane.xlu0 %736  ;;  %v1116_v28 = vcvt.f32.s32 %v4473_v52 }
 0x60b   :  { %v738_v57 = vcvt.f32.s32 %v737_v22  ;;  %v804_v18 = vrot.slane %v726_v42, %v5562_v34  ;;  %v2403_v22 = vcvt.s32.f32 %v2401_v19 }
 0x60c   :  { %v1117_v54 = vshll.u32 %v1116_v28, 16 }
 0x60d   :  { %v741_v7 = vadd.s32 %v740_v62, %v738_v57  ;;  %1550 = vmin.xlane.f32.xlu1 %v1549_v35  ;;  %v823_v33 = vsel %vm397_vm5, %v804_v18, %v822_v5  ;;  %v2408_v44 = vsel %vm2407_vm11, %v2403_v22, inf  ;;  %v1574_v57 = vcvt.s32.f32 %v1572_v6 }
 0x60e   :  { %v752_v25 = vpop.xlane.xlu0 %751  ;;  %v2416_v35 = vand.u32 65535, %v4353_v45 }
 0x60f   :  { %v753_v16 = vcvt.f32.s32 %v752_v25  ;;  %v808_v53 = vrot.slane %v741_v7, %v5562_v34  ;;  %v1579_v59 = vsel %vm1578_vm12, %v1574_v57, inf  ;;  %v5570_v25 = vld [vmem:[#allocation7_spill] sm:$0xff] }
 0x610   :  { %v1131_v1 = vcvt.f32.s32 %v5570_v25  ;;  %v2418_v52 = vcvt.s32.f32 %v2416_v35  ;;  %v5582_v25 = vld [vmem:[#allocation9_spill] sm:$0xff] }
 0x611   :  { %v756_v38 = vadd.s32 %v755_v47, %v753_v16  ;;  %2394 = vmin.xlane.f32.xlu1 %v2393_v37  ;;  %v824_v39 = vsel %vm399_vm6, %v808_v53, %v823_v33  ;;  %v1587_v47 = vand.u32 65535, %v5571_v2 }
 0x612   :  { %v767_v43 = vpop.xlane.xlu0 %766  ;;  %v2423_v16 = vsel %vm2422_vm13, %v2418_v52, inf  ;;  %v1132_v37 = vshll.u32 %v1131_v1, 16 }
 0x613   :  { %v812_v3 = vrot.slane %v756_v38, %v5562_v34  ;;  %v768_v31 = vcvt.f32.s32 %v767_v43  ;;  %v1589_v38 = vcvt.s32.f32 %v1587_v47  ;;  %v5574_v43 = vld [vmem:[#allocation2_spill] sm:$0xff] }
 0x614   :  { %vm2763_vm15 = vcmp.ge.f32.partialorder %v5575_v4, %v5574_v43 }
 0x615   :  { %v825_v63 = vsel %vm401_vm7, %v812_v3, %v824_v39  ;;  %v771_v62 = vadd.s32 %v770_v32, %v768_v31  ;;  %1565 = vmin.xlane.f32.xlu1 %v1564_v46  ;;  %v5573_v32 = vld [vmem:[#allocation47_spill] sm:$0xff]  ;;  %v1594_v3 = vsel %vm1593_vm14, %v1589_v38, inf  ;;  %v5576_v31 = vld [vmem:[#allocation46_spill] sm:$0xff] }
 0x616   :  { %v782_v23 = vpop.xlane.xlu0 %781  ;;  %v2431_v5 = vand.u32 65535, %v5573_v32  ;;  %vm2437_vm0 = vcmp.eq.f32.partialorder %v5576_v31, %v4701_v27 }
 0x617   :  { %v816_v13 = vrot.slane %v771_v62, %v5562_v34  ;;  %v783_v56 = vcvt.f32.s32 %v782_v23  ;;  %v5578_v23 = vld [vmem:[#allocation4_spill] sm:$0xff] }
 0x618   :  { %v2771_v22 = vsel %vm2763_vm15, %v5578_v23, 8 }
 0x619   :  { %v826_v15 = vsel %vm403_vm8, %v816_v13, %v825_v63  ;;  %v786_v11 = vadd.s32 %v785_v12, %v783_v56  ;;  %2409 = vmin.xlane.f32.xlu1 %v2408_v44  ;;  %v5577_v63 = vld [vmem:[#allocation11_spill] sm:$0xff]  ;;  %v2433_v12 = vcvt.s32.f32 %v2431_v5  ;;  %v5581_v44 = vld [vmem:[#allocation14_spill] sm:$0xff]  ;;  %v4805_v35 = vsel %vm196_vm1, %v2771_v22, 2147483647 }
 0x61a   :  { %v1099_v42 = vpop.xlane.xlu0 %1098  ;;  %v2957_v62 = vrot.slane %v5577_v63, %v5562_v34  ;;  %v5580_v13 = vld [vmem:[#allocation31_spill] sm:$0xff]  ;;  %v2809_v2 = vshra.s32 %v4805_v35, 16 }
 0x61b   :  { %v820_v29 = vrot.slane %v786_v11, %v5562_v34  ;;  %v1100_v7 = vcvt.f32.s32 %v1099_v42  ;;  %vm2765_vm2 = vcmp.ge.f32.partialorder %v5580_v13, %v5579_v14  ;;  %v2965_v11 = vrot.slane %v5574_v43, %v5562_v34 }
 0x61c   :  { %v2438_v57 = vsel %vm2437_vm0, %v2433_v12, inf  ;;  %v4833_v32 = vcvt.s32.f32 %v2809_v2 }
 0x61d   :  { %v827_v58 = vsel %vm405_vm9, %v820_v29, %v826_v15  ;;  %v1103_v36 = vadd.s32 %v1102_v40, %v1100_v7  ;;  %1580 = vmin.xlane.f32.xlu1 %v1579_v59  ;;  %v2773_v7 = vsel %vm2765_vm2, %v5578_v23, 8 }
 0x61e   :  { %3017 = vst.msk [vmem:[%s5197_s5 + $0x8] sm:$0xff] %vm196_vm1, %v827_v58  ;;  %v1114_v45 = vpop.xlane.xlu0 %1113  ;;  %v4823_v47 = vsel %vm196_vm1, %v2773_v7, 2147483647 }
 0x61f   :  { %v1115_v18 = vcvt.f32.s32 %v1114_v45  ;;  %v1214_v19 = vrot.slane %v1103_v36, %v5562_v34  ;;  %v2973_v45 = vrot.slane %v5579_v14, %v5562_v34  ;;  %v2839_v5 = vshra.s32 %v4823_v47, 16 }
 0x621   :  { %v1118_v53 = vadd.s32 %v1117_v54, %v1115_v18  ;;  %2424 = vmin.xlane.f32.xlu1 %v2423_v16  ;;  %v4846_v63 = vcvt.s32.f32 %v2839_v5 }
 0x622   :  { %v1129_v55 = vpop.xlane.xlu0 %1128 }
 0x623   :  { %v1218_v17 = vrot.slane %v1118_v53, %v5562_v34  ;;  %v1130_v33 = vcvt.f32.s32 %v1129_v55  ;;  %v5583_v53 = vld [vmem:[#allocation16_spill] sm:$0xff]  ;;  %v5584_v55 = vld [vmem:[#allocation30_spill] sm:$0xff] }
 0x624   :  { %v2981_v38 = vrot.slane %v5584_v55, %v5562_v34 }
 0x625   :  { %v1243_v39 = vsel %vm393_vm3, %v1218_v17, %v1214_v19  ;;  %v1133_v46 = vadd.s32 %v1132_v37, %v1130_v33  ;;  %1595 = vmin.xlane.f32.xlu1 %v1594_v3  ;;  %v5585_v3 = vld [vmem:[#allocation15_spill] sm:$0xff] }
 0x626   :  { %v2742_v6 = vpop.xlane.xlu0 %2741  ;;  %v1146_v31 = vcvt.f32.s32 %v5585_v3 }
 0x627   :  { %v1222_v56 = vrot.slane %v1133_v46, %v5562_v34  ;;  %vm2762_vm10 = vcmp.ge.f32.partialorder %v5581_v44, %v2742_v6  ;;  %v2961_v15 = vrot.slane %v2742_v6, %v5562_v34 }
 0x628   :  { %v2770_v42 = vsel %vm2762_vm10, %v5578_v23, 8  ;;  %v1147_v13 = vshll.u32 %v1146_v31, 16  ;;  %v4891_v31 = vpop.xlane.xlu1 %2028 }
 0x629   :  { %v1244_v40 = vsel %vm395_vm4, %v1222_v56, %v1243_v39  ;;  %v4809_v28 = vsel %vm196_vm1, %v2770_v42, 2147483647  ;;  %v2986_v29 = vsel %vm393_vm3, %v2961_v15, %v2957_v62  ;;  %2439 = vmin.xlane.f32.xlu1 %v2438_v57  ;;  %v5586_v39 = vld [vmem:[#allocation8_spill] sm:$0xff] }
 0x62a   :  { %v2987_v59 = vsel %vm395_vm4, %v2965_v11, %v2986_v29  ;;  %v2748_v58 = vpop.xlane.xlu0 %2747  ;;  %v2794_v36 = vshra.s32 %v4809_v28, 16 }
 0x62b   :  { %vm2764_vm11 = vcmp.ge.f32.partialorder %v5582_v25, %v2748_v58  ;;  %v2969_v1 = vrot.slane %v2748_v58, %v5562_v34  ;;  %v5587_v58 = vld [vmem:[#allocation20_spill] sm:$0xff] }
 0x62c   :  { %v4819_v52 = vcvt.s32.f32 %v2794_v36  ;;  %v2772_v18 = vsel %vm2764_vm11, %v5578_v23, 8  ;;  %v1161_v36 = vcvt.f32.s32 %v5587_v58 }
 0x62d   :  { %v2988_v54 = vsel %vm397_vm5, %v2969_v1, %v2987_v59  ;;  %v4837_v43 = vsel %vm196_vm1, %v2772_v18, 2147483647 }
 0x62e   :  { %2797 = vmin.xlane.f32.xlu0 %v4819_v52  ;;  %v2989_v16 = vsel %vm399_vm6, %v2973_v45, %v2988_v54  ;;  %v2754_v41 = vpop.xlane.xlu0 %2753  ;;  %v2824_v62 = vshra.s32 %v4837_v43, 16  ;;  %v1162_v1 = vshll.u32 %v1161_v36, 16  ;;  %v5588_v45 = vld [vmem:[#allocation61_spill] sm:$0xff] }
 0x62f   :  { %vm2766_vm12 = vcmp.ge.f32.partialorder %v5583_v53, %v2754_v41  ;;  %v2977_v37 = vrot.slane %v2754_v41, %v5562_v34  ;;  %v1176_v2 = vcvt.f32.s32 %v5588_v45  ;;  %v5593_v45 = vld [vmem:[#allocation58_spill] sm:$0xff] }
 0x630   :  { %v2774_v19 = vsel %vm2766_vm12, %v5578_v23, 8  ;;  %v4857_v44 = vcvt.s32.f32 %v2824_v62  ;;  %v5589_v62 = vld [vmem:[#allocation53_spill] sm:$0xff] }
 0x631   :  { %v2990_v4 = vsel %vm401_vm7, %v2977_v37, %v2989_v16  ;;  %v4850_v22 = vsel %vm196_vm1, %v2774_v19, 2147483647  ;;  %v1177_v41 = vshll.u32 %v1176_v2, 16  ;;  %v1195_v2 = vand.u32 65535, %v5593_v45 }
 0x632   :  { %2812 = vmin.xlane.f32.xlu0 %v4833_v32  ;;  %v2760_v17 = vpop.xlane.xlu0 %2759  ;;  %v2991_v33 = vsel %vm403_vm8, %v2981_v38, %v2990_v4  ;;  %v2854_v15 = vshra.s32 %v4850_v22, 16 }
 0x633   :  { %vm2768_vm13 = vcmp.ge.f32.partialorder %v5586_v39, %v2760_v17  ;;  %v2985_v46 = vrot.slane %v2760_v17, %v5562_v34 }
 0x634   :  { %v2776_v12 = vsel %vm2768_vm13, %v5578_v23, 8  ;;  %v4865_v29 = vcvt.s32.f32 %v2854_v15  ;;  %v5590_v15 = vld [vmem:[#allocation52_spill] sm:$0xff] }
 0x635   :  { %v4853_v6 = vsel %vm405_vm9, %v2985_v46, %v2991_v33  ;;  %v4861_v11 = vsel %vm196_vm1, %v2776_v12, 2147483647  ;;  %v1602_v12 = vand.u32 65535, %v5589_v62 }
 0x636   :  { %2842 = vmin.xlane.f32.xlu0 %v4846_v63  ;;  %v1144_v14 = vpop.xlane.xlu0 %1143  ;;  %v2884_v23 = vshra.s32 %v4861_v11, 16 }
 0x637   :  { %v1145_v56 = vcvt.f32.s32 %v1144_v14  ;;  %v4898_v14 = vpop.xlane.xlu1 %1621 }
 0x638   :  { %v4870_v59 = vcvt.s32.f32 %v2884_v23 }
 0x639   :  { %v1148_v42 = vadd.s32 %v1147_v13, %v1145_v56  ;;  %v1604_v56 = vcvt.s32.f32 %v1602_v12 }
 0x63a   :  { %2827 = vmin.xlane.f32.xlu0 %v4857_v44 }
 0x63b   :  { %v1226_v57 = vrot.slane %v1148_v42, %v5562_v34  ;;  %v2446_v42 = vand.u32 65535, %v5590_v15  ;;  %v5598_v15 = vld [vmem:[#allocation5_spill] sm:$0xff] }
 0x63d   :  { %v1245_v7 = vsel %vm397_vm5, %v1226_v57, %v1244_v40  ;;  %v5591_v57 = vld [vmem:[#allocation54_spill] sm:$0xff]  ;;  %v2448_v36 = vcvt.s32.f32 %v2446_v42 }
 0x63e   :  { %2857 = vmin.xlane.f32.xlu0 %v4865_v29 }
 0x642   :  { %2887 = vmin.xlane.f32.xlu0 %v4870_v59 }
 0x656   :  { %v1159_v25 = vpop.xlane.xlu0 %1158 }
 0x657   :  { %v1160_v54 = vcvt.f32.s32 %v1159_v25  ;;  %v5592_v25 = vld [vmem:[#allocation35_spill] sm:$0xff] }
 0x659   :  { %v1163_v18 = vadd.s32 %v1162_v1, %v1160_v54  ;;  %v1617_v1 = vand.u32 65535, %v5592_v25 }
 0x65a   :  { %v1174_v16 = vpop.xlane.xlu0 %1173 }
 0x65b   :  { %v1230_v53 = vrot.slane %v1163_v18, %v5562_v34  ;;  %v1175_v37 = vcvt.f32.s32 %v1174_v16  ;;  %v5594_v18 = vld [vmem:[#allocation42_spill] sm:$0xff] }
 0x65c   :  { %vm1623_vm0 = vcmp.eq.f32.partialorder %v5594_v18, %v4898_v14  ;;  %v5601_v18 = vld [vmem:[#allocation10_spill] sm:$0xff] }
 0x65d   :  { %v1246_v40 = vsel %vm399_vm6, %v1230_v53, %v1245_v7  ;;  %v1178_v55 = vadd.s32 %v1177_v41, %v1175_v37  ;;  %v4905_v7 = vpop.xlane.xlu1 %2465  ;;  %v1619_v53 = vcvt.s32.f32 %v1617_v1  ;;  %v1197_v37 = vcvt.s32.f32 %v1195_v2  ;;  %v5600_v1 = vld [vmem:[#allocation29_spill] sm:$0xff] }
 0x65e   :  { %v4877_v38 = vpop.xlane.xlu0 %1531  ;;  %v1949_v45 = vand.u32 65535, %v5600_v1  ;;  %v5605_v1 = vld [vmem:[#allocation37_spill] sm:$0xff] }
 0x65f   :  { %v1234_v5 = vrot.slane %v1178_v55, %v5562_v34  ;;  %v1624_v12 = vsel %vm1623_vm0, %v1619_v53, inf  ;;  %vm1533_vm11 = vcmp.eq.f32.partialorder %v5598_v15, %v4877_v38  ;;  %v5602_v53 = vld [vmem:[#allocation44_spill] sm:$0xff] }
 0x661   :  { %v4881_v4 = vsel %vm401_vm7, %v1234_v5, %v1246_v40  ;;  %v4915_v16 = vpop.xlane.xlu1 %2782  ;;  %v5595_v40 = vld [vmem:[#allocation48_spill] sm:$0xff] }
 0x662   :  { %v4883_v19 = vpop.xlane.xlu0 %1953  ;;  %v2461_v55 = vand.u32 65535, %v5595_v40  ;;  %v5596_v5 = vld [vmem:[#allocation12_spill] sm:$0xff]  ;;  %vm2784_vm12 = vcmp.eq.f32.partialorder %v5601_v18, %v4915_v16 }
 0x663   :  { %v1527_v62 = vand.u32 65535, %v5596_v5  ;;  %vm1955_vm13 = vcmp.eq.f32.partialorder %v5602_v53, %v4883_v19  ;;  %v5603_v5 = vld [vmem:[#allocation19_spill] sm:$0xff] }
 0x665   :  { %v4927_v42 = vpop.xlane.xlu1 %2872 }
 0x666   :  { %v4885_v17 = vpop.xlane.xlu0 %2375 }
 0x66a   :  { %v4887_v33 = vpop.xlane.xlu0 %1968 }
 0x66e   :  { %v4889_v3 = vpop.xlane.xlu0 %1983 }
 0x672   :  { %v4893_v39 = vpop.xlane.xlu0 %1998 }
 0x676   :  { %v4895_v46 = vpop.xlane.xlu0 %2013 }
 0x67a   :  { %v4900_v13 = vpop.xlane.xlu0 %1606 }
 0x67b   :  { %vm1608_vm14 = vcmp.eq.f32.partialorder %v5591_v57, %v4900_v13  ;;  %v2463_v57 = vcvt.s32.f32 %v2461_v55  ;;  %v1951_v55 = vcvt.s32.f32 %v1949_v45 }
 0x67c   :  { %v1609_v23 = vsel %vm1608_vm14, %v1604_v56, inf  ;;  %v5597_v56 = vld [vmem:[#allocation66_spill] sm:$0xff] }
 0x67d   :  { %1610 = vmin.xlane.f32.xlu1 %v1609_v23  ;;  %vm2467_vm10 = vcmp.eq.f32.partialorder %v5597_v56, %v4905_v7  ;;  %v1529_v23 = vcvt.s32.f32 %v1527_v62  ;;  %v2371_v62 = vand.u32 65535, %v5603_v5  ;;  %v1956_v15 = vsel %vm1955_vm13, %v1951_v55, inf }
 0x67e   :  { %v4907_v58 = vpop.xlane.xlu0 %2450  ;;  %v2468_v2 = vsel %vm2467_vm10, %v2463_v57, inf }
 0x67f   :  { %vm2452_vm15 = vcmp.eq.f32.partialorder %v4686_v9, %v4907_v58 }
 0x680   :  { %v2453_v54 = vsel %vm2452_vm15, %v2448_v36, inf  ;;  %v5599_v36 = vld [vmem:[#allocation18_spill] sm:$0xff] }
 0x681   :  { %2454 = vmin.xlane.f32.xlu1 %v2453_v54  ;;  %v2778_v25 = vand.u32 65535, %v5599_v36  ;;  %v1534_v54 = vsel %vm1533_vm11, %v1529_v23, inf  ;;  %v2373_v36 = vcvt.s32.f32 %v2371_v62 }
 0x682   :  { %v4917_v41 = vpop.xlane.xlu0 %1199 }
 0x683   :  { %vm1201_vm2 = vcmp.eq.f32.partialorder %v4691_v24, %v4917_v41  ;;  %v1191_v24 = vcvt.f32.s32 %v4713_v26  ;;  %v2780_v40 = vcvt.s32.f32 %v2778_v25  ;;  %v5604_v26 = vld [vmem:[#allocation59_spill] sm:$0xff]  ;;  %v1945_v25 = vcvt.f32.s32 %v4590_v21  ;;  %v5608_v21 = vld [vmem:[#allocation56_spill] sm:$0xff] }
 0x684   :  { %v1202_v9 = vsel %vm1201_vm2, %v1197_v37, inf  ;;  %vm2377_vm14 = vcmp.eq.f32.partialorder %v5604_v26, %v4885_v17  ;;  %vm1985_vm0 = vcmp.eq.f32.partialorder %v5608_v21, %v4889_v3 }
 0x685   :  { %1625 = vmin.xlane.f32.xlu1 %v1624_v12  ;;  %1203 = vmin.xlane.f32.xlu0 %v1202_v9  ;;  %v1192_v12 = vshll.u32 %v1191_v24, 16  ;;  %v2785_v56 = vsel %vm2784_vm12, %v2780_v40, inf  ;;  %v5606_v24 = vld [vmem:[#allocation21_spill] sm:$0xff]  ;;  %v5607_v40 = vld [vmem:[#allocation50_spill] sm:$0xff]  ;;  %v1946_v5 = vshll.u32 %v1945_v25, 16 }
 0x686   :  { %vm1970_vm15 = vcmp.eq.f32.partialorder %v5606_v24, %v4887_v33  ;;  %v1979_v55 = vand.u32 65535, %v5607_v40  ;;  %v5614_v40 = vld [vmem:[#allocation40_spill] sm:$0xff] }
 0x689   :  { %2469 = vmin.xlane.f32.xlu1 %v2468_v2  ;;  %1535 = vmin.xlane.f32.xlu0 %v1534_v54  ;;  %v1964_v2 = vand.u32 65535, %v5605_v1  ;;  %v2378_v54 = vsel %vm2377_vm14, %v2373_v36, inf  ;;  %v5610_v36 = vld [vmem:[#allocation57_spill] sm:$0xff] }
 0x68a   :  { %v1189_v37 = vpop.xlane.xlu1 %1188  ;;  %vm2000_vm10 = vcmp.eq.f32.partialorder %v5610_v36, %v4893_v39 }
 0x68b   :  { %v1190_v9 = vcvt.f32.s32 %v1189_v37  ;;  %v1966_v37 = vcvt.s32.f32 %v1964_v2  ;;  %v5611_v2 = vld [vmem:[#allocation51_spill] sm:$0xff] }
 0x68c   :  { %v2009_v25 = vand.u32 65535, %v5611_v2  ;;  %v2808_v2 = vand.u32 65535, %v4805_v35  ;;  %v2823_v35 = vand.u32 65535, %v4837_v43 }
 0x68d   :  { %v1193_v57 = vadd.s32 %v1192_v12, %v1190_v9  ;;  %2786 = vmin.xlane.f32.xlu1 %v2785_v56  ;;  %1957 = vmin.xlane.f32.xlu0 %v1956_v15  ;;  %v1971_v12 = vsel %vm1970_vm15, %v1966_v37, inf  ;;  %v3031_v56 = vld [vmem:[%s5194_s1 + $0x38] sm:$0xff]  ;;  %v5609_v15 = vld [vmem:[#allocation63_spill] sm:$0xff] }
 0x68e   :  { %v4939_v23 = vpop.xlane.xlu1 %1520  ;;  %v1994_v26 = vand.u32 65535, %v5609_v15  ;;  %vm2940_vm2 = vcmp.gt.f32.partialorder %v3031_v56, 0.5  ;;  %v2011_v37 = vcvt.s32.f32 %v2009_v25  ;;  %v2039_v56 = vand.u32 65535, %v4684_v20 }
 0x68f   :  { %v1238_v45 = vrot.slane %v1193_v57, %v5562_v34 }
 0x690   :  { %v1996_v1 = vcvt.s32.f32 %v1994_v26  ;;  %v2041_v15 = vcvt.s32.f32 %v2039_v56 }
 0x691   :  { %v4948_v18 = vsel %vm403_vm8, %v1238_v45, %v4881_v4  ;;  %2379 = vmin.xlane.f32.xlu0 %v2378_v54  ;;  %v1981_v4 = vcvt.s32.f32 %v1979_v55  ;;  %v5612_v45 = vmov 0   ;;  %v2024_v55 = vand.u32 65535, %v5614_v40 }
 0x692   :  { %v1943_v53 = vpop.xlane.xlu1 %1942  ;;  %v2941_v54 = vsel %vm2940_vm2, 1, %v5612_v45  ;;  %v2001_v24 = vsel %vm2000_vm10, %v1996_v1, inf  ;;  %v2810_v45 = vcvt.s32.f32 %v2808_v2 }
 0x693   :  { %v1944_v62 = vcvt.f32.s32 %v1943_v53  ;;  %v1986_v57 = vsel %vm1985_vm0, %v1981_v4, inf  ;;  %v5613_v53 = vld [vmem:[#allocation60_spill] sm:$0xff]  ;;  %v2026_v21 = vcvt.s32.f32 %v2024_v55 }
 0x694   :  { %vm2015_vm11 = vcmp.eq.f32.partialorder %v5613_v53, %v4895_v46 }
 0x695   :  { %v4953_v9 = vadd.s32 %v1946_v5, %v1944_v62  ;;  %1972 = vmin.xlane.f32.xlu0 %v1971_v12  ;;  %v2016_v5 = vsel %vm2015_vm11, %v2011_v37, inf  ;;  %v5615_v62 = vld [vmem:[#allocation26_spill] sm:$0xff]  ;;  %v4968_v12 = vpop.xlane.xlu0 %2043  ;;  %v2825_v37 = vcvt.s32.f32 %v2823_v35  ;;  %v2397_v35 = vcvt.f32.s32 %v4626_v48 }
 0x696   :  { %vm2030_vm12 = vcmp.eq.f32.partialorder %v5615_v62, %v4891_v31  ;;  %vm2045_vm13 = vcmp.eq.f32.partialorder %v4703_v61, %v4968_v12  ;;  %v2838_v61 = vand.u32 65535, %v4823_v47  ;;  %v2853_v47 = vand.u32 65535, %v4850_v22  ;;  %v5617_v62 = vld [vmem:[#allocation3_spill] sm:$0xff] }
 0x697   :  { %v2031_v4 = vsel %vm2030_vm12, %v2026_v21, inf  ;;  %v2046_v26 = vsel %vm2045_vm13, %v2041_v15, inf  ;;  %vm2874_vm11 = vcmp.eq.f32.partialorder %v5617_v62, %v4927_v42  ;;  %v1628_v48 = vcvt.f32.s32 %v4898_v14 }
 0x698   :  { %v2855_v55 = vcvt.s32.f32 %v2853_v47  ;;  %v2412_v47 = vcvt.f32.s32 %v4651_v49  ;;  %v1975_v14 = vcvt.f32.s32 %v4887_v33 }
 0x699   :  { %1987 = vmin.xlane.f32.xlu0 %v1986_v57  ;;  %v2793_v57 = vand.u32 65535, %v4809_v28 }
 0x69b   :  { %v2795_v1 = vcvt.s32.f32 %v2793_v57 }
 0x69d   :  { %2002 = vmin.xlane.f32.xlu0 %v2001_v24  ;;  %v2840_v24 = vcvt.s32.f32 %v2838_v61  ;;  %v1523_v61 = vcvt.f32.s32 %v4578_v0  ;;  %v1598_v0 = vcvt.f32.s32 %v4689_v30  ;;  %v1538_v30 = vcvt.f32.s32 %v4877_v38 }
 0x69e   :  { %2943 = vperm.xlu1 %3036, %v2941_v54   ;;  %v1613_v38 = vcvt.f32.s32 %v4900_v13 }
 0x6a1   :  { %2017 = vmin.xlane.f32.xlu0 %v2016_v5  ;;  %v5616_v5 = vld [vmem:[#allocation13_spill] sm:$0xff] }
 0x6a2   :  { %v2868_v43 = vand.u32 65535, %v5616_v5  ;;  %v1524_v5 = vshll.u32 %v1523_v61, 16 }
 0x6a4   :  { %v2870_v22 = vcvt.s32.f32 %v2868_v43 }
 0x6a5   :  { %2032 = vmin.xlane.f32.xlu0 %v2031_v4 }
 0x6a6   :  { %v2875_v56 = vsel %vm2874_vm11, %v2870_v22, inf  ;;  %v5039_v22 = vshll.u32 %v2412_v47, 16 }
 0x6a9   :  { %2047 = vmin.xlane.f32.xlu0 %v2046_v26  ;;  %v5006_v26 = vpop.xlane.xlu1 %2364 }
 0x6bb   :  { %v4974_v36 = vpop.xlane.xlu0 %2797 }
 0x6bc   :  { %vm2799_vm14 = vcmp.eq.f32.partialorder %v4819_v52, %v4974_v36 }
 0x6bd   :  { %v2800_v25 = vsel %vm2799_vm14, %v2795_v1, inf }
 0x6be   :  { %2801 = vmin.xlane.f32.xlu0 %v2800_v25 }
 0x6bf   :  { %v4979_v20 = vpop.xlane.xlu0 %2812 }
 0x6c0   :  { %vm2814_vm15 = vcmp.eq.f32.partialorder %v4833_v32, %v4979_v20 }
 0x6c1   :  { %v2815_v54 = vsel %vm2814_vm15, %v2810_v45, inf }
 0x6c2   :  { %2816 = vmin.xlane.f32.xlu0 %v2815_v54  ;;  %v2367_v54 = vcvt.f32.s32 %v4602_v50  ;;  %v5033_v50 = vshll.u32 %v2397_v35, 16 }
 0x6c3   :  { %v4984_v28 = vpop.xlane.xlu0 %2842 }
 0x6c4   :  { %vm2844_vm0 = vcmp.eq.f32.partialorder %v4846_v63, %v4984_v28  ;;  %v2368_v43 = vshll.u32 %v2367_v54, 16  ;;  %v1629_v54 = vshll.u32 %v1628_v48, 16 }
 0x6c5   :  { %v2845_v52 = vsel %vm2844_vm0, %v2840_v24, inf  ;;  %v1553_v24 = vcvt.f32.s32 %v4614_v10  ;;  %v2442_v10 = vcvt.f32.s32 %v4701_v27  ;;  %v2382_v27 = vcvt.f32.s32 %v4885_v17 }
 0x6c6   :  { %2846 = vmin.xlane.f32.xlu0 %v2845_v52 }
 0x6c7   :  { %v4989_v53 = vpop.xlane.xlu0 %2827  ;;  %v5050_v61 = vshll.u32 %v2442_v10, 16 }
 0x6c8   :  { %vm2829_vm2 = vcmp.eq.f32.partialorder %v4857_v44, %v4989_v53  ;;  %v2883_v44 = vand.u32 65535, %v4861_v11 }
 0x6c9   :  { %v2830_v32 = vsel %vm2829_vm2, %v2825_v37, inf  ;;  %v1568_v37 = vcvt.f32.s32 %v4638_v60 }
 0x6ca   :  { %2831 = vmin.xlane.f32.xlu0 %v2830_v32  ;;  %v2885_v4 = vcvt.s32.f32 %v2883_v44  ;;  %v1583_v32 = vcvt.f32.s32 %v4668_v8  ;;  %v2789_v8 = vcvt.f32.s32 %v4915_v16 }
 0x6cb   :  { %v4994_v40 = vpop.xlane.xlu0 %2857  ;;  %v1569_v60 = vshll.u32 %v1568_v37, 16 }
 0x6cc   :  { %vm2859_vm10 = vcmp.eq.f32.partialorder %v4865_v29, %v4994_v40  ;;  %v1551_v29 = vpop.xlane.xlu1 %1550  ;;  %v1584_v49 = vshll.u32 %v1583_v32, 16  ;;  %v2790_v37 = vshll.u32 %v2789_v8, 16  ;;  %v1539_v32 = vshll.u32 %v1538_v30, 16 }
 0x6cd   :  { %v2860_v63 = vsel %vm2859_vm10, %v2855_v55, inf  ;;  %v2427_v55 = vcvt.f32.s32 %v4681_v51  ;;  %v1206_v51 = vcvt.f32.s32 %v4917_v41  ;;  %v1552_v41 = vcvt.f32.s32 %v1551_v29 }
 0x6ce   :  { %2861 = vmin.xlane.f32.xlu0 %v2860_v63  ;;  %v1554_v63 = vshll.u32 %v1553_v24, 16  ;;  %v1990_v29 = vcvt.f32.s32 %v4889_v3  ;;  %v2366_v8 = vcvt.f32.s32 %v5006_v26 }
 0x6cf   :  { %v5001_v21 = vpop.xlane.xlu0 %2887  ;;  %v5043_v44 = vshll.u32 %v2427_v55, 16  ;;  %v1207_v47 = vshll.u32 %v1206_v51, 16 }
 0x6d0   :  { %vm2889_vm12 = vcmp.eq.f32.partialorder %v4870_v59, %v5001_v21  ;;  %v5008_v57 = vpop.xlane.xlu1 %2394  ;;  %v1555_v16 = vadd.s32 %v1554_v63, %v1552_v41 }
 0x6d1   :  { %v2890_v15 = vsel %vm2889_vm12, %v2885_v4, inf  ;;  %v1599_v4 = vshll.u32 %v1598_v0, 16  ;;  %v5058_v0 = vshll.u32 %v1975_v14, 16  ;;  %v2457_v14 = vcvt.f32.s32 %v4907_v58 }
 0x6d2   :  { %2876 = vmin.xlane.f32.xlu0 %v2875_v56  ;;  %v1960_v56 = vcvt.f32.s32 %v4883_v19 }
 0x6d4   :  { %v5010_v1 = vpop.xlane.xlu1 %1565  ;;  %v1961_v55 = vshll.u32 %v1960_v56, 16  ;;  %v1614_v56 = vshll.u32 %v1613_v38, 16  ;;  %v2058_v38 = vrot.slane %v4953_v9, %v5562_v34 }
 0x6d5   :  { %v1567_v17 = vcvt.f32.s32 %v5010_v1 }
 0x6d6   :  { %2891 = vmin.xlane.f32.xlu0 %v2890_v15  ;;  %v1522_v15 = vcvt.f32.s32 %v4939_v23  ;;  %v5056_v23 = vshll.u32 %v2382_v27, 16 }
 0x6d8   :  { %v5012_v2 = vpop.xlane.xlu1 %2409  ;;  %v1525_v10 = vadd.s32 %v1524_v5, %v1522_v15  ;;  %v2396_v5 = vcvt.f32.s32 %v5008_v57  ;;  %v1570_v15 = vadd.s32 %v1569_v60, %v1567_v17 }
 0x6da   :  { %v1636_v26 = vrot.slane %v1525_v10, %v5562_v34  ;;  %v1648_v9 = vrot.slane %v1570_v15, %v5562_v34 }
 0x6dc   :  { %v5014_v25 = vpop.xlane.xlu1 %1580 }
 0x6dd   :  { %v1582_v33 = vcvt.f32.s32 %v5014_v25 }
 0x6e0   :  { %v5016_v11 = vpop.xlane.xlu1 %2424 }
 0x6e4   :  { %v5018_v45 = vpop.xlane.xlu1 %1595 }
 0x6e5   :  { %v1597_v13 = vcvt.f32.s32 %v5018_v45 }
 0x6e8   :  { %v5020_v59 = vpop.xlane.xlu1 %2439 }
 0x70a   :  { %v5026_v52 = vpop.xlane.xlu1 %1610 }
 0x70b   :  { %v1612_v1 = vcvt.f32.s32 %v5026_v52  ;;  %v5074_v52 = vadd.s32 %v2368_v43, %v2366_v8  ;;  %v2411_v43 = vcvt.f32.s32 %v5012_v2  ;;  %v3033_v2 = vld [vmem:[%s5198_s3] ss:$0 sm:$0xff] }
 0x70d   :  { %v1615_v60 = vadd.s32 %v1614_v56, %v1612_v1 }
 0x70e   :  { %v5037_v62 = vpop.xlane.xlu1 %2454 }
 0x712   :  { %v1626_v24 = vpop.xlane.xlu1 %1625  ;;  %v1204_v35 = vpop.xlane.xlu0 %1203 }
 0x713   :  { %v1205_v19 = vcvt.f32.s32 %v1204_v35  ;;  %v1585_v35 = vadd.s32 %v1584_v49, %v1582_v33  ;;  %v1627_v63 = vcvt.f32.s32 %v1626_v24 }
 0x715   :  { %v1208_v48 = vadd.s32 %v1207_v47, %v1205_v19  ;;  %v1644_v47 = vrot.slane %v1555_v16, %v5562_v34  ;;  %v1600_v19 = vadd.s32 %v1599_v4, %v1597_v13  ;;  %v1652_v4 = vrot.slane %v1585_v35, %v5562_v34 }
 0x716   :  { %v5063_v51 = vpop.xlane.xlu1 %2469  ;;  %v1536_v30 = vpop.xlane.xlu0 %1535  ;;  %v1630_v16 = vadd.s32 %v1629_v54, %v1627_v63  ;;  %v2441_v13 = vcvt.f32.s32 %v5020_v59  ;;  %v1660_v54 = vrot.slane %v1615_v60, %v5562_v34  ;;  %v5618_v59 = vld [vmem:[#allocation22_spill] sm:$0xff]  ;;  %v2414_v63 = vadd.s32 %v5039_v22, %v2411_v43 }
 0x717   :  { %v1242_v25 = vrot.slane %v1208_v48, %v5562_v34  ;;  %v1537_v27 = vcvt.f32.s32 %v1536_v30  ;;  %v2426_v48 = vcvt.f32.s32 %v5016_v11  ;;  %v1656_v8 = vrot.slane %v1600_v19, %v5562_v34 }
 0x718   :  { %v2456_v11 = vcvt.f32.s32 %v5037_v62  ;;  %v2458_v19 = vshll.u32 %v2457_v14, 16  ;;  %v5619_v22 = vcvt.f32.s32 %v4905_v7  ;;  %v1991_v14 = vshll.u32 %v1990_v29, 16 }
 0x719   :  { %v1249_v45 = vsel %vm405_vm9, %v1242_v25, %v4948_v18  ;;  %v1540_v41 = vadd.s32 %v1539_v32, %v1537_v27  ;;  %v2399_v32 = vadd.s32 %v5033_v50, %v2396_v5  ;;  %v1664_v5 = vrot.slane %v1630_v16, %v5562_v34 }
 0x71a   :  { %3020 = vst.msk [vmem:[%s5197_s5 + $0x10] sm:$0xff] %vm196_vm1, %v1249_v45  ;;  %v2787_v58 = vpop.xlane.xlu1 %2786  ;;  %v1958_v57 = vpop.xlane.xlu0 %1957  ;;  %v2471_v45 = vcvt.f32.s32 %v5063_v51  ;;  %v2480_v51 = vrot.slane %v5074_v52, %v5562_v34  ;;  %v2492_v52 = vrot.slane %v2414_v63, %v5562_v34  ;;  %v2050_v63 = vcvt.f32.s32 %v4968_v12 }
 0x71b   :  { %v1640_v49 = vrot.slane %v1540_v41, %v5562_v34  ;;  %v2788_v18 = vcvt.f32.s32 %v2787_v58  ;;  %v1959_v24 = vcvt.f32.s32 %v1958_v57  ;;  %v2473_v57 = vshll.u32 %v5619_v22, 16 }
 0x71c   :  { %v2488_v60 = vrot.slane %v2399_v32, %v5562_v34  ;;  %v2804_v12 = vcvt.f32.s32 %v4974_v36 }
 0x71d   :  { %v1665_v17 = vsel %vm393_vm3, %v1640_v49, %v1636_v26  ;;  %v5087_v33 = vadd.s32 %v2790_v37, %v2788_v18  ;;  %v1962_v10 = vadd.s32 %v1961_v55, %v1959_v24  ;;  %v2459_v49 = vadd.s32 %v2458_v19, %v2456_v11 }
 0x71e   :  { %v1666_v50 = vsel %vm395_vm4, %v1644_v47, %v1665_v17  ;;  %v2944_v30 = vpop.permute.xlu1 %2943  ;;  %v2380_v56 = vpop.xlane.xlu0 %2379  ;;  %v2005_v18 = vcvt.f32.s32 %v4893_v39 }
 0x71f   :  { %v1667_v37 = vsel %vm397_vm5, %v1648_v9, %v1666_v50  ;;  %v2062_v55 = vrot.slane %v1962_v10, %v5562_v34  ;;  %vm2945_vm13 = vcmp.eq.s32.totalorder %v2944_v30, 1  ;;  %v2381_v27 = vcvt.f32.s32 %v2380_v56 }
 0x720   :  { %v1668_v1 = vsel %vm399_vm6, %v1652_v4, %v1667_v37  ;;  %v2994_v25 = vsel %vm2945_vm13, %v4853_v6, %v5618_v59  ;;  %v2429_v6 = vadd.s32 %v5043_v44, %v2426_v48  ;;  %v2006_v48 = vshll.u32 %v2005_v18, 16 }
 0x721   :  { %v1669_v15 = vsel %vm401_vm7, %v1656_v8, %v1668_v1  ;;  %v2087_v35 = vsel %vm393_vm3, %v2062_v55, %v2058_v38  ;;  %v3002_v26 = vadd.f32 %v3033_v2, %v2994_v25  ;;  %v2384_v62 = vadd.s32 %v5056_v23, %v2381_v27 }
 0x722   :  { %v1670_v41 = vsel %vm403_vm8, %v1660_v54, %v1669_v15  ;;  %v1973_v47 = vpop.xlane.xlu0 %1972  ;;  %v2444_v23 = vadd.s32 %v5050_v61, %v2441_v13  ;;  %v2474_v61 = vadd.s32 %v2473_v57, %v2471_v45  ;;  %v2496_v43 = vrot.slane %v2429_v6, %v5562_v34 }
 0x723   :  { %v1671_v58 = vsel %vm405_vm9, %v1664_v5, %v1670_v41  ;;  %3003 = vst.msk [vmem:[%s5199_s6] sm:$0xff] %vm196_vm1, %v3002_v26  ;;  %v1974_v38 = vcvt.f32.s32 %v1973_v47  ;;  %v2484_v44 = vrot.slane %v2384_v62, %v5562_v34  ;;  %v2020_v2 = vcvt.f32.s32 %v4895_v46 }
 0x724   :  { %3023 = vst.msk [vmem:[%s5197_s5 + $0x18] sm:$0xff] %vm196_vm1, %v1671_v58  ;;  %v2500_v32 = vrot.slane %v2444_v23, %v5562_v34  ;;  %v2508_v8 = vrot.slane %v2474_v61, %v5562_v34  ;;  %v2035_v59 = vcvt.f32.s32 %v4891_v31  ;;  %v2051_v6 = vshll.u32 %v2050_v63, 16 }
 0x725   :  { %v1977_v7 = vadd.s32 %v5058_v0, %v1974_v38  ;;  %v2509_v24 = vsel %vm393_vm3, %v2484_v44, %v2480_v51  ;;  %v2504_v0 = vrot.slane %v2459_v49, %v5562_v34  ;;  %v2021_v25 = vshll.u32 %v2020_v2, 16 }
 0x726   :  { %v1988_v9 = vpop.xlane.xlu0 %1987  ;;  %v2510_v4 = vsel %vm395_vm4, %v2488_v60, %v2509_v24  ;;  %v2036_v26 = vshll.u32 %v2035_v59, 16  ;;  %v2805_v44 = vshll.u32 %v2804_v12, 16 }
 0x727   :  { %v2066_v3 = vrot.slane %v1977_v7, %v5562_v34  ;;  %v1989_v29 = vcvt.f32.s32 %v1988_v9  ;;  %v2511_v16 = vsel %vm397_vm5, %v2492_v52, %v2510_v4  ;;  %v2902_v52 = vrot.slane %v5087_v33, %v5562_v34 }
 0x728   :  { %v2512_v39 = vsel %vm399_vm6, %v2496_v43, %v2511_v16  ;;  %v2849_v4 = vcvt.f32.s32 %v4984_v28  ;;  %v2864_v33 = vcvt.f32.s32 %v4994_v40  ;;  %v2894_v40 = vcvt.f32.s32 %v5001_v21 }
 0x729   :  { %v2088_v17 = vsel %vm395_vm4, %v2066_v3, %v2087_v35  ;;  %v1992_v10 = vadd.s32 %v1991_v14, %v1989_v29  ;;  %v2513_v13 = vsel %vm401_vm7, %v2500_v32, %v2512_v39  ;;  %v2819_v14 = vcvt.f32.s32 %v4979_v20 }
 0x72a   :  { %v2003_v50 = vpop.xlane.xlu0 %2002  ;;  %v2514_v30 = vsel %vm403_vm8, %v2504_v0, %v2513_v13  ;;  %v2834_v3 = vcvt.f32.s32 %v4989_v53  ;;  %v2850_v16 = vshll.u32 %v2849_v4, 16  ;;  %v2879_v13 = vcvt.f32.s32 %v4927_v42 }
 0x72b   :  { %v2070_v56 = vrot.slane %v1992_v10, %v5562_v34  ;;  %v2004_v54 = vcvt.f32.s32 %v2003_v50  ;;  %v2515_v37 = vsel %vm405_vm9, %v2508_v8, %v2514_v30  ;;  %v2820_v18 = vshll.u32 %v2819_v14, 16 }
 0x72c   :  { %3029 = vst.msk [vmem:[%s5197_s5 + $0x28] sm:$0xff] %vm196_vm1, %v2515_v37  ;;  %v2835_v39 = vshll.u32 %v2834_v3, 16  ;;  %v2865_v28 = vshll.u32 %v2864_v33, 16 }
 0x72d   :  { %v2089_v55 = vsel %vm397_vm5, %v2070_v56, %v2088_v17  ;;  %v2007_v11 = vadd.s32 %v2006_v48, %v2004_v54 }
 0x72e   :  { %v2018_v1 = vpop.xlane.xlu0 %2017 }
 0x72f   :  { %v2074_v46 = vrot.slane %v2007_v11, %v5562_v34  ;;  %v2019_v27 = vcvt.f32.s32 %v2018_v1 }
 0x731   :  { %v2090_v5 = vsel %vm399_vm6, %v2074_v46, %v2089_v55  ;;  %v2022_v15 = vadd.s32 %v2021_v25, %v2019_v27  ;;  %v2880_v55 = vshll.u32 %v2879_v13, 16  ;;  %v2895_v46 = vshll.u32 %v2894_v40, 16 }
 0x732   :  { %v2033_v35 = vpop.xlane.xlu0 %2032 }
 0x733   :  { %v2078_v45 = vrot.slane %v2022_v15, %v5562_v34  ;;  %v2034_v41 = vcvt.f32.s32 %v2033_v35 }
 0x735   :  { %v2091_v62 = vsel %vm401_vm7, %v2078_v45, %v2090_v5  ;;  %v2037_v47 = vadd.s32 %v2036_v26, %v2034_v41 }
 0x736   :  { %v2048_v19 = vpop.xlane.xlu0 %2047 }
 0x737   :  { %v2082_v31 = vrot.slane %v2037_v47, %v5562_v34  ;;  %v2049_v58 = vcvt.f32.s32 %v2048_v19 }
 0x739   :  { %v2092_v38 = vsel %vm403_vm8, %v2082_v31, %v2091_v62  ;;  %v2052_v22 = vadd.s32 %v2051_v6, %v2049_v58 }
 0x73b   :  { %v2086_v57 = vrot.slane %v2052_v22, %v5562_v34 }
 0x73d   :  { %v2093_v51 = vsel %vm405_vm9, %v2086_v57, %v2092_v38 }
 0x73e   :  { %3026 = vst.msk [vmem:[%s5197_s5 + $0x20] sm:$0xff] %vm196_vm1, %v2093_v51 }
 0x74b   :  { %v2802_v23 = vpop.xlane.xlu0 %2801 }
 0x74c   :  { %v2803_v60 = vcvt.f32.s32 %v2802_v23 }
 0x74e   :  { %v2806_v49 = vadd.s32 %v2805_v44, %v2803_v60 }
 0x74f   :  { %v2817_v7 = vpop.xlane.xlu0 %2816 }
 0x750   :  { %v2906_v61 = vrot.slane %v2806_v49, %v5562_v34  ;;  %v2818_v24 = vcvt.f32.s32 %v2817_v7 }
 0x752   :  { %v2931_v9 = vsel %vm393_vm3, %v2906_v61, %v2902_v52  ;;  %v2821_v43 = vadd.s32 %v2820_v18, %v2818_v24 }
 0x753   :  { %v2847_v36 = vpop.xlane.xlu0 %2846 }
 0x754   :  { %v2910_v20 = vrot.slane %v2821_v43, %v5562_v34  ;;  %v2848_v29 = vcvt.f32.s32 %v2847_v36 }
 0x756   :  { %v2932_v32 = vsel %vm395_vm4, %v2910_v20, %v2931_v9  ;;  %v2851_v10 = vadd.s32 %v2850_v16, %v2848_v29 }
 0x757   :  { %v2832_v0 = vpop.xlane.xlu0 %2831 }
 0x758   :  { %v2833_v17 = vcvt.f32.s32 %v2832_v0  ;;  %v2918_v2 = vrot.slane %v2851_v10, %v5562_v34 }
 0x75a   :  { %v2836_v48 = vadd.s32 %v2835_v39, %v2833_v17 }
 0x75b   :  { %v2862_v8 = vpop.xlane.xlu0 %2861 }
 0x75c   :  { %v2914_v50 = vrot.slane %v2836_v48, %v5562_v34  ;;  %v2863_v53 = vcvt.f32.s32 %v2862_v8 }
 0x75e   :  { %v2933_v30 = vsel %vm397_vm5, %v2914_v50, %v2932_v32  ;;  %v2866_v56 = vadd.s32 %v2865_v28, %v2863_v53 }
 0x75f   :  { %v2934_v54 = vsel %vm399_vm6, %v2918_v2, %v2933_v30  ;;  %v2877_v37 = vpop.xlane.xlu0 %2876 }
 0x760   :  { %v2922_v11 = vrot.slane %v2866_v56, %v5562_v34  ;;  %v2878_v1 = vcvt.f32.s32 %v2877_v37 }
 0x762   :  { %v2935_v42 = vsel %vm401_vm7, %v2922_v11, %v2934_v54  ;;  %v2881_v59 = vadd.s32 %v2880_v55, %v2878_v1 }
 0x763   :  { %v2892_v25 = vpop.xlane.xlu0 %2891 }
 0x764   :  { %v2926_v27 = vrot.slane %v2881_v59, %v5562_v34  ;;  %v2893_v5 = vcvt.f32.s32 %v2892_v25 }
 0x766   :  { %v2936_v15 = vsel %vm403_vm8, %v2926_v27, %v2935_v42  ;;  %v2896_v35 = vadd.s32 %v2895_v46, %v2893_v5 }
 0x768   :  { %v2930_v26 = vrot.slane %v2896_v35, %v5562_v34 }
 0x76a   :  { %v2937_v63 = vsel %vm405_vm9, %v2930_v26, %v2936_v15 }
 0x76b   :  { %3032 = vst.msk [vmem:[%s5197_s5 + $0x30] sm:$0xff] %vm196_vm1, %v2937_v63 }

</bundles_post_ra>
